<compile_context>
chip_gen: v5e
topology: v5e:2x2
jax: 0.10.0
libtpu: 0.0.40
codegen_flags: <defaults>
</compile_context>

<pallas_src>
import jax
import jax.numpy as jnp
from jax.experimental import pallas as pl
from jax.experimental.pallas import tpu as pltpu


_PARAM_ORDER = ("g1", "c1", "w1", "b1", "w2", "b2", "w3", "b3")


def _full_spec(shape):
    return pl.BlockSpec(shape, lambda n, _nd=len(shape): (0,) * _nd)


# -----------------------------------------------------------------------------
# Fused branch kernel: applies num_blocks pre-activation Bottleneck blocks to one
# image, entirely in VMEM.  Optional fused entry max-pool ("pool") or fused exit
# nearest-2x upsample + add ("upadd").
#
# Bottleneck (stride=1, identity residual, conv2 depthwise via groups=planes):
#   out = x + conv1x1( relu( bn3( dwconv3x3( relu( bn2( conv1x1( relu(bn1(x)) )))))))
# with bn2 folded into (w1,b1) and bn3 folded into (w2,b2).
# -----------------------------------------------------------------------------
def _make_branch_kernel(num_blocks, h, w, C, P, mode, padr):
    HW = h * w
    w_pow2 = (w & (w - 1)) == 0

    def kernel(*refs):
        i = 0
        x_ref = refs[i]; i += 1
        up1_ref = dup_ref = None
        if mode == "upadd":
            up1_ref = refs[i]; i += 1
            dup_ref = refs[i]; i += 1
        g1s, c1s, w1s, b1s, w2s, b2s, w3s, b3s = refs[i:i + 8]
        i += 8
        o_ref = refs[i]; i += 1
        pad_ref = refs[i]; i += 1
        pool_ref = ups_ref = None
        if mode == "pool":
            pool_ref = refs[i]
        elif mode == "upadd":
            ups_ref = refs[i]

        f32 = jnp.float32

        # Zero only the two halo regions of the depthwise scratch, once per image.
        pad_ref[0:padr, :] = jnp.zeros((padr, P), f32)
        pad_ref[padr + HW:padr + HW + padr, :] = jnp.zeros((padr, P), f32)

        # Row-boundary masks for the horizontal taps of the 3x3 stencil (the
        # vertical taps need no mask: they land in the zeroed halo).
        rows = jax.lax.broadcasted_iota(jnp.int32, (HW, P), 0)
        col = (rows & (w - 1)) if w_pow2 else (rows % w)
        not_first = col != 0
        not_last = col != (w - 1)

        # Working activation, flat (HW, C), channels on lanes.
        if mode == "pool":
            # Fused 2x2 max-pool.  Input is the full-res plane in the
            # column-paired view (2*HW, 2C): lanes [0:C]/[C:2C] hold the
            # even/odd columns of each horizontal pair.
            for r in range(h):
                ev = x_ref[0, (2 * r) * w:(2 * r + 1) * w, :]
                od = x_ref[0, (2 * r + 1) * w:(2 * r + 2) * w, :]
                m = jnp.maximum(ev, od)
                pool_ref[r * w:(r + 1) * w, :] = jnp.maximum(m[:, :C], m[:, C:])
            x = pool_ref[...]
        else:
            x = x_ref[0]

        for b in range(num_blocks):
            g1 = g1s[b]
            c1 = c1s[b]
            w1 = w1s[b]
            b1 = b1s[b]
            b2 = b2s[b]
            w3 = w3s[b]
            b3 = b3s[b]

            # bn1 + relu, then 1x1 conv on the MXU (bn2 pre-folded into w1/b1).
            h1 = jnp.maximum(x * g1 + c1, 0.0)
            a1 = jnp.maximum(
                jnp.dot(h1, w1, preferred_element_type=f32) + b1, 0.0)   # (HW, P)

            # Depthwise 3x3, padding=1, in flat space: store once into the
            # sublane-aligned interior of the halo scratch, then 9 whole-plane
            # shifted multiply-adds (vertical shifts = +-w, horizontal = +-1).
            pad_ref[padr:padr + HW, :] = a1
            part = [None, None, None]
            for kx in range(3):
                acc = None
                for ky in range(3):
                    s = (ky - 1) * w + (kx - 1)
                    tap = pad_ref[padr + s:padr + s + HW, :] * w2s[b, ky, kx]
                    acc = tap if acc is None else acc + tap
                part[kx] = acc
            part[0] = jnp.where(not_first, part[0], 0.0)
            part[2] = jnp.where(not_last, part[2], 0.0)

            # bn3 pre-folded into w2/b2; relu; final 1x1 conv (MXU); residual.
            h3 = jnp.maximum(part[0] + part[1] + part[2] + b2, 0.0)       # (HW, P)
            y3 = jnp.dot(h3, w3, preferred_element_type=f32) + b3         # (HW, C)
            x = x + y3

        if mode == "upadd":
            # Fused nearest-neighbour 2x upsample + add.  Duplicate channels
            # across the column-pair lanes with a tiny MXU matmul, then write
            # each source row into its two destination rows while adding up1
            # (already supplied in the paired (2*HW, 2C) layout).
            ups_ref[...] = jnp.dot(x, dup_ref[...], preferred_element_type=f32)
            for r in range(h):
                blk = ups_ref[r * w:(r + 1) * w, :]                        # (w, 2C)
                base = 2 * r * w
                o_ref[0, base:base + w, :] = up1_ref[0, base:base + w, :] + blk
                o_ref[0, base + w:base + 2 * w, :] = (
                    up1_ref[0, base + w:base + 2 * w, :] + blk)
        else:
            o_ref[0] = x

    return kernel


def branch_apply(bp, x_in, h, w, mode="plain", up1_paired=None, dup=None):
    """Apply one hourglass branch (num_blocks bottlenecks) as one pallas_call.

    bp: dict of stacked per-block params (leading dim = num_blocks).
    h, w: the resolution the bottleneck blocks run at.
    mode: "plain"  -> x_in is (N, h*w, C), output (N, h*w, C)
          "pool"   -> x_in is the full-res (2h, 2w) plane in the paired view
                      (N, 2*h*w, 2C); a 2x2 max-pool is fused at the entry.
          "upadd"  -> x_in is (N, h*w, C); up1_paired is (N, 2*h*w, 2C); output
                      is up1 + nearest_2x_upsample(branch(x)) in the paired view.
    """
    N = x_in.shape[0]
    num_blocks, C, P = bp["w1"].shape
    HW = h * w
    padr = ((w + 1 + 7) // 8) * 8  # halo length, sublane-aligned, >= w + 1

    kernel = _make_branch_kernel(num_blocks, h, w, C, P, mode, padr)

    arrays = [x_in]
    if mode == "pool":
        in_specs = [pl.BlockSpec((1, 2 * HW, 2 * C), lambda n: (n, 0, 0))]
    else:
        in_specs = [pl.BlockSpec((1, HW, C), lambda n: (n, 0, 0))]
    if mode == "upadd":
        arrays += [up1_paired, dup]
        in_specs += [pl.BlockSpec((1, 2 * HW, 2 * C), lambda n: (n, 0, 0)),
                     _full_spec(dup.shape)]
    for k in _PARAM_ORDER:
        arrays.append(bp[k])
        in_specs.append(_full_spec(bp[k].shape))

    if mode == "upadd":
        out_shape = jax.ShapeDtypeStruct((N, 2 * HW, 2 * C), jnp.float32)
        out_spec = pl.BlockSpec((1, 2 * HW, 2 * C), lambda n: (n, 0, 0))
    else:
        out_shape = jax.ShapeDtypeStruct((N, HW, C), jnp.float32)
        out_spec = pl.BlockSpec((1, HW, C), lambda n: (n, 0, 0))

    scratch = [pltpu.VMEM((HW + 2 * padr, P), jnp.float32)]
    if mode == "pool":
        scratch.append(pltpu.VMEM((HW, C), jnp.float32))
    elif mode == "upadd":
        scratch.append(pltpu.VMEM((HW, 2 * C), jnp.float32))

    return pl.pallas_call(
        kernel,
        out_shape=out_shape,
        grid=(N,),
        in_specs=in_specs,
        out_specs=out_spec,
        scratch_shapes=scratch,
        compiler_params=pltpu.CompilerParams(dimension_semantics=("parallel",)),
    )(*arrays)


# -----------------------------------------------------------------------------
# Hourglass forward (mirrors Hourglass._hour_glass_forward).
# params[i] = list of 3 (or 4 at i==0) branches; each branch is a dict of
# stacked per-block parameter arrays.
# -----------------------------------------------------------------------------
def hourglass_forward(params, x):
    N, H, W, C = x.shape
    depth = len(params)
    eye = jnp.eye(C, dtype=jnp.float32)
    dup = jnp.concatenate([eye, eye], axis=1)               # (C, 2C) lane-duplicator

    def paired(a_flat, hh, ww):
        # (N, hh*ww, C) -> (N, hh*(ww//2), 2C); free row-major reshape.
        return a_flat.reshape(N, hh * (ww // 2), 2 * C)

    def level(n, x_flat, hh, ww):
        lev = params[n - 1]
        h2, w2 = hh // 2, ww // 2
        up1 = branch_apply(lev[0], x_flat, hh, ww, mode="plain")
        low1 = branch_apply(lev[1], paired(x_flat, hh, ww), h2, w2, mode="pool")
        if n > 1:
            low2 = level(n - 1, low1, h2, w2)
        else:
            low2 = branch_apply(lev[3], low1, h2, w2, mode="plain")
        out_paired = branch_apply(lev[2], low2, h2, w2, mode="upadd",
                                  up1_paired=paired(up1, hh, ww), dup=dup)
        return out_paired.reshape(N, hh * ww, C)

    y = level(depth, x.reshape(N, H * W, C), H, W)
    return y.reshape(N, H, W, C)


# -----------------------------------------------------------------------------
# Deterministic synthetic parameter init (no checkpoints).  BN2/BN3 are folded
# into the adjacent conv weights/biases here (host side), BN1 stays as a
# per-channel scale/shift applied in-kernel.
# -----------------------------------------------------------------------------
def init_hourglass_params(key, planes, depth, num_blocks):
    C = 2 * planes  # Bottleneck.expansion == 2 (identity residual holds inside HG)
    P = planes
    eps = 1e-5
    inv = 1.0 / jnp.sqrt(1.0 + eps)  # fold BN eps with running_var = 1, mean = 0

    def init_block(k):
        ks = jax.random.split(k, 12)

        def u(kk, shape, s):
            return jax.random.uniform(kk, shape, jnp.float32, -s, s)

        # BN1 (applied to x inside the kernel).
        g1 = (1.0 + u(ks[0], (C,), 0.1)) * inv
        c1 = u(ks[1], (C,), 0.1)
        # conv1: 1x1, C -> P, with BN2 folded in.
        w1 = u(ks[2], (C, P), 0.25)
        b1 = u(ks[3], (P,), 0.05)
        g2 = (1.0 + u(ks[4], (P,), 0.1)) * inv
        c2 = u(ks[5], (P,), 0.1)
        w1 = w1 * g2[None, :]
        b1 = b1 * g2 + c2
        # conv2: depthwise 3x3 (groups=planes), with BN3 folded in.
        w2 = u(ks[6], (3, 3, P), 0.25)
        b2 = u(ks[7], (P,), 0.05)
        g3 = (1.0 + u(ks[8], (P,), 0.1)) * inv
        c3 = u(ks[9], (P,), 0.1)
        w2 = w2 * g3[None, None, :]
        b2 = b2 * g3 + c3
        # conv3: 1x1, P -> C.
        w3 = u(ks[10], (P, C), 0.25)
        b3 = u(ks[11], (C,), 0.05)
        return dict(g1=g1, c1=c1, w1=w1, b1=b1, w2=w2, b2=b2, w3=w3, b3=b3)

    def stack_blocks(blocks):
        return {k: jnp.stack([blk[k] for blk in blocks]) for k in _PARAM_ORDER}

    params = []
    for i in range(depth):
        n_branches = 4 if i == 0 else 3
        branches = []
        for _ in range(n_branches):
            blocks = []
            for _ in range(num_blocks):
                key, sub = jax.random.split(key)
                blocks.append(init_block(sub))
            branches.append(stack_blocks(blocks))
        params.append(branches)
    return params


if __name__ == "__main__":
    # Small config consistent with Hourglass(Bottleneck, num_blocks, planes, depth):
    #   planes=8 -> channels = planes * expansion = 16; depth=2; num_blocks=1.
    batch, planes, depth, num_blocks = 2, 8, 2, 1
    H = W = 16
    C = 2 * planes

    key = jax.random.PRNGKey(0)
    kx, kp = jax.random.split(key)

    # PyTorch-style NCHW input, transposed to the kernels' NHWC layout.
    x_nchw = jax.random.normal(kx, (batch, C, H, W), jnp.float32)
    x = jnp.transpose(x_nchw, (0, 2, 3, 1))   # NHWC

    params = init_hourglass_params(kp, planes, depth, num_blocks)

    fwd = jax.jit(hourglass_forward)
    out = jax.block_until_ready(fwd(params, x))

    assert out.shape == (batch, H, W, C), out.shape
    assert bool(jnp.all(jnp.isfinite(out)))
    print("KERNEL_OK")
</pallas_src>

<mosaic_0001>
module attributes {stable_mosaic.version = 11 : i64} {
  func.func @kernel(%arg0: i32, %arg1: memref<1x128x32xf32, #tpu.memory_space<vmem>>, %arg2: memref<1x16xf32, #tpu.memory_space<vmem>>, %arg3: memref<1x16xf32, #tpu.memory_space<vmem>>, %arg4: memref<1x16x8xf32, #tpu.memory_space<vmem>>, %arg5: memref<1x8xf32, #tpu.memory_space<vmem>>, %arg6: memref<1x3x3x8xf32, #tpu.memory_space<vmem>>, %arg7: memref<1x8xf32, #tpu.memory_space<vmem>>, %arg8: memref<1x8x16xf32, #tpu.memory_space<vmem>>, %arg9: memref<1x16xf32, #tpu.memory_space<vmem>>, %arg10: memref<1x64x16xf32, #tpu.memory_space<vmem>>, %arg11: memref<96x8xf32, #tpu.memory_space<vmem>>, %arg12: memref<64x16xf32, #tpu.memory_space<vmem>>) attributes {dimension_semantics = [#tpu.dimension_semantics<parallel>], iteration_bounds = array<i64: 2>, scalar_prefetch = 0 : i64, scratch_operands = 2 : i64, tpu.core_type = #tpu.core_type<tc>, window_params = [{transform_indices = @transform_0, window_bounds = array<i64: 1, 128, 32>}, {pipeline_mode = #tpu.pipeline_mode<synchronous>, transform_indices = @transform_1, window_bounds = array<i64: 1, 16>}, {pipeline_mode = #tpu.pipeline_mode<synchronous>, transform_indices = @transform_2, window_bounds = array<i64: 1, 16>}, {pipeline_mode = #tpu.pipeline_mode<synchronous>, transform_indices = @transform_3, window_bounds = array<i64: 1, 16, 8>}, {pipeline_mode = #tpu.pipeline_mode<synchronous>, transform_indices = @transform_4, window_bounds = array<i64: 1, 8>}, {pipeline_mode = #tpu.pipeline_mode<synchronous>, transform_indices = @transform_5, window_bounds = array<i64: 1, 3, 3, 8>}, {pipeline_mode = #tpu.pipeline_mode<synchronous>, transform_indices = @transform_6, window_bounds = array<i64: 1, 8>}, {pipeline_mode = #tpu.pipeline_mode<synchronous>, transform_indices = @transform_7, window_bounds = array<i64: 1, 8, 16>}, {pipeline_mode = #tpu.pipeline_mode<synchronous>, transform_indices = @transform_8, window_bounds = array<i64: 1, 16>}, {transform_indices = @transform_9, window_bounds = array<i64: 1, 64, 16>}]} {
    %cst = arith.constant 0.000000e+00 : f32
    %0 = vector.broadcast %cst : f32 to vector<16x8xf32>
    %c0 = arith.constant 0 : index
    %c0_0 = arith.constant 0 : index
    %1 = vector.load %arg11[%c0, %c0_0] : memref<96x8xf32, #tpu.memory_space<vmem>>, vector<16x8xf32>
    tpu.vector_store %arg11[%c0, %c0_0], %0 {strides = array<i32>} : memref<96x8xf32, #tpu.memory_space<vmem>>, vector<16x8xf32>,
    %cst_1 = arith.constant 0.000000e+00 : f32
    %2 = vector.broadcast %cst_1 : f32 to vector<16x8xf32>
    %c80 = arith.constant 80 : index
    %c0_2 = arith.constant 0 : index
    %3 = vector.load %arg11[%c80, %c0_2] : memref<96x8xf32, #tpu.memory_space<vmem>>, vector<16x8xf32>
    tpu.vector_store %arg11[%c80, %c0_2], %2 {strides = array<i32>} : memref<96x8xf32, #tpu.memory_space<vmem>>, vector<16x8xf32>,
    %4 = tpu.iota {dimensions = array<i32: 0>} : vector<64x8xi32>
    %c7_i32 = arith.constant 7 : i32
    %5 = vector.broadcast %c7_i32 : i32 to vector<64x8xi32>
    %6 = arith.andi %4, %5 : vector<64x8xi32>
    %c0_i32 = arith.constant 0 : i32
    %7 = vector.broadcast %c0_i32 : i32 to vector<64x8xi32>
    %8 = arith.cmpi ne, %6, %7 : vector<64x8xi32>
    %c7_i32_3 = arith.constant 7 : i32
    %9 = vector.broadcast %c7_i32_3 : i32 to vector<64x8xi32>
    %10 = arith.cmpi ne, %6, %9 : vector<64x8xi32>
    %c0_4 = arith.constant 0 : index
    %c0_5 = arith.constant 0 : index
    %c0_6 = arith.constant 0 : index
    %11 = vector.load %arg1[%c0_4, %c0_5, %c0_6] : memref<1x128x32xf32, #tpu.memory_space<vmem>>, vector<1x8x32xf32>
    %12 = vector.shape_cast %11 : vector<1x8x32xf32> to vector<8x32xf32>
    %c0_7 = arith.constant 0 : index
    %c8 = arith.constant 8 : index
    %c0_8 = arith.constant 0 : index
    %13 = vector.load %arg1[%c0_7, %c8, %c0_8] : memref<1x128x32xf32, #tpu.memory_space<vmem>>, vector<1x8x32xf32>
    %14 = vector.shape_cast %13 : vector<1x8x32xf32> to vector<8x32xf32>
    %15 = arith.maximumf %12, %14 : vector<8x32xf32>
    %16 = vector.extract_strided_slice %15 {offsets = [0, 0], sizes = [8, 16], strides = [1, 1]} : vector<8x32xf32> to vector<8x16xf32>
    %17 = vector.extract_strided_slice %15 {offsets = [0, 16], sizes = [8, 16], strides = [1, 1]} : vector<8x32xf32> to vector<8x16xf32>
    %18 = arith.maximumf %16, %17 : vector<8x16xf32>
    %c0_9 = arith.constant 0 : index
    %c0_10 = arith.constant 0 : index
    %19 = vector.load %arg12[%c0_9, %c0_10] : memref<64x16xf32, #tpu.memory_space<vmem>>, vector<8x16xf32>
    tpu.vector_store %arg12[%c0_9, %c0_10], %18 {strides = array<i32>} : memref<64x16xf32, #tpu.memory_space<vmem>>, vector<8x16xf32>,
    %c0_11 = arith.constant 0 : index
    %c16 = arith.constant 16 : index
    %c0_12 = arith.constant 0 : index
    %20 = vector.load %arg1[%c0_11, %c16, %c0_12] : memref<1x128x32xf32, #tpu.memory_space<vmem>>, vector<1x8x32xf32>
    %21 = vector.shape_cast %20 : vector<1x8x32xf32> to vector<8x32xf32>
    %c0_13 = arith.constant 0 : index
    %c24 = arith.constant 24 : index
    %c0_14 = arith.constant 0 : index
    %22 = vector.load %arg1[%c0_13, %c24, %c0_14] : memref<1x128x32xf32, #tpu.memory_space<vmem>>, vector<1x8x32xf32>
    %23 = vector.shape_cast %22 : vector<1x8x32xf32> to vector<8x32xf32>
    %24 = arith.maximumf %21, %23 : vector<8x32xf32>
    %25 = vector.extract_strided_slice %24 {offsets = [0, 0], sizes = [8, 16], strides = [1, 1]} : vector<8x32xf32> to vector<8x16xf32>
    %26 = vector.extract_strided_slice %24 {offsets = [0, 16], sizes = [8, 16], strides = [1, 1]} : vector<8x32xf32> to vector<8x16xf32>
    %27 = arith.maximumf %25, %26 : vector<8x16xf32>
    %c8_15 = arith.constant 8 : index
    %c0_16 = arith.constant 0 : index
    %28 = vector.load %arg12[%c8_15, %c0_16] : memref<64x16xf32, #tpu.memory_space<vmem>>, vector<8x16xf32>
    tpu.vector_store %arg12[%c8_15, %c0_16], %27 {strides = array<i32>} : memref<64x16xf32, #tpu.memory_space<vmem>>, vector<8x16xf32>,
    %c0_17 = arith.constant 0 : index
    %c32 = arith.constant 32 : index
    %c0_18 = arith.constant 0 : index
    %29 = vector.load %arg1[%c0_17, %c32, %c0_18] : memref<1x128x32xf32, #tpu.memory_space<vmem>>, vector<1x8x32xf32>
    %30 = vector.shape_cast %29 : vector<1x8x32xf32> to vector<8x32xf32>
    %c0_19 = arith.constant 0 : index
    %c40 = arith.constant 40 : index
    %c0_20 = arith.constant 0 : index
    %31 = vector.load %arg1[%c0_19, %c40, %c0_20] : memref<1x128x32xf32, #tpu.memory_space<vmem>>, vector<1x8x32xf32>
    %32 = vector.shape_cast %31 : vector<1x8x32xf32> to vector<8x32xf32>
    %33 = arith.maximumf %30, %32 : vector<8x32xf32>
    %34 = vector.extract_strided_slice %33 {offsets = [0, 0], sizes = [8, 16], strides = [1, 1]} : vector<8x32xf32> to vector<8x16xf32>
    %35 = vector.extract_strided_slice %33 {offsets = [0, 16], sizes = [8, 16], strides = [1, 1]} : vector<8x32xf32> to vector<8x16xf32>
    %36 = arith.maximumf %34, %35 : vector<8x16xf32>
    %c16_21 = arith.constant 16 : index
    %c0_22 = arith.constant 0 : index
    %37 = vector.load %arg12[%c16_21, %c0_22] : memref<64x16xf32, #tpu.memory_space<vmem>>, vector<8x16xf32>
    tpu.vector_store %arg12[%c16_21, %c0_22], %36 {strides = array<i32>} : memref<64x16xf32, #tpu.memory_space<vmem>>, vector<8x16xf32>,
    %c0_23 = arith.constant 0 : index
    %c48 = arith.constant 48 : index
    %c0_24 = arith.constant 0 : index
    %38 = vector.load %arg1[%c0_23, %c48, %c0_24] : memref<1x128x32xf32, #tpu.memory_space<vmem>>, vector<1x8x32xf32>
    %39 = vector.shape_cast %38 : vector<1x8x32xf32> to vector<8x32xf32>
    %c0_25 = arith.constant 0 : index
    %c56 = arith.constant 56 : index
    %c0_26 = arith.constant 0 : index
    %40 = vector.load %arg1[%c0_25, %c56, %c0_26] : memref<1x128x32xf32, #tpu.memory_space<vmem>>, vector<1x8x32xf32>
    %41 = vector.shape_cast %40 : vector<1x8x32xf32> to vector<8x32xf32>
    %42 = arith.maximumf %39, %41 : vector<8x32xf32>
    %43 = vector.extract_strided_slice %42 {offsets = [0, 0], sizes = [8, 16], strides = [1, 1]} : vector<8x32xf32> to vector<8x16xf32>
    %44 = vector.extract_strided_slice %42 {offsets = [0, 16], sizes = [8, 16], strides = [1, 1]} : vector<8x32xf32> to vector<8x16xf32>
    %45 = arith.maximumf %43, %44 : vector<8x16xf32>
    %c24_27 = arith.constant 24 : index
    %c0_28 = arith.constant 0 : index
    %46 = vector.load %arg12[%c24_27, %c0_28] : memref<64x16xf32, #tpu.memory_space<vmem>>, vector<8x16xf32>
    tpu.vector_store %arg12[%c24_27, %c0_28], %45 {strides = array<i32>} : memref<64x16xf32, #tpu.memory_space<vmem>>, vector<8x16xf32>,
    %c0_29 = arith.constant 0 : index
    %c64 = arith.constant 64 : index
    %c0_30 = arith.constant 0 : index
    %47 = vector.load %arg1[%c0_29, %c64, %c0_30] : memref<1x128x32xf32, #tpu.memory_space<vmem>>, vector<1x8x32xf32>
    %48 = vector.shape_cast %47 : vector<1x8x32xf32> to vector<8x32xf32>
    %c0_31 = arith.constant 0 : index
    %c72 = arith.constant 72 : index
    %c0_32 = arith.constant 0 : index
    %49 = vector.load %arg1[%c0_31, %c72, %c0_32] : memref<1x128x32xf32, #tpu.memory_space<vmem>>, vector<1x8x32xf32>
    %50 = vector.shape_cast %49 : vector<1x8x32xf32> to vector<8x32xf32>
    %51 = arith.maximumf %48, %50 : vector<8x32xf32>
    %52 = vector.extract_strided_slice %51 {offsets = [0, 0], sizes = [8, 16], strides = [1, 1]} : vector<8x32xf32> to vector<8x16xf32>
    %53 = vector.extract_strided_slice %51 {offsets = [0, 16], sizes = [8, 16], strides = [1, 1]} : vector<8x32xf32> to vector<8x16xf32>
    %54 = arith.maximumf %52, %53 : vector<8x16xf32>
    %c32_33 = arith.constant 32 : index
    %c0_34 = arith.constant 0 : index
    %55 = vector.load %arg12[%c32_33, %c0_34] : memref<64x16xf32, #tpu.memory_space<vmem>>, vector<8x16xf32>
    tpu.vector_store %arg12[%c32_33, %c0_34], %54 {strides = array<i32>} : memref<64x16xf32, #tpu.memory_space<vmem>>, vector<8x16xf32>,
    %c0_35 = arith.constant 0 : index
    %c80_36 = arith.constant 80 : index
    %c0_37 = arith.constant 0 : index
    %56 = vector.load %arg1[%c0_35, %c80_36, %c0_37] : memref<1x128x32xf32, #tpu.memory_space<vmem>>, vector<1x8x32xf32>
    %57 = vector.shape_cast %56 : vector<1x8x32xf32> to vector<8x32xf32>
    %c0_38 = arith.constant 0 : index
    %c88 = arith.constant 88 : index
    %c0_39 = arith.constant 0 : index
    %58 = vector.load %arg1[%c0_38, %c88, %c0_39] : memref<1x128x32xf32, #tpu.memory_space<vmem>>, vector<1x8x32xf32>
    %59 = vector.shape_cast %58 : vector<1x8x32xf32> to vector<8x32xf32>
    %60 = arith.maximumf %57, %59 : vector<8x32xf32>
    %61 = vector.extract_strided_slice %60 {offsets = [0, 0], sizes = [8, 16], strides = [1, 1]} : vector<8x32xf32> to vector<8x16xf32>
    %62 = vector.extract_strided_slice %60 {offsets = [0, 16], sizes = [8, 16], strides = [1, 1]} : vector<8x32xf32> to vector<8x16xf32>
    %63 = arith.maximumf %61, %62 : vector<8x16xf32>
    %c40_40 = arith.constant 40 : index
    %c0_41 = arith.constant 0 : index
    %64 = vector.load %arg12[%c40_40, %c0_41] : memref<64x16xf32, #tpu.memory_space<vmem>>, vector<8x16xf32>
    tpu.vector_store %arg12[%c40_40, %c0_41], %63 {strides = array<i32>} : memref<64x16xf32, #tpu.memory_space<vmem>>, vector<8x16xf32>,
    %c0_42 = arith.constant 0 : index
    %c96 = arith.constant 96 : index
    %c0_43 = arith.constant 0 : index
    %65 = vector.load %arg1[%c0_42, %c96, %c0_43] : memref<1x128x32xf32, #tpu.memory_space<vmem>>, vector<1x8x32xf32>
    %66 = vector.shape_cast %65 : vector<1x8x32xf32> to vector<8x32xf32>
    %c0_44 = arith.constant 0 : index
    %c104 = arith.constant 104 : index
    %c0_45 = arith.constant 0 : index
    %67 = vector.load %arg1[%c0_44, %c104, %c0_45] : memref<1x128x32xf32, #tpu.memory_space<vmem>>, vector<1x8x32xf32>
    %68 = vector.shape_cast %67 : vector<1x8x32xf32> to vector<8x32xf32>
    %69 = arith.maximumf %66, %68 : vector<8x32xf32>
    %70 = vector.extract_strided_slice %69 {offsets = [0, 0], sizes = [8, 16], strides = [1, 1]} : vector<8x32xf32> to vector<8x16xf32>
    %71 = vector.extract_strided_slice %69 {offsets = [0, 16], sizes = [8, 16], strides = [1, 1]} : vector<8x32xf32> to vector<8x16xf32>
    %72 = arith.maximumf %70, %71 : vector<8x16xf32>
    %c48_46 = arith.constant 48 : index
    %c0_47 = arith.constant 0 : index
    %73 = vector.load %arg12[%c48_46, %c0_47] : memref<64x16xf32, #tpu.memory_space<vmem>>, vector<8x16xf32>
    tpu.vector_store %arg12[%c48_46, %c0_47], %72 {strides = array<i32>} : memref<64x16xf32, #tpu.memory_space<vmem>>, vector<8x16xf32>,
    %c0_48 = arith.constant 0 : index
    %c112 = arith.constant 112 : index
    %c0_49 = arith.constant 0 : index
    %74 = vector.load %arg1[%c0_48, %c112, %c0_49] : memref<1x128x32xf32, #tpu.memory_space<vmem>>, vector<1x8x32xf32>
    %75 = vector.shape_cast %74 : vector<1x8x32xf32> to vector<8x32xf32>
    %c0_50 = arith.constant 0 : index
    %c120 = arith.constant 120 : index
    %c0_51 = arith.constant 0 : index
    %76 = vector.load %arg1[%c0_50, %c120, %c0_51] : memref<1x128x32xf32, #tpu.memory_space<vmem>>, vector<1x8x32xf32>
    %77 = vector.shape_cast %76 : vector<1x8x32xf32> to vector<8x32xf32>
    %78 = arith.maximumf %75, %77 : vector<8x32xf32>
    %79 = vector.extract_strided_slice %78 {offsets = [0, 0], sizes = [8, 16], strides = [1, 1]} : vector<8x32xf32> to vector<8x16xf32>
    %80 = vector.extract_strided_slice %78 {offsets = [0, 16], sizes = [8, 16], strides = [1, 1]} : vector<8x32xf32> to vector<8x16xf32>
    %81 = arith.maximumf %79, %80 : vector<8x16xf32>
    %c56_52 = arith.constant 56 : index
    %c0_53 = arith.constant 0 : index
    %82 = vector.load %arg12[%c56_52, %c0_53] : memref<64x16xf32, #tpu.memory_space<vmem>>, vector<8x16xf32>
    tpu.vector_store %arg12[%c56_52, %c0_53], %81 {strides = array<i32>} : memref<64x16xf32, #tpu.memory_space<vmem>>, vector<8x16xf32>,
    %c0_54 = arith.constant 0 : index
    %c0_55 = arith.constant 0 : index
    %83 = vector.load %arg12[%c0_54, %c0_55] : memref<64x16xf32, #tpu.memory_space<vmem>>, vector<64x16xf32>
    %c0_56 = arith.constant 0 : index
    %c0_57 = arith.constant 0 : index
    %84 = vector.load %arg2[%c0_56, %c0_57] : memref<1x16xf32, #tpu.memory_space<vmem>>, vector<1x16xf32>
    %85 = vector.shape_cast %84 : vector<1x16xf32> to vector<16xf32>
    %c0_58 = arith.constant 0 : index
    %c0_59 = arith.constant 0 : index
    %86 = vector.load %arg3[%c0_58, %c0_59] : memref<1x16xf32, #tpu.memory_space<vmem>>, vector<1x16xf32>
    %87 = vector.shape_cast %86 : vector<1x16xf32> to vector<16xf32>
    %c0_60 = arith.constant 0 : index
    %c0_61 = arith.constant 0 : index
    %c0_62 = arith.constant 0 : index
    %88 = vector.load %arg4[%c0_60, %c0_61, %c0_62] : memref<1x16x8xf32, #tpu.memory_space<vmem>>, vector<1x16x8xf32>
    %89 = vector.shape_cast %88 : vector<1x16x8xf32> to vector<16x8xf32>
    %c0_63 = arith.constant 0 : index
    %c0_64 = arith.constant 0 : index
    %90 = vector.load %arg5[%c0_63, %c0_64] : memref<1x8xf32, #tpu.memory_space<vmem>>, vector<1x8xf32>
    %91 = vector.shape_cast %90 : vector<1x8xf32> to vector<8xf32>
    %c0_65 = arith.constant 0 : index
    %c0_66 = arith.constant 0 : index
    %92 = vector.load %arg7[%c0_65, %c0_66] : memref<1x8xf32, #tpu.memory_space<vmem>>, vector<1x8xf32>
    %93 = vector.shape_cast %92 : vector<1x8xf32> to vector<8xf32>
    %c0_67 = arith.constant 0 : index
    %c0_68 = arith.constant 0 : index
    %c0_69 = arith.constant 0 : index
    %94 = vector.load %arg8[%c0_67, %c0_68, %c0_69] : memref<1x8x16xf32, #tpu.memory_space<vmem>>, vector<1x8x16xf32>
    %95 = vector.shape_cast %94 : vector<1x8x16xf32> to vector<8x16xf32>
    %c0_70 = arith.constant 0 : index
    %c0_71 = arith.constant 0 : index
    %96 = vector.load %arg9[%c0_70, %c0_71] : memref<1x16xf32, #tpu.memory_space<vmem>>, vector<1x16xf32>
    %97 = vector.shape_cast %96 : vector<1x16xf32> to vector<16xf32>
    %98 = vector.shape_cast %85 : vector<16xf32> to vector<1x16xf32>
    %99 = vector.broadcast %98 : vector<1x16xf32> to vector<64x16xf32>
    %100 = arith.mulf %83, %99 : vector<64x16xf32>
    %101 = vector.shape_cast %87 : vector<16xf32> to vector<1x16xf32>
    %102 = vector.broadcast %101 : vector<1x16xf32> to vector<64x16xf32>
    %103 = arith.addf %100, %102 : vector<64x16xf32>
    %cst_72 = arith.constant 0.000000e+00 : f32
    %104 = vector.broadcast %cst_72 : f32 to vector<64x16xf32>
    %105 = arith.maximumf %103, %104 : vector<64x16xf32>
    %cst_73 = arith.constant dense<0.000000e+00> : vector<64x8xf32>
    %106 = tpu.matmul %105, %89, %cst_73 {dimension_numbers = #tpu.dot_dimension_numbers<[1], [0], [0], [1], [0, 0, 1, 1], [], []>} : vector<64x16xf32>, vector<16x8xf32>, vector<64x8xf32> -> vector<64x8xf32>
    %107 = vector.shape_cast %91 : vector<8xf32> to vector<1x8xf32>
    %108 = vector.broadcast %107 : vector<1x8xf32> to vector<64x8xf32>
    %109 = arith.addf %106, %108 : vector<64x8xf32>
    %cst_74 = arith.constant 0.000000e+00 : f32
    %110 = vector.broadcast %cst_74 : f32 to vector<64x8xf32>
    %111 = arith.maximumf %109, %110 : vector<64x8xf32>
    %c16_75 = arith.constant 16 : index
    %c0_76 = arith.constant 0 : index
    %112 = vector.load %arg11[%c16_75, %c0_76] : memref<96x8xf32, #tpu.memory_space<vmem>>, vector<64x8xf32>
    tpu.vector_store %arg11[%c16_75, %c0_76], %111 {strides = array<i32>} : memref<96x8xf32, #tpu.memory_space<vmem>>, vector<64x8xf32>,
    %c7 = arith.constant 7 : index
    %c0_77 = arith.constant 0 : index
    %113 = vector.load %arg11[%c7, %c0_77] : memref<96x8xf32, #tpu.memory_space<vmem>>, vector<64x8xf32>
    %c0_78 = arith.constant 0 : index
    %c0_79 = arith.constant 0 : index
    %c0_80 = arith.constant 0 : index
    %c0_81 = arith.constant 0 : index
    %114 = vector.load %arg6[%c0_78, %c0_79, %c0_80, %c0_81] : memref<1x3x3x8xf32, #tpu.memory_space<vmem>>, vector<1x1x1x8xf32>
    %115 = vector.shape_cast %114 : vector<1x1x1x8xf32> to vector<8xf32>
    %116 = vector.shape_cast %115 : vector<8xf32> to vector<1x8xf32>
    %117 = vector.broadcast %116 : vector<1x8xf32> to vector<64x8xf32>
    %118 = arith.mulf %113, %117 : vector<64x8xf32>
    %c15 = arith.constant 15 : index
    %c0_82 = arith.constant 0 : index
    %119 = vector.load %arg11[%c15, %c0_82] : memref<96x8xf32, #tpu.memory_space<vmem>>, vector<64x8xf32>
    %c0_83 = arith.constant 0 : index
    %c1 = arith.constant 1 : index
    %c0_84 = arith.constant 0 : index
    %c0_85 = arith.constant 0 : index
    %120 = vector.load %arg6[%c0_83, %c1, %c0_84, %c0_85] : memref<1x3x3x8xf32, #tpu.memory_space<vmem>>, vector<1x1x1x8xf32>
    %121 = vector.shape_cast %120 : vector<1x1x1x8xf32> to vector<8xf32>
    %122 = vector.shape_cast %121 : vector<8xf32> to vector<1x8xf32>
    %123 = vector.broadcast %122 : vector<1x8xf32> to vector<64x8xf32>
    %124 = arith.mulf %119, %123 : vector<64x8xf32>
    %125 = arith.addf %118, %124 : vector<64x8xf32>
    %c23 = arith.constant 23 : index
    %c0_86 = arith.constant 0 : index
    %126 = vector.load %arg11[%c23, %c0_86] : memref<96x8xf32, #tpu.memory_space<vmem>>, vector<64x8xf32>
    %c0_87 = arith.constant 0 : index
    %c2 = arith.constant 2 : index
    %c0_88 = arith.constant 0 : index
    %c0_89 = arith.constant 0 : index
    %127 = vector.load %arg6[%c0_87, %c2, %c0_88, %c0_89] : memref<1x3x3x8xf32, #tpu.memory_space<vmem>>, vector<1x1x1x8xf32>
    %128 = vector.shape_cast %127 : vector<1x1x1x8xf32> to vector<8xf32>
    %129 = vector.shape_cast %128 : vector<8xf32> to vector<1x8xf32>
    %130 = vector.broadcast %129 : vector<1x8xf32> to vector<64x8xf32>
    %131 = arith.mulf %126, %130 : vector<64x8xf32>
    %132 = arith.addf %125, %131 : vector<64x8xf32>
    %c8_90 = arith.constant 8 : index
    %c0_91 = arith.constant 0 : index
    %133 = vector.load %arg11[%c8_90, %c0_91] : memref<96x8xf32, #tpu.memory_space<vmem>>, vector<64x8xf32>
    %c0_92 = arith.constant 0 : index
    %c0_93 = arith.constant 0 : index
    %c1_94 = arith.constant 1 : index
    %c0_95 = arith.constant 0 : index
    %134 = vector.load %arg6[%c0_92, %c0_93, %c1_94, %c0_95] : memref<1x3x3x8xf32, #tpu.memory_space<vmem>>, vector<1x1x1x8xf32>
    %135 = vector.shape_cast %134 : vector<1x1x1x8xf32> to vector<8xf32>
    %136 = vector.shape_cast %135 : vector<8xf32> to vector<1x8xf32>
    %137 = vector.broadcast %136 : vector<1x8xf32> to vector<64x8xf32>
    %138 = arith.mulf %133, %137 : vector<64x8xf32>
    %c16_96 = arith.constant 16 : index
    %c0_97 = arith.constant 0 : index
    %139 = vector.load %arg11[%c16_96, %c0_97] : memref<96x8xf32, #tpu.memory_space<vmem>>, vector<64x8xf32>
    %c0_98 = arith.constant 0 : index
    %c1_99 = arith.constant 1 : index
    %c1_100 = arith.constant 1 : index
    %c0_101 = arith.constant 0 : index
    %140 = vector.load %arg6[%c0_98, %c1_99, %c1_100, %c0_101] : memref<1x3x3x8xf32, #tpu.memory_space<vmem>>, vector<1x1x1x8xf32>
    %141 = vector.shape_cast %140 : vector<1x1x1x8xf32> to vector<8xf32>
    %142 = vector.shape_cast %141 : vector<8xf32> to vector<1x8xf32>
    %143 = vector.broadcast %142 : vector<1x8xf32> to vector<64x8xf32>
    %144 = arith.mulf %139, %143 : vector<64x8xf32>
    %145 = arith.addf %138, %144 : vector<64x8xf32>
    %c24_102 = arith.constant 24 : index
    %c0_103 = arith.constant 0 : index
    %146 = vector.load %arg11[%c24_102, %c0_103] : memref<96x8xf32, #tpu.memory_space<vmem>>, vector<64x8xf32>
    %c0_104 = arith.constant 0 : index
    %c2_105 = arith.constant 2 : index
    %c1_106 = arith.constant 1 : index
    %c0_107 = arith.constant 0 : index
    %147 = vector.load %arg6[%c0_104, %c2_105, %c1_106, %c0_107] : memref<1x3x3x8xf32, #tpu.memory_space<vmem>>, vector<1x1x1x8xf32>
    %148 = vector.shape_cast %147 : vector<1x1x1x8xf32> to vector<8xf32>
    %149 = vector.shape_cast %148 : vector<8xf32> to vector<1x8xf32>
    %150 = vector.broadcast %149 : vector<1x8xf32> to vector<64x8xf32>
    %151 = arith.mulf %146, %150 : vector<64x8xf32>
    %152 = arith.addf %145, %151 : vector<64x8xf32>
    %c9 = arith.constant 9 : index
    %c0_108 = arith.constant 0 : index
    %153 = vector.load %arg11[%c9, %c0_108] : memref<96x8xf32, #tpu.memory_space<vmem>>, vector<64x8xf32>
    %c0_109 = arith.constant 0 : index
    %c0_110 = arith.constant 0 : index
    %c2_111 = arith.constant 2 : index
    %c0_112 = arith.constant 0 : index
    %154 = vector.load %arg6[%c0_109, %c0_110, %c2_111, %c0_112] : memref<1x3x3x8xf32, #tpu.memory_space<vmem>>, vector<1x1x1x8xf32>
    %155 = vector.shape_cast %154 : vector<1x1x1x8xf32> to vector<8xf32>
    %156 = vector.shape_cast %155 : vector<8xf32> to vector<1x8xf32>
    %157 = vector.broadcast %156 : vector<1x8xf32> to vector<64x8xf32>
    %158 = arith.mulf %153, %157 : vector<64x8xf32>
    %c17 = arith.constant 17 : index
    %c0_113 = arith.constant 0 : index
    %159 = vector.load %arg11[%c17, %c0_113] : memref<96x8xf32, #tpu.memory_space<vmem>>, vector<64x8xf32>
    %c0_114 = arith.constant 0 : index
    %c1_115 = arith.constant 1 : index
    %c2_116 = arith.constant 2 : index
    %c0_117 = arith.constant 0 : index
    %160 = vector.load %arg6[%c0_114, %c1_115, %c2_116, %c0_117] : memref<1x3x3x8xf32, #tpu.memory_space<vmem>>, vector<1x1x1x8xf32>
    %161 = vector.shape_cast %160 : vector<1x1x1x8xf32> to vector<8xf32>
    %162 = vector.shape_cast %161 : vector<8xf32> to vector<1x8xf32>
    %163 = vector.broadcast %162 : vector<1x8xf32> to vector<64x8xf32>
    %164 = arith.mulf %159, %163 : vector<64x8xf32>
    %165 = arith.addf %158, %164 : vector<64x8xf32>
    %c25 = arith.constant 25 : index
    %c0_118 = arith.constant 0 : index
    %166 = vector.load %arg11[%c25, %c0_118] : memref<96x8xf32, #tpu.memory_space<vmem>>, vector<64x8xf32>
    %c0_119 = arith.constant 0 : index
    %c2_120 = arith.constant 2 : index
    %c2_121 = arith.constant 2 : index
    %c0_122 = arith.constant 0 : index
    %167 = vector.load %arg6[%c0_119, %c2_120, %c2_121, %c0_122] : memref<1x3x3x8xf32, #tpu.memory_space<vmem>>, vector<1x1x1x8xf32>
    %168 = vector.shape_cast %167 : vector<1x1x1x8xf32> to vector<8xf32>
    %169 = vector.shape_cast %168 : vector<8xf32> to vector<1x8xf32>
    %170 = vector.broadcast %169 : vector<1x8xf32> to vector<64x8xf32>
    %171 = arith.mulf %166, %170 : vector<64x8xf32>
    %172 = arith.addf %165, %171 : vector<64x8xf32>
    %cst_123 = arith.constant 0.000000e+00 : f32
    %173 = vector.broadcast %cst_123 : f32 to vector<64x8xf32>
    %174 = arith.select %8, %132, %173 : vector<64x8xi1>, vector<64x8xf32>
    %cst_124 = arith.constant 0.000000e+00 : f32
    %175 = vector.broadcast %cst_124 : f32 to vector<64x8xf32>
    %176 = arith.select %10, %172, %175 : vector<64x8xi1>, vector<64x8xf32>
    %177 = arith.addf %174, %152 : vector<64x8xf32>
    %178 = arith.addf %177, %176 : vector<64x8xf32>
    %179 = vector.shape_cast %93 : vector<8xf32> to vector<1x8xf32>
    %180 = vector.broadcast %179 : vector<1x8xf32> to vector<64x8xf32>
    %181 = arith.addf %178, %180 : vector<64x8xf32>
    %cst_125 = arith.constant 0.000000e+00 : f32
    %182 = vector.broadcast %cst_125 : f32 to vector<64x8xf32>
    %183 = arith.maximumf %181, %182 : vector<64x8xf32>
    %cst_126 = arith.constant dense<0.000000e+00> : vector<64x16xf32>
    %184 = tpu.matmul %183, %95, %cst_126 {dimension_numbers = #tpu.dot_dimension_numbers<[1], [0], [0], [1], [0, 0, 1, 1], [], []>} : vector<64x8xf32>, vector<8x16xf32>, vector<64x16xf32> -> vector<64x16xf32>
    %185 = vector.shape_cast %97 : vector<16xf32> to vector<1x16xf32>
    %186 = vector.broadcast %185 : vector<1x16xf32> to vector<64x16xf32>
    %187 = arith.addf %184, %186 : vector<64x16xf32>
    %188 = arith.addf %83, %187 : vector<64x16xf32>
    %c0_127 = arith.constant 0 : index
    %c0_128 = arith.constant 0 : index
    %c0_129 = arith.constant 0 : index
    %189 = vector.load %arg10[%c0_127, %c0_128, %c0_129] : memref<1x64x16xf32, #tpu.memory_space<vmem>>, vector<1x64x16xf32>
    %190 = vector.shape_cast %189 : vector<1x64x16xf32> to vector<64x16xf32>
    %191 = vector.shape_cast %188 : vector<64x16xf32> to vector<1x64x16xf32>
    tpu.vector_store %arg10[%c0_127, %c0_128, %c0_129], %191 {strides = array<i32>} : memref<1x64x16xf32, #tpu.memory_space<vmem>>, vector<1x64x16xf32>,
    return
  }
  func.func @transform_0(%arg0: i32) -> (i32, i32, i32) {
    %c0_i32 = arith.constant 0 : i32
    %c0_i32_0 = arith.constant 0 : i32
    %c0_i32_1 = arith.constant 0 : i32
    return %arg0, %c0_i32, %c0_i32_0 : i32, i32, i32
  }
  func.func @transform_1(%arg0: i32) -> (i32, i32) {
    %c0_i32 = arith.constant 0 : i32
    %c0_i32_0 = arith.constant 0 : i32
    %c0_i32_1 = arith.constant 0 : i32
    return %c0_i32, %c0_i32_0 : i32, i32
  }
  func.func @transform_2(%arg0: i32) -> (i32, i32) {
    %c0_i32 = arith.constant 0 : i32
    %c0_i32_0 = arith.constant 0 : i32
    %c0_i32_1 = arith.constant 0 : i32
    return %c0_i32, %c0_i32_0 : i32, i32
  }
  func.func @transform_3(%arg0: i32) -> (i32, i32, i32) {
    %c0_i32 = arith.constant 0 : i32
    %c0_i32_0 = arith.constant 0 : i32
    %c0_i32_1 = arith.constant 0 : i32
    %c0_i32_2 = arith.constant 0 : i32
    return %c0_i32, %c0_i32_0, %c0_i32_1 : i32, i32, i32
  }
  func.func @transform_4(%arg0: i32) -> (i32, i32) {
    %c0_i32 = arith.constant 0 : i32
    %c0_i32_0 = arith.constant 0 : i32
    %c0_i32_1 = arith.constant 0 : i32
    return %c0_i32, %c0_i32_0 : i32, i32
  }
  func.func @transform_5(%arg0: i32) -> (i32, i32, i32, i32) {
    %c0_i32 = arith.constant 0 : i32
    %c0_i32_0 = arith.constant 0 : i32
    %c0_i32_1 = arith.constant 0 : i32
    %c0_i32_2 = arith.constant 0 : i32
    %c0_i32_3 = arith.constant 0 : i32
    return %c0_i32, %c0_i32_0, %c0_i32_1, %c0_i32_2 : i32, i32, i32, i32
  }
  func.func @transform_6(%arg0: i32) -> (i32, i32) {
    %c0_i32 = arith.constant 0 : i32
    %c0_i32_0 = arith.constant 0 : i32
    %c0_i32_1 = arith.constant 0 : i32
    return %c0_i32, %c0_i32_0 : i32, i32
  }
  func.func @transform_7(%arg0: i32) -> (i32, i32, i32) {
    %c0_i32 = arith.constant 0 : i32
    %c0_i32_0 = arith.constant 0 : i32
    %c0_i32_1 = arith.constant 0 : i32
    %c0_i32_2 = arith.constant 0 : i32
    return %c0_i32, %c0_i32_0, %c0_i32_1 : i32, i32, i32
  }
  func.func @transform_8(%arg0: i32) -> (i32, i32) {
    %c0_i32 = arith.constant 0 : i32
    %c0_i32_0 = arith.constant 0 : i32
    %c0_i32_1 = arith.constant 0 : i32
    return %c0_i32, %c0_i32_0 : i32, i32
  }
  func.func @transform_9(%arg0: i32) -> (i32, i32, i32) {
    %c0_i32 = arith.constant 0 : i32
    %c0_i32_0 = arith.constant 0 : i32
    %c0_i32_1 = arith.constant 0 : i32
    return %arg0, %c0_i32, %c0_i32_0 : i32, i32, i32
  }
}

module attributes {stable_mosaic.version = 11 : i64} {
  func.func @kernel(%arg0: i32, %arg1: memref<1x64x16xf32, #tpu.memory_space<vmem>>, %arg2: memref<1x16xf32, #tpu.memory_space<vmem>>, %arg3: memref<1x16xf32, #tpu.memory_space<vmem>>, %arg4: memref<1x16x8xf32, #tpu.memory_space<vmem>>, %arg5: memref<1x8xf32, #tpu.memory_space<vmem>>, %arg6: memref<1x3x3x8xf32, #tpu.memory_space<vmem>>, %arg7: memref<1x8xf32, #tpu.memory_space<vmem>>, %arg8: memref<1x8x16xf32, #tpu.memory_space<vmem>>, %arg9: memref<1x16xf32, #tpu.memory_space<vmem>>, %arg10: memref<1x64x16xf32, #tpu.memory_space<vmem>>, %arg11: memref<96x8xf32, #tpu.memory_space<vmem>>) attributes {dimension_semantics = [#tpu.dimension_semantics<parallel>], iteration_bounds = array<i64: 2>, scalar_prefetch = 0 : i64, scratch_operands = 1 : i64, tpu.core_type = #tpu.core_type<tc>, window_params = [{transform_indices = @transform_0, window_bounds = array<i64: 1, 64, 16>}, {pipeline_mode = #tpu.pipeline_mode<synchronous>, transform_indices = @transform_1, window_bounds = array<i64: 1, 16>}, {pipeline_mode = #tpu.pipeline_mode<synchronous>, transform_indices = @transform_2, window_bounds = array<i64: 1, 16>}, {pipeline_mode = #tpu.pipeline_mode<synchronous>, transform_indices = @transform_3, window_bounds = array<i64: 1, 16, 8>}, {pipeline_mode = #tpu.pipeline_mode<synchronous>, transform_indices = @transform_4, window_bounds = array<i64: 1, 8>}, {pipeline_mode = #tpu.pipeline_mode<synchronous>, transform_indices = @transform_5, window_bounds = array<i64: 1, 3, 3, 8>}, {pipeline_mode = #tpu.pipeline_mode<synchronous>, transform_indices = @transform_6, window_bounds = array<i64: 1, 8>}, {pipeline_mode = #tpu.pipeline_mode<synchronous>, transform_indices = @transform_7, window_bounds = array<i64: 1, 8, 16>}, {pipeline_mode = #tpu.pipeline_mode<synchronous>, transform_indices = @transform_8, window_bounds = array<i64: 1, 16>}, {transform_indices = @transform_9, window_bounds = array<i64: 1, 64, 16>}]} {
    %cst = arith.constant 0.000000e+00 : f32
    %0 = vector.broadcast %cst : f32 to vector<16x8xf32>
    %c0 = arith.constant 0 : index
    %c0_0 = arith.constant 0 : index
    %1 = vector.load %arg11[%c0, %c0_0] : memref<96x8xf32, #tpu.memory_space<vmem>>, vector<16x8xf32>
    tpu.vector_store %arg11[%c0, %c0_0], %0 {strides = array<i32>} : memref<96x8xf32, #tpu.memory_space<vmem>>, vector<16x8xf32>,
    %cst_1 = arith.constant 0.000000e+00 : f32
    %2 = vector.broadcast %cst_1 : f32 to vector<16x8xf32>
    %c80 = arith.constant 80 : index
    %c0_2 = arith.constant 0 : index
    %3 = vector.load %arg11[%c80, %c0_2] : memref<96x8xf32, #tpu.memory_space<vmem>>, vector<16x8xf32>
    tpu.vector_store %arg11[%c80, %c0_2], %2 {strides = array<i32>} : memref<96x8xf32, #tpu.memory_space<vmem>>, vector<16x8xf32>,
    %4 = tpu.iota {dimensions = array<i32: 0>} : vector<64x8xi32>
    %c7_i32 = arith.constant 7 : i32
    %5 = vector.broadcast %c7_i32 : i32 to vector<64x8xi32>
    %6 = arith.andi %4, %5 : vector<64x8xi32>
    %c0_i32 = arith.constant 0 : i32
    %7 = vector.broadcast %c0_i32 : i32 to vector<64x8xi32>
    %8 = arith.cmpi ne, %6, %7 : vector<64x8xi32>
    %c7_i32_3 = arith.constant 7 : i32
    %9 = vector.broadcast %c7_i32_3 : i32 to vector<64x8xi32>
    %10 = arith.cmpi ne, %6, %9 : vector<64x8xi32>
    %c0_4 = arith.constant 0 : index
    %c0_5 = arith.constant 0 : index
    %c0_6 = arith.constant 0 : index
    %11 = vector.load %arg1[%c0_4, %c0_5, %c0_6] : memref<1x64x16xf32, #tpu.memory_space<vmem>>, vector<1x64x16xf32>
    %12 = vector.shape_cast %11 : vector<1x64x16xf32> to vector<64x16xf32>
    %c0_7 = arith.constant 0 : index
    %c0_8 = arith.constant 0 : index
    %13 = vector.load %arg2[%c0_7, %c0_8] : memref<1x16xf32, #tpu.memory_space<vmem>>, vector<1x16xf32>
    %14 = vector.shape_cast %13 : vector<1x16xf32> to vector<16xf32>
    %c0_9 = arith.constant 0 : index
    %c0_10 = arith.constant 0 : index
    %15 = vector.load %arg3[%c0_9, %c0_10] : memref<1x16xf32, #tpu.memory_space<vmem>>, vector<1x16xf32>
    %16 = vector.shape_cast %15 : vector<1x16xf32> to vector<16xf32>
    %c0_11 = arith.constant 0 : index
    %c0_12 = arith.constant 0 : index
    %c0_13 = arith.constant 0 : index
    %17 = vector.load %arg4[%c0_11, %c0_12, %c0_13] : memref<1x16x8xf32, #tpu.memory_space<vmem>>, vector<1x16x8xf32>
    %18 = vector.shape_cast %17 : vector<1x16x8xf32> to vector<16x8xf32>
    %c0_14 = arith.constant 0 : index
    %c0_15 = arith.constant 0 : index
    %19 = vector.load %arg5[%c0_14, %c0_15] : memref<1x8xf32, #tpu.memory_space<vmem>>, vector<1x8xf32>
    %20 = vector.shape_cast %19 : vector<1x8xf32> to vector<8xf32>
    %c0_16 = arith.constant 0 : index
    %c0_17 = arith.constant 0 : index
    %21 = vector.load %arg7[%c0_16, %c0_17] : memref<1x8xf32, #tpu.memory_space<vmem>>, vector<1x8xf32>
    %22 = vector.shape_cast %21 : vector<1x8xf32> to vector<8xf32>
    %c0_18 = arith.constant 0 : index
    %c0_19 = arith.constant 0 : index
    %c0_20 = arith.constant 0 : index
    %23 = vector.load %arg8[%c0_18, %c0_19, %c0_20] : memref<1x8x16xf32, #tpu.memory_space<vmem>>, vector<1x8x16xf32>
    %24 = vector.shape_cast %23 : vector<1x8x16xf32> to vector<8x16xf32>
    %c0_21 = arith.constant 0 : index
    %c0_22 = arith.constant 0 : index
    %25 = vector.load %arg9[%c0_21, %c0_22] : memref<1x16xf32, #tpu.memory_space<vmem>>, vector<1x16xf32>
    %26 = vector.shape_cast %25 : vector<1x16xf32> to vector<16xf32>
    %27 = vector.shape_cast %14 : vector<16xf32> to vector<1x16xf32>
    %28 = vector.broadcast %27 : vector<1x16xf32> to vector<64x16xf32>
    %29 = arith.mulf %12, %28 : vector<64x16xf32>
    %30 = vector.shape_cast %16 : vector<16xf32> to vector<1x16xf32>
    %31 = vector.broadcast %30 : vector<1x16xf32> to vector<64x16xf32>
    %32 = arith.addf %29, %31 : vector<64x16xf32>
    %cst_23 = arith.constant 0.000000e+00 : f32
    %33 = vector.broadcast %cst_23 : f32 to vector<64x16xf32>
    %34 = arith.maximumf %32, %33 : vector<64x16xf32>
    %cst_24 = arith.constant dense<0.000000e+00> : vector<64x8xf32>
    %35 = tpu.matmul %34, %18, %cst_24 {dimension_numbers = #tpu.dot_dimension_numbers<[1], [0], [0], [1], [0, 0, 1, 1], [], []>} : vector<64x16xf32>, vector<16x8xf32>, vector<64x8xf32> -> vector<64x8xf32>
    %36 = vector.shape_cast %20 : vector<8xf32> to vector<1x8xf32>
    %37 = vector.broadcast %36 : vector<1x8xf32> to vector<64x8xf32>
    %38 = arith.addf %35, %37 : vector<64x8xf32>
    %cst_25 = arith.constant 0.000000e+00 : f32
    %39 = vector.broadcast %cst_25 : f32 to vector<64x8xf32>
    %40 = arith.maximumf %38, %39 : vector<64x8xf32>
    %c16 = arith.constant 16 : index
    %c0_26 = arith.constant 0 : index
    %41 = vector.load %arg11[%c16, %c0_26] : memref<96x8xf32, #tpu.memory_space<vmem>>, vector<64x8xf32>
    tpu.vector_store %arg11[%c16, %c0_26], %40 {strides = array<i32>} : memref<96x8xf32, #tpu.memory_space<vmem>>, vector<64x8xf32>,
    %c7 = arith.constant 7 : index
    %c0_27 = arith.constant 0 : index
    %42 = vector.load %arg11[%c7, %c0_27] : memref<96x8xf32, #tpu.memory_space<vmem>>, vector<64x8xf32>
    %c0_28 = arith.constant 0 : index
    %c0_29 = arith.constant 0 : index
    %c0_30 = arith.constant 0 : index
    %c0_31 = arith.constant 0 : index
    %43 = vector.load %arg6[%c0_28, %c0_29, %c0_30, %c0_31] : memref<1x3x3x8xf32, #tpu.memory_space<vmem>>, vector<1x1x1x8xf32>
    %44 = vector.shape_cast %43 : vector<1x1x1x8xf32> to vector<8xf32>
    %45 = vector.shape_cast %44 : vector<8xf32> to vector<1x8xf32>
    %46 = vector.broadcast %45 : vector<1x8xf32> to vector<64x8xf32>
    %47 = arith.mulf %42, %46 : vector<64x8xf32>
    %c15 = arith.constant 15 : index
    %c0_32 = arith.constant 0 : index
    %48 = vector.load %arg11[%c15, %c0_32] : memref<96x8xf32, #tpu.memory_space<vmem>>, vector<64x8xf32>
    %c0_33 = arith.constant 0 : index
    %c1 = arith.constant 1 : index
    %c0_34 = arith.constant 0 : index
    %c0_35 = arith.constant 0 : index
    %49 = vector.load %arg6[%c0_33, %c1, %c0_34, %c0_35] : memref<1x3x3x8xf32, #tpu.memory_space<vmem>>, vector<1x1x1x8xf32>
    %50 = vector.shape_cast %49 : vector<1x1x1x8xf32> to vector<8xf32>
    %51 = vector.shape_cast %50 : vector<8xf32> to vector<1x8xf32>
    %52 = vector.broadcast %51 : vector<1x8xf32> to vector<64x8xf32>
    %53 = arith.mulf %48, %52 : vector<64x8xf32>
    %54 = arith.addf %47, %53 : vector<64x8xf32>
    %c23 = arith.constant 23 : index
    %c0_36 = arith.constant 0 : index
    %55 = vector.load %arg11[%c23, %c0_36] : memref<96x8xf32, #tpu.memory_space<vmem>>, vector<64x8xf32>
    %c0_37 = arith.constant 0 : index
    %c2 = arith.constant 2 : index
    %c0_38 = arith.constant 0 : index
    %c0_39 = arith.constant 0 : index
    %56 = vector.load %arg6[%c0_37, %c2, %c0_38, %c0_39] : memref<1x3x3x8xf32, #tpu.memory_space<vmem>>, vector<1x1x1x8xf32>
    %57 = vector.shape_cast %56 : vector<1x1x1x8xf32> to vector<8xf32>
    %58 = vector.shape_cast %57 : vector<8xf32> to vector<1x8xf32>
    %59 = vector.broadcast %58 : vector<1x8xf32> to vector<64x8xf32>
    %60 = arith.mulf %55, %59 : vector<64x8xf32>
    %61 = arith.addf %54, %60 : vector<64x8xf32>
    %c8 = arith.constant 8 : index
    %c0_40 = arith.constant 0 : index
    %62 = vector.load %arg11[%c8, %c0_40] : memref<96x8xf32, #tpu.memory_space<vmem>>, vector<64x8xf32>
    %c0_41 = arith.constant 0 : index
    %c0_42 = arith.constant 0 : index
    %c1_43 = arith.constant 1 : index
    %c0_44 = arith.constant 0 : index
    %63 = vector.load %arg6[%c0_41, %c0_42, %c1_43, %c0_44] : memref<1x3x3x8xf32, #tpu.memory_space<vmem>>, vector<1x1x1x8xf32>
    %64 = vector.shape_cast %63 : vector<1x1x1x8xf32> to vector<8xf32>
    %65 = vector.shape_cast %64 : vector<8xf32> to vector<1x8xf32>
    %66 = vector.broadcast %65 : vector<1x8xf32> to vector<64x8xf32>
    %67 = arith.mulf %62, %66 : vector<64x8xf32>
    %c16_45 = arith.constant 16 : index
    %c0_46 = arith.constant 0 : index
    %68 = vector.load %arg11[%c16_45, %c0_46] : memref<96x8xf32, #tpu.memory_space<vmem>>, vector<64x8xf32>
    %c0_47 = arith.constant 0 : index
    %c1_48 = arith.constant 1 : index
    %c1_49 = arith.constant 1 : index
    %c0_50 = arith.constant 0 : index
    %69 = vector.load %arg6[%c0_47, %c1_48, %c1_49, %c0_50] : memref<1x3x3x8xf32, #tpu.memory_space<vmem>>, vector<1x1x1x8xf32>
    %70 = vector.shape_cast %69 : vector<1x1x1x8xf32> to vector<8xf32>
    %71 = vector.shape_cast %70 : vector<8xf32> to vector<1x8xf32>
    %72 = vector.broadcast %71 : vector<1x8xf32> to vector<64x8xf32>
    %73 = arith.mulf %68, %72 : vector<64x8xf32>
    %74 = arith.addf %67, %73 : vector<64x8xf32>
    %c24 = arith.constant 24 : index
    %c0_51 = arith.constant 0 : index
    %75 = vector.load %arg11[%c24, %c0_51] : memref<96x8xf32, #tpu.memory_space<vmem>>, vector<64x8xf32>
    %c0_52 = arith.constant 0 : index
    %c2_53 = arith.constant 2 : index
    %c1_54 = arith.constant 1 : index
    %c0_55 = arith.constant 0 : index
    %76 = vector.load %arg6[%c0_52, %c2_53, %c1_54, %c0_55] : memref<1x3x3x8xf32, #tpu.memory_space<vmem>>, vector<1x1x1x8xf32>
    %77 = vector.shape_cast %76 : vector<1x1x1x8xf32> to vector<8xf32>
    %78 = vector.shape_cast %77 : vector<8xf32> to vector<1x8xf32>
    %79 = vector.broadcast %78 : vector<1x8xf32> to vector<64x8xf32>
    %80 = arith.mulf %75, %79 : vector<64x8xf32>
    %81 = arith.addf %74, %80 : vector<64x8xf32>
    %c9 = arith.constant 9 : index
    %c0_56 = arith.constant 0 : index
    %82 = vector.load %arg11[%c9, %c0_56] : memref<96x8xf32, #tpu.memory_space<vmem>>, vector<64x8xf32>
    %c0_57 = arith.constant 0 : index
    %c0_58 = arith.constant 0 : index
    %c2_59 = arith.constant 2 : index
    %c0_60 = arith.constant 0 : index
    %83 = vector.load %arg6[%c0_57, %c0_58, %c2_59, %c0_60] : memref<1x3x3x8xf32, #tpu.memory_space<vmem>>, vector<1x1x1x8xf32>
    %84 = vector.shape_cast %83 : vector<1x1x1x8xf32> to vector<8xf32>
    %85 = vector.shape_cast %84 : vector<8xf32> to vector<1x8xf32>
    %86 = vector.broadcast %85 : vector<1x8xf32> to vector<64x8xf32>
    %87 = arith.mulf %82, %86 : vector<64x8xf32>
    %c17 = arith.constant 17 : index
    %c0_61 = arith.constant 0 : index
    %88 = vector.load %arg11[%c17, %c0_61] : memref<96x8xf32, #tpu.memory_space<vmem>>, vector<64x8xf32>
    %c0_62 = arith.constant 0 : index
    %c1_63 = arith.constant 1 : index
    %c2_64 = arith.constant 2 : index
    %c0_65 = arith.constant 0 : index
    %89 = vector.load %arg6[%c0_62, %c1_63, %c2_64, %c0_65] : memref<1x3x3x8xf32, #tpu.memory_space<vmem>>, vector<1x1x1x8xf32>
    %90 = vector.shape_cast %89 : vector<1x1x1x8xf32> to vector<8xf32>
    %91 = vector.shape_cast %90 : vector<8xf32> to vector<1x8xf32>
    %92 = vector.broadcast %91 : vector<1x8xf32> to vector<64x8xf32>
    %93 = arith.mulf %88, %92 : vector<64x8xf32>
    %94 = arith.addf %87, %93 : vector<64x8xf32>
    %c25 = arith.constant 25 : index
    %c0_66 = arith.constant 0 : index
    %95 = vector.load %arg11[%c25, %c0_66] : memref<96x8xf32, #tpu.memory_space<vmem>>, vector<64x8xf32>
    %c0_67 = arith.constant 0 : index
    %c2_68 = arith.constant 2 : index
    %c2_69 = arith.constant 2 : index
    %c0_70 = arith.constant 0 : index
    %96 = vector.load %arg6[%c0_67, %c2_68, %c2_69, %c0_70] : memref<1x3x3x8xf32, #tpu.memory_space<vmem>>, vector<1x1x1x8xf32>
    %97 = vector.shape_cast %96 : vector<1x1x1x8xf32> to vector<8xf32>
    %98 = vector.shape_cast %97 : vector<8xf32> to vector<1x8xf32>
    %99 = vector.broadcast %98 : vector<1x8xf32> to vector<64x8xf32>
    %100 = arith.mulf %95, %99 : vector<64x8xf32>
    %101 = arith.addf %94, %100 : vector<64x8xf32>
    %cst_71 = arith.constant 0.000000e+00 : f32
    %102 = vector.broadcast %cst_71 : f32 to vector<64x8xf32>
    %103 = arith.select %8, %61, %102 : vector<64x8xi1>, vector<64x8xf32>
    %cst_72 = arith.constant 0.000000e+00 : f32
    %104 = vector.broadcast %cst_72 : f32 to vector<64x8xf32>
    %105 = arith.select %10, %101, %104 : vector<64x8xi1>, vector<64x8xf32>
    %106 = arith.addf %103, %81 : vector<64x8xf32>
    %107 = arith.addf %106, %105 : vector<64x8xf32>
    %108 = vector.shape_cast %22 : vector<8xf32> to vector<1x8xf32>
    %109 = vector.broadcast %108 : vector<1x8xf32> to vector<64x8xf32>
    %110 = arith.addf %107, %109 : vector<64x8xf32>
    %cst_73 = arith.constant 0.000000e+00 : f32
    %111 = vector.broadcast %cst_73 : f32 to vector<64x8xf32>
    %112 = arith.maximumf %110, %111 : vector<64x8xf32>
    %cst_74 = arith.constant dense<0.000000e+00> : vector<64x16xf32>
    %113 = tpu.matmul %112, %24, %cst_74 {dimension_numbers = #tpu.dot_dimension_numbers<[1], [0], [0], [1], [0, 0, 1, 1], [], []>} : vector<64x8xf32>, vector<8x16xf32>, vector<64x16xf32> -> vector<64x16xf32>
    %114 = vector.shape_cast %26 : vector<16xf32> to vector<1x16xf32>
    %115 = vector.broadcast %114 : vector<1x16xf32> to vector<64x16xf32>
    %116 = arith.addf %113, %115 : vector<64x16xf32>
    %117 = arith.addf %12, %116 : vector<64x16xf32>
    %c0_75 = arith.constant 0 : index
    %c0_76 = arith.constant 0 : index
    %c0_77 = arith.constant 0 : index
    %118 = vector.load %arg10[%c0_75, %c0_76, %c0_77] : memref<1x64x16xf32, #tpu.memory_space<vmem>>, vector<1x64x16xf32>
    %119 = vector.shape_cast %118 : vector<1x64x16xf32> to vector<64x16xf32>
    %120 = vector.shape_cast %117 : vector<64x16xf32> to vector<1x64x16xf32>
    tpu.vector_store %arg10[%c0_75, %c0_76, %c0_77], %120 {strides = array<i32>} : memref<1x64x16xf32, #tpu.memory_space<vmem>>, vector<1x64x16xf32>,
    return
  }
  func.func @transform_0(%arg0: i32) -> (i32, i32, i32) {
    %c0_i32 = arith.constant 0 : i32
    %c0_i32_0 = arith.constant 0 : i32
    %c0_i32_1 = arith.constant 0 : i32
    return %arg0, %c0_i32, %c0_i32_0 : i32, i32, i32
  }
  func.func @transform_1(%arg0: i32) -> (i32, i32) {
    %c0_i32 = arith.constant 0 : i32
    %c0_i32_0 = arith.constant 0 : i32
    %c0_i32_1 = arith.constant 0 : i32
    return %c0_i32, %c0_i32_0 : i32, i32
  }
  func.func @transform_2(%arg0: i32) -> (i32, i32) {
    %c0_i32 = arith.constant 0 : i32
    %c0_i32_0 = arith.constant 0 : i32
    %c0_i32_1 = arith.constant 0 : i32
    return %c0_i32, %c0_i32_0 : i32, i32
  }
  func.func @transform_3(%arg0: i32) -> (i32, i32, i32) {
    %c0_i32 = arith.constant 0 : i32
    %c0_i32_0 = arith.constant 0 : i32
    %c0_i32_1 = arith.constant 0 : i32
    %c0_i32_2 = arith.constant 0 : i32
    return %c0_i32, %c0_i32_0, %c0_i32_1 : i32, i32, i32
  }
  func.func @transform_4(%arg0: i32) -> (i32, i32) {
    %c0_i32 = arith.constant 0 : i32
    %c0_i32_0 = arith.constant 0 : i32
    %c0_i32_1 = arith.constant 0 : i32
    return %c0_i32, %c0_i32_0 : i32, i32
  }
  func.func @transform_5(%arg0: i32) -> (i32, i32, i32, i32) {
    %c0_i32 = arith.constant 0 : i32
    %c0_i32_0 = arith.constant 0 : i32
    %c0_i32_1 = arith.constant 0 : i32
    %c0_i32_2 = arith.constant 0 : i32
    %c0_i32_3 = arith.constant 0 : i32
    return %c0_i32, %c0_i32_0, %c0_i32_1, %c0_i32_2 : i32, i32, i32, i32
  }
  func.func @transform_6(%arg0: i32) -> (i32, i32) {
    %c0_i32 = arith.constant 0 : i32
    %c0_i32_0 = arith.constant 0 : i32
    %c0_i32_1 = arith.constant 0 : i32
    return %c0_i32, %c0_i32_0 : i32, i32
  }
  func.func @transform_7(%arg0: i32) -> (i32, i32, i32) {
    %c0_i32 = arith.constant 0 : i32
    %c0_i32_0 = arith.constant 0 : i32
    %c0_i32_1 = arith.constant 0 : i32
    %c0_i32_2 = arith.constant 0 : i32
    return %c0_i32, %c0_i32_0, %c0_i32_1 : i32, i32, i32
  }
  func.func @transform_8(%arg0: i32) -> (i32, i32) {
    %c0_i32 = arith.constant 0 : i32
    %c0_i32_0 = arith.constant 0 : i32
    %c0_i32_1 = arith.constant 0 : i32
    return %c0_i32, %c0_i32_0 : i32, i32
  }
  func.func @transform_9(%arg0: i32) -> (i32, i32, i32) {
    %c0_i32 = arith.constant 0 : i32
    %c0_i32_0 = arith.constant 0 : i32
    %c0_i32_1 = arith.constant 0 : i32
    return %arg0, %c0_i32, %c0_i32_0 : i32, i32, i32
  }
}

module attributes {stable_mosaic.version = 11 : i64} {
  func.func @kernel(%arg0: i32, %arg1: memref<1x32x32xf32, #tpu.memory_space<vmem>>, %arg2: memref<1x16xf32, #tpu.memory_space<vmem>>, %arg3: memref<1x16xf32, #tpu.memory_space<vmem>>, %arg4: memref<1x16x8xf32, #tpu.memory_space<vmem>>, %arg5: memref<1x8xf32, #tpu.memory_space<vmem>>, %arg6: memref<1x3x3x8xf32, #tpu.memory_space<vmem>>, %arg7: memref<1x8xf32, #tpu.memory_space<vmem>>, %arg8: memref<1x8x16xf32, #tpu.memory_space<vmem>>, %arg9: memref<1x16xf32, #tpu.memory_space<vmem>>, %arg10: memref<1x16x16xf32, #tpu.memory_space<vmem>>, %arg11: memref<32x8xf32, #tpu.memory_space<vmem>>, %arg12: memref<16x16xf32, #tpu.memory_space<vmem>>) attributes {dimension_semantics = [#tpu.dimension_semantics<parallel>], iteration_bounds = array<i64: 2>, scalar_prefetch = 0 : i64, scratch_operands = 2 : i64, tpu.core_type = #tpu.core_type<tc>, window_params = [{transform_indices = @transform_0, window_bounds = array<i64: 1, 32, 32>}, {pipeline_mode = #tpu.pipeline_mode<synchronous>, transform_indices = @transform_1, window_bounds = array<i64: 1, 16>}, {pipeline_mode = #tpu.pipeline_mode<synchronous>, transform_indices = @transform_2, window_bounds = array<i64: 1, 16>}, {pipeline_mode = #tpu.pipeline_mode<synchronous>, transform_indices = @transform_3, window_bounds = array<i64: 1, 16, 8>}, {pipeline_mode = #tpu.pipeline_mode<synchronous>, transform_indices = @transform_4, window_bounds = array<i64: 1, 8>}, {pipeline_mode = #tpu.pipeline_mode<synchronous>, transform_indices = @transform_5, window_bounds = array<i64: 1, 3, 3, 8>}, {pipeline_mode = #tpu.pipeline_mode<synchronous>, transform_indices = @transform_6, window_bounds = array<i64: 1, 8>}, {pipeline_mode = #tpu.pipeline_mode<synchronous>, transform_indices = @transform_7, window_bounds = array<i64: 1, 8, 16>}, {pipeline_mode = #tpu.pipeline_mode<synchronous>, transform_indices = @transform_8, window_bounds = array<i64: 1, 16>}, {transform_indices = @transform_9, window_bounds = array<i64: 1, 16, 16>}]} {
    %cst = arith.constant 0.000000e+00 : f32
    %0 = vector.broadcast %cst : f32 to vector<8x8xf32>
    %c0 = arith.constant 0 : index
    %c0_0 = arith.constant 0 : index
    %1 = vector.load %arg11[%c0, %c0_0] : memref<32x8xf32, #tpu.memory_space<vmem>>, vector<8x8xf32>
    tpu.vector_store %arg11[%c0, %c0_0], %0 {strides = array<i32>} : memref<32x8xf32, #tpu.memory_space<vmem>>, vector<8x8xf32>,
    %cst_1 = arith.constant 0.000000e+00 : f32
    %2 = vector.broadcast %cst_1 : f32 to vector<8x8xf32>
    %c24 = arith.constant 24 : index
    %c0_2 = arith.constant 0 : index
    %3 = vector.load %arg11[%c24, %c0_2] : memref<32x8xf32, #tpu.memory_space<vmem>>, vector<8x8xf32>
    tpu.vector_store %arg11[%c24, %c0_2], %2 {strides = array<i32>} : memref<32x8xf32, #tpu.memory_space<vmem>>, vector<8x8xf32>,
    %4 = tpu.iota {dimensions = array<i32: 0>} : vector<16x8xi32>
    %c3_i32 = arith.constant 3 : i32
    %5 = vector.broadcast %c3_i32 : i32 to vector<16x8xi32>
    %6 = arith.andi %4, %5 : vector<16x8xi32>
    %c0_i32 = arith.constant 0 : i32
    %7 = vector.broadcast %c0_i32 : i32 to vector<16x8xi32>
    %8 = arith.cmpi ne, %6, %7 : vector<16x8xi32>
    %c3_i32_3 = arith.constant 3 : i32
    %9 = vector.broadcast %c3_i32_3 : i32 to vector<16x8xi32>
    %10 = arith.cmpi ne, %6, %9 : vector<16x8xi32>
    %c0_4 = arith.constant 0 : index
    %c0_5 = arith.constant 0 : index
    %c0_6 = arith.constant 0 : index
    %11 = vector.load %arg1[%c0_4, %c0_5, %c0_6] : memref<1x32x32xf32, #tpu.memory_space<vmem>>, vector<1x4x32xf32>
    %12 = vector.shape_cast %11 : vector<1x4x32xf32> to vector<4x32xf32>
    %c0_7 = arith.constant 0 : index
    %c4 = arith.constant 4 : index
    %c0_8 = arith.constant 0 : index
    %13 = vector.load %arg1[%c0_7, %c4, %c0_8] : memref<1x32x32xf32, #tpu.memory_space<vmem>>, vector<1x4x32xf32>
    %14 = vector.shape_cast %13 : vector<1x4x32xf32> to vector<4x32xf32>
    %15 = arith.maximumf %12, %14 : vector<4x32xf32>
    %16 = vector.extract_strided_slice %15 {offsets = [0, 0], sizes = [4, 16], strides = [1, 1]} : vector<4x32xf32> to vector<4x16xf32>
    %17 = vector.extract_strided_slice %15 {offsets = [0, 16], sizes = [4, 16], strides = [1, 1]} : vector<4x32xf32> to vector<4x16xf32>
    %18 = arith.maximumf %16, %17 : vector<4x16xf32>
    %c0_9 = arith.constant 0 : index
    %c0_10 = arith.constant 0 : index
    %19 = vector.load %arg12[%c0_9, %c0_10] : memref<16x16xf32, #tpu.memory_space<vmem>>, vector<4x16xf32>
    tpu.vector_store %arg12[%c0_9, %c0_10], %18 {strides = array<i32>} : memref<16x16xf32, #tpu.memory_space<vmem>>, vector<4x16xf32>,
    %c0_11 = arith.constant 0 : index
    %c8 = arith.constant 8 : index
    %c0_12 = arith.constant 0 : index
    %20 = vector.load %arg1[%c0_11, %c8, %c0_12] : memref<1x32x32xf32, #tpu.memory_space<vmem>>, vector<1x4x32xf32>
    %21 = vector.shape_cast %20 : vector<1x4x32xf32> to vector<4x32xf32>
    %c0_13 = arith.constant 0 : index
    %c12 = arith.constant 12 : index
    %c0_14 = arith.constant 0 : index
    %22 = vector.load %arg1[%c0_13, %c12, %c0_14] : memref<1x32x32xf32, #tpu.memory_space<vmem>>, vector<1x4x32xf32>
    %23 = vector.shape_cast %22 : vector<1x4x32xf32> to vector<4x32xf32>
    %24 = arith.maximumf %21, %23 : vector<4x32xf32>
    %25 = vector.extract_strided_slice %24 {offsets = [0, 0], sizes = [4, 16], strides = [1, 1]} : vector<4x32xf32> to vector<4x16xf32>
    %26 = vector.extract_strided_slice %24 {offsets = [0, 16], sizes = [4, 16], strides = [1, 1]} : vector<4x32xf32> to vector<4x16xf32>
    %27 = arith.maximumf %25, %26 : vector<4x16xf32>
    %c4_15 = arith.constant 4 : index
    %c0_16 = arith.constant 0 : index
    %28 = vector.load %arg12[%c4_15, %c0_16] : memref<16x16xf32, #tpu.memory_space<vmem>>, vector<4x16xf32>
    tpu.vector_store %arg12[%c4_15, %c0_16], %27 {strides = array<i32>} : memref<16x16xf32, #tpu.memory_space<vmem>>, vector<4x16xf32>,
    %c0_17 = arith.constant 0 : index
    %c16 = arith.constant 16 : index
    %c0_18 = arith.constant 0 : index
    %29 = vector.load %arg1[%c0_17, %c16, %c0_18] : memref<1x32x32xf32, #tpu.memory_space<vmem>>, vector<1x4x32xf32>
    %30 = vector.shape_cast %29 : vector<1x4x32xf32> to vector<4x32xf32>
    %c0_19 = arith.constant 0 : index
    %c20 = arith.constant 20 : index
    %c0_20 = arith.constant 0 : index
    %31 = vector.load %arg1[%c0_19, %c20, %c0_20] : memref<1x32x32xf32, #tpu.memory_space<vmem>>, vector<1x4x32xf32>
    %32 = vector.shape_cast %31 : vector<1x4x32xf32> to vector<4x32xf32>
    %33 = arith.maximumf %30, %32 : vector<4x32xf32>
    %34 = vector.extract_strided_slice %33 {offsets = [0, 0], sizes = [4, 16], strides = [1, 1]} : vector<4x32xf32> to vector<4x16xf32>
    %35 = vector.extract_strided_slice %33 {offsets = [0, 16], sizes = [4, 16], strides = [1, 1]} : vector<4x32xf32> to vector<4x16xf32>
    %36 = arith.maximumf %34, %35 : vector<4x16xf32>
    %c8_21 = arith.constant 8 : index
    %c0_22 = arith.constant 0 : index
    %37 = vector.load %arg12[%c8_21, %c0_22] : memref<16x16xf32, #tpu.memory_space<vmem>>, vector<4x16xf32>
    tpu.vector_store %arg12[%c8_21, %c0_22], %36 {strides = array<i32>} : memref<16x16xf32, #tpu.memory_space<vmem>>, vector<4x16xf32>,
    %c0_23 = arith.constant 0 : index
    %c24_24 = arith.constant 24 : index
    %c0_25 = arith.constant 0 : index
    %38 = vector.load %arg1[%c0_23, %c24_24, %c0_25] : memref<1x32x32xf32, #tpu.memory_space<vmem>>, vector<1x4x32xf32>
    %39 = vector.shape_cast %38 : vector<1x4x32xf32> to vector<4x32xf32>
    %c0_26 = arith.constant 0 : index
    %c28 = arith.constant 28 : index
    %c0_27 = arith.constant 0 : index
    %40 = vector.load %arg1[%c0_26, %c28, %c0_27] : memref<1x32x32xf32, #tpu.memory_space<vmem>>, vector<1x4x32xf32>
    %41 = vector.shape_cast %40 : vector<1x4x32xf32> to vector<4x32xf32>
    %42 = arith.maximumf %39, %41 : vector<4x32xf32>
    %43 = vector.extract_strided_slice %42 {offsets = [0, 0], sizes = [4, 16], strides = [1, 1]} : vector<4x32xf32> to vector<4x16xf32>
    %44 = vector.extract_strided_slice %42 {offsets = [0, 16], sizes = [4, 16], strides = [1, 1]} : vector<4x32xf32> to vector<4x16xf32>
    %45 = arith.maximumf %43, %44 : vector<4x16xf32>
    %c12_28 = arith.constant 12 : index
    %c0_29 = arith.constant 0 : index
    %46 = vector.load %arg12[%c12_28, %c0_29] : memref<16x16xf32, #tpu.memory_space<vmem>>, vector<4x16xf32>
    tpu.vector_store %arg12[%c12_28, %c0_29], %45 {strides = array<i32>} : memref<16x16xf32, #tpu.memory_space<vmem>>, vector<4x16xf32>,
    %c0_30 = arith.constant 0 : index
    %c0_31 = arith.constant 0 : index
    %47 = vector.load %arg12[%c0_30, %c0_31] : memref<16x16xf32, #tpu.memory_space<vmem>>, vector<16x16xf32>
    %c0_32 = arith.constant 0 : index
    %c0_33 = arith.constant 0 : index
    %48 = vector.load %arg2[%c0_32, %c0_33] : memref<1x16xf32, #tpu.memory_space<vmem>>, vector<1x16xf32>
    %49 = vector.shape_cast %48 : vector<1x16xf32> to vector<16xf32>
    %c0_34 = arith.constant 0 : index
    %c0_35 = arith.constant 0 : index
    %50 = vector.load %arg3[%c0_34, %c0_35] : memref<1x16xf32, #tpu.memory_space<vmem>>, vector<1x16xf32>
    %51 = vector.shape_cast %50 : vector<1x16xf32> to vector<16xf32>
    %c0_36 = arith.constant 0 : index
    %c0_37 = arith.constant 0 : index
    %c0_38 = arith.constant 0 : index
    %52 = vector.load %arg4[%c0_36, %c0_37, %c0_38] : memref<1x16x8xf32, #tpu.memory_space<vmem>>, vector<1x16x8xf32>
    %53 = vector.shape_cast %52 : vector<1x16x8xf32> to vector<16x8xf32>
    %c0_39 = arith.constant 0 : index
    %c0_40 = arith.constant 0 : index
    %54 = vector.load %arg5[%c0_39, %c0_40] : memref<1x8xf32, #tpu.memory_space<vmem>>, vector<1x8xf32>
    %55 = vector.shape_cast %54 : vector<1x8xf32> to vector<8xf32>
    %c0_41 = arith.constant 0 : index
    %c0_42 = arith.constant 0 : index
    %56 = vector.load %arg7[%c0_41, %c0_42] : memref<1x8xf32, #tpu.memory_space<vmem>>, vector<1x8xf32>
    %57 = vector.shape_cast %56 : vector<1x8xf32> to vector<8xf32>
    %c0_43 = arith.constant 0 : index
    %c0_44 = arith.constant 0 : index
    %c0_45 = arith.constant 0 : index
    %58 = vector.load %arg8[%c0_43, %c0_44, %c0_45] : memref<1x8x16xf32, #tpu.memory_space<vmem>>, vector<1x8x16xf32>
    %59 = vector.shape_cast %58 : vector<1x8x16xf32> to vector<8x16xf32>
    %c0_46 = arith.constant 0 : index
    %c0_47 = arith.constant 0 : index
    %60 = vector.load %arg9[%c0_46, %c0_47] : memref<1x16xf32, #tpu.memory_space<vmem>>, vector<1x16xf32>
    %61 = vector.shape_cast %60 : vector<1x16xf32> to vector<16xf32>
    %62 = vector.shape_cast %49 : vector<16xf32> to vector<1x16xf32>
    %63 = vector.broadcast %62 : vector<1x16xf32> to vector<16x16xf32>
    %64 = arith.mulf %47, %63 : vector<16x16xf32>
    %65 = vector.shape_cast %51 : vector<16xf32> to vector<1x16xf32>
    %66 = vector.broadcast %65 : vector<1x16xf32> to vector<16x16xf32>
    %67 = arith.addf %64, %66 : vector<16x16xf32>
    %cst_48 = arith.constant 0.000000e+00 : f32
    %68 = vector.broadcast %cst_48 : f32 to vector<16x16xf32>
    %69 = arith.maximumf %67, %68 : vector<16x16xf32>
    %cst_49 = arith.constant dense<0.000000e+00> : vector<16x8xf32>
    %70 = tpu.matmul %69, %53, %cst_49 {dimension_numbers = #tpu.dot_dimension_numbers<[1], [0], [0], [1], [0, 0, 1, 1], [], []>} : vector<16x16xf32>, vector<16x8xf32>, vector<16x8xf32> -> vector<16x8xf32>
    %71 = vector.shape_cast %55 : vector<8xf32> to vector<1x8xf32>
    %72 = vector.broadcast %71 : vector<1x8xf32> to vector<16x8xf32>
    %73 = arith.addf %70, %72 : vector<16x8xf32>
    %cst_50 = arith.constant 0.000000e+00 : f32
    %74 = vector.broadcast %cst_50 : f32 to vector<16x8xf32>
    %75 = arith.maximumf %73, %74 : vector<16x8xf32>
    %c8_51 = arith.constant 8 : index
    %c0_52 = arith.constant 0 : index
    %76 = vector.load %arg11[%c8_51, %c0_52] : memref<32x8xf32, #tpu.memory_space<vmem>>, vector<16x8xf32>
    tpu.vector_store %arg11[%c8_51, %c0_52], %75 {strides = array<i32>} : memref<32x8xf32, #tpu.memory_space<vmem>>, vector<16x8xf32>,
    %c3 = arith.constant 3 : index
    %c0_53 = arith.constant 0 : index
    %77 = vector.load %arg11[%c3, %c0_53] : memref<32x8xf32, #tpu.memory_space<vmem>>, vector<16x8xf32>
    %c0_54 = arith.constant 0 : index
    %c0_55 = arith.constant 0 : index
    %c0_56 = arith.constant 0 : index
    %c0_57 = arith.constant 0 : index
    %78 = vector.load %arg6[%c0_54, %c0_55, %c0_56, %c0_57] : memref<1x3x3x8xf32, #tpu.memory_space<vmem>>, vector<1x1x1x8xf32>
    %79 = vector.shape_cast %78 : vector<1x1x1x8xf32> to vector<8xf32>
    %80 = vector.shape_cast %79 : vector<8xf32> to vector<1x8xf32>
    %81 = vector.broadcast %80 : vector<1x8xf32> to vector<16x8xf32>
    %82 = arith.mulf %77, %81 : vector<16x8xf32>
    %c7 = arith.constant 7 : index
    %c0_58 = arith.constant 0 : index
    %83 = vector.load %arg11[%c7, %c0_58] : memref<32x8xf32, #tpu.memory_space<vmem>>, vector<16x8xf32>
    %c0_59 = arith.constant 0 : index
    %c1 = arith.constant 1 : index
    %c0_60 = arith.constant 0 : index
    %c0_61 = arith.constant 0 : index
    %84 = vector.load %arg6[%c0_59, %c1, %c0_60, %c0_61] : memref<1x3x3x8xf32, #tpu.memory_space<vmem>>, vector<1x1x1x8xf32>
    %85 = vector.shape_cast %84 : vector<1x1x1x8xf32> to vector<8xf32>
    %86 = vector.shape_cast %85 : vector<8xf32> to vector<1x8xf32>
    %87 = vector.broadcast %86 : vector<1x8xf32> to vector<16x8xf32>
    %88 = arith.mulf %83, %87 : vector<16x8xf32>
    %89 = arith.addf %82, %88 : vector<16x8xf32>
    %c11 = arith.constant 11 : index
    %c0_62 = arith.constant 0 : index
    %90 = vector.load %arg11[%c11, %c0_62] : memref<32x8xf32, #tpu.memory_space<vmem>>, vector<16x8xf32>
    %c0_63 = arith.constant 0 : index
    %c2 = arith.constant 2 : index
    %c0_64 = arith.constant 0 : index
    %c0_65 = arith.constant 0 : index
    %91 = vector.load %arg6[%c0_63, %c2, %c0_64, %c0_65] : memref<1x3x3x8xf32, #tpu.memory_space<vmem>>, vector<1x1x1x8xf32>
    %92 = vector.shape_cast %91 : vector<1x1x1x8xf32> to vector<8xf32>
    %93 = vector.shape_cast %92 : vector<8xf32> to vector<1x8xf32>
    %94 = vector.broadcast %93 : vector<1x8xf32> to vector<16x8xf32>
    %95 = arith.mulf %90, %94 : vector<16x8xf32>
    %96 = arith.addf %89, %95 : vector<16x8xf32>
    %c4_66 = arith.constant 4 : index
    %c0_67 = arith.constant 0 : index
    %97 = vector.load %arg11[%c4_66, %c0_67] : memref<32x8xf32, #tpu.memory_space<vmem>>, vector<16x8xf32>
    %c0_68 = arith.constant 0 : index
    %c0_69 = arith.constant 0 : index
    %c1_70 = arith.constant 1 : index
    %c0_71 = arith.constant 0 : index
    %98 = vector.load %arg6[%c0_68, %c0_69, %c1_70, %c0_71] : memref<1x3x3x8xf32, #tpu.memory_space<vmem>>, vector<1x1x1x8xf32>
    %99 = vector.shape_cast %98 : vector<1x1x1x8xf32> to vector<8xf32>
    %100 = vector.shape_cast %99 : vector<8xf32> to vector<1x8xf32>
    %101 = vector.broadcast %100 : vector<1x8xf32> to vector<16x8xf32>
    %102 = arith.mulf %97, %101 : vector<16x8xf32>
    %c8_72 = arith.constant 8 : index
    %c0_73 = arith.constant 0 : index
    %103 = vector.load %arg11[%c8_72, %c0_73] : memref<32x8xf32, #tpu.memory_space<vmem>>, vector<16x8xf32>
    %c0_74 = arith.constant 0 : index
    %c1_75 = arith.constant 1 : index
    %c1_76 = arith.constant 1 : index
    %c0_77 = arith.constant 0 : index
    %104 = vector.load %arg6[%c0_74, %c1_75, %c1_76, %c0_77] : memref<1x3x3x8xf32, #tpu.memory_space<vmem>>, vector<1x1x1x8xf32>
    %105 = vector.shape_cast %104 : vector<1x1x1x8xf32> to vector<8xf32>
    %106 = vector.shape_cast %105 : vector<8xf32> to vector<1x8xf32>
    %107 = vector.broadcast %106 : vector<1x8xf32> to vector<16x8xf32>
    %108 = arith.mulf %103, %107 : vector<16x8xf32>
    %109 = arith.addf %102, %108 : vector<16x8xf32>
    %c12_78 = arith.constant 12 : index
    %c0_79 = arith.constant 0 : index
    %110 = vector.load %arg11[%c12_78, %c0_79] : memref<32x8xf32, #tpu.memory_space<vmem>>, vector<16x8xf32>
    %c0_80 = arith.constant 0 : index
    %c2_81 = arith.constant 2 : index
    %c1_82 = arith.constant 1 : index
    %c0_83 = arith.constant 0 : index
    %111 = vector.load %arg6[%c0_80, %c2_81, %c1_82, %c0_83] : memref<1x3x3x8xf32, #tpu.memory_space<vmem>>, vector<1x1x1x8xf32>
    %112 = vector.shape_cast %111 : vector<1x1x1x8xf32> to vector<8xf32>
    %113 = vector.shape_cast %112 : vector<8xf32> to vector<1x8xf32>
    %114 = vector.broadcast %113 : vector<1x8xf32> to vector<16x8xf32>
    %115 = arith.mulf %110, %114 : vector<16x8xf32>
    %116 = arith.addf %109, %115 : vector<16x8xf32>
    %c5 = arith.constant 5 : index
    %c0_84 = arith.constant 0 : index
    %117 = vector.load %arg11[%c5, %c0_84] : memref<32x8xf32, #tpu.memory_space<vmem>>, vector<16x8xf32>
    %c0_85 = arith.constant 0 : index
    %c0_86 = arith.constant 0 : index
    %c2_87 = arith.constant 2 : index
    %c0_88 = arith.constant 0 : index
    %118 = vector.load %arg6[%c0_85, %c0_86, %c2_87, %c0_88] : memref<1x3x3x8xf32, #tpu.memory_space<vmem>>, vector<1x1x1x8xf32>
    %119 = vector.shape_cast %118 : vector<1x1x1x8xf32> to vector<8xf32>
    %120 = vector.shape_cast %119 : vector<8xf32> to vector<1x8xf32>
    %121 = vector.broadcast %120 : vector<1x8xf32> to vector<16x8xf32>
    %122 = arith.mulf %117, %121 : vector<16x8xf32>
    %c9 = arith.constant 9 : index
    %c0_89 = arith.constant 0 : index
    %123 = vector.load %arg11[%c9, %c0_89] : memref<32x8xf32, #tpu.memory_space<vmem>>, vector<16x8xf32>
    %c0_90 = arith.constant 0 : index
    %c1_91 = arith.constant 1 : index
    %c2_92 = arith.constant 2 : index
    %c0_93 = arith.constant 0 : index
    %124 = vector.load %arg6[%c0_90, %c1_91, %c2_92, %c0_93] : memref<1x3x3x8xf32, #tpu.memory_space<vmem>>, vector<1x1x1x8xf32>
    %125 = vector.shape_cast %124 : vector<1x1x1x8xf32> to vector<8xf32>
    %126 = vector.shape_cast %125 : vector<8xf32> to vector<1x8xf32>
    %127 = vector.broadcast %126 : vector<1x8xf32> to vector<16x8xf32>
    %128 = arith.mulf %123, %127 : vector<16x8xf32>
    %129 = arith.addf %122, %128 : vector<16x8xf32>
    %c13 = arith.constant 13 : index
    %c0_94 = arith.constant 0 : index
    %130 = vector.load %arg11[%c13, %c0_94] : memref<32x8xf32, #tpu.memory_space<vmem>>, vector<16x8xf32>
    %c0_95 = arith.constant 0 : index
    %c2_96 = arith.constant 2 : index
    %c2_97 = arith.constant 2 : index
    %c0_98 = arith.constant 0 : index
    %131 = vector.load %arg6[%c0_95, %c2_96, %c2_97, %c0_98] : memref<1x3x3x8xf32, #tpu.memory_space<vmem>>, vector<1x1x1x8xf32>
    %132 = vector.shape_cast %131 : vector<1x1x1x8xf32> to vector<8xf32>
    %133 = vector.shape_cast %132 : vector<8xf32> to vector<1x8xf32>
    %134 = vector.broadcast %133 : vector<1x8xf32> to vector<16x8xf32>
    %135 = arith.mulf %130, %134 : vector<16x8xf32>
    %136 = arith.addf %129, %135 : vector<16x8xf32>
    %cst_99 = arith.constant 0.000000e+00 : f32
    %137 = vector.broadcast %cst_99 : f32 to vector<16x8xf32>
    %138 = arith.select %8, %96, %137 : vector<16x8xi1>, vector<16x8xf32>
    %cst_100 = arith.constant 0.000000e+00 : f32
    %139 = vector.broadcast %cst_100 : f32 to vector<16x8xf32>
    %140 = arith.select %10, %136, %139 : vector<16x8xi1>, vector<16x8xf32>
    %141 = arith.addf %138, %116 : vector<16x8xf32>
    %142 = arith.addf %141, %140 : vector<16x8xf32>
    %143 = vector.shape_cast %57 : vector<8xf32> to vector<1x8xf32>
    %144 = vector.broadcast %143 : vector<1x8xf32> to vector<16x8xf32>
    %145 = arith.addf %142, %144 : vector<16x8xf32>
    %cst_101 = arith.constant 0.000000e+00 : f32
    %146 = vector.broadcast %cst_101 : f32 to vector<16x8xf32>
    %147 = arith.maximumf %145, %146 : vector<16x8xf32>
    %cst_102 = arith.constant dense<0.000000e+00> : vector<16x16xf32>
    %148 = tpu.matmul %147, %59, %cst_102 {dimension_numbers = #tpu.dot_dimension_numbers<[1], [0], [0], [1], [0, 0, 1, 1], [], []>} : vector<16x8xf32>, vector<8x16xf32>, vector<16x16xf32> -> vector<16x16xf32>
    %149 = vector.shape_cast %61 : vector<16xf32> to vector<1x16xf32>
    %150 = vector.broadcast %149 : vector<1x16xf32> to vector<16x16xf32>
    %151 = arith.addf %148, %150 : vector<16x16xf32>
    %152 = arith.addf %47, %151 : vector<16x16xf32>
    %c0_103 = arith.constant 0 : index
    %c0_104 = arith.constant 0 : index
    %c0_105 = arith.constant 0 : index
    %153 = vector.load %arg10[%c0_103, %c0_104, %c0_105] : memref<1x16x16xf32, #tpu.memory_space<vmem>>, vector<1x16x16xf32>
    %154 = vector.shape_cast %153 : vector<1x16x16xf32> to vector<16x16xf32>
    %155 = vector.shape_cast %152 : vector<16x16xf32> to vector<1x16x16xf32>
    tpu.vector_store %arg10[%c0_103, %c0_104, %c0_105], %155 {strides = array<i32>} : memref<1x16x16xf32, #tpu.memory_space<vmem>>, vector<1x16x16xf32>,
    return
  }
  func.func @transform_0(%arg0: i32) -> (i32, i32, i32) {
    %c0_i32 = arith.constant 0 : i32
    %c0_i32_0 = arith.constant 0 : i32
    %c0_i32_1 = arith.constant 0 : i32
    return %arg0, %c0_i32, %c0_i32_0 : i32, i32, i32
  }
  func.func @transform_1(%arg0: i32) -> (i32, i32) {
    %c0_i32 = arith.constant 0 : i32
    %c0_i32_0 = arith.constant 0 : i32
    %c0_i32_1 = arith.constant 0 : i32
    return %c0_i32, %c0_i32_0 : i32, i32
  }
  func.func @transform_2(%arg0: i32) -> (i32, i32) {
    %c0_i32 = arith.constant 0 : i32
    %c0_i32_0 = arith.constant 0 : i32
    %c0_i32_1 = arith.constant 0 : i32
    return %c0_i32, %c0_i32_0 : i32, i32
  }
  func.func @transform_3(%arg0: i32) -> (i32, i32, i32) {
    %c0_i32 = arith.constant 0 : i32
    %c0_i32_0 = arith.constant 0 : i32
    %c0_i32_1 = arith.constant 0 : i32
    %c0_i32_2 = arith.constant 0 : i32
    return %c0_i32, %c0_i32_0, %c0_i32_1 : i32, i32, i32
  }
  func.func @transform_4(%arg0: i32) -> (i32, i32) {
    %c0_i32 = arith.constant 0 : i32
    %c0_i32_0 = arith.constant 0 : i32
    %c0_i32_1 = arith.constant 0 : i32
    return %c0_i32, %c0_i32_0 : i32, i32
  }
  func.func @transform_5(%arg0: i32) -> (i32, i32, i32, i32) {
    %c0_i32 = arith.constant 0 : i32
    %c0_i32_0 = arith.constant 0 : i32
    %c0_i32_1 = arith.constant 0 : i32
    %c0_i32_2 = arith.constant 0 : i32
    %c0_i32_3 = arith.constant 0 : i32
    return %c0_i32, %c0_i32_0, %c0_i32_1, %c0_i32_2 : i32, i32, i32, i32
  }
  func.func @transform_6(%arg0: i32) -> (i32, i32) {
    %c0_i32 = arith.constant 0 : i32
    %c0_i32_0 = arith.constant 0 : i32
    %c0_i32_1 = arith.constant 0 : i32
    return %c0_i32, %c0_i32_0 : i32, i32
  }
  func.func @transform_7(%arg0: i32) -> (i32, i32, i32) {
    %c0_i32 = arith.constant 0 : i32
    %c0_i32_0 = arith.constant 0 : i32
    %c0_i32_1 = arith.constant 0 : i32
    %c0_i32_2 = arith.constant 0 : i32
    return %c0_i32, %c0_i32_0, %c0_i32_1 : i32, i32, i32
  }
  func.func @transform_8(%arg0: i32) -> (i32, i32) {
    %c0_i32 = arith.constant 0 : i32
    %c0_i32_0 = arith.constant 0 : i32
    %c0_i32_1 = arith.constant 0 : i32
    return %c0_i32, %c0_i32_0 : i32, i32
  }
  func.func @transform_9(%arg0: i32) -> (i32, i32, i32) {
    %c0_i32 = arith.constant 0 : i32
    %c0_i32_0 = arith.constant 0 : i32
    %c0_i32_1 = arith.constant 0 : i32
    return %arg0, %c0_i32, %c0_i32_0 : i32, i32, i32
  }
}

module attributes {stable_mosaic.version = 11 : i64} {
  func.func @kernel(%arg0: i32, %arg1: memref<1x16x16xf32, #tpu.memory_space<vmem>>, %arg2: memref<1x16xf32, #tpu.memory_space<vmem>>, %arg3: memref<1x16xf32, #tpu.memory_space<vmem>>, %arg4: memref<1x16x8xf32, #tpu.memory_space<vmem>>, %arg5: memref<1x8xf32, #tpu.memory_space<vmem>>, %arg6: memref<1x3x3x8xf32, #tpu.memory_space<vmem>>, %arg7: memref<1x8xf32, #tpu.memory_space<vmem>>, %arg8: memref<1x8x16xf32, #tpu.memory_space<vmem>>, %arg9: memref<1x16xf32, #tpu.memory_space<vmem>>, %arg10: memref<1x16x16xf32, #tpu.memory_space<vmem>>, %arg11: memref<32x8xf32, #tpu.memory_space<vmem>>) attributes {dimension_semantics = [#tpu.dimension_semantics<parallel>], iteration_bounds = array<i64: 2>, scalar_prefetch = 0 : i64, scratch_operands = 1 : i64, tpu.core_type = #tpu.core_type<tc>, window_params = [{transform_indices = @transform_0, window_bounds = array<i64: 1, 16, 16>}, {pipeline_mode = #tpu.pipeline_mode<synchronous>, transform_indices = @transform_1, window_bounds = array<i64: 1, 16>}, {pipeline_mode = #tpu.pipeline_mode<synchronous>, transform_indices = @transform_2, window_bounds = array<i64: 1, 16>}, {pipeline_mode = #tpu.pipeline_mode<synchronous>, transform_indices = @transform_3, window_bounds = array<i64: 1, 16, 8>}, {pipeline_mode = #tpu.pipeline_mode<synchronous>, transform_indices = @transform_4, window_bounds = array<i64: 1, 8>}, {pipeline_mode = #tpu.pipeline_mode<synchronous>, transform_indices = @transform_5, window_bounds = array<i64: 1, 3, 3, 8>}, {pipeline_mode = #tpu.pipeline_mode<synchronous>, transform_indices = @transform_6, window_bounds = array<i64: 1, 8>}, {pipeline_mode = #tpu.pipeline_mode<synchronous>, transform_indices = @transform_7, window_bounds = array<i64: 1, 8, 16>}, {pipeline_mode = #tpu.pipeline_mode<synchronous>, transform_indices = @transform_8, window_bounds = array<i64: 1, 16>}, {transform_indices = @transform_9, window_bounds = array<i64: 1, 16, 16>}]} {
    %cst = arith.constant 0.000000e+00 : f32
    %0 = vector.broadcast %cst : f32 to vector<8x8xf32>
    %c0 = arith.constant 0 : index
    %c0_0 = arith.constant 0 : index
    %1 = vector.load %arg11[%c0, %c0_0] : memref<32x8xf32, #tpu.memory_space<vmem>>, vector<8x8xf32>
    tpu.vector_store %arg11[%c0, %c0_0], %0 {strides = array<i32>} : memref<32x8xf32, #tpu.memory_space<vmem>>, vector<8x8xf32>,
    %cst_1 = arith.constant 0.000000e+00 : f32
    %2 = vector.broadcast %cst_1 : f32 to vector<8x8xf32>
    %c24 = arith.constant 24 : index
    %c0_2 = arith.constant 0 : index
    %3 = vector.load %arg11[%c24, %c0_2] : memref<32x8xf32, #tpu.memory_space<vmem>>, vector<8x8xf32>
    tpu.vector_store %arg11[%c24, %c0_2], %2 {strides = array<i32>} : memref<32x8xf32, #tpu.memory_space<vmem>>, vector<8x8xf32>,
    %4 = tpu.iota {dimensions = array<i32: 0>} : vector<16x8xi32>
    %c3_i32 = arith.constant 3 : i32
    %5 = vector.broadcast %c3_i32 : i32 to vector<16x8xi32>
    %6 = arith.andi %4, %5 : vector<16x8xi32>
    %c0_i32 = arith.constant 0 : i32
    %7 = vector.broadcast %c0_i32 : i32 to vector<16x8xi32>
    %8 = arith.cmpi ne, %6, %7 : vector<16x8xi32>
    %c3_i32_3 = arith.constant 3 : i32
    %9 = vector.broadcast %c3_i32_3 : i32 to vector<16x8xi32>
    %10 = arith.cmpi ne, %6, %9 : vector<16x8xi32>
    %c0_4 = arith.constant 0 : index
    %c0_5 = arith.constant 0 : index
    %c0_6 = arith.constant 0 : index
    %11 = vector.load %arg1[%c0_4, %c0_5, %c0_6] : memref<1x16x16xf32, #tpu.memory_space<vmem>>, vector<1x16x16xf32>
    %12 = vector.shape_cast %11 : vector<1x16x16xf32> to vector<16x16xf32>
    %c0_7 = arith.constant 0 : index
    %c0_8 = arith.constant 0 : index
    %13 = vector.load %arg2[%c0_7, %c0_8] : memref<1x16xf32, #tpu.memory_space<vmem>>, vector<1x16xf32>
    %14 = vector.shape_cast %13 : vector<1x16xf32> to vector<16xf32>
    %c0_9 = arith.constant 0 : index
    %c0_10 = arith.constant 0 : index
    %15 = vector.load %arg3[%c0_9, %c0_10] : memref<1x16xf32, #tpu.memory_space<vmem>>, vector<1x16xf32>
    %16 = vector.shape_cast %15 : vector<1x16xf32> to vector<16xf32>
    %c0_11 = arith.constant 0 : index
    %c0_12 = arith.constant 0 : index
    %c0_13 = arith.constant 0 : index
    %17 = vector.load %arg4[%c0_11, %c0_12, %c0_13] : memref<1x16x8xf32, #tpu.memory_space<vmem>>, vector<1x16x8xf32>
    %18 = vector.shape_cast %17 : vector<1x16x8xf32> to vector<16x8xf32>
    %c0_14 = arith.constant 0 : index
    %c0_15 = arith.constant 0 : index
    %19 = vector.load %arg5[%c0_14, %c0_15] : memref<1x8xf32, #tpu.memory_space<vmem>>, vector<1x8xf32>
    %20 = vector.shape_cast %19 : vector<1x8xf32> to vector<8xf32>
    %c0_16 = arith.constant 0 : index
    %c0_17 = arith.constant 0 : index
    %21 = vector.load %arg7[%c0_16, %c0_17] : memref<1x8xf32, #tpu.memory_space<vmem>>, vector<1x8xf32>
    %22 = vector.shape_cast %21 : vector<1x8xf32> to vector<8xf32>
    %c0_18 = arith.constant 0 : index
    %c0_19 = arith.constant 0 : index
    %c0_20 = arith.constant 0 : index
    %23 = vector.load %arg8[%c0_18, %c0_19, %c0_20] : memref<1x8x16xf32, #tpu.memory_space<vmem>>, vector<1x8x16xf32>
    %24 = vector.shape_cast %23 : vector<1x8x16xf32> to vector<8x16xf32>
    %c0_21 = arith.constant 0 : index
    %c0_22 = arith.constant 0 : index
    %25 = vector.load %arg9[%c0_21, %c0_22] : memref<1x16xf32, #tpu.memory_space<vmem>>, vector<1x16xf32>
    %26 = vector.shape_cast %25 : vector<1x16xf32> to vector<16xf32>
    %27 = vector.shape_cast %14 : vector<16xf32> to vector<1x16xf32>
    %28 = vector.broadcast %27 : vector<1x16xf32> to vector<16x16xf32>
    %29 = arith.mulf %12, %28 : vector<16x16xf32>
    %30 = vector.shape_cast %16 : vector<16xf32> to vector<1x16xf32>
    %31 = vector.broadcast %30 : vector<1x16xf32> to vector<16x16xf32>
    %32 = arith.addf %29, %31 : vector<16x16xf32>
    %cst_23 = arith.constant 0.000000e+00 : f32
    %33 = vector.broadcast %cst_23 : f32 to vector<16x16xf32>
    %34 = arith.maximumf %32, %33 : vector<16x16xf32>
    %cst_24 = arith.constant dense<0.000000e+00> : vector<16x8xf32>
    %35 = tpu.matmul %34, %18, %cst_24 {dimension_numbers = #tpu.dot_dimension_numbers<[1], [0], [0], [1], [0, 0, 1, 1], [], []>} : vector<16x16xf32>, vector<16x8xf32>, vector<16x8xf32> -> vector<16x8xf32>
    %36 = vector.shape_cast %20 : vector<8xf32> to vector<1x8xf32>
    %37 = vector.broadcast %36 : vector<1x8xf32> to vector<16x8xf32>
    %38 = arith.addf %35, %37 : vector<16x8xf32>
    %cst_25 = arith.constant 0.000000e+00 : f32
    %39 = vector.broadcast %cst_25 : f32 to vector<16x8xf32>
    %40 = arith.maximumf %38, %39 : vector<16x8xf32>
    %c8 = arith.constant 8 : index
    %c0_26 = arith.constant 0 : index
    %41 = vector.load %arg11[%c8, %c0_26] : memref<32x8xf32, #tpu.memory_space<vmem>>, vector<16x8xf32>
    tpu.vector_store %arg11[%c8, %c0_26], %40 {strides = array<i32>} : memref<32x8xf32, #tpu.memory_space<vmem>>, vector<16x8xf32>,
    %c3 = arith.constant 3 : index
    %c0_27 = arith.constant 0 : index
    %42 = vector.load %arg11[%c3, %c0_27] : memref<32x8xf32, #tpu.memory_space<vmem>>, vector<16x8xf32>
    %c0_28 = arith.constant 0 : index
    %c0_29 = arith.constant 0 : index
    %c0_30 = arith.constant 0 : index
    %c0_31 = arith.constant 0 : index
    %43 = vector.load %arg6[%c0_28, %c0_29, %c0_30, %c0_31] : memref<1x3x3x8xf32, #tpu.memory_space<vmem>>, vector<1x1x1x8xf32>
    %44 = vector.shape_cast %43 : vector<1x1x1x8xf32> to vector<8xf32>
    %45 = vector.shape_cast %44 : vector<8xf32> to vector<1x8xf32>
    %46 = vector.broadcast %45 : vector<1x8xf32> to vector<16x8xf32>
    %47 = arith.mulf %42, %46 : vector<16x8xf32>
    %c7 = arith.constant 7 : index
    %c0_32 = arith.constant 0 : index
    %48 = vector.load %arg11[%c7, %c0_32] : memref<32x8xf32, #tpu.memory_space<vmem>>, vector<16x8xf32>
    %c0_33 = arith.constant 0 : index
    %c1 = arith.constant 1 : index
    %c0_34 = arith.constant 0 : index
    %c0_35 = arith.constant 0 : index
    %49 = vector.load %arg6[%c0_33, %c1, %c0_34, %c0_35] : memref<1x3x3x8xf32, #tpu.memory_space<vmem>>, vector<1x1x1x8xf32>
    %50 = vector.shape_cast %49 : vector<1x1x1x8xf32> to vector<8xf32>
    %51 = vector.shape_cast %50 : vector<8xf32> to vector<1x8xf32>
    %52 = vector.broadcast %51 : vector<1x8xf32> to vector<16x8xf32>
    %53 = arith.mulf %48, %52 : vector<16x8xf32>
    %54 = arith.addf %47, %53 : vector<16x8xf32>
    %c11 = arith.constant 11 : index
    %c0_36 = arith.constant 0 : index
    %55 = vector.load %arg11[%c11, %c0_36] : memref<32x8xf32, #tpu.memory_space<vmem>>, vector<16x8xf32>
    %c0_37 = arith.constant 0 : index
    %c2 = arith.constant 2 : index
    %c0_38 = arith.constant 0 : index
    %c0_39 = arith.constant 0 : index
    %56 = vector.load %arg6[%c0_37, %c2, %c0_38, %c0_39] : memref<1x3x3x8xf32, #tpu.memory_space<vmem>>, vector<1x1x1x8xf32>
    %57 = vector.shape_cast %56 : vector<1x1x1x8xf32> to vector<8xf32>
    %58 = vector.shape_cast %57 : vector<8xf32> to vector<1x8xf32>
    %59 = vector.broadcast %58 : vector<1x8xf32> to vector<16x8xf32>
    %60 = arith.mulf %55, %59 : vector<16x8xf32>
    %61 = arith.addf %54, %60 : vector<16x8xf32>
    %c4 = arith.constant 4 : index
    %c0_40 = arith.constant 0 : index
    %62 = vector.load %arg11[%c4, %c0_40] : memref<32x8xf32, #tpu.memory_space<vmem>>, vector<16x8xf32>
    %c0_41 = arith.constant 0 : index
    %c0_42 = arith.constant 0 : index
    %c1_43 = arith.constant 1 : index
    %c0_44 = arith.constant 0 : index
    %63 = vector.load %arg6[%c0_41, %c0_42, %c1_43, %c0_44] : memref<1x3x3x8xf32, #tpu.memory_space<vmem>>, vector<1x1x1x8xf32>
    %64 = vector.shape_cast %63 : vector<1x1x1x8xf32> to vector<8xf32>
    %65 = vector.shape_cast %64 : vector<8xf32> to vector<1x8xf32>
    %66 = vector.broadcast %65 : vector<1x8xf32> to vector<16x8xf32>
    %67 = arith.mulf %62, %66 : vector<16x8xf32>
    %c8_45 = arith.constant 8 : index
    %c0_46 = arith.constant 0 : index
    %68 = vector.load %arg11[%c8_45, %c0_46] : memref<32x8xf32, #tpu.memory_space<vmem>>, vector<16x8xf32>
    %c0_47 = arith.constant 0 : index
    %c1_48 = arith.constant 1 : index
    %c1_49 = arith.constant 1 : index
    %c0_50 = arith.constant 0 : index
    %69 = vector.load %arg6[%c0_47, %c1_48, %c1_49, %c0_50] : memref<1x3x3x8xf32, #tpu.memory_space<vmem>>, vector<1x1x1x8xf32>
    %70 = vector.shape_cast %69 : vector<1x1x1x8xf32> to vector<8xf32>
    %71 = vector.shape_cast %70 : vector<8xf32> to vector<1x8xf32>
    %72 = vector.broadcast %71 : vector<1x8xf32> to vector<16x8xf32>
    %73 = arith.mulf %68, %72 : vector<16x8xf32>
    %74 = arith.addf %67, %73 : vector<16x8xf32>
    %c12 = arith.constant 12 : index
    %c0_51 = arith.constant 0 : index
    %75 = vector.load %arg11[%c12, %c0_51] : memref<32x8xf32, #tpu.memory_space<vmem>>, vector<16x8xf32>
    %c0_52 = arith.constant 0 : index
    %c2_53 = arith.constant 2 : index
    %c1_54 = arith.constant 1 : index
    %c0_55 = arith.constant 0 : index
    %76 = vector.load %arg6[%c0_52, %c2_53, %c1_54, %c0_55] : memref<1x3x3x8xf32, #tpu.memory_space<vmem>>, vector<1x1x1x8xf32>
    %77 = vector.shape_cast %76 : vector<1x1x1x8xf32> to vector<8xf32>
    %78 = vector.shape_cast %77 : vector<8xf32> to vector<1x8xf32>
    %79 = vector.broadcast %78 : vector<1x8xf32> to vector<16x8xf32>
    %80 = arith.mulf %75, %79 : vector<16x8xf32>
    %81 = arith.addf %74, %80 : vector<16x8xf32>
    %c5 = arith.constant 5 : index
    %c0_56 = arith.constant 0 : index
    %82 = vector.load %arg11[%c5, %c0_56] : memref<32x8xf32, #tpu.memory_space<vmem>>, vector<16x8xf32>
    %c0_57 = arith.constant 0 : index
    %c0_58 = arith.constant 0 : index
    %c2_59 = arith.constant 2 : index
    %c0_60 = arith.constant 0 : index
    %83 = vector.load %arg6[%c0_57, %c0_58, %c2_59, %c0_60] : memref<1x3x3x8xf32, #tpu.memory_space<vmem>>, vector<1x1x1x8xf32>
    %84 = vector.shape_cast %83 : vector<1x1x1x8xf32> to vector<8xf32>
    %85 = vector.shape_cast %84 : vector<8xf32> to vector<1x8xf32>
    %86 = vector.broadcast %85 : vector<1x8xf32> to vector<16x8xf32>
    %87 = arith.mulf %82, %86 : vector<16x8xf32>
    %c9 = arith.constant 9 : index
    %c0_61 = arith.constant 0 : index
    %88 = vector.load %arg11[%c9, %c0_61] : memref<32x8xf32, #tpu.memory_space<vmem>>, vector<16x8xf32>
    %c0_62 = arith.constant 0 : index
    %c1_63 = arith.constant 1 : index
    %c2_64 = arith.constant 2 : index
    %c0_65 = arith.constant 0 : index
    %89 = vector.load %arg6[%c0_62, %c1_63, %c2_64, %c0_65] : memref<1x3x3x8xf32, #tpu.memory_space<vmem>>, vector<1x1x1x8xf32>
    %90 = vector.shape_cast %89 : vector<1x1x1x8xf32> to vector<8xf32>
    %91 = vector.shape_cast %90 : vector<8xf32> to vector<1x8xf32>
    %92 = vector.broadcast %91 : vector<1x8xf32> to vector<16x8xf32>
    %93 = arith.mulf %88, %92 : vector<16x8xf32>
    %94 = arith.addf %87, %93 : vector<16x8xf32>
    %c13 = arith.constant 13 : index
    %c0_66 = arith.constant 0 : index
    %95 = vector.load %arg11[%c13, %c0_66] : memref<32x8xf32, #tpu.memory_space<vmem>>, vector<16x8xf32>
    %c0_67 = arith.constant 0 : index
    %c2_68 = arith.constant 2 : index
    %c2_69 = arith.constant 2 : index
    %c0_70 = arith.constant 0 : index
    %96 = vector.load %arg6[%c0_67, %c2_68, %c2_69, %c0_70] : memref<1x3x3x8xf32, #tpu.memory_space<vmem>>, vector<1x1x1x8xf32>
    %97 = vector.shape_cast %96 : vector<1x1x1x8xf32> to vector<8xf32>
    %98 = vector.shape_cast %97 : vector<8xf32> to vector<1x8xf32>
    %99 = vector.broadcast %98 : vector<1x8xf32> to vector<16x8xf32>
    %100 = arith.mulf %95, %99 : vector<16x8xf32>
    %101 = arith.addf %94, %100 : vector<16x8xf32>
    %cst_71 = arith.constant 0.000000e+00 : f32
    %102 = vector.broadcast %cst_71 : f32 to vector<16x8xf32>
    %103 = arith.select %8, %61, %102 : vector<16x8xi1>, vector<16x8xf32>
    %cst_72 = arith.constant 0.000000e+00 : f32
    %104 = vector.broadcast %cst_72 : f32 to vector<16x8xf32>
    %105 = arith.select %10, %101, %104 : vector<16x8xi1>, vector<16x8xf32>
    %106 = arith.addf %103, %81 : vector<16x8xf32>
    %107 = arith.addf %106, %105 : vector<16x8xf32>
    %108 = vector.shape_cast %22 : vector<8xf32> to vector<1x8xf32>
    %109 = vector.broadcast %108 : vector<1x8xf32> to vector<16x8xf32>
    %110 = arith.addf %107, %109 : vector<16x8xf32>
    %cst_73 = arith.constant 0.000000e+00 : f32
    %111 = vector.broadcast %cst_73 : f32 to vector<16x8xf32>
    %112 = arith.maximumf %110, %111 : vector<16x8xf32>
    %cst_74 = arith.constant dense<0.000000e+00> : vector<16x16xf32>
    %113 = tpu.matmul %112, %24, %cst_74 {dimension_numbers = #tpu.dot_dimension_numbers<[1], [0], [0], [1], [0, 0, 1, 1], [], []>} : vector<16x8xf32>, vector<8x16xf32>, vector<16x16xf32> -> vector<16x16xf32>
    %114 = vector.shape_cast %26 : vector<16xf32> to vector<1x16xf32>
    %115 = vector.broadcast %114 : vector<1x16xf32> to vector<16x16xf32>
    %116 = arith.addf %113, %115 : vector<16x16xf32>
    %117 = arith.addf %12, %116 : vector<16x16xf32>
    %c0_75 = arith.constant 0 : index
    %c0_76 = arith.constant 0 : index
    %c0_77 = arith.constant 0 : index
    %118 = vector.load %arg10[%c0_75, %c0_76, %c0_77] : memref<1x16x16xf32, #tpu.memory_space<vmem>>, vector<1x16x16xf32>
    %119 = vector.shape_cast %118 : vector<1x16x16xf32> to vector<16x16xf32>
    %120 = vector.shape_cast %117 : vector<16x16xf32> to vector<1x16x16xf32>
    tpu.vector_store %arg10[%c0_75, %c0_76, %c0_77], %120 {strides = array<i32>} : memref<1x16x16xf32, #tpu.memory_space<vmem>>, vector<1x16x16xf32>,
    return
  }
  func.func @transform_0(%arg0: i32) -> (i32, i32, i32) {
    %c0_i32 = arith.constant 0 : i32
    %c0_i32_0 = arith.constant 0 : i32
    %c0_i32_1 = arith.constant 0 : i32
    return %arg0, %c0_i32, %c0_i32_0 : i32, i32, i32
  }
  func.func @transform_1(%arg0: i32) -> (i32, i32) {
    %c0_i32 = arith.constant 0 : i32
    %c0_i32_0 = arith.constant 0 : i32
    %c0_i32_1 = arith.constant 0 : i32
    return %c0_i32, %c0_i32_0 : i32, i32
  }
  func.func @transform_2(%arg0: i32) -> (i32, i32) {
    %c0_i32 = arith.constant 0 : i32
    %c0_i32_0 = arith.constant 0 : i32
    %c0_i32_1 = arith.constant 0 : i32
    return %c0_i32, %c0_i32_0 : i32, i32
  }
  func.func @transform_3(%arg0: i32) -> (i32, i32, i32) {
    %c0_i32 = arith.constant 0 : i32
    %c0_i32_0 = arith.constant 0 : i32
    %c0_i32_1 = arith.constant 0 : i32
    %c0_i32_2 = arith.constant 0 : i32
    return %c0_i32, %c0_i32_0, %c0_i32_1 : i32, i32, i32
  }
  func.func @transform_4(%arg0: i32) -> (i32, i32) {
    %c0_i32 = arith.constant 0 : i32
    %c0_i32_0 = arith.constant 0 : i32
    %c0_i32_1 = arith.constant 0 : i32
    return %c0_i32, %c0_i32_0 : i32, i32
  }
  func.func @transform_5(%arg0: i32) -> (i32, i32, i32, i32) {
    %c0_i32 = arith.constant 0 : i32
    %c0_i32_0 = arith.constant 0 : i32
    %c0_i32_1 = arith.constant 0 : i32
    %c0_i32_2 = arith.constant 0 : i32
    %c0_i32_3 = arith.constant 0 : i32
    return %c0_i32, %c0_i32_0, %c0_i32_1, %c0_i32_2 : i32, i32, i32, i32
  }
  func.func @transform_6(%arg0: i32) -> (i32, i32) {
    %c0_i32 = arith.constant 0 : i32
    %c0_i32_0 = arith.constant 0 : i32
    %c0_i32_1 = arith.constant 0 : i32
    return %c0_i32, %c0_i32_0 : i32, i32
  }
  func.func @transform_7(%arg0: i32) -> (i32, i32, i32) {
    %c0_i32 = arith.constant 0 : i32
    %c0_i32_0 = arith.constant 0 : i32
    %c0_i32_1 = arith.constant 0 : i32
    %c0_i32_2 = arith.constant 0 : i32
    return %c0_i32, %c0_i32_0, %c0_i32_1 : i32, i32, i32
  }
  func.func @transform_8(%arg0: i32) -> (i32, i32) {
    %c0_i32 = arith.constant 0 : i32
    %c0_i32_0 = arith.constant 0 : i32
    %c0_i32_1 = arith.constant 0 : i32
    return %c0_i32, %c0_i32_0 : i32, i32
  }
  func.func @transform_9(%arg0: i32) -> (i32, i32, i32) {
    %c0_i32 = arith.constant 0 : i32
    %c0_i32_0 = arith.constant 0 : i32
    %c0_i32_1 = arith.constant 0 : i32
    return %arg0, %c0_i32, %c0_i32_0 : i32, i32, i32
  }
}

module attributes {stable_mosaic.version = 11 : i64} {
  func.func @kernel(%arg0: i32, %arg1: memref<1x16x16xf32, #tpu.memory_space<vmem>>, %arg2: memref<1x32x32xf32, #tpu.memory_space<vmem>>, %arg3: memref<16x32xf32, #tpu.memory_space<vmem>>, %arg4: memref<1x16xf32, #tpu.memory_space<vmem>>, %arg5: memref<1x16xf32, #tpu.memory_space<vmem>>, %arg6: memref<1x16x8xf32, #tpu.memory_space<vmem>>, %arg7: memref<1x8xf32, #tpu.memory_space<vmem>>, %arg8: memref<1x3x3x8xf32, #tpu.memory_space<vmem>>, %arg9: memref<1x8xf32, #tpu.memory_space<vmem>>, %arg10: memref<1x8x16xf32, #tpu.memory_space<vmem>>, %arg11: memref<1x16xf32, #tpu.memory_space<vmem>>, %arg12: memref<1x32x32xf32, #tpu.memory_space<vmem>>, %arg13: memref<32x8xf32, #tpu.memory_space<vmem>>, %arg14: memref<16x32xf32, #tpu.memory_space<vmem>>) attributes {dimension_semantics = [#tpu.dimension_semantics<parallel>], iteration_bounds = array<i64: 2>, scalar_prefetch = 0 : i64, scratch_operands = 2 : i64, tpu.core_type = #tpu.core_type<tc>, window_params = [{transform_indices = @transform_0, window_bounds = array<i64: 1, 16, 16>}, {transform_indices = @transform_1, window_bounds = array<i64: 1, 32, 32>}, {pipeline_mode = #tpu.pipeline_mode<synchronous>, transform_indices = @transform_2, window_bounds = array<i64: 16, 32>}, {pipeline_mode = #tpu.pipeline_mode<synchronous>, transform_indices = @transform_3, window_bounds = array<i64: 1, 16>}, {pipeline_mode = #tpu.pipeline_mode<synchronous>, transform_indices = @transform_4, window_bounds = array<i64: 1, 16>}, {pipeline_mode = #tpu.pipeline_mode<synchronous>, transform_indices = @transform_5, window_bounds = array<i64: 1, 16, 8>}, {pipeline_mode = #tpu.pipeline_mode<synchronous>, transform_indices = @transform_6, window_bounds = array<i64: 1, 8>}, {pipeline_mode = #tpu.pipeline_mode<synchronous>, transform_indices = @transform_7, window_bounds = array<i64: 1, 3, 3, 8>}, {pipeline_mode = #tpu.pipeline_mode<synchronous>, transform_indices = @transform_8, window_bounds = array<i64: 1, 8>}, {pipeline_mode = #tpu.pipeline_mode<synchronous>, transform_indices = @transform_9, window_bounds = array<i64: 1, 8, 16>}, {pipeline_mode = #tpu.pipeline_mode<synchronous>, transform_indices = @transform_10, window_bounds = array<i64: 1, 16>}, {transform_indices = @transform_11, window_bounds = array<i64: 1, 32, 32>}]} {
    %cst = arith.constant 0.000000e+00 : f32
    %0 = vector.broadcast %cst : f32 to vector<8x8xf32>
    %c0 = arith.constant 0 : index
    %c0_0 = arith.constant 0 : index
    %1 = vector.load %arg13[%c0, %c0_0] : memref<32x8xf32, #tpu.memory_space<vmem>>, vector<8x8xf32>
    tpu.vector_store %arg13[%c0, %c0_0], %0 {strides = array<i32>} : memref<32x8xf32, #tpu.memory_space<vmem>>, vector<8x8xf32>,
    %cst_1 = arith.constant 0.000000e+00 : f32
    %2 = vector.broadcast %cst_1 : f32 to vector<8x8xf32>
    %c24 = arith.constant 24 : index
    %c0_2 = arith.constant 0 : index
    %3 = vector.load %arg13[%c24, %c0_2] : memref<32x8xf32, #tpu.memory_space<vmem>>, vector<8x8xf32>
    tpu.vector_store %arg13[%c24, %c0_2], %2 {strides = array<i32>} : memref<32x8xf32, #tpu.memory_space<vmem>>, vector<8x8xf32>,
    %4 = tpu.iota {dimensions = array<i32: 0>} : vector<16x8xi32>
    %c3_i32 = arith.constant 3 : i32
    %5 = vector.broadcast %c3_i32 : i32 to vector<16x8xi32>
    %6 = arith.andi %4, %5 : vector<16x8xi32>
    %c0_i32 = arith.constant 0 : i32
    %7 = vector.broadcast %c0_i32 : i32 to vector<16x8xi32>
    %8 = arith.cmpi ne, %6, %7 : vector<16x8xi32>
    %c3_i32_3 = arith.constant 3 : i32
    %9 = vector.broadcast %c3_i32_3 : i32 to vector<16x8xi32>
    %10 = arith.cmpi ne, %6, %9 : vector<16x8xi32>
    %c0_4 = arith.constant 0 : index
    %c0_5 = arith.constant 0 : index
    %c0_6 = arith.constant 0 : index
    %11 = vector.load %arg1[%c0_4, %c0_5, %c0_6] : memref<1x16x16xf32, #tpu.memory_space<vmem>>, vector<1x16x16xf32>
    %12 = vector.shape_cast %11 : vector<1x16x16xf32> to vector<16x16xf32>
    %c0_7 = arith.constant 0 : index
    %c0_8 = arith.constant 0 : index
    %13 = vector.load %arg4[%c0_7, %c0_8] : memref<1x16xf32, #tpu.memory_space<vmem>>, vector<1x16xf32>
    %14 = vector.shape_cast %13 : vector<1x16xf32> to vector<16xf32>
    %c0_9 = arith.constant 0 : index
    %c0_10 = arith.constant 0 : index
    %15 = vector.load %arg5[%c0_9, %c0_10] : memref<1x16xf32, #tpu.memory_space<vmem>>, vector<1x16xf32>
    %16 = vector.shape_cast %15 : vector<1x16xf32> to vector<16xf32>
    %c0_11 = arith.constant 0 : index
    %c0_12 = arith.constant 0 : index
    %c0_13 = arith.constant 0 : index
    %17 = vector.load %arg6[%c0_11, %c0_12, %c0_13] : memref<1x16x8xf32, #tpu.memory_space<vmem>>, vector<1x16x8xf32>
    %18 = vector.shape_cast %17 : vector<1x16x8xf32> to vector<16x8xf32>
    %c0_14 = arith.constant 0 : index
    %c0_15 = arith.constant 0 : index
    %19 = vector.load %arg7[%c0_14, %c0_15] : memref<1x8xf32, #tpu.memory_space<vmem>>, vector<1x8xf32>
    %20 = vector.shape_cast %19 : vector<1x8xf32> to vector<8xf32>
    %c0_16 = arith.constant 0 : index
    %c0_17 = arith.constant 0 : index
    %21 = vector.load %arg9[%c0_16, %c0_17] : memref<1x8xf32, #tpu.memory_space<vmem>>, vector<1x8xf32>
    %22 = vector.shape_cast %21 : vector<1x8xf32> to vector<8xf32>
    %c0_18 = arith.constant 0 : index
    %c0_19 = arith.constant 0 : index
    %c0_20 = arith.constant 0 : index
    %23 = vector.load %arg10[%c0_18, %c0_19, %c0_20] : memref<1x8x16xf32, #tpu.memory_space<vmem>>, vector<1x8x16xf32>
    %24 = vector.shape_cast %23 : vector<1x8x16xf32> to vector<8x16xf32>
    %c0_21 = arith.constant 0 : index
    %c0_22 = arith.constant 0 : index
    %25 = vector.load %arg11[%c0_21, %c0_22] : memref<1x16xf32, #tpu.memory_space<vmem>>, vector<1x16xf32>
    %26 = vector.shape_cast %25 : vector<1x16xf32> to vector<16xf32>
    %27 = vector.shape_cast %14 : vector<16xf32> to vector<1x16xf32>
    %28 = vector.broadcast %27 : vector<1x16xf32> to vector<16x16xf32>
    %29 = arith.mulf %12, %28 : vector<16x16xf32>
    %30 = vector.shape_cast %16 : vector<16xf32> to vector<1x16xf32>
    %31 = vector.broadcast %30 : vector<1x16xf32> to vector<16x16xf32>
    %32 = arith.addf %29, %31 : vector<16x16xf32>
    %cst_23 = arith.constant 0.000000e+00 : f32
    %33 = vector.broadcast %cst_23 : f32 to vector<16x16xf32>
    %34 = arith.maximumf %32, %33 : vector<16x16xf32>
    %cst_24 = arith.constant dense<0.000000e+00> : vector<16x8xf32>
    %35 = tpu.matmul %34, %18, %cst_24 {dimension_numbers = #tpu.dot_dimension_numbers<[1], [0], [0], [1], [0, 0, 1, 1], [], []>} : vector<16x16xf32>, vector<16x8xf32>, vector<16x8xf32> -> vector<16x8xf32>
    %36 = vector.shape_cast %20 : vector<8xf32> to vector<1x8xf32>
    %37 = vector.broadcast %36 : vector<1x8xf32> to vector<16x8xf32>
    %38 = arith.addf %35, %37 : vector<16x8xf32>
    %cst_25 = arith.constant 0.000000e+00 : f32
    %39 = vector.broadcast %cst_25 : f32 to vector<16x8xf32>
    %40 = arith.maximumf %38, %39 : vector<16x8xf32>
    %c8 = arith.constant 8 : index
    %c0_26 = arith.constant 0 : index
    %41 = vector.load %arg13[%c8, %c0_26] : memref<32x8xf32, #tpu.memory_space<vmem>>, vector<16x8xf32>
    tpu.vector_store %arg13[%c8, %c0_26], %40 {strides = array<i32>} : memref<32x8xf32, #tpu.memory_space<vmem>>, vector<16x8xf32>,
    %c3 = arith.constant 3 : index
    %c0_27 = arith.constant 0 : index
    %42 = vector.load %arg13[%c3, %c0_27] : memref<32x8xf32, #tpu.memory_space<vmem>>, vector<16x8xf32>
    %c0_28 = arith.constant 0 : index
    %c0_29 = arith.constant 0 : index
    %c0_30 = arith.constant 0 : index
    %c0_31 = arith.constant 0 : index
    %43 = vector.load %arg8[%c0_28, %c0_29, %c0_30, %c0_31] : memref<1x3x3x8xf32, #tpu.memory_space<vmem>>, vector<1x1x1x8xf32>
    %44 = vector.shape_cast %43 : vector<1x1x1x8xf32> to vector<8xf32>
    %45 = vector.shape_cast %44 : vector<8xf32> to vector<1x8xf32>
    %46 = vector.broadcast %45 : vector<1x8xf32> to vector<16x8xf32>
    %47 = arith.mulf %42, %46 : vector<16x8xf32>
    %c7 = arith.constant 7 : index
    %c0_32 = arith.constant 0 : index
    %48 = vector.load %arg13[%c7, %c0_32] : memref<32x8xf32, #tpu.memory_space<vmem>>, vector<16x8xf32>
    %c0_33 = arith.constant 0 : index
    %c1 = arith.constant 1 : index
    %c0_34 = arith.constant 0 : index
    %c0_35 = arith.constant 0 : index
    %49 = vector.load %arg8[%c0_33, %c1, %c0_34, %c0_35] : memref<1x3x3x8xf32, #tpu.memory_space<vmem>>, vector<1x1x1x8xf32>
    %50 = vector.shape_cast %49 : vector<1x1x1x8xf32> to vector<8xf32>
    %51 = vector.shape_cast %50 : vector<8xf32> to vector<1x8xf32>
    %52 = vector.broadcast %51 : vector<1x8xf32> to vector<16x8xf32>
    %53 = arith.mulf %48, %52 : vector<16x8xf32>
    %54 = arith.addf %47, %53 : vector<16x8xf32>
    %c11 = arith.constant 11 : index
    %c0_36 = arith.constant 0 : index
    %55 = vector.load %arg13[%c11, %c0_36] : memref<32x8xf32, #tpu.memory_space<vmem>>, vector<16x8xf32>
    %c0_37 = arith.constant 0 : index
    %c2 = arith.constant 2 : index
    %c0_38 = arith.constant 0 : index
    %c0_39 = arith.constant 0 : index
    %56 = vector.load %arg8[%c0_37, %c2, %c0_38, %c0_39] : memref<1x3x3x8xf32, #tpu.memory_space<vmem>>, vector<1x1x1x8xf32>
    %57 = vector.shape_cast %56 : vector<1x1x1x8xf32> to vector<8xf32>
    %58 = vector.shape_cast %57 : vector<8xf32> to vector<1x8xf32>
    %59 = vector.broadcast %58 : vector<1x8xf32> to vector<16x8xf32>
    %60 = arith.mulf %55, %59 : vector<16x8xf32>
    %61 = arith.addf %54, %60 : vector<16x8xf32>
    %c4 = arith.constant 4 : index
    %c0_40 = arith.constant 0 : index
    %62 = vector.load %arg13[%c4, %c0_40] : memref<32x8xf32, #tpu.memory_space<vmem>>, vector<16x8xf32>
    %c0_41 = arith.constant 0 : index
    %c0_42 = arith.constant 0 : index
    %c1_43 = arith.constant 1 : index
    %c0_44 = arith.constant 0 : index
    %63 = vector.load %arg8[%c0_41, %c0_42, %c1_43, %c0_44] : memref<1x3x3x8xf32, #tpu.memory_space<vmem>>, vector<1x1x1x8xf32>
    %64 = vector.shape_cast %63 : vector<1x1x1x8xf32> to vector<8xf32>
    %65 = vector.shape_cast %64 : vector<8xf32> to vector<1x8xf32>
    %66 = vector.broadcast %65 : vector<1x8xf32> to vector<16x8xf32>
    %67 = arith.mulf %62, %66 : vector<16x8xf32>
    %c8_45 = arith.constant 8 : index
    %c0_46 = arith.constant 0 : index
    %68 = vector.load %arg13[%c8_45, %c0_46] : memref<32x8xf32, #tpu.memory_space<vmem>>, vector<16x8xf32>
    %c0_47 = arith.constant 0 : index
    %c1_48 = arith.constant 1 : index
    %c1_49 = arith.constant 1 : index
    %c0_50 = arith.constant 0 : index
    %69 = vector.load %arg8[%c0_47, %c1_48, %c1_49, %c0_50] : memref<1x3x3x8xf32, #tpu.memory_space<vmem>>, vector<1x1x1x8xf32>
    %70 = vector.shape_cast %69 : vector<1x1x1x8xf32> to vector<8xf32>
    %71 = vector.shape_cast %70 : vector<8xf32> to vector<1x8xf32>
    %72 = vector.broadcast %71 : vector<1x8xf32> to vector<16x8xf32>
    %73 = arith.mulf %68, %72 : vector<16x8xf32>
    %74 = arith.addf %67, %73 : vector<16x8xf32>
    %c12 = arith.constant 12 : index
    %c0_51 = arith.constant 0 : index
    %75 = vector.load %arg13[%c12, %c0_51] : memref<32x8xf32, #tpu.memory_space<vmem>>, vector<16x8xf32>
    %c0_52 = arith.constant 0 : index
    %c2_53 = arith.constant 2 : index
    %c1_54 = arith.constant 1 : index
    %c0_55 = arith.constant 0 : index
    %76 = vector.load %arg8[%c0_52, %c2_53, %c1_54, %c0_55] : memref<1x3x3x8xf32, #tpu.memory_space<vmem>>, vector<1x1x1x8xf32>
    %77 = vector.shape_cast %76 : vector<1x1x1x8xf32> to vector<8xf32>
    %78 = vector.shape_cast %77 : vector<8xf32> to vector<1x8xf32>
    %79 = vector.broadcast %78 : vector<1x8xf32> to vector<16x8xf32>
    %80 = arith.mulf %75, %79 : vector<16x8xf32>
    %81 = arith.addf %74, %80 : vector<16x8xf32>
    %c5 = arith.constant 5 : index
    %c0_56 = arith.constant 0 : index
    %82 = vector.load %arg13[%c5, %c0_56] : memref<32x8xf32, #tpu.memory_space<vmem>>, vector<16x8xf32>
    %c0_57 = arith.constant 0 : index
    %c0_58 = arith.constant 0 : index
    %c2_59 = arith.constant 2 : index
    %c0_60 = arith.constant 0 : index
    %83 = vector.load %arg8[%c0_57, %c0_58, %c2_59, %c0_60] : memref<1x3x3x8xf32, #tpu.memory_space<vmem>>, vector<1x1x1x8xf32>
    %84 = vector.shape_cast %83 : vector<1x1x1x8xf32> to vector<8xf32>
    %85 = vector.shape_cast %84 : vector<8xf32> to vector<1x8xf32>
    %86 = vector.broadcast %85 : vector<1x8xf32> to vector<16x8xf32>
    %87 = arith.mulf %82, %86 : vector<16x8xf32>
    %c9 = arith.constant 9 : index
    %c0_61 = arith.constant 0 : index
    %88 = vector.load %arg13[%c9, %c0_61] : memref<32x8xf32, #tpu.memory_space<vmem>>, vector<16x8xf32>
    %c0_62 = arith.constant 0 : index
    %c1_63 = arith.constant 1 : index
    %c2_64 = arith.constant 2 : index
    %c0_65 = arith.constant 0 : index
    %89 = vector.load %arg8[%c0_62, %c1_63, %c2_64, %c0_65] : memref<1x3x3x8xf32, #tpu.memory_space<vmem>>, vector<1x1x1x8xf32>
    %90 = vector.shape_cast %89 : vector<1x1x1x8xf32> to vector<8xf32>
    %91 = vector.shape_cast %90 : vector<8xf32> to vector<1x8xf32>
    %92 = vector.broadcast %91 : vector<1x8xf32> to vector<16x8xf32>
    %93 = arith.mulf %88, %92 : vector<16x8xf32>
    %94 = arith.addf %87, %93 : vector<16x8xf32>
    %c13 = arith.constant 13 : index
    %c0_66 = arith.constant 0 : index
    %95 = vector.load %arg13[%c13, %c0_66] : memref<32x8xf32, #tpu.memory_space<vmem>>, vector<16x8xf32>
    %c0_67 = arith.constant 0 : index
    %c2_68 = arith.constant 2 : index
    %c2_69 = arith.constant 2 : index
    %c0_70 = arith.constant 0 : index
    %96 = vector.load %arg8[%c0_67, %c2_68, %c2_69, %c0_70] : memref<1x3x3x8xf32, #tpu.memory_space<vmem>>, vector<1x1x1x8xf32>
    %97 = vector.shape_cast %96 : vector<1x1x1x8xf32> to vector<8xf32>
    %98 = vector.shape_cast %97 : vector<8xf32> to vector<1x8xf32>
    %99 = vector.broadcast %98 : vector<1x8xf32> to vector<16x8xf32>
    %100 = arith.mulf %95, %99 : vector<16x8xf32>
    %101 = arith.addf %94, %100 : vector<16x8xf32>
    %cst_71 = arith.constant 0.000000e+00 : f32
    %102 = vector.broadcast %cst_71 : f32 to vector<16x8xf32>
    %103 = arith.select %8, %61, %102 : vector<16x8xi1>, vector<16x8xf32>
    %cst_72 = arith.constant 0.000000e+00 : f32
    %104 = vector.broadcast %cst_72 : f32 to vector<16x8xf32>
    %105 = arith.select %10, %101, %104 : vector<16x8xi1>, vector<16x8xf32>
    %106 = arith.addf %103, %81 : vector<16x8xf32>
    %107 = arith.addf %106, %105 : vector<16x8xf32>
    %108 = vector.shape_cast %22 : vector<8xf32> to vector<1x8xf32>
    %109 = vector.broadcast %108 : vector<1x8xf32> to vector<16x8xf32>
    %110 = arith.addf %107, %109 : vector<16x8xf32>
    %cst_73 = arith.constant 0.000000e+00 : f32
    %111 = vector.broadcast %cst_73 : f32 to vector<16x8xf32>
    %112 = arith.maximumf %110, %111 : vector<16x8xf32>
    %cst_74 = arith.constant dense<0.000000e+00> : vector<16x16xf32>
    %113 = tpu.matmul %112, %24, %cst_74 {dimension_numbers = #tpu.dot_dimension_numbers<[1], [0], [0], [1], [0, 0, 1, 1], [], []>} : vector<16x8xf32>, vector<8x16xf32>, vector<16x16xf32> -> vector<16x16xf32>
    %114 = vector.shape_cast %26 : vector<16xf32> to vector<1x16xf32>
    %115 = vector.broadcast %114 : vector<1x16xf32> to vector<16x16xf32>
    %116 = arith.addf %113, %115 : vector<16x16xf32>
    %117 = arith.addf %12, %116 : vector<16x16xf32>
    %c0_75 = arith.constant 0 : index
    %c0_76 = arith.constant 0 : index
    %118 = vector.load %arg3[%c0_75, %c0_76] : memref<16x32xf32, #tpu.memory_space<vmem>>, vector<16x32xf32>
    %cst_77 = arith.constant dense<0.000000e+00> : vector<16x32xf32>
    %119 = tpu.matmul %117, %118, %cst_77 {dimension_numbers = #tpu.dot_dimension_numbers<[1], [0], [0], [1], [0, 0, 1, 1], [], []>} : vector<16x16xf32>, vector<16x32xf32>, vector<16x32xf32> -> vector<16x32xf32>
    %c0_78 = arith.constant 0 : index
    %c0_79 = arith.constant 0 : index
    %120 = vector.load %arg14[%c0_78, %c0_79] : memref<16x32xf32, #tpu.memory_space<vmem>>, vector<16x32xf32>
    tpu.vector_store %arg14[%c0_78, %c0_79], %119 {strides = array<i32>} : memref<16x32xf32, #tpu.memory_space<vmem>>, vector<16x32xf32>,
    %c0_80 = arith.constant 0 : index
    %c0_81 = arith.constant 0 : index
    %121 = vector.load %arg14[%c0_80, %c0_81] : memref<16x32xf32, #tpu.memory_space<vmem>>, vector<4x32xf32>
    %c0_82 = arith.constant 0 : index
    %c0_83 = arith.constant 0 : index
    %c0_84 = arith.constant 0 : index
    %122 = vector.load %arg2[%c0_82, %c0_83, %c0_84] : memref<1x32x32xf32, #tpu.memory_space<vmem>>, vector<1x4x32xf32>
    %123 = vector.shape_cast %122 : vector<1x4x32xf32> to vector<4x32xf32>
    %124 = arith.addf %123, %121 : vector<4x32xf32>
    %c0_85 = arith.constant 0 : index
    %c0_86 = arith.constant 0 : index
    %c0_87 = arith.constant 0 : index
    %125 = vector.load %arg12[%c0_85, %c0_86, %c0_87] : memref<1x32x32xf32, #tpu.memory_space<vmem>>, vector<1x4x32xf32>
    %126 = vector.shape_cast %125 : vector<1x4x32xf32> to vector<4x32xf32>
    %127 = vector.shape_cast %124 : vector<4x32xf32> to vector<1x4x32xf32>
    tpu.vector_store %arg12[%c0_85, %c0_86, %c0_87], %127 {strides = array<i32>} : memref<1x32x32xf32, #tpu.memory_space<vmem>>, vector<1x4x32xf32>,
    %c0_88 = arith.constant 0 : index
    %c4_89 = arith.constant 4 : index
    %c0_90 = arith.constant 0 : index
    %128 = vector.load %arg2[%c0_88, %c4_89, %c0_90] : memref<1x32x32xf32, #tpu.memory_space<vmem>>, vector<1x4x32xf32>
    %129 = vector.shape_cast %128 : vector<1x4x32xf32> to vector<4x32xf32>
    %130 = arith.addf %129, %121 : vector<4x32xf32>
    %c0_91 = arith.constant 0 : index
    %c4_92 = arith.constant 4 : index
    %c0_93 = arith.constant 0 : index
    %131 = vector.load %arg12[%c0_91, %c4_92, %c0_93] : memref<1x32x32xf32, #tpu.memory_space<vmem>>, vector<1x4x32xf32>
    %132 = vector.shape_cast %131 : vector<1x4x32xf32> to vector<4x32xf32>
    %133 = vector.shape_cast %130 : vector<4x32xf32> to vector<1x4x32xf32>
    tpu.vector_store %arg12[%c0_91, %c4_92, %c0_93], %133 {strides = array<i32>} : memref<1x32x32xf32, #tpu.memory_space<vmem>>, vector<1x4x32xf32>,
    %c4_94 = arith.constant 4 : index
    %c0_95 = arith.constant 0 : index
    %134 = vector.load %arg14[%c4_94, %c0_95] : memref<16x32xf32, #tpu.memory_space<vmem>>, vector<4x32xf32>
    %c0_96 = arith.constant 0 : index
    %c8_97 = arith.constant 8 : index
    %c0_98 = arith.constant 0 : index
    %135 = vector.load %arg2[%c0_96, %c8_97, %c0_98] : memref<1x32x32xf32, #tpu.memory_space<vmem>>, vector<1x4x32xf32>
    %136 = vector.shape_cast %135 : vector<1x4x32xf32> to vector<4x32xf32>
    %137 = arith.addf %136, %134 : vector<4x32xf32>
    %c0_99 = arith.constant 0 : index
    %c8_100 = arith.constant 8 : index
    %c0_101 = arith.constant 0 : index
    %138 = vector.load %arg12[%c0_99, %c8_100, %c0_101] : memref<1x32x32xf32, #tpu.memory_space<vmem>>, vector<1x4x32xf32>
    %139 = vector.shape_cast %138 : vector<1x4x32xf32> to vector<4x32xf32>
    %140 = vector.shape_cast %137 : vector<4x32xf32> to vector<1x4x32xf32>
    tpu.vector_store %arg12[%c0_99, %c8_100, %c0_101], %140 {strides = array<i32>} : memref<1x32x32xf32, #tpu.memory_space<vmem>>, vector<1x4x32xf32>,
    %c0_102 = arith.constant 0 : index
    %c12_103 = arith.constant 12 : index
    %c0_104 = arith.constant 0 : index
    %141 = vector.load %arg2[%c0_102, %c12_103, %c0_104] : memref<1x32x32xf32, #tpu.memory_space<vmem>>, vector<1x4x32xf32>
    %142 = vector.shape_cast %141 : vector<1x4x32xf32> to vector<4x32xf32>
    %143 = arith.addf %142, %134 : vector<4x32xf32>
    %c0_105 = arith.constant 0 : index
    %c12_106 = arith.constant 12 : index
    %c0_107 = arith.constant 0 : index
    %144 = vector.load %arg12[%c0_105, %c12_106, %c0_107] : memref<1x32x32xf32, #tpu.memory_space<vmem>>, vector<1x4x32xf32>
    %145 = vector.shape_cast %144 : vector<1x4x32xf32> to vector<4x32xf32>
    %146 = vector.shape_cast %143 : vector<4x32xf32> to vector<1x4x32xf32>
    tpu.vector_store %arg12[%c0_105, %c12_106, %c0_107], %146 {strides = array<i32>} : memref<1x32x32xf32, #tpu.memory_space<vmem>>, vector<1x4x32xf32>,
    %c8_108 = arith.constant 8 : index
    %c0_109 = arith.constant 0 : index
    %147 = vector.load %arg14[%c8_108, %c0_109] : memref<16x32xf32, #tpu.memory_space<vmem>>, vector<4x32xf32>
    %c0_110 = arith.constant 0 : index
    %c16 = arith.constant 16 : index
    %c0_111 = arith.constant 0 : index
    %148 = vector.load %arg2[%c0_110, %c16, %c0_111] : memref<1x32x32xf32, #tpu.memory_space<vmem>>, vector<1x4x32xf32>
    %149 = vector.shape_cast %148 : vector<1x4x32xf32> to vector<4x32xf32>
    %150 = arith.addf %149, %147 : vector<4x32xf32>
    %c0_112 = arith.constant 0 : index
    %c16_113 = arith.constant 16 : index
    %c0_114 = arith.constant 0 : index
    %151 = vector.load %arg12[%c0_112, %c16_113, %c0_114] : memref<1x32x32xf32, #tpu.memory_space<vmem>>, vector<1x4x32xf32>
    %152 = vector.shape_cast %151 : vector<1x4x32xf32> to vector<4x32xf32>
    %153 = vector.shape_cast %150 : vector<4x32xf32> to vector<1x4x32xf32>
    tpu.vector_store %arg12[%c0_112, %c16_113, %c0_114], %153 {strides = array<i32>} : memref<1x32x32xf32, #tpu.memory_space<vmem>>, vector<1x4x32xf32>,
    %c0_115 = arith.constant 0 : index
    %c20 = arith.constant 20 : index
    %c0_116 = arith.constant 0 : index
    %154 = vector.load %arg2[%c0_115, %c20, %c0_116] : memref<1x32x32xf32, #tpu.memory_space<vmem>>, vector<1x4x32xf32>
    %155 = vector.shape_cast %154 : vector<1x4x32xf32> to vector<4x32xf32>
    %156 = arith.addf %155, %147 : vector<4x32xf32>
    %c0_117 = arith.constant 0 : index
    %c20_118 = arith.constant 20 : index
    %c0_119 = arith.constant 0 : index
    %157 = vector.load %arg12[%c0_117, %c20_118, %c0_119] : memref<1x32x32xf32, #tpu.memory_space<vmem>>, vector<1x4x32xf32>
    %158 = vector.shape_cast %157 : vector<1x4x32xf32> to vector<4x32xf32>
    %159 = vector.shape_cast %156 : vector<4x32xf32> to vector<1x4x32xf32>
    tpu.vector_store %arg12[%c0_117, %c20_118, %c0_119], %159 {strides = array<i32>} : memref<1x32x32xf32, #tpu.memory_space<vmem>>, vector<1x4x32xf32>,
    %c12_120 = arith.constant 12 : index
    %c0_121 = arith.constant 0 : index
    %160 = vector.load %arg14[%c12_120, %c0_121] : memref<16x32xf32, #tpu.memory_space<vmem>>, vector<4x32xf32>
    %c0_122 = arith.constant 0 : index
    %c24_123 = arith.constant 24 : index
    %c0_124 = arith.constant 0 : index
    %161 = vector.load %arg2[%c0_122, %c24_123, %c0_124] : memref<1x32x32xf32, #tpu.memory_space<vmem>>, vector<1x4x32xf32>
    %162 = vector.shape_cast %161 : vector<1x4x32xf32> to vector<4x32xf32>
    %163 = arith.addf %162, %160 : vector<4x32xf32>
    %c0_125 = arith.constant 0 : index
    %c24_126 = arith.constant 24 : index
    %c0_127 = arith.constant 0 : index
    %164 = vector.load %arg12[%c0_125, %c24_126, %c0_127] : memref<1x32x32xf32, #tpu.memory_space<vmem>>, vector<1x4x32xf32>
    %165 = vector.shape_cast %164 : vector<1x4x32xf32> to vector<4x32xf32>
    %166 = vector.shape_cast %163 : vector<4x32xf32> to vector<1x4x32xf32>
    tpu.vector_store %arg12[%c0_125, %c24_126, %c0_127], %166 {strides = array<i32>} : memref<1x32x32xf32, #tpu.memory_space<vmem>>, vector<1x4x32xf32>,
    %c0_128 = arith.constant 0 : index
    %c28 = arith.constant 28 : index
    %c0_129 = arith.constant 0 : index
    %167 = vector.load %arg2[%c0_128, %c28, %c0_129] : memref<1x32x32xf32, #tpu.memory_space<vmem>>, vector<1x4x32xf32>
    %168 = vector.shape_cast %167 : vector<1x4x32xf32> to vector<4x32xf32>
    %169 = arith.addf %168, %160 : vector<4x32xf32>
    %c0_130 = arith.constant 0 : index
    %c28_131 = arith.constant 28 : index
    %c0_132 = arith.constant 0 : index
    %170 = vector.load %arg12[%c0_130, %c28_131, %c0_132] : memref<1x32x32xf32, #tpu.memory_space<vmem>>, vector<1x4x32xf32>
    %171 = vector.shape_cast %170 : vector<1x4x32xf32> to vector<4x32xf32>
    %172 = vector.shape_cast %169 : vector<4x32xf32> to vector<1x4x32xf32>
    tpu.vector_store %arg12[%c0_130, %c28_131, %c0_132], %172 {strides = array<i32>} : memref<1x32x32xf32, #tpu.memory_space<vmem>>, vector<1x4x32xf32>,
    return
  }
  func.func @transform_0(%arg0: i32) -> (i32, i32, i32) {
    %c0_i32 = arith.constant 0 : i32
    %c0_i32_0 = arith.constant 0 : i32
    %c0_i32_1 = arith.constant 0 : i32
    return %arg0, %c0_i32, %c0_i32_0 : i32, i32, i32
  }
  func.func @transform_1(%arg0: i32) -> (i32, i32, i32) {
    %c0_i32 = arith.constant 0 : i32
    %c0_i32_0 = arith.constant 0 : i32
    %c0_i32_1 = arith.constant 0 : i32
    return %arg0, %c0_i32, %c0_i32_0 : i32, i32, i32
  }
  func.func @transform_2(%arg0: i32) -> (i32, i32) {
    %c0_i32 = arith.constant 0 : i32
    %c0_i32_0 = arith.constant 0 : i32
    %c0_i32_1 = arith.constant 0 : i32
    return %c0_i32, %c0_i32_0 : i32, i32
  }
  func.func @transform_3(%arg0: i32) -> (i32, i32) {
    %c0_i32 = arith.constant 0 : i32
    %c0_i32_0 = arith.constant 0 : i32
    %c0_i32_1 = arith.constant 0 : i32
    return %c0_i32, %c0_i32_0 : i32, i32
  }
  func.func @transform_4(%arg0: i32) -> (i32, i32) {
    %c0_i32 = arith.constant 0 : i32
    %c0_i32_0 = arith.constant 0 : i32
    %c0_i32_1 = arith.constant 0 : i32
    return %c0_i32, %c0_i32_0 : i32, i32
  }
  func.func @transform_5(%arg0: i32) -> (i32, i32, i32) {
    %c0_i32 = arith.constant 0 : i32
    %c0_i32_0 = arith.constant 0 : i32
    %c0_i32_1 = arith.constant 0 : i32
    %c0_i32_2 = arith.constant 0 : i32
    return %c0_i32, %c0_i32_0, %c0_i32_1 : i32, i32, i32
  }
  func.func @transform_6(%arg0: i32) -> (i32, i32) {
    %c0_i32 = arith.constant 0 : i32
    %c0_i32_0 = arith.constant 0 : i32
    %c0_i32_1 = arith.constant 0 : i32
    return %c0_i32, %c0_i32_0 : i32, i32
  }
  func.func @transform_7(%arg0: i32) -> (i32, i32, i32, i32) {
    %c0_i32 = arith.constant 0 : i32
    %c0_i32_0 = arith.constant 0 : i32
    %c0_i32_1 = arith.constant 0 : i32
    %c0_i32_2 = arith.constant 0 : i32
    %c0_i32_3 = arith.constant 0 : i32
    return %c0_i32, %c0_i32_0, %c0_i32_1, %c0_i32_2 : i32, i32, i32, i32
  }
  func.func @transform_8(%arg0: i32) -> (i32, i32) {
    %c0_i32 = arith.constant 0 : i32
    %c0_i32_0 = arith.constant 0 : i32
    %c0_i32_1 = arith.constant 0 : i32
    return %c0_i32, %c0_i32_0 : i32, i32
  }
  func.func @transform_9(%arg0: i32) -> (i32, i32, i32) {
    %c0_i32 = arith.constant 0 : i32
    %c0_i32_0 = arith.constant 0 : i32
    %c0_i32_1 = arith.constant 0 : i32
    %c0_i32_2 = arith.constant 0 : i32
    return %c0_i32, %c0_i32_0, %c0_i32_1 : i32, i32, i32
  }
  func.func @transform_10(%arg0: i32) -> (i32, i32) {
    %c0_i32 = arith.constant 0 : i32
    %c0_i32_0 = arith.constant 0 : i32
    %c0_i32_1 = arith.constant 0 : i32
    return %c0_i32, %c0_i32_0 : i32, i32
  }
  func.func @transform_11(%arg0: i32) -> (i32, i32, i32) {
    %c0_i32 = arith.constant 0 : i32
    %c0_i32_0 = arith.constant 0 : i32
    %c0_i32_1 = arith.constant 0 : i32
    return %arg0, %c0_i32, %c0_i32_0 : i32, i32, i32
  }
}

module attributes {stable_mosaic.version = 11 : i64} {
  func.func @kernel(%arg0: i32, %arg1: memref<1x256x16xf32, #tpu.memory_space<vmem>>, %arg2: memref<1x16xf32, #tpu.memory_space<vmem>>, %arg3: memref<1x16xf32, #tpu.memory_space<vmem>>, %arg4: memref<1x16x8xf32, #tpu.memory_space<vmem>>, %arg5: memref<1x8xf32, #tpu.memory_space<vmem>>, %arg6: memref<1x3x3x8xf32, #tpu.memory_space<vmem>>, %arg7: memref<1x8xf32, #tpu.memory_space<vmem>>, %arg8: memref<1x8x16xf32, #tpu.memory_space<vmem>>, %arg9: memref<1x16xf32, #tpu.memory_space<vmem>>, %arg10: memref<1x256x16xf32, #tpu.memory_space<vmem>>, %arg11: memref<304x8xf32, #tpu.memory_space<vmem>>) attributes {dimension_semantics = [#tpu.dimension_semantics<parallel>], iteration_bounds = array<i64: 2>, scalar_prefetch = 0 : i64, scratch_operands = 1 : i64, tpu.core_type = #tpu.core_type<tc>, window_params = [{transform_indices = @transform_0, window_bounds = array<i64: 1, 256, 16>}, {pipeline_mode = #tpu.pipeline_mode<synchronous>, transform_indices = @transform_1, window_bounds = array<i64: 1, 16>}, {pipeline_mode = #tpu.pipeline_mode<synchronous>, transform_indices = @transform_2, window_bounds = array<i64: 1, 16>}, {pipeline_mode = #tpu.pipeline_mode<synchronous>, transform_indices = @transform_3, window_bounds = array<i64: 1, 16, 8>}, {pipeline_mode = #tpu.pipeline_mode<synchronous>, transform_indices = @transform_4, window_bounds = array<i64: 1, 8>}, {pipeline_mode = #tpu.pipeline_mode<synchronous>, transform_indices = @transform_5, window_bounds = array<i64: 1, 3, 3, 8>}, {pipeline_mode = #tpu.pipeline_mode<synchronous>, transform_indices = @transform_6, window_bounds = array<i64: 1, 8>}, {pipeline_mode = #tpu.pipeline_mode<synchronous>, transform_indices = @transform_7, window_bounds = array<i64: 1, 8, 16>}, {pipeline_mode = #tpu.pipeline_mode<synchronous>, transform_indices = @transform_8, window_bounds = array<i64: 1, 16>}, {transform_indices = @transform_9, window_bounds = array<i64: 1, 256, 16>}]} {
    %cst = arith.constant 0.000000e+00 : f32
    %0 = vector.broadcast %cst : f32 to vector<24x8xf32>
    %c0 = arith.constant 0 : index
    %c0_0 = arith.constant 0 : index
    %1 = vector.load %arg11[%c0, %c0_0] : memref<304x8xf32, #tpu.memory_space<vmem>>, vector<24x8xf32>
    tpu.vector_store %arg11[%c0, %c0_0], %0 {strides = array<i32>} : memref<304x8xf32, #tpu.memory_space<vmem>>, vector<24x8xf32>,
    %cst_1 = arith.constant 0.000000e+00 : f32
    %2 = vector.broadcast %cst_1 : f32 to vector<24x8xf32>
    %c280 = arith.constant 280 : index
    %c0_2 = arith.constant 0 : index
    %3 = vector.load %arg11[%c280, %c0_2] : memref<304x8xf32, #tpu.memory_space<vmem>>, vector<24x8xf32>
    tpu.vector_store %arg11[%c280, %c0_2], %2 {strides = array<i32>} : memref<304x8xf32, #tpu.memory_space<vmem>>, vector<24x8xf32>,
    %4 = tpu.iota {dimensions = array<i32: 0>} : vector<256x8xi32>
    %c15_i32 = arith.constant 15 : i32
    %5 = vector.broadcast %c15_i32 : i32 to vector<256x8xi32>
    %6 = arith.andi %4, %5 : vector<256x8xi32>
    %c0_i32 = arith.constant 0 : i32
    %7 = vector.broadcast %c0_i32 : i32 to vector<256x8xi32>
    %8 = arith.cmpi ne, %6, %7 : vector<256x8xi32>
    %c15_i32_3 = arith.constant 15 : i32
    %9 = vector.broadcast %c15_i32_3 : i32 to vector<256x8xi32>
    %10 = arith.cmpi ne, %6, %9 : vector<256x8xi32>
    %c0_4 = arith.constant 0 : index
    %c0_5 = arith.constant 0 : index
    %c0_6 = arith.constant 0 : index
    %11 = vector.load %arg1[%c0_4, %c0_5, %c0_6] : memref<1x256x16xf32, #tpu.memory_space<vmem>>, vector<1x256x16xf32>
    %12 = vector.shape_cast %11 : vector<1x256x16xf32> to vector<256x16xf32>
    %c0_7 = arith.constant 0 : index
    %c0_8 = arith.constant 0 : index
    %13 = vector.load %arg2[%c0_7, %c0_8] : memref<1x16xf32, #tpu.memory_space<vmem>>, vector<1x16xf32>
    %14 = vector.shape_cast %13 : vector<1x16xf32> to vector<16xf32>
    %c0_9 = arith.constant 0 : index
    %c0_10 = arith.constant 0 : index
    %15 = vector.load %arg3[%c0_9, %c0_10] : memref<1x16xf32, #tpu.memory_space<vmem>>, vector<1x16xf32>
    %16 = vector.shape_cast %15 : vector<1x16xf32> to vector<16xf32>
    %c0_11 = arith.constant 0 : index
    %c0_12 = arith.constant 0 : index
    %c0_13 = arith.constant 0 : index
    %17 = vector.load %arg4[%c0_11, %c0_12, %c0_13] : memref<1x16x8xf32, #tpu.memory_space<vmem>>, vector<1x16x8xf32>
    %18 = vector.shape_cast %17 : vector<1x16x8xf32> to vector<16x8xf32>
    %c0_14 = arith.constant 0 : index
    %c0_15 = arith.constant 0 : index
    %19 = vector.load %arg5[%c0_14, %c0_15] : memref<1x8xf32, #tpu.memory_space<vmem>>, vector<1x8xf32>
    %20 = vector.shape_cast %19 : vector<1x8xf32> to vector<8xf32>
    %c0_16 = arith.constant 0 : index
    %c0_17 = arith.constant 0 : index
    %21 = vector.load %arg7[%c0_16, %c0_17] : memref<1x8xf32, #tpu.memory_space<vmem>>, vector<1x8xf32>
    %22 = vector.shape_cast %21 : vector<1x8xf32> to vector<8xf32>
    %c0_18 = arith.constant 0 : index
    %c0_19 = arith.constant 0 : index
    %c0_20 = arith.constant 0 : index
    %23 = vector.load %arg8[%c0_18, %c0_19, %c0_20] : memref<1x8x16xf32, #tpu.memory_space<vmem>>, vector<1x8x16xf32>
    %24 = vector.shape_cast %23 : vector<1x8x16xf32> to vector<8x16xf32>
    %c0_21 = arith.constant 0 : index
    %c0_22 = arith.constant 0 : index
    %25 = vector.load %arg9[%c0_21, %c0_22] : memref<1x16xf32, #tpu.memory_space<vmem>>, vector<1x16xf32>
    %26 = vector.shape_cast %25 : vector<1x16xf32> to vector<16xf32>
    %27 = vector.shape_cast %14 : vector<16xf32> to vector<1x16xf32>
    %28 = vector.broadcast %27 : vector<1x16xf32> to vector<256x16xf32>
    %29 = arith.mulf %12, %28 : vector<256x16xf32>
    %30 = vector.shape_cast %16 : vector<16xf32> to vector<1x16xf32>
    %31 = vector.broadcast %30 : vector<1x16xf32> to vector<256x16xf32>
    %32 = arith.addf %29, %31 : vector<256x16xf32>
    %cst_23 = arith.constant 0.000000e+00 : f32
    %33 = vector.broadcast %cst_23 : f32 to vector<256x16xf32>
    %34 = arith.maximumf %32, %33 : vector<256x16xf32>
    %cst_24 = arith.constant dense<0.000000e+00> : vector<256x8xf32>
    %35 = tpu.matmul %34, %18, %cst_24 {dimension_numbers = #tpu.dot_dimension_numbers<[1], [0], [0], [1], [0, 0, 1, 1], [], []>} : vector<256x16xf32>, vector<16x8xf32>, vector<256x8xf32> -> vector<256x8xf32>
    %36 = vector.shape_cast %20 : vector<8xf32> to vector<1x8xf32>
    %37 = vector.broadcast %36 : vector<1x8xf32> to vector<256x8xf32>
    %38 = arith.addf %35, %37 : vector<256x8xf32>
    %cst_25 = arith.constant 0.000000e+00 : f32
    %39 = vector.broadcast %cst_25 : f32 to vector<256x8xf32>
    %40 = arith.maximumf %38, %39 : vector<256x8xf32>
    %c24 = arith.constant 24 : index
    %c0_26 = arith.constant 0 : index
    %41 = vector.load %arg11[%c24, %c0_26] : memref<304x8xf32, #tpu.memory_space<vmem>>, vector<256x8xf32>
    tpu.vector_store %arg11[%c24, %c0_26], %40 {strides = array<i32>} : memref<304x8xf32, #tpu.memory_space<vmem>>, vector<256x8xf32>,
    %c7 = arith.constant 7 : index
    %c0_27 = arith.constant 0 : index
    %42 = vector.load %arg11[%c7, %c0_27] : memref<304x8xf32, #tpu.memory_space<vmem>>, vector<256x8xf32>
    %c0_28 = arith.constant 0 : index
    %c0_29 = arith.constant 0 : index
    %c0_30 = arith.constant 0 : index
    %c0_31 = arith.constant 0 : index
    %43 = vector.load %arg6[%c0_28, %c0_29, %c0_30, %c0_31] : memref<1x3x3x8xf32, #tpu.memory_space<vmem>>, vector<1x1x1x8xf32>
    %44 = vector.shape_cast %43 : vector<1x1x1x8xf32> to vector<8xf32>
    %45 = vector.shape_cast %44 : vector<8xf32> to vector<1x8xf32>
    %46 = vector.broadcast %45 : vector<1x8xf32> to vector<256x8xf32>
    %47 = arith.mulf %42, %46 : vector<256x8xf32>
    %c23 = arith.constant 23 : index
    %c0_32 = arith.constant 0 : index
    %48 = vector.load %arg11[%c23, %c0_32] : memref<304x8xf32, #tpu.memory_space<vmem>>, vector<256x8xf32>
    %c0_33 = arith.constant 0 : index
    %c1 = arith.constant 1 : index
    %c0_34 = arith.constant 0 : index
    %c0_35 = arith.constant 0 : index
    %49 = vector.load %arg6[%c0_33, %c1, %c0_34, %c0_35] : memref<1x3x3x8xf32, #tpu.memory_space<vmem>>, vector<1x1x1x8xf32>
    %50 = vector.shape_cast %49 : vector<1x1x1x8xf32> to vector<8xf32>
    %51 = vector.shape_cast %50 : vector<8xf32> to vector<1x8xf32>
    %52 = vector.broadcast %51 : vector<1x8xf32> to vector<256x8xf32>
    %53 = arith.mulf %48, %52 : vector<256x8xf32>
    %54 = arith.addf %47, %53 : vector<256x8xf32>
    %c39 = arith.constant 39 : index
    %c0_36 = arith.constant 0 : index
    %55 = vector.load %arg11[%c39, %c0_36] : memref<304x8xf32, #tpu.memory_space<vmem>>, vector<256x8xf32>
    %c0_37 = arith.constant 0 : index
    %c2 = arith.constant 2 : index
    %c0_38 = arith.constant 0 : index
    %c0_39 = arith.constant 0 : index
    %56 = vector.load %arg6[%c0_37, %c2, %c0_38, %c0_39] : memref<1x3x3x8xf32, #tpu.memory_space<vmem>>, vector<1x1x1x8xf32>
    %57 = vector.shape_cast %56 : vector<1x1x1x8xf32> to vector<8xf32>
    %58 = vector.shape_cast %57 : vector<8xf32> to vector<1x8xf32>
    %59 = vector.broadcast %58 : vector<1x8xf32> to vector<256x8xf32>
    %60 = arith.mulf %55, %59 : vector<256x8xf32>
    %61 = arith.addf %54, %60 : vector<256x8xf32>
    %c8 = arith.constant 8 : index
    %c0_40 = arith.constant 0 : index
    %62 = vector.load %arg11[%c8, %c0_40] : memref<304x8xf32, #tpu.memory_space<vmem>>, vector<256x8xf32>
    %c0_41 = arith.constant 0 : index
    %c0_42 = arith.constant 0 : index
    %c1_43 = arith.constant 1 : index
    %c0_44 = arith.constant 0 : index
    %63 = vector.load %arg6[%c0_41, %c0_42, %c1_43, %c0_44] : memref<1x3x3x8xf32, #tpu.memory_space<vmem>>, vector<1x1x1x8xf32>
    %64 = vector.shape_cast %63 : vector<1x1x1x8xf32> to vector<8xf32>
    %65 = vector.shape_cast %64 : vector<8xf32> to vector<1x8xf32>
    %66 = vector.broadcast %65 : vector<1x8xf32> to vector<256x8xf32>
    %67 = arith.mulf %62, %66 : vector<256x8xf32>
    %c24_45 = arith.constant 24 : index
    %c0_46 = arith.constant 0 : index
    %68 = vector.load %arg11[%c24_45, %c0_46] : memref<304x8xf32, #tpu.memory_space<vmem>>, vector<256x8xf32>
    %c0_47 = arith.constant 0 : index
    %c1_48 = arith.constant 1 : index
    %c1_49 = arith.constant 1 : index
    %c0_50 = arith.constant 0 : index
    %69 = vector.load %arg6[%c0_47, %c1_48, %c1_49, %c0_50] : memref<1x3x3x8xf32, #tpu.memory_space<vmem>>, vector<1x1x1x8xf32>
    %70 = vector.shape_cast %69 : vector<1x1x1x8xf32> to vector<8xf32>
    %71 = vector.shape_cast %70 : vector<8xf32> to vector<1x8xf32>
    %72 = vector.broadcast %71 : vector<1x8xf32> to vector<256x8xf32>
    %73 = arith.mulf %68, %72 : vector<256x8xf32>
    %74 = arith.addf %67, %73 : vector<256x8xf32>
    %c40 = arith.constant 40 : index
    %c0_51 = arith.constant 0 : index
    %75 = vector.load %arg11[%c40, %c0_51] : memref<304x8xf32, #tpu.memory_space<vmem>>, vector<256x8xf32>
    %c0_52 = arith.constant 0 : index
    %c2_53 = arith.constant 2 : index
    %c1_54 = arith.constant 1 : index
    %c0_55 = arith.constant 0 : index
    %76 = vector.load %arg6[%c0_52, %c2_53, %c1_54, %c0_55] : memref<1x3x3x8xf32, #tpu.memory_space<vmem>>, vector<1x1x1x8xf32>
    %77 = vector.shape_cast %76 : vector<1x1x1x8xf32> to vector<8xf32>
    %78 = vector.shape_cast %77 : vector<8xf32> to vector<1x8xf32>
    %79 = vector.broadcast %78 : vector<1x8xf32> to vector<256x8xf32>
    %80 = arith.mulf %75, %79 : vector<256x8xf32>
    %81 = arith.addf %74, %80 : vector<256x8xf32>
    %c9 = arith.constant 9 : index
    %c0_56 = arith.constant 0 : index
    %82 = vector.load %arg11[%c9, %c0_56] : memref<304x8xf32, #tpu.memory_space<vmem>>, vector<256x8xf32>
    %c0_57 = arith.constant 0 : index
    %c0_58 = arith.constant 0 : index
    %c2_59 = arith.constant 2 : index
    %c0_60 = arith.constant 0 : index
    %83 = vector.load %arg6[%c0_57, %c0_58, %c2_59, %c0_60] : memref<1x3x3x8xf32, #tpu.memory_space<vmem>>, vector<1x1x1x8xf32>
    %84 = vector.shape_cast %83 : vector<1x1x1x8xf32> to vector<8xf32>
    %85 = vector.shape_cast %84 : vector<8xf32> to vector<1x8xf32>
    %86 = vector.broadcast %85 : vector<1x8xf32> to vector<256x8xf32>
    %87 = arith.mulf %82, %86 : vector<256x8xf32>
    %c25 = arith.constant 25 : index
    %c0_61 = arith.constant 0 : index
    %88 = vector.load %arg11[%c25, %c0_61] : memref<304x8xf32, #tpu.memory_space<vmem>>, vector<256x8xf32>
    %c0_62 = arith.constant 0 : index
    %c1_63 = arith.constant 1 : index
    %c2_64 = arith.constant 2 : index
    %c0_65 = arith.constant 0 : index
    %89 = vector.load %arg6[%c0_62, %c1_63, %c2_64, %c0_65] : memref<1x3x3x8xf32, #tpu.memory_space<vmem>>, vector<1x1x1x8xf32>
    %90 = vector.shape_cast %89 : vector<1x1x1x8xf32> to vector<8xf32>
    %91 = vector.shape_cast %90 : vector<8xf32> to vector<1x8xf32>
    %92 = vector.broadcast %91 : vector<1x8xf32> to vector<256x8xf32>
    %93 = arith.mulf %88, %92 : vector<256x8xf32>
    %94 = arith.addf %87, %93 : vector<256x8xf32>
    %c41 = arith.constant 41 : index
    %c0_66 = arith.constant 0 : index
    %95 = vector.load %arg11[%c41, %c0_66] : memref<304x8xf32, #tpu.memory_space<vmem>>, vector<256x8xf32>
    %c0_67 = arith.constant 0 : index
    %c2_68 = arith.constant 2 : index
    %c2_69 = arith.constant 2 : index
    %c0_70 = arith.constant 0 : index
    %96 = vector.load %arg6[%c0_67, %c2_68, %c2_69, %c0_70] : memref<1x3x3x8xf32, #tpu.memory_space<vmem>>, vector<1x1x1x8xf32>
    %97 = vector.shape_cast %96 : vector<1x1x1x8xf32> to vector<8xf32>
    %98 = vector.shape_cast %97 : vector<8xf32> to vector<1x8xf32>
    %99 = vector.broadcast %98 : vector<1x8xf32> to vector<256x8xf32>
    %100 = arith.mulf %95, %99 : vector<256x8xf32>
    %101 = arith.addf %94, %100 : vector<256x8xf32>
    %cst_71 = arith.constant 0.000000e+00 : f32
    %102 = vector.broadcast %cst_71 : f32 to vector<256x8xf32>
    %103 = arith.select %8, %61, %102 : vector<256x8xi1>, vector<256x8xf32>
    %cst_72 = arith.constant 0.000000e+00 : f32
    %104 = vector.broadcast %cst_72 : f32 to vector<256x8xf32>
    %105 = arith.select %10, %101, %104 : vector<256x8xi1>, vector<256x8xf32>
    %106 = arith.addf %103, %81 : vector<256x8xf32>
    %107 = arith.addf %106, %105 : vector<256x8xf32>
    %108 = vector.shape_cast %22 : vector<8xf32> to vector<1x8xf32>
    %109 = vector.broadcast %108 : vector<1x8xf32> to vector<256x8xf32>
    %110 = arith.addf %107, %109 : vector<256x8xf32>
    %cst_73 = arith.constant 0.000000e+00 : f32
    %111 = vector.broadcast %cst_73 : f32 to vector<256x8xf32>
    %112 = arith.maximumf %110, %111 : vector<256x8xf32>
    %cst_74 = arith.constant dense<0.000000e+00> : vector<256x16xf32>
    %113 = tpu.matmul %112, %24, %cst_74 {dimension_numbers = #tpu.dot_dimension_numbers<[1], [0], [0], [1], [0, 0, 1, 1], [], []>} : vector<256x8xf32>, vector<8x16xf32>, vector<256x16xf32> -> vector<256x16xf32>
    %114 = vector.shape_cast %26 : vector<16xf32> to vector<1x16xf32>
    %115 = vector.broadcast %114 : vector<1x16xf32> to vector<256x16xf32>
    %116 = arith.addf %113, %115 : vector<256x16xf32>
    %117 = arith.addf %12, %116 : vector<256x16xf32>
    %c0_75 = arith.constant 0 : index
    %c0_76 = arith.constant 0 : index
    %c0_77 = arith.constant 0 : index
    %118 = vector.load %arg10[%c0_75, %c0_76, %c0_77] : memref<1x256x16xf32, #tpu.memory_space<vmem>>, vector<1x256x16xf32>
    %119 = vector.shape_cast %118 : vector<1x256x16xf32> to vector<256x16xf32>
    %120 = vector.shape_cast %117 : vector<256x16xf32> to vector<1x256x16xf32>
    tpu.vector_store %arg10[%c0_75, %c0_76, %c0_77], %120 {strides = array<i32>} : memref<1x256x16xf32, #tpu.memory_space<vmem>>, vector<1x256x16xf32>,
    return
  }
  func.func @transform_0(%arg0: i32) -> (i32, i32, i32) {
    %c0_i32 = arith.constant 0 : i32
    %c0_i32_0 = arith.constant 0 : i32
    %c0_i32_1 = arith.constant 0 : i32
    return %arg0, %c0_i32, %c0_i32_0 : i32, i32, i32
  }
  func.func @transform_1(%arg0: i32) -> (i32, i32) {
    %c0_i32 = arith.constant 0 : i32
    %c0_i32_0 = arith.constant 0 : i32
    %c0_i32_1 = arith.constant 0 : i32
    return %c0_i32, %c0_i32_0 : i32, i32
  }
  func.func @transform_2(%arg0: i32) -> (i32, i32) {
    %c0_i32 = arith.constant 0 : i32
    %c0_i32_0 = arith.constant 0 : i32
    %c0_i32_1 = arith.constant 0 : i32
    return %c0_i32, %c0_i32_0 : i32, i32
  }
  func.func @transform_3(%arg0: i32) -> (i32, i32, i32) {
    %c0_i32 = arith.constant 0 : i32
    %c0_i32_0 = arith.constant 0 : i32
    %c0_i32_1 = arith.constant 0 : i32
    %c0_i32_2 = arith.constant 0 : i32
    return %c0_i32, %c0_i32_0, %c0_i32_1 : i32, i32, i32
  }
  func.func @transform_4(%arg0: i32) -> (i32, i32) {
    %c0_i32 = arith.constant 0 : i32
    %c0_i32_0 = arith.constant 0 : i32
    %c0_i32_1 = arith.constant 0 : i32
    return %c0_i32, %c0_i32_0 : i32, i32
  }
  func.func @transform_5(%arg0: i32) -> (i32, i32, i32, i32) {
    %c0_i32 = arith.constant 0 : i32
    %c0_i32_0 = arith.constant 0 : i32
    %c0_i32_1 = arith.constant 0 : i32
    %c0_i32_2 = arith.constant 0 : i32
    %c0_i32_3 = arith.constant 0 : i32
    return %c0_i32, %c0_i32_0, %c0_i32_1, %c0_i32_2 : i32, i32, i32, i32
  }
  func.func @transform_6(%arg0: i32) -> (i32, i32) {
    %c0_i32 = arith.constant 0 : i32
    %c0_i32_0 = arith.constant 0 : i32
    %c0_i32_1 = arith.constant 0 : i32
    return %c0_i32, %c0_i32_0 : i32, i32
  }
  func.func @transform_7(%arg0: i32) -> (i32, i32, i32) {
    %c0_i32 = arith.constant 0 : i32
    %c0_i32_0 = arith.constant 0 : i32
    %c0_i32_1 = arith.constant 0 : i32
    %c0_i32_2 = arith.constant 0 : i32
    return %c0_i32, %c0_i32_0, %c0_i32_1 : i32, i32, i32
  }
  func.func @transform_8(%arg0: i32) -> (i32, i32) {
    %c0_i32 = arith.constant 0 : i32
    %c0_i32_0 = arith.constant 0 : i32
    %c0_i32_1 = arith.constant 0 : i32
    return %c0_i32, %c0_i32_0 : i32, i32
  }
  func.func @transform_9(%arg0: i32) -> (i32, i32, i32) {
    %c0_i32 = arith.constant 0 : i32
    %c0_i32_0 = arith.constant 0 : i32
    %c0_i32_1 = arith.constant 0 : i32
    return %arg0, %c0_i32, %c0_i32_0 : i32, i32, i32
  }
}

module attributes {stable_mosaic.version = 11 : i64} {
  func.func @kernel(%arg0: i32, %arg1: memref<1x64x16xf32, #tpu.memory_space<vmem>>, %arg2: memref<1x128x32xf32, #tpu.memory_space<vmem>>, %arg3: memref<16x32xf32, #tpu.memory_space<vmem>>, %arg4: memref<1x16xf32, #tpu.memory_space<vmem>>, %arg5: memref<1x16xf32, #tpu.memory_space<vmem>>, %arg6: memref<1x16x8xf32, #tpu.memory_space<vmem>>, %arg7: memref<1x8xf32, #tpu.memory_space<vmem>>, %arg8: memref<1x3x3x8xf32, #tpu.memory_space<vmem>>, %arg9: memref<1x8xf32, #tpu.memory_space<vmem>>, %arg10: memref<1x8x16xf32, #tpu.memory_space<vmem>>, %arg11: memref<1x16xf32, #tpu.memory_space<vmem>>, %arg12: memref<1x128x32xf32, #tpu.memory_space<vmem>>, %arg13: memref<96x8xf32, #tpu.memory_space<vmem>>, %arg14: memref<64x32xf32, #tpu.memory_space<vmem>>) attributes {dimension_semantics = [#tpu.dimension_semantics<parallel>], iteration_bounds = array<i64: 2>, scalar_prefetch = 0 : i64, scratch_operands = 2 : i64, tpu.core_type = #tpu.core_type<tc>, window_params = [{transform_indices = @transform_0, window_bounds = array<i64: 1, 64, 16>}, {transform_indices = @transform_1, window_bounds = array<i64: 1, 128, 32>}, {pipeline_mode = #tpu.pipeline_mode<synchronous>, transform_indices = @transform_2, window_bounds = array<i64: 16, 32>}, {pipeline_mode = #tpu.pipeline_mode<synchronous>, transform_indices = @transform_3, window_bounds = array<i64: 1, 16>}, {pipeline_mode = #tpu.pipeline_mode<synchronous>, transform_indices = @transform_4, window_bounds = array<i64: 1, 16>}, {pipeline_mode = #tpu.pipeline_mode<synchronous>, transform_indices = @transform_5, window_bounds = array<i64: 1, 16, 8>}, {pipeline_mode = #tpu.pipeline_mode<synchronous>, transform_indices = @transform_6, window_bounds = array<i64: 1, 8>}, {pipeline_mode = #tpu.pipeline_mode<synchronous>, transform_indices = @transform_7, window_bounds = array<i64: 1, 3, 3, 8>}, {pipeline_mode = #tpu.pipeline_mode<synchronous>, transform_indices = @transform_8, window_bounds = array<i64: 1, 8>}, {pipeline_mode = #tpu.pipeline_mode<synchronous>, transform_indices = @transform_9, window_bounds = array<i64: 1, 8, 16>}, {pipeline_mode = #tpu.pipeline_mode<synchronous>, transform_indices = @transform_10, window_bounds = array<i64: 1, 16>}, {transform_indices = @transform_11, window_bounds = array<i64: 1, 128, 32>}]} {
    %cst = arith.constant 0.000000e+00 : f32
    %0 = vector.broadcast %cst : f32 to vector<16x8xf32>
    %c0 = arith.constant 0 : index
    %c0_0 = arith.constant 0 : index
    %1 = vector.load %arg13[%c0, %c0_0] : memref<96x8xf32, #tpu.memory_space<vmem>>, vector<16x8xf32>
    tpu.vector_store %arg13[%c0, %c0_0], %0 {strides = array<i32>} : memref<96x8xf32, #tpu.memory_space<vmem>>, vector<16x8xf32>,
    %cst_1 = arith.constant 0.000000e+00 : f32
    %2 = vector.broadcast %cst_1 : f32 to vector<16x8xf32>
    %c80 = arith.constant 80 : index
    %c0_2 = arith.constant 0 : index
    %3 = vector.load %arg13[%c80, %c0_2] : memref<96x8xf32, #tpu.memory_space<vmem>>, vector<16x8xf32>
    tpu.vector_store %arg13[%c80, %c0_2], %2 {strides = array<i32>} : memref<96x8xf32, #tpu.memory_space<vmem>>, vector<16x8xf32>,
    %4 = tpu.iota {dimensions = array<i32: 0>} : vector<64x8xi32>
    %c7_i32 = arith.constant 7 : i32
    %5 = vector.broadcast %c7_i32 : i32 to vector<64x8xi32>
    %6 = arith.andi %4, %5 : vector<64x8xi32>
    %c0_i32 = arith.constant 0 : i32
    %7 = vector.broadcast %c0_i32 : i32 to vector<64x8xi32>
    %8 = arith.cmpi ne, %6, %7 : vector<64x8xi32>
    %c7_i32_3 = arith.constant 7 : i32
    %9 = vector.broadcast %c7_i32_3 : i32 to vector<64x8xi32>
    %10 = arith.cmpi ne, %6, %9 : vector<64x8xi32>
    %c0_4 = arith.constant 0 : index
    %c0_5 = arith.constant 0 : index
    %c0_6 = arith.constant 0 : index
    %11 = vector.load %arg1[%c0_4, %c0_5, %c0_6] : memref<1x64x16xf32, #tpu.memory_space<vmem>>, vector<1x64x16xf32>
    %12 = vector.shape_cast %11 : vector<1x64x16xf32> to vector<64x16xf32>
    %c0_7 = arith.constant 0 : index
    %c0_8 = arith.constant 0 : index
    %13 = vector.load %arg4[%c0_7, %c0_8] : memref<1x16xf32, #tpu.memory_space<vmem>>, vector<1x16xf32>
    %14 = vector.shape_cast %13 : vector<1x16xf32> to vector<16xf32>
    %c0_9 = arith.constant 0 : index
    %c0_10 = arith.constant 0 : index
    %15 = vector.load %arg5[%c0_9, %c0_10] : memref<1x16xf32, #tpu.memory_space<vmem>>, vector<1x16xf32>
    %16 = vector.shape_cast %15 : vector<1x16xf32> to vector<16xf32>
    %c0_11 = arith.constant 0 : index
    %c0_12 = arith.constant 0 : index
    %c0_13 = arith.constant 0 : index
    %17 = vector.load %arg6[%c0_11, %c0_12, %c0_13] : memref<1x16x8xf32, #tpu.memory_space<vmem>>, vector<1x16x8xf32>
    %18 = vector.shape_cast %17 : vector<1x16x8xf32> to vector<16x8xf32>
    %c0_14 = arith.constant 0 : index
    %c0_15 = arith.constant 0 : index
    %19 = vector.load %arg7[%c0_14, %c0_15] : memref<1x8xf32, #tpu.memory_space<vmem>>, vector<1x8xf32>
    %20 = vector.shape_cast %19 : vector<1x8xf32> to vector<8xf32>
    %c0_16 = arith.constant 0 : index
    %c0_17 = arith.constant 0 : index
    %21 = vector.load %arg9[%c0_16, %c0_17] : memref<1x8xf32, #tpu.memory_space<vmem>>, vector<1x8xf32>
    %22 = vector.shape_cast %21 : vector<1x8xf32> to vector<8xf32>
    %c0_18 = arith.constant 0 : index
    %c0_19 = arith.constant 0 : index
    %c0_20 = arith.constant 0 : index
    %23 = vector.load %arg10[%c0_18, %c0_19, %c0_20] : memref<1x8x16xf32, #tpu.memory_space<vmem>>, vector<1x8x16xf32>
    %24 = vector.shape_cast %23 : vector<1x8x16xf32> to vector<8x16xf32>
    %c0_21 = arith.constant 0 : index
    %c0_22 = arith.constant 0 : index
    %25 = vector.load %arg11[%c0_21, %c0_22] : memref<1x16xf32, #tpu.memory_space<vmem>>, vector<1x16xf32>
    %26 = vector.shape_cast %25 : vector<1x16xf32> to vector<16xf32>
    %27 = vector.shape_cast %14 : vector<16xf32> to vector<1x16xf32>
    %28 = vector.broadcast %27 : vector<1x16xf32> to vector<64x16xf32>
    %29 = arith.mulf %12, %28 : vector<64x16xf32>
    %30 = vector.shape_cast %16 : vector<16xf32> to vector<1x16xf32>
    %31 = vector.broadcast %30 : vector<1x16xf32> to vector<64x16xf32>
    %32 = arith.addf %29, %31 : vector<64x16xf32>
    %cst_23 = arith.constant 0.000000e+00 : f32
    %33 = vector.broadcast %cst_23 : f32 to vector<64x16xf32>
    %34 = arith.maximumf %32, %33 : vector<64x16xf32>
    %cst_24 = arith.constant dense<0.000000e+00> : vector<64x8xf32>
    %35 = tpu.matmul %34, %18, %cst_24 {dimension_numbers = #tpu.dot_dimension_numbers<[1], [0], [0], [1], [0, 0, 1, 1], [], []>} : vector<64x16xf32>, vector<16x8xf32>, vector<64x8xf32> -> vector<64x8xf32>
    %36 = vector.shape_cast %20 : vector<8xf32> to vector<1x8xf32>
    %37 = vector.broadcast %36 : vector<1x8xf32> to vector<64x8xf32>
    %38 = arith.addf %35, %37 : vector<64x8xf32>
    %cst_25 = arith.constant 0.000000e+00 : f32
    %39 = vector.broadcast %cst_25 : f32 to vector<64x8xf32>
    %40 = arith.maximumf %38, %39 : vector<64x8xf32>
    %c16 = arith.constant 16 : index
    %c0_26 = arith.constant 0 : index
    %41 = vector.load %arg13[%c16, %c0_26] : memref<96x8xf32, #tpu.memory_space<vmem>>, vector<64x8xf32>
    tpu.vector_store %arg13[%c16, %c0_26], %40 {strides = array<i32>} : memref<96x8xf32, #tpu.memory_space<vmem>>, vector<64x8xf32>,
    %c7 = arith.constant 7 : index
    %c0_27 = arith.constant 0 : index
    %42 = vector.load %arg13[%c7, %c0_27] : memref<96x8xf32, #tpu.memory_space<vmem>>, vector<64x8xf32>
    %c0_28 = arith.constant 0 : index
    %c0_29 = arith.constant 0 : index
    %c0_30 = arith.constant 0 : index
    %c0_31 = arith.constant 0 : index
    %43 = vector.load %arg8[%c0_28, %c0_29, %c0_30, %c0_31] : memref<1x3x3x8xf32, #tpu.memory_space<vmem>>, vector<1x1x1x8xf32>
    %44 = vector.shape_cast %43 : vector<1x1x1x8xf32> to vector<8xf32>
    %45 = vector.shape_cast %44 : vector<8xf32> to vector<1x8xf32>
    %46 = vector.broadcast %45 : vector<1x8xf32> to vector<64x8xf32>
    %47 = arith.mulf %42, %46 : vector<64x8xf32>
    %c15 = arith.constant 15 : index
    %c0_32 = arith.constant 0 : index
    %48 = vector.load %arg13[%c15, %c0_32] : memref<96x8xf32, #tpu.memory_space<vmem>>, vector<64x8xf32>
    %c0_33 = arith.constant 0 : index
    %c1 = arith.constant 1 : index
    %c0_34 = arith.constant 0 : index
    %c0_35 = arith.constant 0 : index
    %49 = vector.load %arg8[%c0_33, %c1, %c0_34, %c0_35] : memref<1x3x3x8xf32, #tpu.memory_space<vmem>>, vector<1x1x1x8xf32>
    %50 = vector.shape_cast %49 : vector<1x1x1x8xf32> to vector<8xf32>
    %51 = vector.shape_cast %50 : vector<8xf32> to vector<1x8xf32>
    %52 = vector.broadcast %51 : vector<1x8xf32> to vector<64x8xf32>
    %53 = arith.mulf %48, %52 : vector<64x8xf32>
    %54 = arith.addf %47, %53 : vector<64x8xf32>
    %c23 = arith.constant 23 : index
    %c0_36 = arith.constant 0 : index
    %55 = vector.load %arg13[%c23, %c0_36] : memref<96x8xf32, #tpu.memory_space<vmem>>, vector<64x8xf32>
    %c0_37 = arith.constant 0 : index
    %c2 = arith.constant 2 : index
    %c0_38 = arith.constant 0 : index
    %c0_39 = arith.constant 0 : index
    %56 = vector.load %arg8[%c0_37, %c2, %c0_38, %c0_39] : memref<1x3x3x8xf32, #tpu.memory_space<vmem>>, vector<1x1x1x8xf32>
    %57 = vector.shape_cast %56 : vector<1x1x1x8xf32> to vector<8xf32>
    %58 = vector.shape_cast %57 : vector<8xf32> to vector<1x8xf32>
    %59 = vector.broadcast %58 : vector<1x8xf32> to vector<64x8xf32>
    %60 = arith.mulf %55, %59 : vector<64x8xf32>
    %61 = arith.addf %54, %60 : vector<64x8xf32>
    %c8 = arith.constant 8 : index
    %c0_40 = arith.constant 0 : index
    %62 = vector.load %arg13[%c8, %c0_40] : memref<96x8xf32, #tpu.memory_space<vmem>>, vector<64x8xf32>
    %c0_41 = arith.constant 0 : index
    %c0_42 = arith.constant 0 : index
    %c1_43 = arith.constant 1 : index
    %c0_44 = arith.constant 0 : index
    %63 = vector.load %arg8[%c0_41, %c0_42, %c1_43, %c0_44] : memref<1x3x3x8xf32, #tpu.memory_space<vmem>>, vector<1x1x1x8xf32>
    %64 = vector.shape_cast %63 : vector<1x1x1x8xf32> to vector<8xf32>
    %65 = vector.shape_cast %64 : vector<8xf32> to vector<1x8xf32>
    %66 = vector.broadcast %65 : vector<1x8xf32> to vector<64x8xf32>
    %67 = arith.mulf %62, %66 : vector<64x8xf32>
    %c16_45 = arith.constant 16 : index
    %c0_46 = arith.constant 0 : index
    %68 = vector.load %arg13[%c16_45, %c0_46] : memref<96x8xf32, #tpu.memory_space<vmem>>, vector<64x8xf32>
    %c0_47 = arith.constant 0 : index
    %c1_48 = arith.constant 1 : index
    %c1_49 = arith.constant 1 : index
    %c0_50 = arith.constant 0 : index
    %69 = vector.load %arg8[%c0_47, %c1_48, %c1_49, %c0_50] : memref<1x3x3x8xf32, #tpu.memory_space<vmem>>, vector<1x1x1x8xf32>
    %70 = vector.shape_cast %69 : vector<1x1x1x8xf32> to vector<8xf32>
    %71 = vector.shape_cast %70 : vector<8xf32> to vector<1x8xf32>
    %72 = vector.broadcast %71 : vector<1x8xf32> to vector<64x8xf32>
    %73 = arith.mulf %68, %72 : vector<64x8xf32>
    %74 = arith.addf %67, %73 : vector<64x8xf32>
    %c24 = arith.constant 24 : index
    %c0_51 = arith.constant 0 : index
    %75 = vector.load %arg13[%c24, %c0_51] : memref<96x8xf32, #tpu.memory_space<vmem>>, vector<64x8xf32>
    %c0_52 = arith.constant 0 : index
    %c2_53 = arith.constant 2 : index
    %c1_54 = arith.constant 1 : index
    %c0_55 = arith.constant 0 : index
    %76 = vector.load %arg8[%c0_52, %c2_53, %c1_54, %c0_55] : memref<1x3x3x8xf32, #tpu.memory_space<vmem>>, vector<1x1x1x8xf32>
    %77 = vector.shape_cast %76 : vector<1x1x1x8xf32> to vector<8xf32>
    %78 = vector.shape_cast %77 : vector<8xf32> to vector<1x8xf32>
    %79 = vector.broadcast %78 : vector<1x8xf32> to vector<64x8xf32>
    %80 = arith.mulf %75, %79 : vector<64x8xf32>
    %81 = arith.addf %74, %80 : vector<64x8xf32>
    %c9 = arith.constant 9 : index
    %c0_56 = arith.constant 0 : index
    %82 = vector.load %arg13[%c9, %c0_56] : memref<96x8xf32, #tpu.memory_space<vmem>>, vector<64x8xf32>
    %c0_57 = arith.constant 0 : index
    %c0_58 = arith.constant 0 : index
    %c2_59 = arith.constant 2 : index
    %c0_60 = arith.constant 0 : index
    %83 = vector.load %arg8[%c0_57, %c0_58, %c2_59, %c0_60] : memref<1x3x3x8xf32, #tpu.memory_space<vmem>>, vector<1x1x1x8xf32>
    %84 = vector.shape_cast %83 : vector<1x1x1x8xf32> to vector<8xf32>
    %85 = vector.shape_cast %84 : vector<8xf32> to vector<1x8xf32>
    %86 = vector.broadcast %85 : vector<1x8xf32> to vector<64x8xf32>
    %87 = arith.mulf %82, %86 : vector<64x8xf32>
    %c17 = arith.constant 17 : index
    %c0_61 = arith.constant 0 : index
    %88 = vector.load %arg13[%c17, %c0_61] : memref<96x8xf32, #tpu.memory_space<vmem>>, vector<64x8xf32>
    %c0_62 = arith.constant 0 : index
    %c1_63 = arith.constant 1 : index
    %c2_64 = arith.constant 2 : index
    %c0_65 = arith.constant 0 : index
    %89 = vector.load %arg8[%c0_62, %c1_63, %c2_64, %c0_65] : memref<1x3x3x8xf32, #tpu.memory_space<vmem>>, vector<1x1x1x8xf32>
    %90 = vector.shape_cast %89 : vector<1x1x1x8xf32> to vector<8xf32>
    %91 = vector.shape_cast %90 : vector<8xf32> to vector<1x8xf32>
    %92 = vector.broadcast %91 : vector<1x8xf32> to vector<64x8xf32>
    %93 = arith.mulf %88, %92 : vector<64x8xf32>
    %94 = arith.addf %87, %93 : vector<64x8xf32>
    %c25 = arith.constant 25 : index
    %c0_66 = arith.constant 0 : index
    %95 = vector.load %arg13[%c25, %c0_66] : memref<96x8xf32, #tpu.memory_space<vmem>>, vector<64x8xf32>
    %c0_67 = arith.constant 0 : index
    %c2_68 = arith.constant 2 : index
    %c2_69 = arith.constant 2 : index
    %c0_70 = arith.constant 0 : index
    %96 = vector.load %arg8[%c0_67, %c2_68, %c2_69, %c0_70] : memref<1x3x3x8xf32, #tpu.memory_space<vmem>>, vector<1x1x1x8xf32>
    %97 = vector.shape_cast %96 : vector<1x1x1x8xf32> to vector<8xf32>
    %98 = vector.shape_cast %97 : vector<8xf32> to vector<1x8xf32>
    %99 = vector.broadcast %98 : vector<1x8xf32> to vector<64x8xf32>
    %100 = arith.mulf %95, %99 : vector<64x8xf32>
    %101 = arith.addf %94, %100 : vector<64x8xf32>
    %cst_71 = arith.constant 0.000000e+00 : f32
    %102 = vector.broadcast %cst_71 : f32 to vector<64x8xf32>
    %103 = arith.select %8, %61, %102 : vector<64x8xi1>, vector<64x8xf32>
    %cst_72 = arith.constant 0.000000e+00 : f32
    %104 = vector.broadcast %cst_72 : f32 to vector<64x8xf32>
    %105 = arith.select %10, %101, %104 : vector<64x8xi1>, vector<64x8xf32>
    %106 = arith.addf %103, %81 : vector<64x8xf32>
    %107 = arith.addf %106, %105 : vector<64x8xf32>
    %108 = vector.shape_cast %22 : vector<8xf32> to vector<1x8xf32>
    %109 = vector.broadcast %108 : vector<1x8xf32> to vector<64x8xf32>
    %110 = arith.addf %107, %109 : vector<64x8xf32>
    %cst_73 = arith.constant 0.000000e+00 : f32
    %111 = vector.broadcast %cst_73 : f32 to vector<64x8xf32>
    %112 = arith.maximumf %110, %111 : vector<64x8xf32>
    %cst_74 = arith.constant dense<0.000000e+00> : vector<64x16xf32>
    %113 = tpu.matmul %112, %24, %cst_74 {dimension_numbers = #tpu.dot_dimension_numbers<[1], [0], [0], [1], [0, 0, 1, 1], [], []>} : vector<64x8xf32>, vector<8x16xf32>, vector<64x16xf32> -> vector<64x16xf32>
    %114 = vector.shape_cast %26 : vector<16xf32> to vector<1x16xf32>
    %115 = vector.broadcast %114 : vector<1x16xf32> to vector<64x16xf32>
    %116 = arith.addf %113, %115 : vector<64x16xf32>
    %117 = arith.addf %12, %116 : vector<64x16xf32>
    %c0_75 = arith.constant 0 : index
    %c0_76 = arith.constant 0 : index
    %118 = vector.load %arg3[%c0_75, %c0_76] : memref<16x32xf32, #tpu.memory_space<vmem>>, vector<16x32xf32>
    %cst_77 = arith.constant dense<0.000000e+00> : vector<64x32xf32>
    %119 = tpu.matmul %117, %118, %cst_77 {dimension_numbers = #tpu.dot_dimension_numbers<[1], [0], [0], [1], [0, 0, 1, 1], [], []>} : vector<64x16xf32>, vector<16x32xf32>, vector<64x32xf32> -> vector<64x32xf32>
    %c0_78 = arith.constant 0 : index
    %c0_79 = arith.constant 0 : index
    %120 = vector.load %arg14[%c0_78, %c0_79] : memref<64x32xf32, #tpu.memory_space<vmem>>, vector<64x32xf32>
    tpu.vector_store %arg14[%c0_78, %c0_79], %119 {strides = array<i32>} : memref<64x32xf32, #tpu.memory_space<vmem>>, vector<64x32xf32>,
    %c0_80 = arith.constant 0 : index
    %c0_81 = arith.constant 0 : index
    %121 = vector.load %arg14[%c0_80, %c0_81] : memref<64x32xf32, #tpu.memory_space<vmem>>, vector<8x32xf32>
    %c0_82 = arith.constant 0 : index
    %c0_83 = arith.constant 0 : index
    %c0_84 = arith.constant 0 : index
    %122 = vector.load %arg2[%c0_82, %c0_83, %c0_84] : memref<1x128x32xf32, #tpu.memory_space<vmem>>, vector<1x8x32xf32>
    %123 = vector.shape_cast %122 : vector<1x8x32xf32> to vector<8x32xf32>
    %124 = arith.addf %123, %121 : vector<8x32xf32>
    %c0_85 = arith.constant 0 : index
    %c0_86 = arith.constant 0 : index
    %c0_87 = arith.constant 0 : index
    %125 = vector.load %arg12[%c0_85, %c0_86, %c0_87] : memref<1x128x32xf32, #tpu.memory_space<vmem>>, vector<1x8x32xf32>
    %126 = vector.shape_cast %125 : vector<1x8x32xf32> to vector<8x32xf32>
    %127 = vector.shape_cast %124 : vector<8x32xf32> to vector<1x8x32xf32>
    tpu.vector_store %arg12[%c0_85, %c0_86, %c0_87], %127 {strides = array<i32>} : memref<1x128x32xf32, #tpu.memory_space<vmem>>, vector<1x8x32xf32>,
    %c0_88 = arith.constant 0 : index
    %c8_89 = arith.constant 8 : index
    %c0_90 = arith.constant 0 : index
    %128 = vector.load %arg2[%c0_88, %c8_89, %c0_90] : memref<1x128x32xf32, #tpu.memory_space<vmem>>, vector<1x8x32xf32>
    %129 = vector.shape_cast %128 : vector<1x8x32xf32> to vector<8x32xf32>
    %130 = arith.addf %129, %121 : vector<8x32xf32>
    %c0_91 = arith.constant 0 : index
    %c8_92 = arith.constant 8 : index
    %c0_93 = arith.constant 0 : index
    %131 = vector.load %arg12[%c0_91, %c8_92, %c0_93] : memref<1x128x32xf32, #tpu.memory_space<vmem>>, vector<1x8x32xf32>
    %132 = vector.shape_cast %131 : vector<1x8x32xf32> to vector<8x32xf32>
    %133 = vector.shape_cast %130 : vector<8x32xf32> to vector<1x8x32xf32>
    tpu.vector_store %arg12[%c0_91, %c8_92, %c0_93], %133 {strides = array<i32>} : memref<1x128x32xf32, #tpu.memory_space<vmem>>, vector<1x8x32xf32>,
    %c8_94 = arith.constant 8 : index
    %c0_95 = arith.constant 0 : index
    %134 = vector.load %arg14[%c8_94, %c0_95] : memref<64x32xf32, #tpu.memory_space<vmem>>, vector<8x32xf32>
    %c0_96 = arith.constant 0 : index
    %c16_97 = arith.constant 16 : index
    %c0_98 = arith.constant 0 : index
    %135 = vector.load %arg2[%c0_96, %c16_97, %c0_98] : memref<1x128x32xf32, #tpu.memory_space<vmem>>, vector<1x8x32xf32>
    %136 = vector.shape_cast %135 : vector<1x8x32xf32> to vector<8x32xf32>
    %137 = arith.addf %136, %134 : vector<8x32xf32>
    %c0_99 = arith.constant 0 : index
    %c16_100 = arith.constant 16 : index
    %c0_101 = arith.constant 0 : index
    %138 = vector.load %arg12[%c0_99, %c16_100, %c0_101] : memref<1x128x32xf32, #tpu.memory_space<vmem>>, vector<1x8x32xf32>
    %139 = vector.shape_cast %138 : vector<1x8x32xf32> to vector<8x32xf32>
    %140 = vector.shape_cast %137 : vector<8x32xf32> to vector<1x8x32xf32>
    tpu.vector_store %arg12[%c0_99, %c16_100, %c0_101], %140 {strides = array<i32>} : memref<1x128x32xf32, #tpu.memory_space<vmem>>, vector<1x8x32xf32>,
    %c0_102 = arith.constant 0 : index
    %c24_103 = arith.constant 24 : index
    %c0_104 = arith.constant 0 : index
    %141 = vector.load %arg2[%c0_102, %c24_103, %c0_104] : memref<1x128x32xf32, #tpu.memory_space<vmem>>, vector<1x8x32xf32>
    %142 = vector.shape_cast %141 : vector<1x8x32xf32> to vector<8x32xf32>
    %143 = arith.addf %142, %134 : vector<8x32xf32>
    %c0_105 = arith.constant 0 : index
    %c24_106 = arith.constant 24 : index
    %c0_107 = arith.constant 0 : index
    %144 = vector.load %arg12[%c0_105, %c24_106, %c0_107] : memref<1x128x32xf32, #tpu.memory_space<vmem>>, vector<1x8x32xf32>
    %145 = vector.shape_cast %144 : vector<1x8x32xf32> to vector<8x32xf32>
    %146 = vector.shape_cast %143 : vector<8x32xf32> to vector<1x8x32xf32>
    tpu.vector_store %arg12[%c0_105, %c24_106, %c0_107], %146 {strides = array<i32>} : memref<1x128x32xf32, #tpu.memory_space<vmem>>, vector<1x8x32xf32>,
    %c16_108 = arith.constant 16 : index
    %c0_109 = arith.constant 0 : index
    %147 = vector.load %arg14[%c16_108, %c0_109] : memref<64x32xf32, #tpu.memory_space<vmem>>, vector<8x32xf32>
    %c0_110 = arith.constant 0 : index
    %c32 = arith.constant 32 : index
    %c0_111 = arith.constant 0 : index
    %148 = vector.load %arg2[%c0_110, %c32, %c0_111] : memref<1x128x32xf32, #tpu.memory_space<vmem>>, vector<1x8x32xf32>
    %149 = vector.shape_cast %148 : vector<1x8x32xf32> to vector<8x32xf32>
    %150 = arith.addf %149, %147 : vector<8x32xf32>
    %c0_112 = arith.constant 0 : index
    %c32_113 = arith.constant 32 : index
    %c0_114 = arith.constant 0 : index
    %151 = vector.load %arg12[%c0_112, %c32_113, %c0_114] : memref<1x128x32xf32, #tpu.memory_space<vmem>>, vector<1x8x32xf32>
    %152 = vector.shape_cast %151 : vector<1x8x32xf32> to vector<8x32xf32>
    %153 = vector.shape_cast %150 : vector<8x32xf32> to vector<1x8x32xf32>
    tpu.vector_store %arg12[%c0_112, %c32_113, %c0_114], %153 {strides = array<i32>} : memref<1x128x32xf32, #tpu.memory_space<vmem>>, vector<1x8x32xf32>,
    %c0_115 = arith.constant 0 : index
    %c40 = arith.constant 40 : index
    %c0_116 = arith.constant 0 : index
    %154 = vector.load %arg2[%c0_115, %c40, %c0_116] : memref<1x128x32xf32, #tpu.memory_space<vmem>>, vector<1x8x32xf32>
    %155 = vector.shape_cast %154 : vector<1x8x32xf32> to vector<8x32xf32>
    %156 = arith.addf %155, %147 : vector<8x32xf32>
    %c0_117 = arith.constant 0 : index
    %c40_118 = arith.constant 40 : index
    %c0_119 = arith.constant 0 : index
    %157 = vector.load %arg12[%c0_117, %c40_118, %c0_119] : memref<1x128x32xf32, #tpu.memory_space<vmem>>, vector<1x8x32xf32>
    %158 = vector.shape_cast %157 : vector<1x8x32xf32> to vector<8x32xf32>
    %159 = vector.shape_cast %156 : vector<8x32xf32> to vector<1x8x32xf32>
    tpu.vector_store %arg12[%c0_117, %c40_118, %c0_119], %159 {strides = array<i32>} : memref<1x128x32xf32, #tpu.memory_space<vmem>>, vector<1x8x32xf32>,
    %c24_120 = arith.constant 24 : index
    %c0_121 = arith.constant 0 : index
    %160 = vector.load %arg14[%c24_120, %c0_121] : memref<64x32xf32, #tpu.memory_space<vmem>>, vector<8x32xf32>
    %c0_122 = arith.constant 0 : index
    %c48 = arith.constant 48 : index
    %c0_123 = arith.constant 0 : index
    %161 = vector.load %arg2[%c0_122, %c48, %c0_123] : memref<1x128x32xf32, #tpu.memory_space<vmem>>, vector<1x8x32xf32>
    %162 = vector.shape_cast %161 : vector<1x8x32xf32> to vector<8x32xf32>
    %163 = arith.addf %162, %160 : vector<8x32xf32>
    %c0_124 = arith.constant 0 : index
    %c48_125 = arith.constant 48 : index
    %c0_126 = arith.constant 0 : index
    %164 = vector.load %arg12[%c0_124, %c48_125, %c0_126] : memref<1x128x32xf32, #tpu.memory_space<vmem>>, vector<1x8x32xf32>
    %165 = vector.shape_cast %164 : vector<1x8x32xf32> to vector<8x32xf32>
    %166 = vector.shape_cast %163 : vector<8x32xf32> to vector<1x8x32xf32>
    tpu.vector_store %arg12[%c0_124, %c48_125, %c0_126], %166 {strides = array<i32>} : memref<1x128x32xf32, #tpu.memory_space<vmem>>, vector<1x8x32xf32>,
    %c0_127 = arith.constant 0 : index
    %c56 = arith.constant 56 : index
    %c0_128 = arith.constant 0 : index
    %167 = vector.load %arg2[%c0_127, %c56, %c0_128] : memref<1x128x32xf32, #tpu.memory_space<vmem>>, vector<1x8x32xf32>
    %168 = vector.shape_cast %167 : vector<1x8x32xf32> to vector<8x32xf32>
    %169 = arith.addf %168, %160 : vector<8x32xf32>
    %c0_129 = arith.constant 0 : index
    %c56_130 = arith.constant 56 : index
    %c0_131 = arith.constant 0 : index
    %170 = vector.load %arg12[%c0_129, %c56_130, %c0_131] : memref<1x128x32xf32, #tpu.memory_space<vmem>>, vector<1x8x32xf32>
    %171 = vector.shape_cast %170 : vector<1x8x32xf32> to vector<8x32xf32>
    %172 = vector.shape_cast %169 : vector<8x32xf32> to vector<1x8x32xf32>
    tpu.vector_store %arg12[%c0_129, %c56_130, %c0_131], %172 {strides = array<i32>} : memref<1x128x32xf32, #tpu.memory_space<vmem>>, vector<1x8x32xf32>,
    %c32_132 = arith.constant 32 : index
    %c0_133 = arith.constant 0 : index
    %173 = vector.load %arg14[%c32_132, %c0_133] : memref<64x32xf32, #tpu.memory_space<vmem>>, vector<8x32xf32>
    %c0_134 = arith.constant 0 : index
    %c64 = arith.constant 64 : index
    %c0_135 = arith.constant 0 : index
    %174 = vector.load %arg2[%c0_134, %c64, %c0_135] : memref<1x128x32xf32, #tpu.memory_space<vmem>>, vector<1x8x32xf32>
    %175 = vector.shape_cast %174 : vector<1x8x32xf32> to vector<8x32xf32>
    %176 = arith.addf %175, %173 : vector<8x32xf32>
    %c0_136 = arith.constant 0 : index
    %c64_137 = arith.constant 64 : index
    %c0_138 = arith.constant 0 : index
    %177 = vector.load %arg12[%c0_136, %c64_137, %c0_138] : memref<1x128x32xf32, #tpu.memory_space<vmem>>, vector<1x8x32xf32>
    %178 = vector.shape_cast %177 : vector<1x8x32xf32> to vector<8x32xf32>
    %179 = vector.shape_cast %176 : vector<8x32xf32> to vector<1x8x32xf32>
    tpu.vector_store %arg12[%c0_136, %c64_137, %c0_138], %179 {strides = array<i32>} : memref<1x128x32xf32, #tpu.memory_space<vmem>>, vector<1x8x32xf32>,
    %c0_139 = arith.constant 0 : index
    %c72 = arith.constant 72 : index
    %c0_140 = arith.constant 0 : index
    %180 = vector.load %arg2[%c0_139, %c72, %c0_140] : memref<1x128x32xf32, #tpu.memory_space<vmem>>, vector<1x8x32xf32>
    %181 = vector.shape_cast %180 : vector<1x8x32xf32> to vector<8x32xf32>
    %182 = arith.addf %181, %173 : vector<8x32xf32>
    %c0_141 = arith.constant 0 : index
    %c72_142 = arith.constant 72 : index
    %c0_143 = arith.constant 0 : index
    %183 = vector.load %arg12[%c0_141, %c72_142, %c0_143] : memref<1x128x32xf32, #tpu.memory_space<vmem>>, vector<1x8x32xf32>
    %184 = vector.shape_cast %183 : vector<1x8x32xf32> to vector<8x32xf32>
    %185 = vector.shape_cast %182 : vector<8x32xf32> to vector<1x8x32xf32>
    tpu.vector_store %arg12[%c0_141, %c72_142, %c0_143], %185 {strides = array<i32>} : memref<1x128x32xf32, #tpu.memory_space<vmem>>, vector<1x8x32xf32>,
    %c40_144 = arith.constant 40 : index
    %c0_145 = arith.constant 0 : index
    %186 = vector.load %arg14[%c40_144, %c0_145] : memref<64x32xf32, #tpu.memory_space<vmem>>, vector<8x32xf32>
    %c0_146 = arith.constant 0 : index
    %c80_147 = arith.constant 80 : index
    %c0_148 = arith.constant 0 : index
    %187 = vector.load %arg2[%c0_146, %c80_147, %c0_148] : memref<1x128x32xf32, #tpu.memory_space<vmem>>, vector<1x8x32xf32>
    %188 = vector.shape_cast %187 : vector<1x8x32xf32> to vector<8x32xf32>
    %189 = arith.addf %188, %186 : vector<8x32xf32>
    %c0_149 = arith.constant 0 : index
    %c80_150 = arith.constant 80 : index
    %c0_151 = arith.constant 0 : index
    %190 = vector.load %arg12[%c0_149, %c80_150, %c0_151] : memref<1x128x32xf32, #tpu.memory_space<vmem>>, vector<1x8x32xf32>
    %191 = vector.shape_cast %190 : vector<1x8x32xf32> to vector<8x32xf32>
    %192 = vector.shape_cast %189 : vector<8x32xf32> to vector<1x8x32xf32>
    tpu.vector_store %arg12[%c0_149, %c80_150, %c0_151], %192 {strides = array<i32>} : memref<1x128x32xf32, #tpu.memory_space<vmem>>, vector<1x8x32xf32>,
    %c0_152 = arith.constant 0 : index
    %c88 = arith.constant 88 : index
    %c0_153 = arith.constant 0 : index
    %193 = vector.load %arg2[%c0_152, %c88, %c0_153] : memref<1x128x32xf32, #tpu.memory_space<vmem>>, vector<1x8x32xf32>
    %194 = vector.shape_cast %193 : vector<1x8x32xf32> to vector<8x32xf32>
    %195 = arith.addf %194, %186 : vector<8x32xf32>
    %c0_154 = arith.constant 0 : index
    %c88_155 = arith.constant 88 : index
    %c0_156 = arith.constant 0 : index
    %196 = vector.load %arg12[%c0_154, %c88_155, %c0_156] : memref<1x128x32xf32, #tpu.memory_space<vmem>>, vector<1x8x32xf32>
    %197 = vector.shape_cast %196 : vector<1x8x32xf32> to vector<8x32xf32>
    %198 = vector.shape_cast %195 : vector<8x32xf32> to vector<1x8x32xf32>
    tpu.vector_store %arg12[%c0_154, %c88_155, %c0_156], %198 {strides = array<i32>} : memref<1x128x32xf32, #tpu.memory_space<vmem>>, vector<1x8x32xf32>,
    %c48_157 = arith.constant 48 : index
    %c0_158 = arith.constant 0 : index
    %199 = vector.load %arg14[%c48_157, %c0_158] : memref<64x32xf32, #tpu.memory_space<vmem>>, vector<8x32xf32>
    %c0_159 = arith.constant 0 : index
    %c96 = arith.constant 96 : index
    %c0_160 = arith.constant 0 : index
    %200 = vector.load %arg2[%c0_159, %c96, %c0_160] : memref<1x128x32xf32, #tpu.memory_space<vmem>>, vector<1x8x32xf32>
    %201 = vector.shape_cast %200 : vector<1x8x32xf32> to vector<8x32xf32>
    %202 = arith.addf %201, %199 : vector<8x32xf32>
    %c0_161 = arith.constant 0 : index
    %c96_162 = arith.constant 96 : index
    %c0_163 = arith.constant 0 : index
    %203 = vector.load %arg12[%c0_161, %c96_162, %c0_163] : memref<1x128x32xf32, #tpu.memory_space<vmem>>, vector<1x8x32xf32>
    %204 = vector.shape_cast %203 : vector<1x8x32xf32> to vector<8x32xf32>
    %205 = vector.shape_cast %202 : vector<8x32xf32> to vector<1x8x32xf32>
    tpu.vector_store %arg12[%c0_161, %c96_162, %c0_163], %205 {strides = array<i32>} : memref<1x128x32xf32, #tpu.memory_space<vmem>>, vector<1x8x32xf32>,
    %c0_164 = arith.constant 0 : index
    %c104 = arith.constant 104 : index
    %c0_165 = arith.constant 0 : index
    %206 = vector.load %arg2[%c0_164, %c104, %c0_165] : memref<1x128x32xf32, #tpu.memory_space<vmem>>, vector<1x8x32xf32>
    %207 = vector.shape_cast %206 : vector<1x8x32xf32> to vector<8x32xf32>
    %208 = arith.addf %207, %199 : vector<8x32xf32>
    %c0_166 = arith.constant 0 : index
    %c104_167 = arith.constant 104 : index
    %c0_168 = arith.constant 0 : index
    %209 = vector.load %arg12[%c0_166, %c104_167, %c0_168] : memref<1x128x32xf32, #tpu.memory_space<vmem>>, vector<1x8x32xf32>
    %210 = vector.shape_cast %209 : vector<1x8x32xf32> to vector<8x32xf32>
    %211 = vector.shape_cast %208 : vector<8x32xf32> to vector<1x8x32xf32>
    tpu.vector_store %arg12[%c0_166, %c104_167, %c0_168], %211 {strides = array<i32>} : memref<1x128x32xf32, #tpu.memory_space<vmem>>, vector<1x8x32xf32>,
    %c56_169 = arith.constant 56 : index
    %c0_170 = arith.constant 0 : index
    %212 = vector.load %arg14[%c56_169, %c0_170] : memref<64x32xf32, #tpu.memory_space<vmem>>, vector<8x32xf32>
    %c0_171 = arith.constant 0 : index
    %c112 = arith.constant 112 : index
    %c0_172 = arith.constant 0 : index
    %213 = vector.load %arg2[%c0_171, %c112, %c0_172] : memref<1x128x32xf32, #tpu.memory_space<vmem>>, vector<1x8x32xf32>
    %214 = vector.shape_cast %213 : vector<1x8x32xf32> to vector<8x32xf32>
    %215 = arith.addf %214, %212 : vector<8x32xf32>
    %c0_173 = arith.constant 0 : index
    %c112_174 = arith.constant 112 : index
    %c0_175 = arith.constant 0 : index
    %216 = vector.load %arg12[%c0_173, %c112_174, %c0_175] : memref<1x128x32xf32, #tpu.memory_space<vmem>>, vector<1x8x32xf32>
    %217 = vector.shape_cast %216 : vector<1x8x32xf32> to vector<8x32xf32>
    %218 = vector.shape_cast %215 : vector<8x32xf32> to vector<1x8x32xf32>
    tpu.vector_store %arg12[%c0_173, %c112_174, %c0_175], %218 {strides = array<i32>} : memref<1x128x32xf32, #tpu.memory_space<vmem>>, vector<1x8x32xf32>,
    %c0_176 = arith.constant 0 : index
    %c120 = arith.constant 120 : index
    %c0_177 = arith.constant 0 : index
    %219 = vector.load %arg2[%c0_176, %c120, %c0_177] : memref<1x128x32xf32, #tpu.memory_space<vmem>>, vector<1x8x32xf32>
    %220 = vector.shape_cast %219 : vector<1x8x32xf32> to vector<8x32xf32>
    %221 = arith.addf %220, %212 : vector<8x32xf32>
    %c0_178 = arith.constant 0 : index
    %c120_179 = arith.constant 120 : index
    %c0_180 = arith.constant 0 : index
    %222 = vector.load %arg12[%c0_178, %c120_179, %c0_180] : memref<1x128x32xf32, #tpu.memory_space<vmem>>, vector<1x8x32xf32>
    %223 = vector.shape_cast %222 : vector<1x8x32xf32> to vector<8x32xf32>
    %224 = vector.shape_cast %221 : vector<8x32xf32> to vector<1x8x32xf32>
    tpu.vector_store %arg12[%c0_178, %c120_179, %c0_180], %224 {strides = array<i32>} : memref<1x128x32xf32, #tpu.memory_space<vmem>>, vector<1x8x32xf32>,
    return
  }
  func.func @transform_0(%arg0: i32) -> (i32, i32, i32) {
    %c0_i32 = arith.constant 0 : i32
    %c0_i32_0 = arith.constant 0 : i32
    %c0_i32_1 = arith.constant 0 : i32
    return %arg0, %c0_i32, %c0_i32_0 : i32, i32, i32
  }
  func.func @transform_1(%arg0: i32) -> (i32, i32, i32) {
    %c0_i32 = arith.constant 0 : i32
    %c0_i32_0 = arith.constant 0 : i32
    %c0_i32_1 = arith.constant 0 : i32
    return %arg0, %c0_i32, %c0_i32_0 : i32, i32, i32
  }
  func.func @transform_2(%arg0: i32) -> (i32, i32) {
    %c0_i32 = arith.constant 0 : i32
    %c0_i32_0 = arith.constant 0 : i32
    %c0_i32_1 = arith.constant 0 : i32
    return %c0_i32, %c0_i32_0 : i32, i32
  }
  func.func @transform_3(%arg0: i32) -> (i32, i32) {
    %c0_i32 = arith.constant 0 : i32
    %c0_i32_0 = arith.constant 0 : i32
    %c0_i32_1 = arith.constant 0 : i32
    return %c0_i32, %c0_i32_0 : i32, i32
  }
  func.func @transform_4(%arg0: i32) -> (i32, i32) {
    %c0_i32 = arith.constant 0 : i32
    %c0_i32_0 = arith.constant 0 : i32
    %c0_i32_1 = arith.constant 0 : i32
    return %c0_i32, %c0_i32_0 : i32, i32
  }
  func.func @transform_5(%arg0: i32) -> (i32, i32, i32) {
    %c0_i32 = arith.constant 0 : i32
    %c0_i32_0 = arith.constant 0 : i32
    %c0_i32_1 = arith.constant 0 : i32
    %c0_i32_2 = arith.constant 0 : i32
    return %c0_i32, %c0_i32_0, %c0_i32_1 : i32, i32, i32
  }
  func.func @transform_6(%arg0: i32) -> (i32, i32) {
    %c0_i32 = arith.constant 0 : i32
    %c0_i32_0 = arith.constant 0 : i32
    %c0_i32_1 = arith.constant 0 : i32
    return %c0_i32, %c0_i32_0 : i32, i32
  }
  func.func @transform_7(%arg0: i32) -> (i32, i32, i32, i32) {
    %c0_i32 = arith.constant 0 : i32
    %c0_i32_0 = arith.constant 0 : i32
    %c0_i32_1 = arith.constant 0 : i32
    %c0_i32_2 = arith.constant 0 : i32
    %c0_i32_3 = arith.constant 0 : i32
    return %c0_i32, %c0_i32_0, %c0_i32_1, %c0_i32_2 : i32, i32, i32, i32
  }
  func.func @transform_8(%arg0: i32) -> (i32, i32) {
    %c0_i32 = arith.constant 0 : i32
    %c0_i32_0 = arith.constant 0 : i32
    %c0_i32_1 = arith.constant 0 : i32
    return %c0_i32, %c0_i32_0 : i32, i32
  }
  func.func @transform_9(%arg0: i32) -> (i32, i32, i32) {
    %c0_i32 = arith.constant 0 : i32
    %c0_i32_0 = arith.constant 0 : i32
    %c0_i32_1 = arith.constant 0 : i32
    %c0_i32_2 = arith.constant 0 : i32
    return %c0_i32, %c0_i32_0, %c0_i32_1 : i32, i32, i32
  }
  func.func @transform_10(%arg0: i32) -> (i32, i32) {
    %c0_i32 = arith.constant 0 : i32
    %c0_i32_0 = arith.constant 0 : i32
    %c0_i32_1 = arith.constant 0 : i32
    return %c0_i32, %c0_i32_0 : i32, i32
  }
  func.func @transform_11(%arg0: i32) -> (i32, i32, i32) {
    %c0_i32 = arith.constant 0 : i32
    %c0_i32_0 = arith.constant 0 : i32
    %c0_i32_1 = arith.constant 0 : i32
    return %arg0, %c0_i32, %c0_i32_0 : i32, i32, i32
  }
}

</mosaic_0001>

<bundles_post_ra>
// kernel: hourglass_forward.11
= control target key start
LH: loop header
LB: loop body
LE: loop exit
PB: predicated region body
PF: predicated region fallthrough
CT: control target
= control target key end

     0   :  { %s683_s30 = smov 0   ;;  %s794_s0 = inlined_call_operand.vmem [shape: f32[2,16,16], index: 0, kind: input, shape index: {}]   ;;  %s795_s1 = inlined_call_operand.vmem [shape: f32[1,16], index: 1, kind: input, shape index: {}]   ;;  %s796_s2 = inlined_call_operand.vmem [shape: f32[1,16], index: 2, kind: input, shape index: {}]   ;;  %s797_s3 = inlined_call_operand.vmem [shape: f32[1,16,8], index: 3, kind: input, shape index: {}]   ;;  %s798_s4 = inlined_call_operand.vmem [shape: f32[1,8], index: 4, kind: input, shape index: {}]   ;;  %s799_s5 = inlined_call_operand.vmem [shape: f32[1,3,3,8], index: 5, kind: input, shape index: {}]   ;;  %s800_s6 = inlined_call_operand.vmem [shape: f32[1,8], index: 6, kind: input, shape index: {}]   ;;  %s801_s7 = inlined_call_operand.vmem [shape: f32[1,8,16], index: 7, kind: input, shape index: {}]   ;;  %s802_s8 = inlined_call_operand.vmem [shape: f32[1,16], index: 8, kind: input, shape index: {}]   ;;  %s803_s9 = inlined_call_operand.vmem [shape: f32[2,16,16], index: 9, kind: output, shape index: {}]  }
   0x1 LB: > { %s575_s10 = sadd.s32 4294967295, %s630_s30   ;;  %p579_p0 = scmp.ge.s32.totalorder %s630_s30, 1  ;;  %s630_s30 = sphi %s683_s30, %s19_s30  }
   0x2   : > { %p287_p1 = scmp.lt.s32.totalorder %s630_s30, 3 }
   0x4   : > { %p288_p2 = pnand %p579_p0, %p287_p1 }
   0x5   : > { %p323_p3 = scmp.lt.s32.totalorder (!%p288_p2), %s575_s10, 1 }
   0x6   : > { %291 = sbr.rel (%p288_p2) target bundleno = 321 (0x141), region = 56 }
   0xb   : > { %v350_v0 = vld [vmem:[%s797_s3 + $0x8] sm:$0xff]  ;;  %v349_v1 = vld [vmem:[%s797_s3] sm:$0xff]  ;;  %s811_s10 = smov (!%p323_p3, %s575_s10), 1  ;;  %vm333_vm0 = vcmask 64512   ;;  %v632_v4 = vmov 0.0   ;;  %vm370_vm1 = vcmask 130048   ;;  %v336_v18 = vlaneseq }
   0xc   : > { %598 = vmatpush.msra.mxu2 %v350_v0  ;;  %v610_v2 = vld [vmem:[%s795_s1] ss:$0 sm:$0xff]  ;;  %391 = vmatpush.msra.mxu0 %v350_v0  ;;  %334 = vst.msk [vmem:[#allocation2] sm:$0xff] %vm333_vm0, %v632_v4  ;;  %s596_s19 = sshll.u32 %s811_s10, 4  ;;  %v614_v24 = vld [vmem:[%s799_s5 + $0x4] ss:$0 sm:$0xff] }
   0xd   : > { %v611_v3 = vld [vmem:[%s796_s2] ss:$0 sm:$0xff]  ;;  %335 = vst.msk [vmem:[#allocation2 + $0x18] sm:$0xff] %vm333_vm0, %v632_v4  ;;  %s327_s22 = scalar_lea.vmem %s794_s0, %s596_s19  ;;  %v337_v21 = vshrl.u32 %v336_v18, 7  ;;  %v616_v25 = vld [vmem:[%s799_s5 + $0x1] ss:$0 sm:$0xff]  ;;  %s332_s14 = scalar_lea.vmem %s803_s9, %s596_s19 }
   0xe   : > { %599 = vmatpush.msra.mxu2 %v349_v1  ;;  %392 = vmatpush.msra.mxu0 %v349_v1  ;;  %v713_v5 = vld [vmem:[%s327_s22 + $0x8] sm:$0xff]  ;;  %v715_v6 = vld [vmem:[%s327_s22] sm:$0xff] }
   0xf   : > { %v359_v7 = vmul.f32 %v610_v2, %v713_v5  ;;  %v358_v8 = vmul.f32 %v610_v2, %v715_v6  ;;  %v353_v13 = vld [vmem:[%s801_s7] sm:$0xff]  ;;  %v338_v27 = vadd.s32 8, %v337_v21  ;;  %v339_v35 = vand.u32 3, %v337_v21  ;;  %v615_v38 = vld [vmem:[%s799_s5 + $0x8] ss:$0 sm:$0xff] }
  0x10   : > { %508 = vmatpush.msra.mxu1 %v353_v13  ;;  %600 = vmatpush.msra.mxu3 %v353_v13  ;;  %v612_v14 = vld [vmem:[%s798_s4] ss:$0 sm:$0xff]  ;;  %v617_v26 = vld [vmem:[%s799_s5 + $0x5] ss:$0 sm:$0xff]  ;;  %v619_v37 = vld [vmem:[%s799_s5 + $0x2] ss:$0 sm:$0xff] }
  0x11   : > { %v364_v9 = vadd.f32 %v611_v3, %v359_v7  ;;  %v363_v10 = vadd.f32 %v611_v3, %v358_v8  ;;  %v613_v22 = vld [vmem:[%s799_s5] ss:$0 sm:$0xff]  ;;  %v618_v39 = vld [vmem:[%s799_s5 + $0x9] ss:$0 sm:$0xff]  ;;  %v340_v41 = vand.u32 3, %v338_v27  ;;  %vm756_vm2 = vcmp.ne.s32.totalorder %v339_v35, 0 }
  0x12   : > { %v620_v42 = vld [vmem:[%s799_s5 + $0x6] ss:$0 sm:$0xff]  ;;  %v621_v43 = vld [vmem:[%s799_s5 + $0xa] ss:$0 sm:$0xff]  ;;  %vm760_vm3 = vcmp.ne.s32.totalorder %v339_v35, 3 }
  0x13   : > { %v366_v11 = vmax.f32 %v364_v9, 0.0  ;;  %v365_v12 = vmax.f32 %v363_v10, 0.0  ;;  %vm764_vm4 = vcmp.ne.s32.totalorder %v340_v41, 0  ;;  %v622_v21 = vld [vmem:[%s800_s6] ss:$0 sm:$0xff]  ;;  %vm344_vm5 = vcmp.ne.s32.totalorder %v340_v41, 3 }
  0x15   : > { %585 = vmatmul.msk.f32.vlgmr.msra.gmra.mxu2 %vm370_vm1, %v366_v11  ;;  %584 = vmatmul.msk.f32.vlgmr.msra.gmra.mxu0 %vm370_vm1, %v365_v12 }
  0x92   : > { %v394_v15 = vpop.f32.mrf.mxu0 }
  0x93   : > { %v395_v16 = vadd.f32 %v612_v14, %v394_v15 }
  0x95   : > { %v400_v17 = vmax.f32 %v395_v16, 0.0 }
  0x97   : > { %402 = vst.msk [vmem:[#allocation2 + $0x8] sm:$0xff] %vm333_vm0, %v400_v17 }
  0x98   : > { %v397_v19 = vpop.f32.mrf.mxu2 }
  0x99   : > { %v398_v20 = vadd.f32 %v612_v14, %v397_v19 }
  0x9b   : > { %v401_v23 = vmax.f32 %v398_v20, 0.0 }
  0x9d   : > { %403 = vst.msk [vmem:[#allocation2 + $0x10] sm:$0xff] %vm333_vm0, %v401_v23 }
  0x9e   : > { %v404_v28 = vld [vmem:[#allocation2 + $0x3] sm:$0xff] }
  0x9f   : > { %v410_v29 = vld [vmem:[#allocation2 + $0x7] sm:$0xff]  ;;  %v408_v31 = vmul.f32 %v613_v22, %v404_v28 }
  0xa0   : > { %v427_v30 = vld [vmem:[#allocation2 + $0x4] sm:$0xff]  ;;  %v415_v32 = vmul.f32 %v614_v24, %v410_v29 }
  0xa1   : > { %v431_v33 = vmul.f32 %v616_v25, %v427_v30  ;;  %v433_v34 = vld [vmem:[#allocation2 + $0x8] sm:$0xff] }
  0xa2   : > { %v437_v36 = vmul.f32 %v617_v26, %v433_v34  ;;  %v448_v40 = vld [vmem:[#allocation2 + $0x5] sm:$0xff]  ;;  %v417_v44 = vadd.f32 %v415_v32, %v408_v31  ;;  %v623_v34 = vld [vmem:[%s802_s8] ss:$0 sm:$0xff] }
  0xa3   : > { %v452_v51 = vmul.f32 %v619_v37, %v448_v40 }
  0xa4   : > { %v439_v45 = vadd.f32 %v437_v36, %v431_v33  ;;  %v405_v48 = vld [vmem:[#allocation2 + $0xb] sm:$0xff]  ;;  %v419_v58 = vld [vmem:[#allocation2 + $0x13] sm:$0xff] }
  0xa5   : > { %v428_v49 = vld [vmem:[#allocation2 + $0xc] sm:$0xff]  ;;  %v423_v52 = vmul.f32 %v615_v38, %v405_v48  ;;  %v409_v56 = vmul.f32 %v613_v22, %v405_v48  ;;  %v441_v0 = vld [vmem:[#allocation2 + $0x14] sm:$0xff]  ;;  %v424_v4 = vmul.f32 %v615_v38, %v419_v58 }
  0xa6   : > { %v449_v50 = vld [vmem:[#allocation2 + $0xd] sm:$0xff]  ;;  %v444_v53 = vmul.f32 %v618_v39, %v428_v49  ;;  %v432_v62 = vmul.f32 %v616_v25, %v428_v49  ;;  %v462_v8 = vld [vmem:[#allocation2 + $0x15] sm:$0xff]  ;;  %v445_v15 = vmul.f32 %v618_v39, %v441_v0 }
  0xa7   : > { %v454_v54 = vld [vmem:[#allocation2 + $0x9] sm:$0xff]  ;;  %v465_v60 = vmul.f32 %v621_v43, %v449_v50  ;;  %v455_v1 = vld [vmem:[#allocation2 + $0x11] sm:$0xff]  ;;  %v425_v2 = vadd.f32 %v423_v52, %v417_v44  ;;  %v453_v11 = vmul.f32 %v619_v37, %v449_v50  ;;  %v466_v16 = vmul.f32 %v621_v43, %v462_v8 }
  0xa8   : > { %v411_v57 = vld [vmem:[#allocation2 + $0xf] sm:$0xff]  ;;  %v458_v59 = vmul.f32 %v620_v42, %v454_v54  ;;  %v446_v3 = vadd.f32 %v444_v53, %v439_v45  ;;  %v459_v12 = vmul.f32 %v620_v42, %v455_v1 }
  0xa9   : > { %v416_v61 = vmul.f32 %v614_v24, %v411_v57  ;;  %v434_v63 = vld [vmem:[#allocation2 + $0x10] sm:$0xff]  ;;  %v469_v13 = vsel %vm756_vm2, %v425_v2, 0.0 }
  0xaa   : > { %v438_v7 = vmul.f32 %v617_v26, %v434_v63  ;;  %v460_v9 = vadd.f32 %v458_v59, %v452_v51  ;;  %v473_v18 = vadd.f32 %v469_v13, %v446_v3  ;;  %v461_v20 = vadd.f32 %v459_v12, %v453_v11 }
  0xab   : > { %v418_v10 = vadd.f32 %v416_v61, %v409_v56 }
  0xac   : > { %v440_v14 = vadd.f32 %v438_v7, %v432_v62  ;;  %v467_v17 = vadd.f32 %v465_v60, %v460_v9  ;;  %v468_v24 = vadd.f32 %v466_v16, %v461_v20 }
  0xad   : > { %v426_v19 = vadd.f32 %v424_v4, %v418_v10 }
  0xae   : > { %v447_v22 = vadd.f32 %v445_v15, %v440_v14  ;;  %v471_v23 = vsel %vm760_vm3, %v467_v17, 0.0  ;;  %v472_v28 = vsel %vm344_vm5, %v468_v24, 0.0 }
  0xaf   : > { %v470_v25 = vsel %vm764_vm4, %v426_v19, 0.0  ;;  %v475_v26 = vadd.f32 %v473_v18, %v471_v23 }
  0xb0   : > { %v474_v27 = vadd.f32 %v470_v25, %v447_v22 }
  0xb1   : > { %v480_v29 = vadd.f32 %v622_v21, %v475_v26 }
  0xb2   : > { %v476_v30 = vadd.f32 %v474_v27, %v472_v28 }
  0xb3   : > { %v482_v31 = vmax.f32 %v480_v29, 0.0 }
  0xb4   : > { %v481_v32 = vadd.f32 %v622_v21, %v476_v30 }
  0xb5   : > { %592 = vmatmul.msk.f32.vlgmr.msra.gmra.mxu1 %vm333_vm0, %v482_v31 }
  0xb6   : > { %v483_v33 = vmax.f32 %v481_v32, 0.0 }
  0xb8   : > { %593 = vmatmul.msk.f32.vlgmr.msra.gmra.mxu3 %vm333_vm0, %v483_v33 }
 0x132   : > { %v510_v35 = vpop.f32.mrf.mxu1 }
 0x133   : > { %v511_v36 = vadd.f32 %v623_v34, %v510_v35 }
 0x135   : > { %v516_v37 = vadd.f32 %v511_v36, %v715_v6 }
 0x137   : > { %518 = vst.msk [vmem:[%s332_s14] sm:$0xff] %vm370_vm1, %v516_v37 }
 0x13b   : > { %v513_v38 = vpop.f32.mrf.mxu3 }
 0x13c   : > { %v514_v39 = vadd.f32 %v623_v34, %v513_v38 }
 0x13e   : > { %v517_v40 = vadd.f32 %v514_v39, %v713_v5 }
 0x140   : > { %519 = vst.msk [vmem:[%s332_s14 + $0x8] sm:$0xff] %vm370_vm1, %v517_v40 }
 0x141 PF: > { %s19_s30 = sadd.s32 1, %s630_s30  }
 0x142   : > { %p16_p4 = scmp.ge.s32.totalorder %s19_s30, 4  }
 0x144   :  { %18 = sbr.rel (!%p16_p4) target bundleno = 1 (0x1), region = 88 }

// kernel: hourglass_forward.10
= control target key start
LH: loop header
LB: loop body
LE: loop exit
PB: predicated region body
PF: predicated region fallthrough
CT: control target
= control target key end

     0   :  { %s722_s30 = smov 0   ;;  %s830_s0 = inlined_call_operand.vmem [shape: f32[2,32,32], index: 0, kind: input, shape index: {}]   ;;  %s831_s1 = inlined_call_operand.vmem [shape: f32[1,16], index: 1, kind: input, shape index: {}]   ;;  %s832_s2 = inlined_call_operand.vmem [shape: f32[1,16], index: 2, kind: input, shape index: {}]   ;;  %s833_s3 = inlined_call_operand.vmem [shape: f32[1,16,8], index: 3, kind: input, shape index: {}]   ;;  %s834_s4 = inlined_call_operand.vmem [shape: f32[1,8], index: 4, kind: input, shape index: {}]   ;;  %s835_s5 = inlined_call_operand.vmem [shape: f32[1,3,3,8], index: 5, kind: input, shape index: {}]   ;;  %s836_s6 = inlined_call_operand.vmem [shape: f32[1,8], index: 6, kind: input, shape index: {}]   ;;  %s837_s7 = inlined_call_operand.vmem [shape: f32[1,8,16], index: 7, kind: input, shape index: {}]   ;;  %s838_s8 = inlined_call_operand.vmem [shape: f32[1,16], index: 8, kind: input, shape index: {}]   ;;  %s839_s9 = inlined_call_operand.vmem [shape: f32[2,16,16], index: 9, kind: output, shape index: {}]  }
   0x1 LB: > { %s612_s10 = sadd.s32 4294967295, %s668_s30   ;;  %p616_p0 = scmp.ge.s32.totalorder %s668_s30, 1  ;;  %s668_s30 = sphi %s722_s30, %s19_s30  }
   0x2   : > { %p287_p1 = scmp.lt.s32.totalorder %s668_s30, 3 }
   0x4   : > { %p288_p2 = pnand %p616_p0, %p287_p1 }
   0x5   : > { %p323_p3 = scmp.lt.s32.totalorder (!%p288_p2), %s612_s10, 1  ;;  %s670_s15 = smov (!%p288_p2), 112  }
   0x6   : > { %291 = sbr.rel (%p288_p2) target bundleno = 456 (0x1c8), region = 56 }
   0xb   : > { %s847_s10 = smov (!%p323_p3, %s612_s10), 1  ;;  %v387_v12 = vld [vmem:[%s833_s3 + $0x8] sm:$0xff]  ;;  %v386_v13 = vld [vmem:[%s833_s3] sm:$0xff]  ;;  %vm333_vm0 = vcmask 64512   ;;  %v671_v14 = vmov 0.0   ;;  %vm353_vm1 = vcmask 125952   ;;  %v336_v37 = vlaneseq }
   0xc   : > { %s633_s11 = sshll.u32 %s847_s10, 5  ;;  %428 = vmatpush.msra.mxu0 %v387_v12  ;;  %635 = vmatpush.msra.mxu2 %v387_v12  ;;  %334 = vst.msk [vmem:[#allocation2] sm:$0xff] %vm333_vm0, %v671_v14  ;;  %v648_v23 = vld [vmem:[%s831_s1] ss:$0 sm:$0xff]  ;;  %vm407_vm2 = vcmask 130048   ;;  %s634_s12 = sshll.u32 %s847_s10, 4 }
   0xd   : > { %s327_s14 = scalar_lea.vmem %s830_s0, %s633_s11  ;;  %335 = vst.msk [vmem:[#allocation2 + $0x18] sm:$0xff] %vm333_vm0, %v671_v14  ;;  %v649_v24 = vld [vmem:[%s832_s2] ss:$0 sm:$0xff]  ;;  %v337_v40 = vshrl.u32 %v336_v37, 7  ;;  %v652_v44 = vld [vmem:[%s835_s5 + $0x4] ss:$0 sm:$0xff] }
   0xe   : > { %v364_v0 = vld [vmem:[%s327_s14 + $0x10] sm:$0xf]  ;;  %v365_v1 = vld [vmem:[%s327_s14 + $0x14] sm:$0xf]  ;;  %v345_v2 = vld [vmem:[%s327_s14] sm:$0xf]  ;;  %429 = vmatpush.msra.mxu0 %v386_v13  ;;  %636 = vmatpush.msra.mxu2 %v386_v13 }
   0xf   : > { %v366_v3 = vmax.f32 %v364_v0, %v365_v1  ;;  %v346_v4 = vld [vmem:[%s327_s14 + $0x4] sm:$0xf]  ;;  %v373_v6 = vld [vmem:[%s327_s14 + $0x18] sm:$0xf]  ;;  %v374_v7 = vld [vmem:[%s327_s14 + $0x1c] sm:$0xf] }
  0x10   : > { %v347_v5 = vmax.f32 %v345_v2, %v346_v4  ;;  %v355_v8 = vld [vmem:[%s327_s14 + $0x8] sm:$0xf]  ;;  %v356_v9 = vld [vmem:[%s327_s14 + $0xc] sm:$0xf]  ;;  %v375_v10 = vmax.f32 %v373_v6, %v374_v7  ;;  %v390_v33 = vld [vmem:[%s837_s7] sm:$0xff]  ;;  %v338_v45 = vadd.s32 8, %v337_v40 }
  0x11   : > { %368 = vrot.lane.b32.xlu0 %v366_v3, %s670_s15  ;;  %v357_v11 = vmax.f32 %v355_v8, %v356_v9  ;;  %545 = vmatpush.msra.mxu1 %v390_v33  ;;  %v650_v34 = vld [vmem:[%s834_s4] ss:$0 sm:$0xff]  ;;  %v654_v46 = vld [vmem:[%s835_s5 + $0x1] ss:$0 sm:$0xff]  ;;  %v655_v47 = vld [vmem:[%s835_s5 + $0x5] ss:$0 sm:$0xff] }
  0x12   : > { %349 = vrot.lane.b32.xlu1 %v347_v5, %s670_s15  ;;  %637 = vmatpush.msra.mxu3 %v390_v33  ;;  %v651_v43 = vld [vmem:[%s835_s5] ss:$0 sm:$0xff]  ;;  %v339_v48 = vand.u32 3, %v337_v40  ;;  %v657_v55 = vld [vmem:[%s835_s5 + $0x2] ss:$0 sm:$0xff]  ;;  %v340_v56 = vand.u32 3, %v338_v45 }
  0x13   : > { %v653_v57 = vld [vmem:[%s835_s5 + $0x8] ss:$0 sm:$0xff]  ;;  %v656_v60 = vld [vmem:[%s835_s5 + $0x9] ss:$0 sm:$0xff]  ;;  %v658_v62 = vld [vmem:[%s835_s5 + $0x6] ss:$0 sm:$0xff] }
  0x14   : > { %v659_v63 = vld [vmem:[%s835_s5 + $0xa] ss:$0 sm:$0xff]  ;;  %vm793_vm3 = vcmp.ne.s32.totalorder %v339_v48, 0  ;;  %vm797_vm4 = vcmp.ne.s32.totalorder %v339_v48, 3  ;;  %vm801_vm5 = vcmp.ne.s32.totalorder %v340_v56, 0  ;;  %vm344_vm6 = vcmp.ne.s32.totalorder %v340_v56, 3 }
  0x19   : > { %377 = vrot.lane.b32.xlu0 %v375_v10, %s670_s15 }
  0x1a   : > { %359 = vrot.lane.b32.xlu1 %v357_v11, %s670_s15  ;;  %s332_s15 = scalar_lea.vmem %s839_s9, %s634_s12 }
  0x83   : > { %v369_v15 = vpop.permute.xlu0 %368 }
  0x84   : > { %v371_v16 = vmax.f32 %v366_v3, %v369_v15  ;;  %v350_v17 = vpop.permute.xlu1 %349 }
  0x85   : > { %v352_v18 = vmax.f32 %v347_v5, %v350_v17 }
  0x86   : > { %372 = vst.msk [vmem:[#allocation3 + $0x8] sm:$0xf] %vm353_vm1, %v371_v16 }
  0x87   : > { %354 = vst.msk [vmem:[#allocation3] sm:$0xf] %vm353_vm1, %v352_v18 }
  0x8b   : > { %v378_v19 = vpop.permute.xlu0 %377 }
  0x8c   : > { %v380_v20 = vmax.f32 %v375_v10, %v378_v19  ;;  %v360_v21 = vpop.permute.xlu1 %359 }
  0x8d   : > { %v362_v22 = vmax.f32 %v357_v11, %v360_v21 }
  0x8e   : > { %381 = vst.msk [vmem:[#allocation3 + $0xc] sm:$0xf] %vm353_vm1, %v380_v20 }
  0x8f   : > { %363 = vst.msk [vmem:[#allocation3 + $0x4] sm:$0xf] %vm353_vm1, %v362_v22 }
  0x95   : > { %v750_v25 = vld [vmem:[#allocation3 + $0x8] sm:$0xff] }
  0x96   : > { %v752_v26 = vld [vmem:[#allocation3] sm:$0xff]  ;;  %v396_v27 = vmul.f32 %v648_v23, %v750_v25 }
  0x97   : > { %v395_v28 = vmul.f32 %v648_v23, %v752_v26 }
  0x98   : > { %v401_v29 = vadd.f32 %v649_v24, %v396_v27 }
  0x99   : > { %v400_v30 = vadd.f32 %v649_v24, %v395_v28 }
  0x9a   : > { %v403_v31 = vmax.f32 %v401_v29, 0.0 }
  0x9b   : > { %v402_v32 = vmax.f32 %v400_v30, 0.0 }
  0x9c   : > { %622 = vmatmul.msk.f32.vlgmr.msra.gmra.mxu2 %vm407_vm2, %v403_v31 }
  0x9d   : > { %621 = vmatmul.msk.f32.vlgmr.msra.gmra.mxu0 %vm407_vm2, %v402_v32 }
 0x11a   : > { %v431_v35 = vpop.f32.mrf.mxu0 }
 0x11b   : > { %v432_v36 = vadd.f32 %v650_v34, %v431_v35 }
 0x11d   : > { %v437_v38 = vmax.f32 %v432_v36, 0.0 }
 0x11f   : > { %439 = vst.msk [vmem:[#allocation2 + $0x8] sm:$0xff] %vm333_vm0, %v437_v38  ;;  %v434_v39 = vpop.f32.mrf.mxu2 }
 0x120   : > { %v435_v41 = vadd.f32 %v650_v34, %v434_v39 }
 0x122   : > { %v438_v42 = vmax.f32 %v435_v41, 0.0  ;;  %v660_v41 = vld [vmem:[%s836_s6] ss:$0 sm:$0xff] }
 0x124   : > { %440 = vst.msk [vmem:[#allocation2 + $0x10] sm:$0xff] %vm333_vm0, %v438_v42 }
 0x126   : > { %v441_v49 = vld [vmem:[#allocation2 + $0x3] sm:$0xff] }
 0x127   : > { %v447_v50 = vld [vmem:[#allocation2 + $0x7] sm:$0xff]  ;;  %v445_v52 = vmul.f32 %v651_v43, %v441_v49 }
 0x128   : > { %v464_v51 = vld [vmem:[#allocation2 + $0x4] sm:$0xff]  ;;  %v452_v53 = vmul.f32 %v652_v44, %v447_v50 }
 0x129   : > { %v470_v54 = vld [vmem:[#allocation2 + $0x8] sm:$0xff]  ;;  %v468_v58 = vmul.f32 %v654_v46, %v464_v51 }
 0x12a   : > { %v474_v59 = vmul.f32 %v655_v47, %v470_v54  ;;  %v485_v61 = vld [vmem:[#allocation2 + $0x5] sm:$0xff]  ;;  %v454_v3 = vadd.f32 %v452_v53, %v445_v52  ;;  %v661_v54 = vld [vmem:[%s838_s8] ss:$0 sm:$0xff] }
 0x12b   : > { %v442_v2 = vld [vmem:[#allocation2 + $0xb] sm:$0xff]  ;;  %v489_v6 = vmul.f32 %v657_v55, %v485_v61  ;;  %v456_v14 = vld [vmem:[#allocation2 + $0x13] sm:$0xff] }
 0x12c   : > { %v465_v4 = vld [vmem:[#allocation2 + $0xc] sm:$0xff]  ;;  %v460_v8 = vmul.f32 %v653_v57, %v442_v2  ;;  %v476_v9 = vadd.f32 %v474_v59, %v468_v58  ;;  %v446_v12 = vmul.f32 %v651_v43, %v442_v2  ;;  %v478_v20 = vld [vmem:[#allocation2 + $0x14] sm:$0xff]  ;;  %v461_v24 = vmul.f32 %v653_v57, %v456_v14 }
 0x12d   : > { %v486_v5 = vld [vmem:[#allocation2 + $0xd] sm:$0xff]  ;;  %v481_v10 = vmul.f32 %v656_v60, %v465_v4  ;;  %v469_v18 = vmul.f32 %v654_v46, %v465_v4  ;;  %v499_v28 = vld [vmem:[#allocation2 + $0x15] sm:$0xff]  ;;  %v482_v35 = vmul.f32 %v656_v60, %v478_v20 }
 0x12e   : > { %v491_v11 = vld [vmem:[#allocation2 + $0x9] sm:$0xff]  ;;  %v502_v16 = vmul.f32 %v659_v63, %v486_v5  ;;  %v492_v21 = vld [vmem:[#allocation2 + $0x11] sm:$0xff]  ;;  %v462_v22 = vadd.f32 %v460_v8, %v454_v3  ;;  %v490_v31 = vmul.f32 %v657_v55, %v486_v5  ;;  %v503_v36 = vmul.f32 %v659_v63, %v499_v28 }
 0x12f   : > { %v448_v13 = vld [vmem:[#allocation2 + $0xf] sm:$0xff]  ;;  %v495_v15 = vmul.f32 %v658_v62, %v491_v11  ;;  %v483_v23 = vadd.f32 %v481_v10, %v476_v9  ;;  %v496_v32 = vmul.f32 %v658_v62, %v492_v21 }
 0x130   : > { %v453_v17 = vmul.f32 %v652_v44, %v448_v13  ;;  %v471_v19 = vld [vmem:[#allocation2 + $0x10] sm:$0xff]  ;;  %v506_v33 = vsel %vm793_vm3, %v462_v22, 0.0 }
 0x131   : > { %v475_v27 = vmul.f32 %v655_v47, %v471_v19  ;;  %v497_v29 = vadd.f32 %v495_v15, %v489_v6  ;;  %v510_v38 = vadd.f32 %v506_v33, %v483_v23  ;;  %v498_v40 = vadd.f32 %v496_v32, %v490_v31 }
 0x132   : > { %v455_v30 = vadd.f32 %v453_v17, %v446_v12 }
 0x133   : > { %v477_v34 = vadd.f32 %v475_v27, %v469_v18  ;;  %v504_v37 = vadd.f32 %v502_v16, %v497_v29  ;;  %v505_v44 = vadd.f32 %v503_v36, %v498_v40 }
 0x134   : > { %v463_v39 = vadd.f32 %v461_v24, %v455_v30 }
 0x135   : > { %v484_v42 = vadd.f32 %v482_v35, %v477_v34  ;;  %v508_v43 = vsel %vm797_vm4, %v504_v37, 0.0  ;;  %v509_v48 = vsel %vm344_vm6, %v505_v44, 0.0 }
 0x136   : > { %v507_v45 = vsel %vm801_vm5, %v463_v39, 0.0  ;;  %v512_v46 = vadd.f32 %v510_v38, %v508_v43 }
 0x137   : > { %v511_v47 = vadd.f32 %v507_v45, %v484_v42 }
 0x138   : > { %v517_v49 = vadd.f32 %v660_v41, %v512_v46 }
 0x139   : > { %v513_v50 = vadd.f32 %v511_v47, %v509_v48 }
 0x13a   : > { %v519_v51 = vmax.f32 %v517_v49, 0.0 }
 0x13b   : > { %v518_v52 = vadd.f32 %v660_v41, %v513_v50 }
 0x13c   : > { %629 = vmatmul.msk.f32.vlgmr.msra.gmra.mxu1 %vm333_vm0, %v519_v51 }
 0x13d   : > { %v520_v53 = vmax.f32 %v518_v52, 0.0 }
 0x13f   : > { %630 = vmatmul.msk.f32.vlgmr.msra.gmra.mxu3 %vm333_vm0, %v520_v53 }
 0x1b9   : > { %v547_v55 = vpop.f32.mrf.mxu1 }
 0x1ba   : > { %v548_v56 = vadd.f32 %v661_v54, %v547_v55 }
 0x1bc   : > { %v553_v57 = vadd.f32 %v548_v56, %v752_v26 }
 0x1be   : > { %555 = vst.msk [vmem:[%s332_s15] sm:$0xff] %vm407_vm2, %v553_v57 }
 0x1c2   : > { %v550_v58 = vpop.f32.mrf.mxu3 }
 0x1c3   : > { %v551_v59 = vadd.f32 %v661_v54, %v550_v58 }
 0x1c5   : > { %v554_v60 = vadd.f32 %v551_v59, %v750_v25 }
 0x1c7   : > { %556 = vst.msk [vmem:[%s332_s15 + $0x8] sm:$0xff] %vm407_vm2, %v554_v60 }
 0x1c8 PF: > { %s19_s30 = sadd.s32 1, %s668_s30  }
 0x1c9   : > { %p16_p4 = scmp.ge.s32.totalorder %s19_s30, 4  }
 0x1cb   :  { %18 = sbr.rel (!%p16_p4) target bundleno = 1 (0x1), region = 88 }

// kernel: hourglass_forward.8
= control target key start
LH: loop header
LB: loop body
LE: loop exit
PB: predicated region body
PF: predicated region fallthrough
CT: control target
= control target key end

     0   :  { %s1056_s30 = smov 0   ;;  %s1550_s0 = inlined_call_operand.vmem [shape: f32[2,128,32], index: 0, kind: input, shape index: {}]   ;;  %s1551_s1 = inlined_call_operand.vmem [shape: f32[1,16], index: 1, kind: input, shape index: {}]   ;;  %s1552_s2 = inlined_call_operand.vmem [shape: f32[1,16], index: 2, kind: input, shape index: {}]   ;;  %s1553_s3 = inlined_call_operand.vmem [shape: f32[1,16,8], index: 3, kind: input, shape index: {}]   ;;  %s1554_s4 = inlined_call_operand.vmem [shape: f32[1,8], index: 4, kind: input, shape index: {}]   ;;  %s1555_s5 = inlined_call_operand.vmem [shape: f32[1,3,3,8], index: 5, kind: input, shape index: {}]   ;;  %s1556_s6 = inlined_call_operand.vmem [shape: f32[1,8], index: 6, kind: input, shape index: {}]   ;;  %s1557_s7 = inlined_call_operand.vmem [shape: f32[1,8,16], index: 7, kind: input, shape index: {}]   ;;  %s1558_s8 = inlined_call_operand.vmem [shape: f32[1,16], index: 8, kind: input, shape index: {}]   ;;  %s1559_s9 = inlined_call_operand.vmem [shape: f32[2,64,16], index: 9, kind: output, shape index: {}]  }
   0x1 LB: > { %s934_s10 = sadd.s32 4294967295, %s1002_s30   ;;  %p938_p0 = scmp.ge.s32.totalorder %s1002_s30, 1  ;;  %s1002_s30 = sphi %s1056_s30, %s19_s30  }
   0x2   : > { %p287_p1 = scmp.lt.s32.totalorder %s1002_s30, 3 }
   0x4   : > { %p288_p2 = pnand %p938_p0, %p287_p1 }
   0x6   : > { %291 = sbr.rel (%p288_p2) target bundleno = 493 (0x1ed), region = 56 }
   0xb   : > { %p323_p3 = scmp.lt.s32.totalorder %s934_s10, 1  ;;  %s1004_s15 = smov 112   ;;  %v455_v24 = vld [vmem:[%s1553_s3 + $0x8] sm:$0xff]  ;;  %v454_v25 = vld [vmem:[%s1553_s3] sm:$0xff]  ;;  %vm379_vm0 = vcmask 130048   ;;  %vm333_vm1 = vcmask 64512  }
   0xc   : > { %969 = vmatpush.msra.mxu2 %v455_v24  ;;  %531 = vmatpush.msra.mxu0 %v455_v24  ;;  %v982_v34 = vld [vmem:[%s1551_s1] ss:$0 sm:$0xff] }
   0xd   : > { %s1651_s10 = smov (!%p323_p3, %s934_s10), 1  ;;  %v983_v38 = vld [vmem:[%s1552_s2] ss:$0 sm:$0xff] }
   0xe   : > { %s967_s11 = sshll.u32 %s1651_s10, 7  ;;  %970 = vmatpush.msra.mxu2 %v454_v25  ;;  %532 = vmatpush.msra.mxu0 %v454_v25  ;;  %s968_s12 = sshll.u32 %s1651_s10, 6 }
   0xf   : > { %s327_s14 = scalar_lea.vmem %s1550_s0, %s967_s11 }
  0x10   : > { %v408_v0 = vld [vmem:[%s327_s14 + $0x40] sm:$0xff]  ;;  %v409_v1 = vld [vmem:[%s327_s14 + $0x48] sm:$0xff]  ;;  %v417_v2 = vld [vmem:[%s327_s14 + $0x50] sm:$0xff] }
  0x11   : > { %v410_v3 = vmax.f32 %v408_v0, %v409_v1  ;;  %v418_v4 = vld [vmem:[%s327_s14 + $0x58] sm:$0xff]  ;;  %v371_v6 = vld [vmem:[%s327_s14] sm:$0xff]  ;;  %v372_v7 = vld [vmem:[%s327_s14 + $0x8] sm:$0xff] }
  0x12   : > { %v419_v5 = vmax.f32 %v417_v2, %v418_v4  ;;  %v426_v8 = vld [vmem:[%s327_s14 + $0x60] sm:$0xff]  ;;  %v427_v9 = vld [vmem:[%s327_s14 + $0x68] sm:$0xff]  ;;  %v381_v10 = vld [vmem:[%s327_s14 + $0x10] sm:$0xff]  ;;  %v373_v13 = vmax.f32 %v371_v6, %v372_v7 }
  0x13   : > { %412 = vrot.lane.b32.xlu0 %v410_v3, %s1004_s15  ;;  %v382_v11 = vld [vmem:[%s327_s14 + $0x18] sm:$0xff]  ;;  %v428_v12 = vmax.f32 %v426_v8, %v427_v9  ;;  %v390_v15 = vld [vmem:[%s327_s14 + $0x20] sm:$0xff]  ;;  %v391_v16 = vld [vmem:[%s327_s14 + $0x28] sm:$0xff] }
  0x14   : > { %421 = vrot.lane.b32.xlu1 %v419_v5, %s1004_s15  ;;  %v383_v14 = vmax.f32 %v381_v10, %v382_v11  ;;  %v392_v17 = vmax.f32 %v390_v15, %v391_v16  ;;  %v435_v18 = vld [vmem:[%s327_s14 + $0x70] sm:$0xff]  ;;  %v436_v19 = vld [vmem:[%s327_s14 + $0x78] sm:$0xff] }
  0x15   : > { %430 = vrot.lane.b32.xlu2 %v428_v12, %s1004_s15  ;;  %v399_v20 = vld [vmem:[%s327_s14 + $0x30] sm:$0xff]  ;;  %v400_v21 = vld [vmem:[%s327_s14 + $0x38] sm:$0xff]  ;;  %v437_v22 = vmax.f32 %v435_v18, %v436_v19 }
  0x16   : > { %v401_v23 = vmax.f32 %v399_v20, %v400_v21  ;;  %v338_v20 = vlaneseq }
  0x1b   : > { %375 = vrot.lane.b32.xlu0 %v373_v13, %s1004_s15 }
  0x1c   : > { %385 = vrot.lane.b32.xlu1 %v383_v14, %s1004_s15 }
  0x1d   : > { %394 = vrot.lane.b32.xlu2 %v392_v17, %s1004_s15 }
  0x23   : > { %439 = vrot.lane.b32.xlu0 %v437_v22, %s1004_s15 }
  0x24   : > { %403 = vrot.lane.b32.xlu1 %v401_v23, %s1004_s15  ;;  %s332_s15 = scalar_lea.vmem %s1559_s9, %s968_s12 }
  0x6f   : > { %v431_v26 = vpop.permute.xlu2 %430 }
  0x70   : > { %v433_v27 = vmax.f32 %v428_v12, %v431_v26  ;;  %v1005_v12 = vmov 0.0  }
  0x71   : > { %334 = vst.msk [vmem:[#allocation2] sm:$0xff] %vm333_vm1, %v1005_v12 }
  0x72   : > { %434 = vst.msk [vmem:[#allocation3 + $0x30] sm:$0xff] %vm379_vm0, %v433_v27 }
  0x73   : > { %335 = vst.msk [vmem:[#allocation2 + $0x8] sm:$0xff] %vm333_vm1, %v1005_v12 }
  0x74   : > { %336 = vst.msk [vmem:[#allocation2 + $0x50] sm:$0xff] %vm333_vm1, %v1005_v12 }
  0x75   : > { %337 = vst.msk [vmem:[#allocation2 + $0x58] sm:$0xff] %vm333_vm1, %v1005_v12 }
  0x77   : > { %v395_v28 = vpop.permute.xlu2 %394 }
  0x78   : > { %v397_v29 = vmax.f32 %v392_v17, %v395_v28 }
  0x79   : > { %v1097_v52 = vld [vmem:[#allocation3 + $0x30] sm:$0xff] }
  0x7a   : > { %398 = vst.msk [vmem:[#allocation3 + $0x10] sm:$0xff] %vm379_vm0, %v397_v29  ;;  %v469_v58 = vmul.f32 %v982_v34, %v1097_v52  ;;  %v1146_v29 = vld [vmem:[%s1555_s5] ss:$0 sm:$0xff] }
  0x7b   : > { %1576 = vst [vmem:[#allocation7_spill] sm:$0xff] %v1097_v52 }
  0x7c   : > { %v480_v61 = vadd.f32 %v983_v38, %v469_v58  ;;  %1581 = vst [vmem:[#allocation12_spill] sm:$0xff] %v1146_v29 }
  0x7e   : > { %v488_v1 = vmax.f32 %v480_v61, 0.0 }
  0x81   : > { %v1108_v62 = vld [vmem:[#allocation3 + $0x10] sm:$0xff] }
  0x82   : > { %1578 = vst [vmem:[#allocation9_spill] sm:$0xff] %v1108_v62  ;;  %v465_v2 = vmul.f32 %v982_v34, %v1108_v62 }
  0x84   : > { %v476_v4 = vadd.f32 %v983_v38, %v465_v2 }
  0x85   : > { %v413_v30 = vpop.permute.xlu0 %412 }
  0x86   : > { %v415_v31 = vmax.f32 %v410_v3, %v413_v30  ;;  %v422_v32 = vpop.permute.xlu1 %421  ;;  %v484_v7 = vmax.f32 %v476_v4, 0.0  ;;  %v1151_v30 = vld [vmem:[%s1555_s5 + $0x1] ss:$0 sm:$0xff] }
  0x87   : > { %v424_v33 = vmax.f32 %v419_v5, %v422_v32 }
  0x88   : > { %416 = vst.msk [vmem:[#allocation3 + $0x20] sm:$0xff] %vm379_vm0, %v415_v31 }
  0x89   : > { %425 = vst.msk [vmem:[#allocation3 + $0x28] sm:$0xff] %vm379_vm0, %v424_v33  ;;  %v574_v33 = vld [vmem:[#allocation2 + $0x7] sm:$0xff] }
  0x8d   : > { %v376_v35 = vpop.permute.xlu0 %375 }
  0x8e   : > { %v378_v36 = vmax.f32 %v373_v13, %v376_v35  ;;  %v386_v37 = vpop.permute.xlu1 %385  ;;  %v1129_v13 = vld [vmem:[%s1554_s4] ss:$0 sm:$0xff]  ;;  %v632_v35 = vld [vmem:[#allocation2 + $0x8] sm:$0xff] }
  0x8f   : > { %v388_v39 = vmax.f32 %v383_v14, %v386_v37  ;;  %v1086_v40 = vld [vmem:[#allocation3 + $0x20] sm:$0xff] }
  0x90   : > { %1573 = vst [vmem:[#allocation4_spill] sm:$0xff] %v1086_v40  ;;  %v467_v41 = vmul.f32 %v982_v34, %v1086_v40  ;;  %v1090_v42 = vld [vmem:[#allocation3 + $0x28] sm:$0xff]  ;;  %v458_v14 = vld [vmem:[%s1557_s7] sm:$0xff] }
  0x91   : > { %380 = vst.msk [vmem:[#allocation3] sm:$0xff] %vm379_vm0, %v378_v36  ;;  %v468_v44 = vmul.f32 %v982_v34, %v1090_v42  ;;  %837 = vmatpush.msra.mxu1 %v458_v14  ;;  %971 = vmatpush.msra.mxu3 %v458_v14  ;;  %v1165_v36 = vld [vmem:[%s1555_s5 + $0x5] ss:$0 sm:$0xff] }
  0x92   : > { %1574 = vst [vmem:[#allocation5_spill] sm:$0xff] %v1090_v42  ;;  %v478_v43 = vadd.f32 %v983_v38, %v467_v41 }
  0x93   : > { %389 = vst.msk [vmem:[#allocation3 + $0x8] sm:$0xff] %vm379_vm0, %v388_v39  ;;  %v479_v48 = vadd.f32 %v983_v38, %v468_v44  ;;  %v1180_v44 = vld [vmem:[%s1555_s5 + $0x9] ss:$0 sm:$0xff] }
  0x94   : > { %v486_v45 = vmax.f32 %v478_v43, 0.0 }
  0x95   : > { %v440_v46 = vpop.permute.xlu0 %439  ;;  %v487_v56 = vmax.f32 %v479_v48, 0.0 }
  0x96   : > { %947 = vmatmul.msk.f32.vlgmr.msra.gmra.mxu2 %vm379_vm0, %v486_v45  ;;  %v442_v47 = vmax.f32 %v437_v22, %v440_v46  ;;  %v404_v49 = vpop.permute.xlu1 %403 }
  0x97   : > { %v406_v51 = vmax.f32 %v401_v23, %v404_v49  ;;  %v1138_v23 = vshrl.u32 %v338_v20, 7  ;;  %v584_v49 = vmul.f32 %v1146_v29, %v574_v33 }
  0x98   : > { %v1095_v50 = vld [vmem:[#allocation3] sm:$0xff]  ;;  %443 = vst.msk [vmem:[#allocation3 + $0x38] sm:$0xff] %vm379_vm0, %v442_v47 }
  0x99   : > { %1575 = vst [vmem:[#allocation6_spill] sm:$0xff] %v1095_v50  ;;  %v463_v53 = vmul.f32 %v982_v34, %v1095_v50  ;;  %v347_v28 = vand.u32 7, %v1138_v23  ;;  %v1154_v31 = vadd.s32 8, %v1138_v23  ;;  %v1168_v39 = vadd.s32 40, %v1138_v23 }
  0x9a   : > { %v1101_v54 = vld [vmem:[#allocation3 + $0x8] sm:$0xff]  ;;  %407 = vst.msk [vmem:[#allocation3 + $0x18] sm:$0xff] %vm379_vm0, %v406_v51  ;;  %v1171_v41 = vadd.s32 16, %v1138_v23  ;;  %v1174_v43 = vadd.s32 48, %v1138_v23  ;;  %v1183_v46 = vadd.s32 24, %v1138_v23  ;;  %v642_v51 = vmul.f32 %v1151_v30, %v632_v35 }
  0x9b   : > { %1577 = vst [vmem:[#allocation8_spill] sm:$0xff] %v1101_v54  ;;  %v474_v55 = vadd.f32 %v983_v38, %v463_v53  ;;  %v464_v57 = vmul.f32 %v982_v34, %v1101_v54  ;;  %vm1187_vm2 = vcmp.ne.s32.totalorder %v347_v28, 0  ;;  %v1196_v53 = vld [vmem:[%s1555_s5 + $0x2] ss:$0 sm:$0xff]  ;;  %vm1257_vm3 = vcmp.ne.s32.totalorder %v347_v28, 7 }
  0x9d   : > { %v482_v59 = vmax.f32 %v474_v55, 0.0  ;;  %v475_v60 = vadd.f32 %v983_v38, %v464_v57  ;;  %v1560_v55 = vand.u32 7, %v1154_v31 }
  0x9e   : > { %948 = vmatmul.msk.f32.gmra.mxu2 %vm379_vm0, %v487_v56 }
  0x9f   : > { %943 = vmatmul.msk.f32.vlgmr.msra.gmra.mxu0 %vm379_vm0, %v482_v59  ;;  %v1110_v63 = vld [vmem:[#allocation3 + $0x38] sm:$0xff]  ;;  %v483_v0 = vmax.f32 %v475_v60, 0.0  ;;  %v1203_v60 = vadd.s32 56, %v1138_v23  ;;  %vm1263_vm4 = vcmp.ne.s32.totalorder %v1560_v55, 0 }
  0xa0   : > { %1579 = vst [vmem:[#allocation10_spill] sm:$0xff] %v1110_v63  ;;  %v470_v3 = vmul.f32 %v982_v34, %v1110_v63 }
  0xa1   : > { %v1116_v6 = vld [vmem:[#allocation3 + $0x18] sm:$0xff] }
  0xa2   : > { %v481_v5 = vadd.f32 %v983_v38, %v470_v3  ;;  %1580 = vst [vmem:[#allocation11_spill] sm:$0xff] %v1116_v6  ;;  %v466_v9 = vmul.f32 %v982_v34, %v1116_v6  ;;  %v1160_v34 = vld [vmem:[%s1555_s5 + $0x4] ss:$0 sm:$0xff] }
  0xa4   : > { %v489_v8 = vmax.f32 %v481_v5, 0.0  ;;  %v477_v10 = vadd.f32 %v983_v38, %v466_v9 }
  0xa6   : > { %949 = vmatmul.msk.f32.gmra.mxu2 %vm379_vm0, %v488_v1  ;;  %v485_v11 = vmax.f32 %v477_v10, 0.0 }
  0xa7   : > { %944 = vmatmul.msk.f32.gmra.mxu0 %vm379_vm0, %v483_v0 }
  0xae   : > { %950 = vmatmul.msk.f32.gmra.mxu2 %vm379_vm0, %v489_v8  ;;  %v1218_v8 = vld [vmem:[%s1555_s5 + $0xa] ss:$0 sm:$0xff] }
  0xaf   : > { %945 = vmatmul.msk.f32.gmra.mxu0 %vm379_vm0, %v484_v7  ;;  %v1213_v7 = vld [vmem:[%s1555_s5 + $0x8] ss:$0 sm:$0xff] }
  0xb7   : > { %946 = vmatmul.msk.f32.gmra.mxu0 %vm379_vm0, %v485_v11  ;;  %v669_v11 = vld [vmem:[#allocation2 + $0x50] sm:$0xff] }
 0x119   : > { %v546_v15 = vpop.f32.mrf.mxu2 }
 0x11a   : > { %v547_v16 = vadd.f32 %v1129_v13, %v546_v15 }
 0x11c   : > { %v534_v17 = vpop.f32.mrf.mxu0  ;;  %v562_v18 = vmax.f32 %v547_v16, 0.0 }
 0x11d   : > { %v535_v19 = vadd.f32 %v1129_v13, %v534_v17 }
 0x11e   : > { %570 = vst.msk [vmem:[#allocation2 + $0x30] sm:$0xff] %vm333_vm1, %v562_v18 }
 0x11f   : > { %v558_v21 = vmax.f32 %v535_v19, 0.0 }
 0x121   : > { %566 = vst.msk [vmem:[#allocation2 + $0x10] sm:$0xff] %vm333_vm1, %v558_v21  ;;  %v549_v22 = vpop.f32.mrf.mxu2 }
 0x122   : > { %v550_v24 = vadd.f32 %v1129_v13, %v549_v22 }
 0x124   : > { %v537_v25 = vpop.f32.mrf.mxu0  ;;  %v563_v26 = vmax.f32 %v550_v24, 0.0  ;;  %v1236_v24 = vld [vmem:[%s1555_s5 + $0x6] ss:$0 sm:$0xff] }
 0x125   : > { %v538_v27 = vadd.f32 %v1129_v13, %v537_v25  ;;  %v637_v45 = vld [vmem:[#allocation2 + $0x30] sm:$0xff] }
 0x126   : > { %571 = vst.msk [vmem:[#allocation2 + $0x38] sm:$0xff] %vm333_vm1, %v563_v26  ;;  %v647_v1 = vmul.f32 %v1151_v30, %v637_v45  ;;  %v1222_v10 = vmul.f32 %v1180_v44, %v637_v45  ;;  %v1230_v19 = vmul.f32 %v1165_v36, %v637_v45  ;;  %v725_v25 = vld [vmem:[#allocation2 + $0x51] sm:$0xff] }
 0x127   : > { %v559_v32 = vmax.f32 %v538_v27, 0.0 }
 0x128   : > { %v575_v37 = vld [vmem:[#allocation2 + $0xf] sm:$0xff]  ;;  %1584 = vst [vmem:[#allocation13_spill] sm:$0xff] %v1230_v19 }
 0x129   : > { %v633_v38 = vld [vmem:[#allocation2 + $0x10] sm:$0xff]  ;;  %567 = vst.msk [vmem:[#allocation2 + $0x18] sm:$0xff] %vm333_vm1, %v559_v32  ;;  %v552_v47 = vpop.f32.mrf.mxu2  ;;  %v596_v57 = vmul.f32 %v1160_v34, %v575_v37  ;;  %v585_v14 = vmul.f32 %v1146_v29, %v575_v37 }
 0x12a   : > { %v553_v56 = vadd.f32 %v1129_v13, %v552_v47  ;;  %v653_v58 = vmul.f32 %v1165_v36, %v633_v38  ;;  %v688_v59 = vld [vmem:[#allocation2 + $0x9] sm:$0xff]  ;;  %v643_v15 = vmul.f32 %v1151_v30, %v633_v38  ;;  %v1248_v38 = vmul.f32 %v1180_v44, %v669_v11 }
 0x12b   : > { %v698_v12 = vmul.f32 %v1196_v53, %v688_v59  ;;  %v604_v21 = vadd.f32 %v596_v57, %v584_v49 }
 0x12c   : > { %v540_v61 = vpop.f32.mrf.mxu0  ;;  %v564_v4 = vmax.f32 %v553_v56, 0.0  ;;  %v661_v22 = vadd.f32 %v653_v58, %v642_v51  ;;  %1585 = vst [vmem:[#allocation14_spill] sm:$0xff] %v1248_v38 }
 0x12d   : > { %v541_v5 = vadd.f32 %v1129_v13, %v540_v61  ;;  %v580_v16 = vld [vmem:[#allocation2 + $0x37] sm:$0xff] }
 0x12e   : > { %v638_v17 = vld [vmem:[#allocation2 + $0x38] sm:$0xff]  ;;  %572 = vst.msk [vmem:[#allocation2 + $0x40] sm:$0xff] %vm333_vm1, %v564_v4  ;;  %v1240_v33 = vmul.f32 %v1160_v34, %v580_v16  ;;  %v1269_v61 = vmul.f32 %v1146_v29, %v580_v16  ;;  %v1280_v9 = vmul.f32 %v1213_v7, %v580_v16 }
 0x12f   : > { %v1227_v18 = vld [vmem:[#allocation2 + $0x31] sm:$0xff]  ;;  %v560_v20 = vmax.f32 %v541_v5, 0.0  ;;  %v658_v35 = vmul.f32 %v1165_v36, %v638_v17  ;;  %v1272_v4 = vmul.f32 %v1151_v30, %v638_v17 }
 0x130   : > { %v576_v26 = vld [vmem:[#allocation2 + $0x17] sm:$0xff]  ;;  %v1245_v37 = vmul.f32 %v1196_v53, %v1227_v18  ;;  %v1276_v28 = vmul.f32 %v1218_v8, %v1227_v18  ;;  %1591 = vst [vmem:[#allocation16_spill] sm:$0xff] %v1280_v9 }
 0x131   : > { %v634_v27 = vld [vmem:[#allocation2 + $0x18] sm:$0xff]  ;;  %568 = vst.msk [vmem:[#allocation2 + $0x20] sm:$0xff] %vm333_vm1, %v560_v20  ;;  %v616_v45 = vmul.f32 %v1213_v7, %v576_v26  ;;  %v597_v51 = vmul.f32 %v1160_v34, %v576_v26  ;;  %v555_v56 = vpop.f32.mrf.mxu2  ;;  %v666_v55 = vadd.f32 %v658_v35, %v647_v1  ;;  %v586_v63 = vmul.f32 %v1146_v29, %v576_v26 }
 0x132   : > { %v689_v32 = vld [vmem:[#allocation2 + $0x11] sm:$0xff]  ;;  %v672_v47 = vmul.f32 %v1180_v44, %v634_v27  ;;  %v654_v59 = vmul.f32 %v1165_v36, %v634_v27  ;;  %1590 = vst [vmem:[#allocation15_spill] sm:$0xff] %v1276_v28  ;;  %v556_v5 = vadd.f32 %v1129_v13, %v555_v56  ;;  %v1296_v1 = vadd.s32 32, %v1138_v23 }
 0x133   : > { %v709_v49 = vmul.f32 %v1236_v24, %v689_v32  ;;  %v624_v11 = vadd.f32 %v616_v45, %v604_v21  ;;  %v699_v2 = vmul.f32 %v1196_v53, %v689_v32  ;;  %v605_v56 = vadd.f32 %v597_v51, %v585_v14 }
 0x134   : > { %v680_v20 = vadd.f32 %v672_v47, %v661_v22  ;;  %v543_v0 = vpop.f32.mrf.mxu0  ;;  %v565_v40 = vmax.f32 %v556_v5, 0.0  ;;  %v662_v21 = vadd.f32 %v654_v59, %v643_v15  ;;  %v1293_v32 = vmul.f32 %v1218_v8, %v725_v25  ;;  %1594 = vst [vmem:[#allocation19_spill] sm:$0xff] %v1296_v1 }
 0x135   : > { %v717_v3 = vadd.f32 %v709_v49, %v698_v12  ;;  %v544_v52 = vadd.f32 %v1129_v13, %v543_v0  ;;  %v744_v6 = vsel %vm1187_vm2, %v624_v11, 0.0  ;;  %v581_v22 = vld [vmem:[#allocation2 + $0x3f] sm:$0xff]  ;;  %v644_v12 = vmul.f32 %v1151_v30, %v634_v27 }
 0x136   : > { %v1287_v45 = vld [vmem:[#allocation2 + $0x40] sm:$0xff]  ;;  %1593 = vst [vmem:[#allocation18_spill] sm:$0xff] %v1293_v32  ;;  %v760_v48 = vadd.f32 %v744_v6, %v680_v20  ;;  %v1302_v14 = vmul.f32 %v1180_v44, %v638_v17  ;;  %v1305_v27 = vmul.f32 %v1213_v7, %v581_v22  ;;  %v602_v25 = vmul.f32 %v1160_v34, %v581_v22 }
 0x137   : > { %v1289_v16 = vld [vmem:[#allocation2 + $0x39] sm:$0xff]  ;;  %573 = vst.msk [vmem:[#allocation2 + $0x48] sm:$0xff] %vm333_vm1, %v565_v40  ;;  %v561_v13 = vmax.f32 %v544_v52, 0.0  ;;  %v677_v0 = vmul.f32 %v1180_v44, %v1287_v45  ;;  %v659_v40 = vmul.f32 %v1165_v36, %v1287_v45  ;;  %v1596_v49 = vand.u32 7, %v1154_v31 }
 0x138   : > { %1592 = vst [vmem:[#allocation17_spill] sm:$0xff] %v1289_v16  ;;  %v690_v15 = vld [vmem:[#allocation2 + $0x19] sm:$0xff]  ;;  %v714_v23 = vmul.f32 %v1236_v24, %v1289_v16  ;;  %v1599_v59 = vand.u32 7, %v1171_v41  ;;  %v1336_v31 = vmul.f32 %v1146_v29, %v581_v22  ;;  %v1605_v22 = vand.u32 7, %v1168_v39 }
 0x139   : > { %1595 = vst [vmem:[#allocation20_spill] sm:$0xff] %v1302_v14  ;;  %v577_v26 = vld [vmem:[#allocation2 + $0x1f] sm:$0xff]  ;;  %v728_v52 = vmul.f32 %v1218_v8, %v690_v15  ;;  %v710_v47 = vmul.f32 %v1236_v24, %v690_v15  ;;  %vm1319_vm5 = vcmp.ne.s32.totalorder %v1596_v49, 7  ;;  %v1338_v54 = vadd.f32 %v677_v0, %v666_v55 }
 0x13a   : > { %v635_v35 = vld [vmem:[#allocation2 + $0x20] sm:$0xff]  ;;  %569 = vst.msk [vmem:[#allocation2 + $0x28] sm:$0xff] %vm333_vm1, %v561_v13  ;;  %v617_v6 = vmul.f32 %v1213_v7, %v577_v26  ;;  %vm1325_vm6 = vcmp.ne.s32.totalorder %v1599_v59, 0  ;;  %v598_v11 = vmul.f32 %v1160_v34, %v577_v26  ;;  %v1333_v13 = vmul.f32 %v1196_v53, %v1289_v16 }
 0x13b   : > { %v673_v17 = vmul.f32 %v1180_v44, %v635_v35  ;;  %v655_v20 = vmul.f32 %v1165_v36, %v635_v35  ;;  %v736_v49 = vadd.f32 %v728_v52, %v717_v3  ;;  %v1602_v59 = vand.u32 7, %v1174_v43  ;;  %v1349_v14 = vld [vmem:[%s1556_s6] ss:$0 sm:$0xff] }
 0x13c   : > { %v625_v42 = vadd.f32 %v617_v6, %v605_v56  ;;  %v718_v9 = vadd.f32 %v710_v47, %v699_v2  ;;  %vm1353_vm8 = vcmp.ne.s32.totalorder %v1605_v22, 0  ;;  %v1608_v55 = vmov %v1605_v22 }
 0x13d   : > { %v681_v62 = vadd.f32 %v673_v17, %v662_v21  ;;  %vm1342_vm7 = vcmp.ne.s32.totalorder %v1602_v59, 0  ;;  %vm1359_vm9 = vcmp.ne.s32.totalorder %v1608_v55, 7  ;;  %v722_v21 = vadd.f32 %v714_v23, %v1245_v37 }
 0x13e   : > { %v606_v0 = vadd.f32 %v598_v11, %v586_v63  ;;  %v663_v52 = vadd.f32 %v655_v20, %v644_v12  ;;  %v752_v6 = vsel %vm1257_vm3, %v736_v49, 0.0  ;;  %v745_v2 = vsel %vm1263_vm4, %v625_v42, 0.0  ;;  %v1376_v63 = vld [vmem:[#allocation2 + $0x41] sm:$0xff] }
 0x13f   : > { %v1611_v17 = vand.u32 7, %v1171_v41  ;;  %v700_v39 = vmul.f32 %v1196_v53, %v690_v15  ;;  %v610_v59 = vadd.f32 %v602_v25, %v1269_v61  ;;  %v768_v22 = vadd.f32 %v760_v48, %v752_v6  ;;  %1614 = vst [vmem:[#allocation21_spill] sm:$0xff] %v1376_v63  ;;  %v592_v12 = vld [vmem:[#allocation2 + $0x47] sm:$0xff]  ;;  %v612_v25 = vld [vmem:[#allocation2 + $0x4f] sm:$0xff] }
 0x140   : > { %v761_v37 = vadd.f32 %v745_v2, %v681_v62  ;;  %v1378_v57 = vld [vmem:[#allocation2 + $0x48] sm:$0xff]  ;;  %v667_v58 = vadd.f32 %v659_v40, %v1272_v4  ;;  %v587_v42 = vmul.f32 %v1146_v29, %v577_v26  ;;  %v733_v41 = vmul.f32 %v1218_v8, %v1376_v63 }
 0x141   : > { %vm1370_vm10 = vcmp.ne.s32.totalorder %v1611_v17, 7  ;;  %v1615_v23 = vand.u32 7, %v1174_v43  ;;  %v622_v62 = vmul.f32 %v1213_v7, %v592_v12  ;;  %v678_v61 = vmul.f32 %v1180_v44, %v1378_v57  ;;  %v1393_v48 = vld [vmem:[#allocation2 + $0x49] sm:$0xff]  ;;  %v691_v40 = vld [vmem:[#allocation2 + $0x21] sm:$0xff] }
 0x142   : > { %1618 = vst [vmem:[#allocation22_spill] sm:$0xff] %v1393_v48  ;;  %v645_v4 = vmul.f32 %v1151_v30, %v635_v35  ;;  %v779_v26 = vadd.f32 %v1349_v14, %v768_v22  ;;  %v1397_v11 = vld [vmem:[#allocation2 + $0x2f] sm:$0xff]  ;;  %v1399_v43 = vld [vmem:[#allocation2 + $0x27] sm:$0xff]  ;;  %v715_v20 = vmul.f32 %v1236_v24, %v1376_v63  ;;  %v734_v49 = vmul.f32 %v1218_v8, %v1393_v48 }
 0x143   : > { %vm1386_vm11 = vcmp.ne.s32.totalorder %v1615_v23, 7  ;;  %v603_v55 = vmul.f32 %v1160_v34, %v592_v12  ;;  %v729_v6 = vmul.f32 %v1218_v8, %v691_v40  ;;  %v589_v35 = vmul.f32 %v1146_v29, %v1397_v11  ;;  %v1411_v17 = vld [vmem:[#allocation2 + $0x28] sm:$0xff] }
 0x144   : > { %v618_v2 = vmul.f32 %v1213_v7, %v1399_v43  ;;  %v1413_v22 = vld [vmem:[#allocation2 + $0x29] sm:$0xff]  ;;  %v623_v23 = vmul.f32 %v1213_v7, %v612_v25  ;;  %v787_v16 = vmax.f32 %v779_v26, 0.0  ;;  %v741_v19 = vadd.f32 %v733_v41, %v722_v21 }
 0x145   : > { %v674_v32 = vmul.f32 %v1180_v44, %v1411_v17  ;;  %v711_v12 = vmul.f32 %v1236_v24, %v691_v40  ;;  %v1619_v1 = vand.u32 7, %v1183_v46  ;;  %v737_v38 = vadd.f32 %v729_v6, %v718_v9 }
 0x146   : > { %v609_v48 = vadd.f32 %v1240_v33, %v589_v35  ;;  %v626_v63 = vadd.f32 %v618_v2, %v606_v0  ;;  %v730_v25 = vmul.f32 %v1218_v8, %v1413_v22  ;;  %957 = vmatmul.msk.f32.vlgmr.msra.gmra.mxu1 %vm333_vm1, %v787_v16  ;;  %v630_v44 = vadd.f32 %v622_v62, %v610_v59 }
 0x147   : > { %vm1421_vm12 = vcmp.ne.s32.totalorder %v1619_v1, 0  ;;  %v682_v21 = vadd.f32 %v674_v32, %v663_v52  ;;  %v719_v41 = vadd.f32 %v711_v12, %v700_v39  ;;  %v686_v26 = vadd.f32 %v678_v61, %v667_v58 }
 0x148   : > { %v753_v28 = vsel %vm1319_vm5, %v737_v38, 0.0  ;;  %v629_v1 = vadd.f32 %v1305_v27, %v609_v48  ;;  %v746_v9 = vsel %vm1325_vm6, %v626_v63, 0.0  ;;  %v723_v33 = vadd.f32 %v715_v20, %v1333_v13 }
 0x149   : > { %v1622_v0 = vand.u32 7, %v1203_v60  ;;  %v769_v16 = vadd.f32 %v761_v37, %v753_v28  ;;  %v738_v32 = vadd.f32 %v730_v25, %v719_v41  ;;  %v762_v52 = vadd.f32 %v746_v9, %v682_v21  ;;  %v1633_v9 = vld [vmem:[#allocation22_spill] sm:$0xff] }
 0x14a   : > { %v750_v51 = vsel %vm1342_vm7, %v630_v44, 0.0  ;;  %v1625_v38 = vand.u32 7, %v1183_v46  ;;  %v749_v5 = vsel %vm1353_vm8, %v629_v1, 0.0  ;;  %v757_v13 = vsel %vm1359_vm9, %v741_v19, 0.0  ;;  %v1632_v1 = vld [vmem:[#allocation21_spill] sm:$0xff] }
 0x14b   : > { %vm1437_vm13 = vcmp.ne.s32.totalorder %v1622_v0, 0  ;;  %v742_v39 = vadd.f32 %v734_v49, %v723_v33  ;;  %v599_v28 = vmul.f32 %v1160_v34, %v1399_v43  ;;  %v780_v59 = vadd.f32 %v1349_v14, %v769_v16  ;;  %v1635_v33 = vld [vmem:[#allocation19_spill] sm:$0xff] }
 0x14c   : > { %vm1445_vm14 = vcmp.ne.s32.totalorder %v1625_v38, 7  ;;  %v765_v50 = vadd.f32 %v749_v5, %v1338_v54  ;;  %v754_v46 = vsel %vm1370_vm10, %v738_v32, 0.0  ;;  %v766_v37 = vadd.f32 %v750_v51, %v686_v26  ;;  %v1631_v26 = vld [vmem:[#allocation15_spill] sm:$0xff] }
 0x14d   : > { %v770_v63 = vadd.f32 %v762_v52, %v754_v46  ;;  %v607_v58 = vadd.f32 %v599_v28, %v587_v42  ;;  %v619_v3 = vmul.f32 %v1213_v7, %v1397_v11  ;;  %v656_v19 = vmul.f32 %v1165_v36, %v1411_v17 }
 0x14e   : > { %v788_v56 = vmax.f32 %v780_v59, 0.0  ;;  %v773_v62 = vadd.f32 %v765_v50, %v757_v13  ;;  %v758_v61 = vsel %vm1386_vm11, %v742_v39, 0.0  ;;  %v701_v48 = vmul.f32 %v1196_v53, %v691_v40  ;;  %v1637_v39 = vld [vmem:[#allocation18_spill] sm:$0xff]  ;;  %v1638_v50 = vld [vmem:[#allocation13_spill] sm:$0xff] }
 0x14f   : > { %v1628_v54 = vmov %v1622_v0  ;;  %v627_v42 = vadd.f32 %v619_v3, %v607_v58  ;;  %v664_v20 = vadd.f32 %v656_v19, %v645_v4  ;;  %v712_v7 = vmul.f32 %v1236_v24, %v1413_v22 }
 0x150   : > { %vm1468_vm15 = vcmp.ne.s32.totalorder %v1628_v54, 7  ;;  %v713_v49 = vmul.f32 %v1236_v24, %v1227_v18  ;;  %958 = vmatmul.msk.f32.gmra.mxu1 %vm333_vm1, %v788_v56  ;;  %v784_v15 = vadd.f32 %v1349_v14, %v773_v62  ;;  %v611_v40 = vadd.f32 %v603_v55, %v1336_v31 }
 0x151   : > { %v649_v60 = vmul.f32 %v1151_v30, %v1287_v45  ;;  %v660_v35 = vmul.f32 %v1165_v36, %v1378_v57  ;;  %v774_v2 = vadd.f32 %v766_v37, %v758_v61  ;;  %v683_v4 = vadd.f32 %v1222_v10, %v664_v20  ;;  %v1634_v10 = vld [vmem:[#allocation14_spill] sm:$0xff]  ;;  %v1641_v37 = vld [vmem:[#allocation20_spill] sm:$0xff] }
 0x152   : > { %v720_v12 = vadd.f32 %v712_v7, %v701_v48  ;;  %v747_v25 = vsel %vm1421_vm12, %v627_v42, 0.0  ;;  %v792_v18 = vmax.f32 %v784_v15, 0.0  ;;  %v781_v21 = vadd.f32 %v1349_v14, %v770_v63  ;;  %v995_v7 = vld [vmem:[%s1558_s8] ss:$0 sm:$0xff] }
 0x153   : > { %v631_v41 = vadd.f32 %v623_v23, %v611_v40  ;;  %v668_v44 = vadd.f32 %v660_v35, %v649_v60  ;;  %v763_v55 = vadd.f32 %v747_v25, %v683_v4  ;;  %v705_v45 = vmul.f32 %v1196_v53, %v1632_v1  ;;  %v1636_v23 = vld [vmem:[#allocation12_spill] sm:$0xff]  ;;  %v1642_v40 = vld [vmem:[#allocation6_spill] sm:$0xff] }
 0x154   : > { %v739_v31 = vadd.f32 %v1631_v26, %v720_v12  ;;  %v716_v36 = vmul.f32 %v1236_v24, %v1633_v9  ;;  %962 = vmatmul.msk.f32.vlgmr.msra.gmra.mxu3 %vm333_vm1, %v792_v18  ;;  %v351_v0 = vand.u32 7, %v1635_v33  ;;  %v588_v16 = vmul.f32 %v1636_v23, %v1399_v43  ;;  %v1645_v26 = vld [vmem:[#allocation5_spill] sm:$0xff]  ;;  %v1646_v9 = vld [vmem:[#allocation11_spill] sm:$0xff] }
 0x155   : > { %v687_v57 = vadd.f32 %v1634_v10, %v668_v44  ;;  %v751_v29 = vsel %vm1437_vm13, %v631_v41, 0.0  ;;  %v600_v51 = vmul.f32 %v1160_v34, %v1397_v11  ;;  %v646_v24 = vmul.f32 %v1151_v30, %v1411_v17  ;;  %v1639_v34 = vld [vmem:[#allocation17_spill] sm:$0xff]  ;;  %v1640_v17 = vld [vmem:[#allocation16_spill] sm:$0xff] }
 0x156   : > { %v755_v32 = vsel %vm1445_vm14, %v739_v31, 0.0  ;;  %v724_v52 = vadd.f32 %v716_v36, %v705_v45  ;;  %v789_v38 = vmax.f32 %v781_v21, 0.0  ;;  %v785_v5 = vadd.f32 %v1349_v14, %v774_v2  ;;  %v1643_v2 = vld [vmem:[#allocation8_spill] sm:$0xff]  ;;  %v1644_v21 = vld [vmem:[#allocation9_spill] sm:$0xff] }
 0x157   : > { %v771_v6 = vadd.f32 %v763_v55, %v755_v32  ;;  %v767_v13 = vadd.f32 %v751_v29, %v687_v57  ;;  %v608_v59 = vadd.f32 %v600_v51, %v588_v16  ;;  %v665_v43 = vadd.f32 %v1638_v50, %v646_v24  ;;  %v1647_v57 = vld [vmem:[#allocation7_spill] sm:$0xff]  ;;  %v1648_v16 = vld [vmem:[#allocation4_spill] sm:$0xff]  ;;  %v1649_v51 = vld [vmem:[#allocation10_spill] sm:$0xff] }
 0x158   : > { %v743_v28 = vadd.f32 %v1637_v39, %v724_v52  ;;  %v702_v27 = vmul.f32 %v1196_v53, %v1413_v22  ;;  %959 = vmatmul.msk.f32.gmra.mxu1 %vm333_vm1, %v789_v38  ;;  %vm359_vm2 = vcmp.ne.s32.totalorder %v351_v0, 0  ;;  %v732_v11 = vmul.f32 %v1218_v8, %v1639_v34 }
 0x159   : > { %v628_v46 = vadd.f32 %v1640_v17, %v608_v59  ;;  %v684_v63 = vadd.f32 %v1641_v37, %v665_v43  ;;  %v793_v3 = vmax.f32 %v785_v5, 0.0  ;;  %v782_v19 = vadd.f32 %v1349_v14, %v771_v6 }
 0x15a   : > { %v759_v30 = vsel %vm1468_vm15, %v743_v28, 0.0  ;;  %v721_v58 = vadd.f32 %v713_v49, %v702_v27  ;;  %vm367_vm3 = vcmp.ne.s32.totalorder %v351_v0, 7 }
 0x15b   : > { %v775_v56 = vadd.f32 %v767_v13, %v759_v30  ;;  %v748_v22 = vsel %vm359_vm2, %v628_v46, 0.0  ;;  %v790_v61 = vmax.f32 %v782_v19, 0.0 }
 0x15c   : > { %v740_v53 = vadd.f32 %v732_v11, %v721_v58  ;;  %963 = vmatmul.msk.f32.gmra.mxu3 %vm333_vm1, %v793_v3  ;;  %v764_v62 = vadd.f32 %v748_v22, %v684_v63 }
 0x15d   : > { %v786_v48 = vadd.f32 %v1349_v14, %v775_v56 }
 0x15e   : > { %v756_v8 = vsel %vm367_vm3, %v740_v53, 0.0 }
 0x15f   : > { %v772_v54 = vadd.f32 %v764_v62, %v756_v8  ;;  %v794_v47 = vmax.f32 %v786_v48, 0.0 }
 0x160   : > { %960 = vmatmul.msk.f32.gmra.mxu1 %vm333_vm1, %v790_v61 }
 0x161   : > { %v783_v42 = vadd.f32 %v1349_v14, %v772_v54 }
 0x163   : > { %v791_v20 = vmax.f32 %v783_v42, 0.0 }
 0x164   : > { %964 = vmatmul.msk.f32.gmra.mxu3 %vm333_vm1, %v794_v47 }
 0x168   : > { %961 = vmatmul.msk.f32.gmra.mxu1 %vm333_vm1, %v791_v20 }
 0x1c3   : > { %v839_v49 = vpop.f32.mrf.mxu1 }
 0x1c4   : > { %v840_v15 = vadd.f32 %v995_v7, %v839_v49 }
 0x1c6   : > { %v863_v60 = vadd.f32 %v840_v15, %v1642_v40 }
 0x1c8   : > { %871 = vst.msk [vmem:[%s332_s15] sm:$0xff] %vm379_vm0, %v863_v60 }
 0x1cd   : > { %v842_v14 = vpop.f32.mrf.mxu1 }
 0x1ce   : > { %v843_v35 = vadd.f32 %v995_v7, %v842_v14 }
 0x1d0   : > { %v864_v4 = vadd.f32 %v843_v35, %v1643_v2 }
 0x1d2   : > { %872 = vst.msk [vmem:[%s332_s15 + $0x8] sm:$0xff] %vm379_vm0, %v864_v4 }
 0x1d5   : > { %v845_v12 = vpop.f32.mrf.mxu1 }
 0x1d6   : > { %v846_v25 = vadd.f32 %v995_v7, %v845_v12 }
 0x1d7   : > { %v854_v18 = vpop.f32.mrf.mxu3 }
 0x1d8   : > { %v865_v41 = vadd.f32 %v846_v25, %v1644_v21  ;;  %v855_v44 = vadd.f32 %v995_v7, %v854_v18 }
 0x1da   : > { %873 = vst.msk [vmem:[%s332_s15 + $0x10] sm:$0xff] %vm379_vm0, %v865_v41  ;;  %v868_v31 = vadd.f32 %v855_v44, %v1645_v26 }
 0x1dc   : > { %876 = vst.msk [vmem:[%s332_s15 + $0x28] sm:$0xff] %vm379_vm0, %v868_v31 }
 0x1dd   : > { %v848_v55 = vpop.f32.mrf.mxu1 }
 0x1de   : > { %v849_v1 = vadd.f32 %v995_v7, %v848_v55 }
 0x1df   : > { %v857_v45 = vpop.f32.mrf.mxu3 }
 0x1e0   : > { %v866_v36 = vadd.f32 %v849_v1, %v1646_v9  ;;  %v858_v10 = vadd.f32 %v995_v7, %v857_v45 }
 0x1e2   : > { %874 = vst.msk [vmem:[%s332_s15 + $0x18] sm:$0xff] %vm379_vm0, %v866_v36  ;;  %v869_v29 = vadd.f32 %v858_v10, %v1647_v57 }
 0x1e4   : > { %877 = vst.msk [vmem:[%s332_s15 + $0x30] sm:$0xff] %vm379_vm0, %v869_v29 }
 0x1e5   : > { %v851_v33 = vpop.f32.mrf.mxu1 }
 0x1e6   : > { %v852_v0 = vadd.f32 %v995_v7, %v851_v33 }
 0x1e7   : > { %v860_v23 = vpop.f32.mrf.mxu3 }
 0x1e8   : > { %v867_v32 = vadd.f32 %v852_v0, %v1648_v16  ;;  %v861_v52 = vadd.f32 %v995_v7, %v860_v23 }
 0x1ea   : > { %875 = vst.msk [vmem:[%s332_s15 + $0x20] sm:$0xff] %vm379_vm0, %v867_v32  ;;  %v870_v24 = vadd.f32 %v861_v52, %v1649_v51 }
 0x1ec   : > { %878 = vst.msk [vmem:[%s332_s15 + $0x38] sm:$0xff] %vm379_vm0, %v870_v24 }
 0x1ed PF: > { %s19_s30 = sadd.s32 1, %s1002_s30  }
 0x1ee   : > { %p16_p4 = scmp.ge.s32.totalorder %s19_s30, 4  }
 0x1f0   :  { %18 = sbr.rel (!%p16_p4) target bundleno = 1 (0x1), region = 88 }

// kernel: hourglass_forward.9
= control target key start
LH: loop header
LB: loop body
LE: loop exit
PB: predicated region body
PF: predicated region fallthrough
CT: control target
= control target key end

     0   :  { %s982_s30 = smov 0   ;;  %s1465_s0 = inlined_call_operand.vmem [shape: f32[2,64,16], index: 0, kind: input, shape index: {}]   ;;  %s1466_s1 = inlined_call_operand.vmem [shape: f32[1,16], index: 1, kind: input, shape index: {}]   ;;  %s1467_s2 = inlined_call_operand.vmem [shape: f32[1,16], index: 2, kind: input, shape index: {}]   ;;  %s1468_s3 = inlined_call_operand.vmem [shape: f32[1,16,8], index: 3, kind: input, shape index: {}]   ;;  %s1469_s4 = inlined_call_operand.vmem [shape: f32[1,8], index: 4, kind: input, shape index: {}]   ;;  %s1470_s5 = inlined_call_operand.vmem [shape: f32[1,3,3,8], index: 5, kind: input, shape index: {}]   ;;  %s1471_s6 = inlined_call_operand.vmem [shape: f32[1,8], index: 6, kind: input, shape index: {}]   ;;  %s1472_s7 = inlined_call_operand.vmem [shape: f32[1,8,16], index: 7, kind: input, shape index: {}]   ;;  %s1473_s8 = inlined_call_operand.vmem [shape: f32[1,16], index: 8, kind: input, shape index: {}]   ;;  %s1474_s9 = inlined_call_operand.vmem [shape: f32[2,64,16], index: 9, kind: output, shape index: {}]  }
   0x1 LB: > { %s862_s10 = sadd.s32 4294967295, %s929_s30   ;;  %p866_p0 = scmp.ge.s32.totalorder %s929_s30, 1  ;;  %s929_s30 = sphi %s982_s30, %s19_s30  }
   0x2   : > { %p287_p1 = scmp.lt.s32.totalorder %s929_s30, 3 }
   0x4   : > { %p288_p2 = pnand %p866_p0, %p287_p1 }
   0x6   : > { %291 = sbr.rel (%p288_p2) target bundleno = 358 (0x166), region = 56 }
   0xb   : > { %v382_v0 = vld [vmem:[%s1468_s3 + $0x8] sm:$0xff]  ;;  %v381_v1 = vld [vmem:[%s1468_s3] sm:$0xff]  ;;  %p323_p3 = scmp.lt.s32.totalorder %s862_s10, 1  ;;  %vm420_vm0 = vcmask 130048   ;;  %vm333_vm1 = vcmask 64512   ;;  %v931_v36 = vmov 0.0   ;;  %v338_v44 = vlaneseq }
   0xc   : > { %459 = vmatpush.msra.mxu0 %v382_v0  ;;  %897 = vmatpush.msra.mxu2 %v382_v0  ;;  %v909_v2 = vld [vmem:[%s1466_s1] ss:$0 sm:$0xff]  ;;  %334 = vst.msk [vmem:[#allocation2] sm:$0xff] %vm333_vm1, %v931_v36  ;;  %v1069_v51 = vld [vmem:[%s1470_s5 + $0x4] ss:$0 sm:$0xff] }
   0xd   : > { %s1547_s10 = smov (!%p323_p3, %s862_s10), 1  ;;  %v910_v3 = vld [vmem:[%s1467_s2] ss:$0 sm:$0xff]  ;;  %335 = vst.msk [vmem:[#allocation2 + $0x8] sm:$0xff] %vm333_vm1, %v931_v36  ;;  %v1059_v49 = vshrl.u32 %v338_v44, 7 }
   0xe   : > { %460 = vmatpush.msra.mxu0 %v381_v1  ;;  %898 = vmatpush.msra.mxu2 %v381_v1  ;;  %s895_s17 = sshll.u32 %s1547_s10, 6  ;;  %336 = vst.msk [vmem:[#allocation2 + $0x50] sm:$0xff] %vm333_vm1, %v931_v36  ;;  %v1049_v37 = vld [vmem:[%s1469_s4] ss:$0 sm:$0xff]  ;;  %v1074_v52 = vld [vmem:[%s1470_s5 + $0x1] ss:$0 sm:$0xff] }
   0xf   : > { %s327_s20 = scalar_lea.vmem %s1465_s0, %s895_s17  ;;  %337 = vst.msk [vmem:[#allocation2 + $0x58] sm:$0xff] %vm333_vm1, %v931_v36  ;;  %v385_v41 = vld [vmem:[%s1472_s7] sm:$0xff]  ;;  %v1083_v59 = vadd.s32 8, %v1059_v49  ;;  %v347_v61 = vand.u32 7, %v1059_v49  ;;  %v1088_v62 = vadd.s32 16, %v1059_v49  ;;  %s332_s14 = scalar_lea.vmem %s1474_s9, %s895_s17 }
  0x10   : > { %v1010_v4 = vld [vmem:[%s327_s20] sm:$0xff]  ;;  %v1014_v6 = vld [vmem:[%s327_s20 + $0x8] sm:$0xff]  ;;  %v1024_v18 = vld [vmem:[%s327_s20 + $0x10] sm:$0xff]  ;;  %765 = vmatpush.msra.mxu1 %v385_v41  ;;  %899 = vmatpush.msra.mxu3 %v385_v41 }
  0x11   : > { %1486 = vst [vmem:[#allocation3_spill] sm:$0xff] %v1010_v4  ;;  %v1012_v5 = vld [vmem:[%s327_s20 + $0x20] sm:$0xff]  ;;  %v390_v7 = vmul.f32 %v909_v2, %v1010_v4  ;;  %v1018_v9 = vld [vmem:[%s327_s20 + $0x28] sm:$0xff]  ;;  %v391_v12 = vmul.f32 %v909_v2, %v1014_v6  ;;  %v1026_v19 = vld [vmem:[%s327_s20 + $0x30] sm:$0xff]  ;;  %v392_v22 = vmul.f32 %v909_v2, %v1024_v18  ;;  %vm1123_vm2 = vcmp.ne.s32.totalorder %v347_v61, 0 }
  0x12   : > { %1487 = vst [vmem:[#allocation4_spill] sm:$0xff] %v1012_v5  ;;  %v394_v8 = vmul.f32 %v909_v2, %v1012_v5  ;;  %v395_v13 = vmul.f32 %v909_v2, %v1018_v9  ;;  %v396_v23 = vmul.f32 %v909_v2, %v1026_v19  ;;  %v1032_v26 = vld [vmem:[%s327_s20 + $0x18] sm:$0xff]  ;;  %v1064_v50 = vld [vmem:[%s1470_s5] ss:$0 sm:$0xff]  ;;  %v1080_v55 = vld [vmem:[%s1470_s5 + $0x5] ss:$0 sm:$0xff] }
  0x13   : > { %1488 = vst [vmem:[#allocation5_spill] sm:$0xff] %v1014_v6  ;;  %v401_v10 = vadd.f32 %v910_v3, %v390_v7  ;;  %v402_v16 = vadd.f32 %v910_v3, %v391_v12  ;;  %v403_v24 = vadd.f32 %v910_v3, %v392_v22  ;;  %v1034_v27 = vld [vmem:[%s327_s20 + $0x38] sm:$0xff]  ;;  %v393_v30 = vmul.f32 %v909_v2, %v1032_v26  ;;  %v1108_v12 = vld [vmem:[%s1470_s5 + $0x8] ss:$0 sm:$0xff] }
  0x14   : > { %1489 = vst [vmem:[#allocation6_spill] sm:$0xff] %v1018_v9  ;;  %v405_v11 = vadd.f32 %v910_v3, %v394_v8  ;;  %v406_v17 = vadd.f32 %v910_v3, %v395_v13  ;;  %v407_v25 = vadd.f32 %v910_v3, %v396_v23  ;;  %v397_v31 = vmul.f32 %v909_v2, %v1034_v27  ;;  %v502_v53 = vld [vmem:[#allocation2 + $0x7] sm:$0xff]  ;;  %v1095_v2 = vld [vmem:[%s1470_s5 + $0x2] ss:$0 sm:$0xff] }
  0x15   : > { %v409_v14 = vmax.f32 %v401_v10, 0.0  ;;  %1490 = vst [vmem:[#allocation7_spill] sm:$0xff] %v1024_v18  ;;  %v410_v20 = vmax.f32 %v402_v16, 0.0  ;;  %v411_v28 = vmax.f32 %v403_v24, 0.0  ;;  %v404_v32 = vadd.f32 %v910_v3, %v393_v30  ;;  %v560_v54 = vld [vmem:[#allocation2 + $0x8] sm:$0xff] }
  0x16   : > { %v413_v15 = vmax.f32 %v405_v11, 0.0  ;;  %1491 = vst [vmem:[#allocation8_spill] sm:$0xff] %v1026_v19  ;;  %v414_v21 = vmax.f32 %v406_v17, 0.0  ;;  %v415_v29 = vmax.f32 %v407_v25, 0.0  ;;  %v408_v33 = vadd.f32 %v910_v3, %v397_v31  ;;  %v1119_v16 = vld [vmem:[%s1470_s5 + $0x6] ss:$0 sm:$0xff] }
  0x17   : > { %871 = vmatmul.msk.f32.vlgmr.msra.gmra.mxu0 %vm420_vm0, %v409_v14  ;;  %1492 = vst [vmem:[#allocation9_spill] sm:$0xff] %v1032_v26  ;;  %v412_v34 = vmax.f32 %v404_v32, 0.0  ;;  %v512_v0 = vmul.f32 %v1064_v50, %v502_v53  ;;  %v570_v1 = vmul.f32 %v1074_v52, %v560_v54  ;;  %v1098_v3 = vadd.s32 40, %v1059_v49  ;;  %v1232_v53 = vld [vmem:[%s1471_s6] ss:$0 sm:$0xff] }
  0x18   : > { %875 = vmatmul.msk.f32.vlgmr.msra.gmra.mxu2 %vm420_vm0, %v413_v15  ;;  %1493 = vst [vmem:[#allocation10_spill] sm:$0xff] %v1034_v27  ;;  %v416_v35 = vmax.f32 %v408_v33, 0.0  ;;  %v1101_v7 = vadd.s32 24, %v1059_v49  ;;  %v1114_v15 = vld [vmem:[%s1470_s5 + $0x9] ss:$0 sm:$0xff]  ;;  %v348_v17 = vand.u32 7, %v1083_v59 }
  0x19   : > { %v349_v22 = vand.u32 7, %v1088_v62  ;;  %v1129_v23 = vadd.s32 48, %v1059_v49  ;;  %vm1140_vm3 = vcmp.ne.s32.totalorder %v347_v61, 7  ;;  %v1506_v27 = vand.u32 7, %v1098_v3 }
  0x1a   : > { %vm1147_vm4 = vcmp.ne.s32.totalorder %v348_v17, 0  ;;  %vm1208_vm5 = vcmp.ne.s32.totalorder %v348_v17, 7 }
  0x1b   : > { %vm1225_vm6 = vcmp.ne.s32.totalorder %v349_v22, 0  ;;  %vm1236_vm7 = vcmp.ne.s32.totalorder %v1506_v27, 0  ;;  %vm1247_vm8 = vcmp.ne.s32.totalorder %v349_v22, 7 }
  0x1f   : > { %872 = vmatmul.msk.f32.gmra.mxu0 %vm420_vm0, %v410_v20 }
  0x20   : > { %876 = vmatmul.msk.f32.gmra.mxu2 %vm420_vm0, %v414_v21 }
  0x27   : > { %873 = vmatmul.msk.f32.gmra.mxu0 %vm420_vm0, %v411_v28 }
  0x28   : > { %877 = vmatmul.msk.f32.gmra.mxu2 %vm420_vm0, %v415_v29 }
  0x2f   : > { %874 = vmatmul.msk.f32.gmra.mxu0 %vm420_vm0, %v412_v34 }
  0x30   : > { %878 = vmatmul.msk.f32.gmra.mxu2 %vm420_vm0, %v416_v35 }
  0x94   : > { %v462_v38 = vpop.f32.mrf.mxu0 }
  0x95   : > { %v463_v39 = vadd.f32 %v1049_v37, %v462_v38 }
  0x97   : > { %v486_v40 = vmax.f32 %v463_v39, 0.0 }
  0x99   : > { %494 = vst.msk [vmem:[#allocation2 + $0x10] sm:$0xff] %vm333_vm1, %v486_v40 }
  0x9b   : > { %v474_v42 = vpop.f32.mrf.mxu2 }
  0x9c   : > { %v475_v43 = vadd.f32 %v1049_v37, %v474_v42  ;;  %v465_v45 = vpop.f32.mrf.mxu0 }
  0x9d   : > { %v466_v47 = vadd.f32 %v1049_v37, %v465_v45 }
  0x9e   : > { %v490_v46 = vmax.f32 %v475_v43, 0.0 }
  0x9f   : > { %v487_v48 = vmax.f32 %v466_v47, 0.0 }
  0xa0   : > { %498 = vst.msk [vmem:[#allocation2 + $0x30] sm:$0xff] %vm333_vm1, %v490_v46  ;;  %v503_v57 = vld [vmem:[#allocation2 + $0xf] sm:$0xff] }
  0xa1   : > { %495 = vst.msk [vmem:[#allocation2 + $0x18] sm:$0xff] %vm333_vm1, %v487_v48  ;;  %v561_v58 = vld [vmem:[#allocation2 + $0x10] sm:$0xff]  ;;  %v524_v11 = vmul.f32 %v1069_v51, %v503_v57  ;;  %v513_v30 = vmul.f32 %v1064_v50, %v503_v57 }
  0xa2   : > { %v581_v13 = vmul.f32 %v1080_v55, %v561_v58  ;;  %v616_v14 = vld [vmem:[#allocation2 + $0x9] sm:$0xff]  ;;  %v571_v44 = vmul.f32 %v1074_v52, %v561_v58  ;;  %v1164_v58 = vadd.s32 56, %v1059_v49 }
  0xa3   : > { %v477_v56 = vpop.f32.mrf.mxu2  ;;  %v626_v29 = vmul.f32 %v1095_v2, %v616_v14  ;;  %v532_v33 = vadd.f32 %v524_v11, %v512_v0  ;;  %v1170_v0 = vld [vmem:[%s1470_s5 + $0xa] ss:$0 sm:$0xff] }
  0xa4   : > { %v478_v60 = vadd.f32 %v1049_v37, %v477_v56  ;;  %v468_v63 = vpop.f32.mrf.mxu0  ;;  %v589_v35 = vadd.f32 %v581_v13, %v570_v1 }
  0xa5   : > { %v469_v10 = vadd.f32 %v1049_v37, %v468_v63 }
  0xa6   : > { %v491_v8 = vmax.f32 %v478_v60, 0.0 }
  0xa7   : > { %v488_v20 = vmax.f32 %v469_v10, 0.0  ;;  %v1138_v38 = vld [vmem:[#allocation2 + $0x30] sm:$0xff] }
  0xa8   : > { %499 = vst.msk [vmem:[#allocation2 + $0x38] sm:$0xff] %vm333_vm1, %v491_v8  ;;  %v504_v24 = vld [vmem:[#allocation2 + $0x17] sm:$0xff]  ;;  %v575_v57 = vmul.f32 %v1074_v52, %v1138_v38  ;;  %v1161_v60 = vmul.f32 %v1114_v15, %v1138_v38 }
  0xa9   : > { %v562_v25 = vld [vmem:[#allocation2 + $0x18] sm:$0xff]  ;;  %496 = vst.msk [vmem:[#allocation2 + $0x20] sm:$0xff] %vm333_vm1, %v488_v20  ;;  %v544_v34 = vmul.f32 %v1108_v12, %v504_v24  ;;  %v525_v43 = vmul.f32 %v1069_v51, %v504_v24  ;;  %v514_v8 = vmul.f32 %v1064_v50, %v504_v24 }
  0xaa   : > { %v617_v28 = vld [vmem:[#allocation2 + $0x11] sm:$0xff]  ;;  %v600_v36 = vmul.f32 %v1114_v15, %v562_v25  ;;  %v582_v45 = vmul.f32 %v1080_v55, %v562_v25 }
  0xab   : > { %v480_v39 = vpop.f32.mrf.mxu2  ;;  %v637_v41 = vmul.f32 %v1119_v16, %v617_v28  ;;  %v552_v47 = vadd.f32 %v544_v34, %v532_v33  ;;  %v627_v56 = vmul.f32 %v1095_v2, %v617_v28  ;;  %v533_v11 = vadd.f32 %v525_v43, %v513_v30 }
  0xac   : > { %v481_v46 = vadd.f32 %v1049_v37, %v480_v39  ;;  %v608_v48 = vadd.f32 %v600_v36, %v589_v35  ;;  %v471_v54 = vpop.f32.mrf.mxu0  ;;  %v590_v13 = vadd.f32 %v582_v45, %v571_v44  ;;  %v572_v33 = vmul.f32 %v1074_v52, %v562_v25 }
  0xad   : > { %v472_v63 = vadd.f32 %v1049_v37, %v471_v54  ;;  %v672_v1 = vsel %vm1123_vm2, %v552_v47, 0.0  ;;  %v645_v10 = vadd.f32 %v637_v41, %v626_v29  ;;  %v1185_v36 = vadd.s32 32, %v1059_v49 }
  0xae   : > { %v492_v61 = vmax.f32 %v481_v46, 0.0  ;;  %v688_v35 = vadd.f32 %v672_v1, %v608_v48 }
  0xaf   : > { %v1175_v14 = vld [vmem:[#allocation2 + $0x37] sm:$0xff]  ;;  %v489_v34 = vmax.f32 %v472_v63, 0.0 }
  0xb0   : > { %v1177_v20 = vld [vmem:[#allocation2 + $0x38] sm:$0xff]  ;;  %500 = vst.msk [vmem:[#allocation2 + $0x40] sm:$0xff] %vm333_vm1, %v492_v61  ;;  %v563_v30 = vld [vmem:[#allocation2 + $0x20] sm:$0xff]  ;;  %v1189_v39 = vmul.f32 %v1069_v51, %v1175_v14  ;;  %v1199_v43 = vmul.f32 %v1064_v50, %v1175_v14 }
  0xb1   : > { %1500 = vst [vmem:[#allocation11_spill] sm:$0xff] %v1177_v20  ;;  %v1179_v28 = vld [vmem:[#allocation2 + $0x31] sm:$0xff]  ;;  %v618_v24 = vld [vmem:[#allocation2 + $0x19] sm:$0xff]  ;;  %v586_v41 = vmul.f32 %v1080_v55, %v1177_v20  ;;  %v601_v45 = vmul.f32 %v1114_v15, %v563_v30  ;;  %v583_v61 = vmul.f32 %v1080_v55, %v563_v30  ;;  %v1216_v63 = vmul.f32 %v1074_v52, %v1177_v20 }
  0xb2   : > { %1501 = vst [vmem:[#allocation12_spill] sm:$0xff] %v1179_v28  ;;  %v505_v29 = vld [vmem:[#allocation2 + $0x1f] sm:$0xff]  ;;  %v1195_v25 = vmul.f32 %v1095_v2, %v1179_v28  ;;  %v656_v49 = vmul.f32 %v1170_v0, %v618_v24  ;;  %v638_v46 = vmul.f32 %v1119_v16, %v618_v24  ;;  %v1220_v1 = vmul.f32 %v1170_v0, %v1179_v28 }
  0xb3   : > { %497 = vst.msk [vmem:[#allocation2 + $0x28] sm:$0xff] %vm333_vm1, %v489_v34  ;;  %v545_v44 = vmul.f32 %v1108_v12, %v505_v29  ;;  %v483_v47 = vpop.f32.mrf.mxu2  ;;  %v526_v54 = vmul.f32 %v1069_v51, %v505_v29  ;;  %v609_v17 = vadd.f32 %v601_v45, %v590_v13  ;;  %v597_v13 = vld [vmem:[#allocation2 + $0x50] sm:$0xff]  ;;  %v591_v27 = vadd.f32 %v583_v61, %v572_v33 }
  0xb4   : > { %v484_v34 = vadd.f32 %v1049_v37, %v483_v47  ;;  %v664_v21 = vadd.f32 %v656_v49, %v645_v10  ;;  %v646_v31 = vadd.f32 %v638_v46, %v627_v56  ;;  %v594_v37 = vadd.f32 %v586_v41, %v575_v57 }
  0xb5   : > { %v553_v59 = vadd.f32 %v545_v44, %v533_v11  ;;  %v534_v10 = vadd.f32 %v526_v54, %v514_v8  ;;  %v628_v11 = vmul.f32 %v1095_v2, %v618_v24  ;;  %v1256_v40 = vmul.f32 %v1064_v50, %v505_v29 }
  0xb6   : > { %v493_v49 = vmax.f32 %v484_v34, 0.0  ;;  %v680_v44 = vsel %vm1140_vm3, %v664_v21, 0.0  ;;  %v1259_v42 = vmul.f32 %v1074_v52, %v563_v30  ;;  %v1512_v30 = vand.u32 7, %v1098_v3 }
  0xb7   : > { %v673_v45 = vsel %vm1147_vm4, %v553_v59, 0.0  ;;  %v696_v46 = vadd.f32 %v688_v35, %v680_v44  ;;  %v509_v8 = vld [vmem:[#allocation2 + $0x3f] sm:$0xff]  ;;  %v1268_v35 = vmul.f32 %v1114_v15, %v597_v13  ;;  %v1515_v34 = vand.u32 7, %v1129_v23 }
  0xb8   : > { %v689_v57 = vadd.f32 %v673_v45, %v609_v17  ;;  %v1251_v41 = vld [vmem:[#allocation2 + $0x40] sm:$0xff]  ;;  %501 = vst.msk [vmem:[#allocation2 + $0x48] sm:$0xff] %vm333_vm1, %v493_v49  ;;  %v549_v62 = vmul.f32 %v1108_v12, %v509_v8  ;;  %vm1275_vm9 = vcmp.ne.s32.totalorder %v1512_v30, 7  ;;  %v530_v17 = vmul.f32 %v1069_v51, %v509_v8 }
  0xb9   : > { %v1253_v24 = vld [vmem:[#allocation2 + $0x39] sm:$0xff]  ;;  %v605_v22 = vmul.f32 %v1114_v15, %v1251_v41  ;;  %v707_v21 = vadd.f32 %v1232_v53, %v696_v46  ;;  %vm1285_vm10 = vcmp.ne.s32.totalorder %v1515_v34, 0  ;;  %v587_v13 = vmul.f32 %v1080_v55, %v1251_v41 }
  0xba   : > { %1511 = vst [vmem:[#allocation13_spill] sm:$0xff] %v1253_v24  ;;  %v642_v33 = vmul.f32 %v1119_v16, %v1253_v24  ;;  %v1271_v29 = vld [vmem:[#allocation2 + $0x21] sm:$0xff]  ;;  %v1279_v54 = vld [vmem:[#allocation2 + $0x2f] sm:$0xff]  ;;  %v632_v3 = vmul.f32 %v1095_v2, %v1253_v24  ;;  %v1303_v34 = vmul.f32 %v1064_v50, %v509_v8  ;;  %v1518_v8 = vand.u32 7, %v1101_v7 }
  0xbb   : > { %v1281_v61 = vld [vmem:[#allocation2 + $0x27] sm:$0xff]  ;;  %v657_v49 = vmul.f32 %v1170_v0, %v1271_v29  ;;  %v517_v44 = vmul.f32 %v1064_v50, %v1279_v54  ;;  %v613_v45 = vadd.f32 %v605_v22, %v594_v37  ;;  %v715_v19 = vmax.f32 %v707_v21, 0.0 }
  0xbc   : > { %v1298_v46 = vld [vmem:[#allocation2 + $0x28] sm:$0xff]  ;;  %v546_v26 = vmul.f32 %v1108_v12, %v1281_v61  ;;  %v639_v18 = vmul.f32 %v1119_v16, %v1271_v29  ;;  %v650_v22 = vadd.f32 %v642_v33, %v1195_v25  ;;  %vm1317_vm11 = vcmp.ne.s32.totalorder %v1518_v8, 0 }
  0xbd   : > { %v1300_v30 = vld [vmem:[#allocation2 + $0x29] sm:$0xff]  ;;  %v602_v9 = vmul.f32 %v1114_v15, %v1298_v46  ;;  %v665_v6 = vadd.f32 %v657_v49, %v646_v31  ;;  %v537_v37 = vadd.f32 %v1189_v39, %v517_v44  ;;  %885 = vmatmul.msk.f32.vlgmr.msra.gmra.mxu1 %vm333_vm1, %v715_v19  ;;  %v1521_v31 = vand.u32 7, %v1129_v23 }
  0xbe   : > { %v658_v4 = vmul.f32 %v1170_v0, %v1300_v30  ;;  %v554_v24 = vadd.f32 %v546_v26, %v534_v10  ;;  %v647_v28 = vadd.f32 %v639_v18, %v628_v11  ;;  %v538_v25 = vadd.f32 %v530_v17, %v1199_v43 }
  0xbf   : > { %v610_v20 = vadd.f32 %v602_v9, %v591_v27  ;;  %vm1324_vm12 = vcmp.ne.s32.totalorder %v1521_v31, 7  ;;  %v681_v33 = vsel %vm1208_vm5, %v665_v6, 0.0  ;;  %v557_v49 = vadd.f32 %v549_v62, %v537_v37  ;;  %v623_v9 = vld [vmem:[#allocation2 + $0x41] sm:$0xff] }
  0xc0   : > { %v595_v44 = vadd.f32 %v587_v13, %v1216_v63  ;;  %v527_v19 = vmul.f32 %v1069_v51, %v1281_v61  ;;  %v697_v26 = vadd.f32 %v689_v57, %v681_v33  ;;  %v666_v18 = vadd.f32 %v658_v4, %v647_v28  ;;  %v520_v10 = vld [vmem:[#allocation2 + $0x47] sm:$0xff] }
  0xc1   : > { %v674_v23 = vsel %vm1225_vm6, %v554_v24, 0.0  ;;  %v578_v11 = vld [vmem:[#allocation2 + $0x48] sm:$0xff]  ;;  %v547_v43 = vmul.f32 %v1108_v12, %v1279_v54  ;;  %v661_v48 = vmul.f32 %v1170_v0, %v623_v9  ;;  %v677_v6 = vsel %vm1236_vm7, %v557_v49, 0.0 }
  0xc2   : > { %v690_v63 = vadd.f32 %v674_v23, %v610_v20  ;;  %v550_v27 = vmul.f32 %v1108_v12, %v520_v10  ;;  %v708_v57 = vadd.f32 %v1232_v53, %v697_v26  ;;  %v682_v4 = vsel %vm1247_vm8, %v666_v18, 0.0  ;;  %v634_v28 = vld [vmem:[#allocation2 + $0x49] sm:$0xff] }
  0xc3   : > { %v606_v32 = vmul.f32 %v1114_v15, %v578_v11  ;;  %v1524_v24 = vmov %v1518_v8  ;;  %v584_v5 = vmul.f32 %v1080_v55, %v1298_v46  ;;  %v669_v20 = vadd.f32 %v661_v48, %v650_v22 }
  0xc4   : > { %vm1348_vm13 = vcmp.ne.s32.totalorder %v1524_v24, 7  ;;  %v698_v17 = vadd.f32 %v690_v63, %v682_v4  ;;  %v558_v13 = vadd.f32 %v550_v27, %v538_v25  ;;  %v643_v37 = vmul.f32 %v1119_v16, %v623_v9 }
  0xc5   : > { %v1527_v56 = vand.u32 7, %v1164_v58  ;;  %v716_v31 = vmax.f32 %v708_v57, 0.0  ;;  %v693_v7 = vadd.f32 %v677_v6, %v613_v45  ;;  %v614_v33 = vadd.f32 %v606_v32, %v595_v44  ;;  %v540_v45 = vld [vmem:[#allocation2 + $0x4f] sm:$0xff] }
  0xc6   : > { %v535_v49 = vadd.f32 %v527_v19, %v1256_v40  ;;  %v685_v26 = vsel %vm1275_vm9, %v669_v20, 0.0  ;;  %v651_v18 = vadd.f32 %v643_v37, %v632_v3  ;;  %v662_v22 = vmul.f32 %v1170_v0, %v634_v28  ;;  %v653_v32 = vld [vmem:[#allocation2 + $0x51] sm:$0xff] }
  0xc7   : > { %vm1357_vm14 = vcmp.ne.s32.totalorder %v1527_v56, 0  ;;  %v678_v25 = vsel %vm1285_vm10, %v558_v13, 0.0  ;;  %886 = vmatmul.msk.f32.gmra.mxu1 %vm333_vm1, %v716_v31  ;;  %v701_v23 = vadd.f32 %v693_v7, %v685_v26  ;;  %v592_v27 = vadd.f32 %v584_v5, %v1259_v42 }
  0xc8   : > { %v694_v48 = vadd.f32 %v678_v25, %v614_v33  ;;  %v555_v63 = vadd.f32 %v547_v43, %v535_v49  ;;  %v709_v44 = vadd.f32 %v1232_v53, %v698_v17  ;;  %v670_v40 = vadd.f32 %v662_v22, %v651_v18  ;;  %v1535_v22 = vld [vmem:[#allocation12_spill] sm:$0xff] }
  0xc9   : > { %v629_v47 = vmul.f32 %v1095_v2, %v1271_v29  ;;  %v640_v3 = vmul.f32 %v1119_v16, %v1300_v30  ;;  %v712_v59 = vadd.f32 %v1232_v53, %v701_v23  ;;  %v611_v19 = vadd.f32 %v1161_v60, %v592_v27 }
  0xca   : > { %v675_v6 = vsel %vm1317_vm11, %v555_v63, 0.0  ;;  %v531_v43 = vmul.f32 %v1069_v51, %v520_v10  ;;  %v686_v42 = vsel %vm1324_vm12, %v670_v40, 0.0  ;;  %v551_v4 = vmul.f32 %v1108_v12, %v540_v45 }
  0xcb   : > { %v648_v57 = vadd.f32 %v640_v3, %v629_v47  ;;  %v577_v29 = vmul.f32 %v1074_v52, %v1251_v41  ;;  %v720_v24 = vmax.f32 %v712_v59, 0.0  ;;  %v702_v5 = vadd.f32 %v694_v48, %v686_v42  ;;  %v1536_v48 = vld [vmem:[#allocation11_spill] sm:$0xff] }
  0xcc   : > { %v691_v20 = vadd.f32 %v675_v6, %v611_v19  ;;  %v539_v60 = vadd.f32 %v531_v43, %v1303_v34  ;;  %v588_v17 = vmul.f32 %v1080_v55, %v578_v11  ;;  %v633_v10 = vmul.f32 %v1095_v2, %v623_v9  ;;  %v922_v19 = vld [vmem:[%s1473_s8] ss:$0 sm:$0xff] }
  0xcd   : > { %v667_v21 = vadd.f32 %v1220_v1, %v648_v57  ;;  %v644_v39 = vmul.f32 %v1119_v16, %v634_v28  ;;  %890 = vmatmul.msk.f32.vlgmr.msra.gmra.mxu3 %vm333_vm1, %v720_v24  ;;  %v717_v13 = vmax.f32 %v709_v44, 0.0  ;;  %v663_v41 = vmul.f32 %v1170_v0, %v653_v32  ;;  %v1538_v42 = vld [vmem:[#allocation3_spill] sm:$0xff] }
  0xce   : > { %v559_v37 = vadd.f32 %v551_v4, %v539_v60  ;;  %v351_v56 = vand.u32 7, %v1185_v36  ;;  %v596_v34 = vadd.f32 %v588_v17, %v577_v29  ;;  %v585_v1 = vmul.f32 %v1080_v55, %v1138_v38  ;;  %v1539_v29 = vld [vmem:[#allocation5_spill] sm:$0xff] }
  0xcf   : > { %v683_v31 = vsel %vm1348_vm13, %v667_v21, 0.0  ;;  %v652_v7 = vadd.f32 %v644_v39, %v633_v10  ;;  %887 = vmatmul.msk.f32.gmra.mxu1 %vm333_vm1, %v717_v13  ;;  %v713_v9 = vadd.f32 %v1232_v53, %v702_v5  ;;  %v516_v33 = vmul.f32 %v1064_v50, %v1281_v61  ;;  %v1541_v10 = vld [vmem:[#allocation6_spill] sm:$0xff] }
  0xd0   : > { %v699_v11 = vadd.f32 %v691_v20, %v683_v31  ;;  %v679_v28 = vsel %vm1357_vm14, %v559_v37, 0.0  ;;  %v1530_v36 = vand.u32 7, %v1164_v58  ;;  %v615_v49 = vadd.f32 %v1268_v35, %v596_v34  ;;  %v1540_v20 = vld [vmem:[#allocation7_spill] sm:$0xff] }
  0xd1   : > { %v671_v55 = vadd.f32 %v663_v41, %v652_v7  ;;  %v528_v38 = vmul.f32 %v1069_v51, %v1279_v54  ;;  %vm1412_vm2 = vcmp.ne.s32.totalorder %v351_v56, 0  ;;  %v574_v50 = vmul.f32 %v1074_v52, %v1298_v46  ;;  %v1542_v41 = vld [vmem:[#allocation9_spill] sm:$0xff]  ;;  %v1543_v7 = vld [vmem:[#allocation8_spill] sm:$0xff] }
  0xd2   : > { %vm1404_vm15 = vcmp.ne.s32.totalorder %v1530_v36, 7  ;;  %v710_v26 = vadd.f32 %v1232_v53, %v699_v11  ;;  %v630_v58 = vmul.f32 %v1095_v2, %v1300_v30  ;;  %v695_v61 = vadd.f32 %v679_v28, %v615_v49  ;;  %v1537_v2 = vld [vmem:[#allocation13_spill] sm:$0xff]  ;;  %v1544_v28 = vld [vmem:[#allocation4_spill] sm:$0xff]  ;;  %v1545_v49 = vld [vmem:[#allocation10_spill] sm:$0xff] }
  0xd3   : > { %v536_v18 = vadd.f32 %v528_v38, %v516_v33  ;;  %v548_v35 = vmul.f32 %v1108_v12, %v1175_v14  ;;  %v641_v51 = vmul.f32 %v1119_v16, %v1535_v22  ;;  %v721_v54 = vmax.f32 %v713_v9, 0.0 }
  0xd4   : > { %v687_v25 = vsel %vm1404_vm15, %v671_v55, 0.0  ;;  %v593_v23 = vadd.f32 %v585_v1, %v574_v50  ;;  %v604_v63 = vmul.f32 %v1114_v15, %v1536_v48  ;;  %v660_v30 = vmul.f32 %v1170_v0, %v1537_v2 }
  0xd5   : > { %v703_v52 = vadd.f32 %v695_v61, %v687_v25  ;;  %v556_v46 = vadd.f32 %v548_v35, %v536_v18  ;;  %v649_v27 = vadd.f32 %v641_v51, %v630_v58  ;;  %891 = vmatmul.msk.f32.gmra.mxu3 %vm333_vm1, %v721_v54  ;;  %v718_v12 = vmax.f32 %v710_v26, 0.0 }
  0xd6   : > { %vm367_vm3 = vcmp.ne.s32.totalorder %v351_v56, 7  ;;  %v612_v14 = vadd.f32 %v604_v63, %v593_v23 }
  0xd7   : > { %v668_v16 = vadd.f32 %v660_v30, %v649_v27  ;;  %v676_v45 = vsel %vm1412_vm2, %v556_v46, 0.0  ;;  %888 = vmatmul.msk.f32.gmra.mxu1 %vm333_vm1, %v718_v12  ;;  %v714_v15 = vadd.f32 %v1232_v53, %v703_v52 }
  0xd8   : > { %v692_v44 = vadd.f32 %v676_v45, %v612_v14 }
  0xd9   : > { %v684_v40 = vsel %vm367_vm3, %v668_v16, 0.0  ;;  %v722_v3 = vmax.f32 %v714_v15, 0.0 }
  0xda   : > { %v700_v47 = vadd.f32 %v692_v44, %v684_v40 }
  0xdc   : > { %v711_v0 = vadd.f32 %v1232_v53, %v700_v47 }
  0xdd   : > { %892 = vmatmul.msk.f32.gmra.mxu3 %vm333_vm1, %v722_v3 }
  0xde   : > { %v719_v59 = vmax.f32 %v711_v0, 0.0 }
  0xe0   : > { %889 = vmatmul.msk.f32.gmra.mxu1 %vm333_vm1, %v719_v59 }
 0x13a   : > { %v767_v6 = vpop.f32.mrf.mxu1 }
 0x13b   : > { %v768_v43 = vadd.f32 %v922_v19, %v767_v6 }
 0x13d   : > { %v791_v57 = vadd.f32 %v768_v43, %v1538_v42 }
 0x13f   : > { %799 = vst.msk [vmem:[%s332_s14] sm:$0xff] %vm420_vm0, %v791_v57 }
 0x144   : > { %v770_v53 = vpop.f32.mrf.mxu1 }
 0x145   : > { %v771_v4 = vadd.f32 %v922_v19, %v770_v53 }
 0x147   : > { %v792_v32 = vadd.f32 %v771_v4, %v1539_v29 }
 0x149   : > { %800 = vst.msk [vmem:[%s332_s14 + $0x8] sm:$0xff] %vm420_vm0, %v792_v32 }
 0x14c   : > { %v773_v24 = vpop.f32.mrf.mxu1 }
 0x14d   : > { %v774_v5 = vadd.f32 %v922_v19, %v773_v24 }
 0x14f   : > { %v793_v60 = vadd.f32 %v774_v5, %v1540_v20 }
 0x150   : > { %v782_v21 = vpop.f32.mrf.mxu3 }
 0x151   : > { %801 = vst.msk [vmem:[%s332_s14 + $0x10] sm:$0xff] %vm420_vm0, %v793_v60  ;;  %v783_v17 = vadd.f32 %v922_v19, %v782_v21 }
 0x153   : > { %v796_v39 = vadd.f32 %v783_v17, %v1541_v10 }
 0x154   : > { %v776_v13 = vpop.f32.mrf.mxu1 }
 0x155   : > { %804 = vst.msk [vmem:[%s332_s14 + $0x28] sm:$0xff] %vm420_vm0, %v796_v39  ;;  %v777_v37 = vadd.f32 %v922_v19, %v776_v13 }
 0x157   : > { %v794_v56 = vadd.f32 %v777_v37, %v1542_v41 }
 0x158   : > { %v785_v31 = vpop.f32.mrf.mxu3 }
 0x159   : > { %802 = vst.msk [vmem:[%s332_s14 + $0x18] sm:$0xff] %vm420_vm0, %v794_v56  ;;  %v786_v34 = vadd.f32 %v922_v19, %v785_v31 }
 0x15b   : > { %v797_v1 = vadd.f32 %v786_v34, %v1543_v7 }
 0x15d   : > { %v779_v9 = vpop.f32.mrf.mxu1  ;;  %805 = vst.msk [vmem:[%s332_s14 + $0x30] sm:$0xff] %vm420_vm0, %v797_v1 }
 0x15e   : > { %v780_v11 = vadd.f32 %v922_v19, %v779_v9 }
 0x160   : > { %v795_v33 = vadd.f32 %v780_v11, %v1544_v28  ;;  %v788_v36 = vpop.f32.mrf.mxu3 }
 0x161   : > { %v789_v62 = vadd.f32 %v922_v19, %v788_v36 }
 0x162   : > { %803 = vst.msk [vmem:[%s332_s14 + $0x20] sm:$0xff] %vm420_vm0, %v795_v33 }
 0x163   : > { %v798_v55 = vadd.f32 %v789_v62, %v1545_v49 }
 0x165   : > { %806 = vst.msk [vmem:[%s332_s14 + $0x38] sm:$0xff] %vm420_vm0, %v798_v55 }
 0x166 PF: > { %s19_s30 = sadd.s32 1, %s929_s30  }
 0x167   : > { %p16_p4 = scmp.ge.s32.totalorder %s19_s30, 4  }
 0x169   :  { %18 = sbr.rel (!%p16_p4) target bundleno = 1 (0x1), region = 88 }

// kernel: hourglass_forward.12
= control target key start
LH: loop header
LB: loop body
LE: loop exit
PB: predicated region body
PF: predicated region fallthrough
CT: control target
= control target key end

     0   :  { %s844_s17 = smov 0   ;;  %s974_s0 = inlined_call_operand.vmem [shape: f32[2,16,16], index: 0, kind: input, shape index: {}]   ;;  %s975_s1 = inlined_call_operand.vmem [shape: f32[2,32,32], index: 1, kind: input, shape index: {}]   ;;  %s976_s2 = inlined_call_operand.vmem [shape: f32[16,32], index: 2, kind: input, shape index: {}]   ;;  %s977_s3 = inlined_call_operand.vmem [shape: f32[1,16], index: 3, kind: input, shape index: {}]   ;;  %s978_s4 = inlined_call_operand.vmem [shape: f32[1,16], index: 4, kind: input, shape index: {}]   ;;  %s979_s5 = inlined_call_operand.vmem [shape: f32[1,16,8], index: 5, kind: input, shape index: {}]   ;;  %s980_s6 = inlined_call_operand.vmem [shape: f32[1,8], index: 6, kind: input, shape index: {}]   ;;  %s981_s7 = inlined_call_operand.vmem [shape: f32[1,3,3,8], index: 7, kind: input, shape index: {}]   ;;  %s982_s8 = inlined_call_operand.vmem [shape: f32[1,8], index: 8, kind: input, shape index: {}]   ;;  %s983_s9 = inlined_call_operand.vmem [shape: f32[1,8,16], index: 9, kind: input, shape index: {}]   ;;  %s984_s10 = inlined_call_operand.vmem [shape: f32[1,16], index: 10, kind: input, shape index: {}]   ;;  %s985_s11 = inlined_call_operand.vmem [shape: f32[2,32,32], index: 11, kind: output, shape index: {}]  }
   0x1 LB: > { %s722_s18 = sadd.s32 4294967295, %s781_s17   ;;  %p726_p0 = scmp.ge.s32.totalorder %s781_s17, 1  ;;  %s781_s17 = sphi %s844_s17, %s21_s17  }
   0x2   : > { %p347_p1 = scmp.lt.s32.totalorder %s781_s17, 3 }
   0x4   : > { %p348_p2 = pnand %p726_p0, %p347_p1 }
   0x5   : > { %p392_p3 = scmp.lt.s32.totalorder (!%p348_p2), %s722_s18, 1 }
   0x6   : > { %351 = sbr.rel (%p348_p2) target bundleno = 465 (0x1d1), region = 64 }
   0xb   : > { %v424_v0 = vld [vmem:[%s979_s5 + $0x8] sm:$0xff]  ;;  %v423_v1 = vld [vmem:[%s979_s5] sm:$0xff]  ;;  %s993_s18 = smov (!%p392_p3, %s722_s18), 1  ;;  %vm407_vm0 = vcmask 64512   ;;  %v783_v3 = vmov 0.0   ;;  %vm444_vm1 = vcmask 130048   ;;  %v410_v15 = vlaneseq }
   0xc   : > { %750 = vmatpush.msra.mxu3 %v424_v0  ;;  %465 = vmatpush.msra.mxu0 %v424_v0  ;;  %v761_v2 = vld [vmem:[%s977_s3] ss:$0 sm:$0xff]  ;;  %408 = vst.msk [vmem:[#allocation2] sm:$0xff] %vm407_vm0, %v783_v3  ;;  %s747_s25 = sshll.u32 %s993_s18, 4  ;;  %v765_v25 = vld [vmem:[%s981_s7 + $0x4] ss:$0 sm:$0xff] }
   0xd   : > { %v762_v4 = vld [vmem:[%s978_s4] ss:$0 sm:$0xff]  ;;  %409 = vst.msk [vmem:[#allocation2 + $0x18] sm:$0xff] %vm407_vm0, %v783_v3  ;;  %s396_s30 = scalar_lea.vmem %s974_s0, %s747_s25  ;;  %v411_v20 = vshrl.u32 %v410_v15, 7  ;;  %v767_v26 = vld [vmem:[%s981_s7 + $0x1] ss:$0 sm:$0xff] }
   0xe   : > { %751 = vmatpush.msra.mxu3 %v423_v1  ;;  %466 = vmatpush.msra.mxu0 %v423_v1  ;;  %v872_v5 = vld [vmem:[%s396_s30 + $0x8] sm:$0xff]  ;;  %v875_v8 = vld [vmem:[%s396_s30] sm:$0xff]  ;;  %vm623_vm6 = vcmask 261120   ;;  %s748_s27 = sshll.u32 %s993_s18, 5  ;;  %vm629_vm7 = vcmask 257024  }
   0xf   : > { %v433_v6 = vmul.f32 %v761_v2, %v872_v5  ;;  %v432_v9 = vmul.f32 %v761_v2, %v875_v8  ;;  %v427_v13 = vld [vmem:[%s983_s9] sm:$0xff]  ;;  %v887_v23 = vadd.s32 8, %v411_v20  ;;  %v766_v27 = vld [vmem:[%s981_s7 + $0x8] ss:$0 sm:$0xff]  ;;  %v413_v30 = vand.u32 3, %v411_v20  ;;  %s401_s30 = scalar_lea.vmem %s975_s1, %s748_s27  ;;  %s406_s14 = scalar_lea.vmem %s985_s11, %s748_s27 }
  0x10   : > { %582 = vmatpush.msra.mxu1 %v427_v13  ;;  %v763_v14 = vld [vmem:[%s980_s6] ss:$0 sm:$0xff]  ;;  %v768_v28 = vld [vmem:[%s981_s7 + $0x5] ss:$0 sm:$0xff]  ;;  %v770_v29 = vld [vmem:[%s981_s7 + $0x2] ss:$0 sm:$0xff] }
  0x11   : > { %v438_v7 = vadd.f32 %v762_v4, %v433_v6  ;;  %v437_v11 = vadd.f32 %v762_v4, %v432_v9  ;;  %v764_v24 = vld [vmem:[%s981_s7] ss:$0 sm:$0xff]  ;;  %v769_v31 = vld [vmem:[%s981_s7 + $0x9] ss:$0 sm:$0xff]  ;;  %v771_v32 = vld [vmem:[%s981_s7 + $0x6] ss:$0 sm:$0xff] }
  0x12   : > { %v414_v33 = vand.u32 3, %v887_v23  ;;  %v772_v42 = vld [vmem:[%s981_s7 + $0xa] ss:$0 sm:$0xff]  ;;  %vm918_vm2 = vcmp.ne.s32.totalorder %v413_v30, 0  ;;  %vm922_vm3 = vcmp.ne.s32.totalorder %v413_v30, 3 }
  0x13   : > { %v440_v10 = vmax.f32 %v438_v7, 0.0  ;;  %v439_v12 = vmax.f32 %v437_v11, 0.0  ;;  %v627_v44 = vld [vmem:[%s401_s30] sm:$0xf]  ;;  %v631_v45 = vld [vmem:[%s401_s30 + $0x4] sm:$0xf] }
  0x14   : > { %vm926_vm4 = vcmp.ne.s32.totalorder %v414_v33, 0  ;;  %vm418_vm5 = vcmp.ne.s32.totalorder %v414_v33, 3  ;;  %v592_v33 = vld [vmem:[%s976_s2] sm:$0xff] }
  0x15   : > { %734 = vmatmul.msk.f32.vlgmr.msra.gmra.mxu3 %vm444_vm1, %v440_v10  ;;  %733 = vmatmul.msk.f32.vlgmr.msra.gmra.mxu0 %vm444_vm1, %v439_v12 }
  0x92   : > { %v468_v16 = vpop.f32.mrf.mxu0 }
  0x93   : > { %v469_v17 = vadd.f32 %v763_v14, %v468_v16 }
  0x95   : > { %v474_v18 = vmax.f32 %v469_v17, 0.0 }
  0x97   : > { %476 = vst.msk [vmem:[#allocation2 + $0x8] sm:$0xff] %vm407_vm0, %v474_v18 }
  0x98   : > { %v471_v19 = vpop.f32.mrf.mxu3 }
  0x99   : > { %v472_v21 = vadd.f32 %v763_v14, %v471_v19  ;;  %v773_v19 = vld [vmem:[%s982_s8] ss:$0 sm:$0xff] }
  0x9b   : > { %v475_v22 = vmax.f32 %v472_v21, 0.0 }
  0x9d   : > { %477 = vst.msk [vmem:[#allocation2 + $0x10] sm:$0xff] %vm407_vm0, %v475_v22 }
  0x9e   : > { %v478_v34 = vld [vmem:[#allocation2 + $0x3] sm:$0xff] }
  0x9f   : > { %v484_v35 = vld [vmem:[#allocation2 + $0x7] sm:$0xff]  ;;  %v482_v37 = vmul.f32 %v764_v24, %v478_v34 }
  0xa0   : > { %v501_v36 = vld [vmem:[#allocation2 + $0x4] sm:$0xff]  ;;  %v489_v38 = vmul.f32 %v765_v25, %v484_v35 }
  0xa1   : > { %v505_v39 = vmul.f32 %v767_v26, %v501_v36  ;;  %v507_v40 = vld [vmem:[#allocation2 + $0x8] sm:$0xff]  ;;  %v774_v36 = vld [vmem:[%s984_s10] ss:$0 sm:$0xff] }
  0xa2   : > { %v522_v41 = vld [vmem:[#allocation2 + $0x5] sm:$0xff]  ;;  %v511_v43 = vmul.f32 %v768_v28, %v507_v40  ;;  %v491_v47 = vadd.f32 %v489_v38, %v482_v37 }
  0xa3   : > { %v526_v54 = vmul.f32 %v770_v29, %v522_v41  ;;  %v593_v35 = vld [vmem:[%s976_s2 + $0x8] sm:$0xff] }
  0xa4   : > { %v479_v46 = vld [vmem:[#allocation2 + $0xb] sm:$0xff]  ;;  %v513_v52 = vadd.f32 %v511_v43, %v505_v39  ;;  %v493_v57 = vld [vmem:[#allocation2 + $0x13] sm:$0xff]  ;;  %614 = vmatpush.msra.mxu2 %v593_v35 }
  0xa5   : > { %v502_v48 = vld [vmem:[#allocation2 + $0xc] sm:$0xff]  ;;  %v497_v51 = vmul.f32 %v766_v27, %v479_v46  ;;  %v483_v60 = vmul.f32 %v764_v24, %v479_v46  ;;  %v515_v63 = vld [vmem:[#allocation2 + $0x14] sm:$0xff]  ;;  %v498_v9 = vmul.f32 %v766_v27, %v493_v57 }
  0xa6   : > { %v523_v49 = vld [vmem:[#allocation2 + $0xd] sm:$0xff]  ;;  %v518_v53 = vmul.f32 %v769_v31, %v502_v48  ;;  %v506_v3 = vmul.f32 %v767_v26, %v502_v48  ;;  %v536_v11 = vld [vmem:[#allocation2 + $0x15] sm:$0xff]  ;;  %v519_v14 = vmul.f32 %v769_v31, %v515_v63  ;;  %615 = vmatpush.msra.mxu2 %v592_v33 }
  0xa7   : > { %v528_v55 = vld [vmem:[#allocation2 + $0x9] sm:$0xff]  ;;  %v539_v59 = vmul.f32 %v772_v42, %v523_v49  ;;  %v529_v0 = vld [vmem:[#allocation2 + $0x11] sm:$0xff]  ;;  %v499_v1 = vadd.f32 %v497_v51, %v491_v47  ;;  %v527_v10 = vmul.f32 %v770_v29, %v523_v49  ;;  %v540_v22 = vmul.f32 %v772_v42, %v536_v11 }
  0xa8   : > { %v485_v56 = vld [vmem:[#allocation2 + $0xf] sm:$0xff]  ;;  %v532_v58 = vmul.f32 %v771_v32, %v528_v55  ;;  %v520_v2 = vadd.f32 %v518_v53, %v513_v52  ;;  %v533_v15 = vmul.f32 %v771_v32, %v529_v0  ;;  %v649_v55 = vld [vmem:[%s401_s30 + $0x18] sm:$0xf] }
  0xa9   : > { %v490_v61 = vmul.f32 %v765_v25, %v485_v56  ;;  %v508_v62 = vld [vmem:[#allocation2 + $0x10] sm:$0xff]  ;;  %v543_v12 = vsel %vm918_vm2, %v499_v1, 0.0  ;;  %v638_v46 = vld [vmem:[%s401_s30 + $0xc] sm:$0xf]  ;;  %v652_v56 = vld [vmem:[%s401_s30 + $0x1c] sm:$0xf] }
  0xaa   : > { %v512_v4 = vmul.f32 %v768_v28, %v508_v62  ;;  %v534_v6 = vadd.f32 %v532_v58, %v526_v54  ;;  %v547_v17 = vadd.f32 %v543_v12, %v520_v2  ;;  %v535_v21 = vadd.f32 %v533_v15, %v527_v10  ;;  %v642_v53 = vld [vmem:[%s401_s30 + $0x10] sm:$0xf]  ;;  %v645_v54 = vld [vmem:[%s401_s30 + $0x14] sm:$0xf] }
  0xab   : > { %v492_v7 = vadd.f32 %v490_v61, %v483_v60 }
  0xac   : > { %v514_v13 = vadd.f32 %v512_v4, %v506_v3  ;;  %v541_v16 = vadd.f32 %v539_v59, %v534_v6  ;;  %v542_v26 = vadd.f32 %v540_v22, %v535_v21 }
  0xad   : > { %v500_v18 = vadd.f32 %v498_v9, %v492_v7 }
  0xae   : > { %v521_v20 = vadd.f32 %v519_v14, %v514_v13  ;;  %v545_v23 = vsel %vm922_vm3, %v541_v16, 0.0  ;;  %v546_v29 = vsel %vm418_vm5, %v542_v26, 0.0 }
  0xaf   : > { %v544_v24 = vsel %vm926_vm4, %v500_v18, 0.0  ;;  %v549_v25 = vadd.f32 %v547_v17, %v545_v23 }
  0xb0   : > { %v548_v27 = vadd.f32 %v544_v24, %v521_v20 }
  0xb1   : > { %v554_v28 = vadd.f32 %v773_v19, %v549_v25 }
  0xb2   : > { %v550_v31 = vadd.f32 %v548_v27, %v546_v29 }
  0xb3   : > { %v556_v30 = vmax.f32 %v554_v28, 0.0 }
  0xb4   : > { %v555_v32 = vadd.f32 %v773_v19, %v550_v31 }
  0xb5   : > { %741 = vmatmul.msk.f32.vlgmr.msra.gmra.mxu1 %vm407_vm0, %v556_v30 }
  0xb6   : > { %v557_v34 = vmax.f32 %v555_v32, 0.0 }
  0xbd   : > { %742 = vmatmul.msk.f32.gmra.mxu1 %vm407_vm0, %v557_v34 }
 0x132   : > { %v584_v37 = vpop.f32.mrf.mxu1 }
 0x133   : > { %v585_v38 = vadd.f32 %v774_v36, %v584_v37 }
 0x135   : > { %v590_v39 = vadd.f32 %v585_v38, %v875_v8  ;;  %v635_v8 = vld [vmem:[%s401_s30 + $0x8] sm:$0xf] }
 0x137   : > { %743 = vmatmul.msk.f32.vlgmr.msra.gmra.mxu2 %vm444_vm1, %v590_v39 }
 0x13a   : > { %v587_v40 = vpop.f32.mrf.mxu1 }
 0x13b   : > { %v588_v41 = vadd.f32 %v774_v36, %v587_v40 }
 0x13d   : > { %v591_v42 = vadd.f32 %v588_v41, %v872_v5 }
 0x13f   : > { %744 = vmatmul.msk.f32.gmra.mxu2 %vm444_vm1, %v591_v42 }
 0x1ba   : > { %v617_v43 = vpop.f32.mrf.mxu2 }
 0x1bb   : > { %624 = vst.msk [vmem:[#allocation3] sm:$0xff] %vm623_vm6, %v617_v43 }
 0x1c2   : > { %v626_v5 = vld [vmem:[#allocation3] sm:$0xf]  ;;  %v634_v47 = vld [vmem:[#allocation3 + $0x4] sm:$0xf]  ;;  %v620_v48 = vpop.f32.mrf.mxu2 }
 0x1c3   : > { %v628_v49 = vadd.f32 %v627_v44, %v626_v5  ;;  %v632_v50 = vadd.f32 %v631_v45, %v626_v5  ;;  %v636_v51 = vadd.f32 %v635_v8, %v634_v47  ;;  %625 = vst.msk [vmem:[#allocation3 + $0x8] sm:$0xff] %vm623_vm6, %v620_v48  ;;  %v639_v52 = vadd.f32 %v638_v46, %v634_v47 }
 0x1c5   : > { %630 = vst.msk [vmem:[%s406_s14] sm:$0xf] %vm629_vm7, %v628_v49 }
 0x1c6   : > { %633 = vst.msk [vmem:[%s406_s14 + $0x4] sm:$0xf] %vm629_vm7, %v632_v50 }
 0x1c7   : > { %637 = vst.msk [vmem:[%s406_s14 + $0x8] sm:$0xf] %vm629_vm7, %v636_v51 }
 0x1c8   : > { %640 = vst.msk [vmem:[%s406_s14 + $0xc] sm:$0xf] %vm629_vm7, %v639_v52 }
 0x1ca   : > { %v641_v57 = vld [vmem:[#allocation3 + $0x8] sm:$0xf]  ;;  %v648_v58 = vld [vmem:[#allocation3 + $0xc] sm:$0xf] }
 0x1cb   : > { %v643_v59 = vadd.f32 %v642_v53, %v641_v57  ;;  %v646_v60 = vadd.f32 %v645_v54, %v641_v57  ;;  %v650_v61 = vadd.f32 %v649_v55, %v648_v58  ;;  %v653_v62 = vadd.f32 %v652_v56, %v648_v58 }
 0x1cd   : > { %644 = vst.msk [vmem:[%s406_s14 + $0x10] sm:$0xf] %vm629_vm7, %v643_v59 }
 0x1ce   : > { %647 = vst.msk [vmem:[%s406_s14 + $0x14] sm:$0xf] %vm629_vm7, %v646_v60 }
 0x1cf   : > { %651 = vst.msk [vmem:[%s406_s14 + $0x18] sm:$0xf] %vm629_vm7, %v650_v61 }
 0x1d0   : > { %654 = vst.msk [vmem:[%s406_s14 + $0x1c] sm:$0xf] %vm629_vm7, %v653_v62 }
 0x1d1 PF: > { %s21_s17 = sadd.s32 1, %s781_s17  }
 0x1d2   : > { %p18_p4 = scmp.ge.s32.totalorder %s21_s17, 4  }
 0x1d4   :  { %20 = sbr.rel (!%p18_p4) target bundleno = 1 (0x1), region = 99 }

// kernel: hourglass_forward.13
= control target key start
LH: loop header
LB: loop body
LE: loop exit
PB: predicated region body
PF: predicated region fallthrough
CT: control target
= control target key end

     0   :  { %s1215_s17 = smov 0   ;;  %s1739_s0 = inlined_call_operand.vmem [shape: f32[2,64,16], index: 0, kind: input, shape index: {}]   ;;  %s1740_s1 = inlined_call_operand.vmem [shape: f32[2,128,32], index: 1, kind: input, shape index: {}]   ;;  %s1741_s2 = inlined_call_operand.vmem [shape: f32[16,32], index: 2, kind: input, shape index: {}]   ;;  %s1742_s3 = inlined_call_operand.vmem [shape: f32[1,16], index: 3, kind: input, shape index: {}]   ;;  %s1743_s4 = inlined_call_operand.vmem [shape: f32[1,16], index: 4, kind: input, shape index: {}]   ;;  %s1744_s5 = inlined_call_operand.vmem [shape: f32[1,16,8], index: 5, kind: input, shape index: {}]   ;;  %s1745_s6 = inlined_call_operand.vmem [shape: f32[1,8], index: 6, kind: input, shape index: {}]   ;;  %s1746_s7 = inlined_call_operand.vmem [shape: f32[1,3,3,8], index: 7, kind: input, shape index: {}]   ;;  %s1747_s8 = inlined_call_operand.vmem [shape: f32[1,8], index: 8, kind: input, shape index: {}]   ;;  %s1748_s9 = inlined_call_operand.vmem [shape: f32[1,8,16], index: 9, kind: input, shape index: {}]   ;;  %s1749_s10 = inlined_call_operand.vmem [shape: f32[1,16], index: 10, kind: input, shape index: {}]   ;;  %s1750_s11 = inlined_call_operand.vmem [shape: f32[2,128,32], index: 11, kind: output, shape index: {}]  }
   0x1 LB: > { %s1072_s18 = sadd.s32 4294967295, %s1152_s17   ;;  %p1076_p0 = scmp.ge.s32.totalorder %s1152_s17, 1  ;;  %s1152_s17 = sphi %s1215_s17, %s21_s17  }
   0x2   : > { %p347_p1 = scmp.lt.s32.totalorder %s1152_s17, 3 }
   0x4   : > { %p348_p2 = pnand %p1076_p0, %p347_p1 }
   0x6   : > { %351 = sbr.rel (%p348_p2) target bundleno = 518 (0x206), region = 64 }
   0xb   : > { %v456_v0 = vld [vmem:[%s1744_s5 + $0x8] sm:$0xff]  ;;  %v455_v1 = vld [vmem:[%s1744_s5] sm:$0xff]  ;;  %p392_p3 = scmp.lt.s32.totalorder %s1072_s18, 1  ;;  %vm494_vm0 = vcmask 130048   ;;  %vm407_vm1 = vcmask 64512   ;;  %v1154_v36 = vmov 0.0   ;;  %v412_v48 = vlaneseq }
   0xc   : > { %533 = vmatpush.msra.mxu0 %v456_v0  ;;  %v1132_v2 = vld [vmem:[%s1742_s3] ss:$0 sm:$0xff]  ;;  %1118 = vmatpush.msra.mxu3 %v456_v0  ;;  %408 = vst.msk [vmem:[#allocation2] sm:$0xff] %vm407_vm1, %v1154_v36  ;;  %v1309_v51 = vld [vmem:[%s1746_s7 + $0x4] ss:$0 sm:$0xff] }
   0xd   : > { %s1801_s18 = smov (!%p392_p3, %s1072_s18), 1  ;;  %v1133_v3 = vld [vmem:[%s1743_s4] ss:$0 sm:$0xff]  ;;  %409 = vst.msk [vmem:[#allocation2 + $0x8] sm:$0xff] %vm407_vm1, %v1154_v36  ;;  %v1312_v54 = vshrl.u32 %v412_v48, 7 }
   0xe   : > { %534 = vmatpush.msra.mxu0 %v455_v1  ;;  %1119 = vmatpush.msra.mxu3 %v455_v1  ;;  %s1115_s27 = sshll.u32 %s1801_s18, 6  ;;  %410 = vst.msk [vmem:[#allocation2 + $0x50] sm:$0xff] %vm407_vm1, %v1154_v36  ;;  %v1290_v37 = vld [vmem:[%s1745_s6] ss:$0 sm:$0xff]  ;;  %v1318_v58 = vld [vmem:[%s1746_s7 + $0x8] ss:$0 sm:$0xff] }
   0xf   : > { %s1241_s30 = scalar_lea.vmem %s1739_s0, %s1115_s27  ;;  %411 = vst.msk [vmem:[#allocation2 + $0x58] sm:$0xff] %vm407_vm1, %v1154_v36  ;;  %v459_v41 = vld [vmem:[%s1748_s9] sm:$0xff]  ;;  %v414_v62 = vadd.s32 8, %v1312_v54  ;;  %v1391_v48 = vadd.s32 32, %v1312_v54  ;;  %s1116_s27 = sshll.u32 %s1801_s18, 7 }
  0x10   : > { %v1244_v4 = vld [vmem:[%s1241_s30] sm:$0xff]  ;;  %v1247_v5 = vld [vmem:[%s1241_s30 + $0x8] sm:$0xff]  ;;  %v1251_v7 = vld [vmem:[%s1241_s30 + $0x30] sm:$0xff]  ;;  %839 = vmatpush.msra.mxu1 %v459_v41  ;;  %1120 = vmatpush.msrb.mxu3 %v459_v41  ;;  %s1681_s14 = scalar_lea.vmem %s1750_s11, %s1116_s27 }
  0x11   : > { %v464_v6 = vmul.f32 %v1132_v2, %v1244_v4  ;;  %1757 = vst [vmem:[#allocation4_spill] sm:$0xff] %v1251_v7  ;;  %v470_v8 = vmul.f32 %v1132_v2, %v1251_v7  ;;  %v1255_v9 = vld [vmem:[%s1241_s30 + $0x38] sm:$0xff]  ;;  %v465_v11 = vmul.f32 %v1132_v2, %v1247_v5  ;;  %v1261_v17 = vld [vmem:[%s1241_s30 + $0x10] sm:$0xff]  ;;  %v1273_v27 = vld [vmem:[%s1241_s30 + $0x20] sm:$0xff] }
  0x12   : > { %1758 = vst [vmem:[#allocation5_spill] sm:$0xff] %v1255_v9  ;;  %v471_v13 = vmul.f32 %v1132_v2, %v1255_v9  ;;  %v466_v20 = vmul.f32 %v1132_v2, %v1261_v17  ;;  %v1267_v23 = vld [vmem:[%s1241_s30 + $0x18] sm:$0xff]  ;;  %v468_v29 = vmul.f32 %v1132_v2, %v1273_v27  ;;  %v1278_v31 = vld [vmem:[%s1241_s30 + $0x28] sm:$0xff]  ;;  %v1304_v50 = vld [vmem:[%s1746_s7] ss:$0 sm:$0xff]  ;;  %s1674_s30 = scalar_lea.vmem %s1740_s1, %s1116_s27 }
  0x13   : > { %v475_v10 = vadd.f32 %v1133_v3, %v464_v6  ;;  %v481_v12 = vadd.f32 %v1133_v3, %v470_v8  ;;  %v476_v16 = vadd.f32 %v1133_v3, %v465_v11  ;;  %1759 = vst [vmem:[#allocation6_spill] sm:$0xff] %v1267_v23  ;;  %v467_v25 = vmul.f32 %v1132_v2, %v1267_v23  ;;  %v1323_v60 = vld [vmem:[%s1746_s7 + $0x1] ss:$0 sm:$0xff]  ;;  %v1328_v61 = vld [vmem:[%s1746_s7 + $0x5] ss:$0 sm:$0xff] }
  0x14   : > { %v482_v18 = vadd.f32 %v1133_v3, %v471_v13  ;;  %v477_v22 = vadd.f32 %v1133_v3, %v466_v20  ;;  %1760 = vst [vmem:[#allocation7_spill] sm:$0xff] %v1273_v27  ;;  %v479_v30 = vadd.f32 %v1133_v3, %v468_v29  ;;  %v469_v33 = vmul.f32 %v1132_v2, %v1278_v31  ;;  %v576_v55 = vld [vmem:[#allocation2 + $0x7] sm:$0xff]  ;;  %v1345_v13 = vld [vmem:[%s1746_s7 + $0x6] ss:$0 sm:$0xff] }
  0x15   : > { %v483_v14 = vmax.f32 %v475_v10, 0.0  ;;  %v489_v15 = vmax.f32 %v481_v12, 0.0  ;;  %v484_v19 = vmax.f32 %v476_v16, 0.0  ;;  %v478_v26 = vadd.f32 %v1133_v3, %v467_v25  ;;  %1761 = vst [vmem:[#allocation8_spill] sm:$0xff] %v1278_v31  ;;  %v634_v2 = vld [vmem:[#allocation2 + $0x8] sm:$0xff] }
  0x16   : > { %v490_v21 = vmax.f32 %v482_v18, 0.0  ;;  %v485_v24 = vmax.f32 %v477_v22, 0.0  ;;  %v487_v32 = vmax.f32 %v479_v30, 0.0  ;;  %v480_v34 = vadd.f32 %v1133_v3, %v469_v33  ;;  %v1338_v10 = vld [vmem:[%s1746_s7 + $0x9] ss:$0 sm:$0xff] }
  0x17   : > { %1083 = vmatmul.msk.f32.vlgmr.msra.gmra.mxu0 %vm494_vm0, %v483_v14  ;;  %1089 = vmatmul.msk.f32.vlgmr.msra.gmra.mxu3 %vm494_vm0, %v489_v15  ;;  %v486_v28 = vmax.f32 %v478_v26, 0.0  ;;  %v586_v0 = vmul.f32 %v1304_v50, %v576_v55  ;;  %v421_v6 = vand.u32 7, %v1312_v54  ;;  %v644_v14 = vmul.f32 %v1323_v60, %v634_v2  ;;  %v1371_v33 = vld [vmem:[%s1746_s7 + $0xa] ss:$0 sm:$0xff] }
  0x18   : > { %v488_v35 = vmax.f32 %v480_v34, 0.0  ;;  %v422_v18 = vand.u32 7, %v414_v62  ;;  %v1443_v29 = vadd.s32 40, %v1312_v54 }
  0x19   : > { %vm1357_vm2 = vcmp.ne.s32.totalorder %v421_v6, 0  ;;  %vm1363_vm3 = vcmp.ne.s32.totalorder %v421_v6, 7 }
  0x1a   : > { %vm1373_vm4 = vcmp.ne.s32.totalorder %v422_v18, 0  ;;  %vm1404_vm5 = vcmp.ne.s32.totalorder %v422_v18, 7 }
  0x1f   : > { %1084 = vmatmul.msk.f32.gmra.mxu0 %vm494_vm0, %v484_v19  ;;  %1090 = vmatmul.msk.f32.gmra.mxu3 %vm494_vm0, %v490_v21  ;;  %v1350_v19 = vadd.s32 16, %v1312_v54  ;;  %v1355_v21 = vld [vmem:[%s1746_s7 + $0x2] ss:$0 sm:$0xff] }
  0x21   : > { %v423_v36 = vand.u32 7, %v1350_v19 }
  0x23   : > { %vm1434_vm6 = vcmp.ne.s32.totalorder %v423_v36, 0  ;;  %vm1482_vm7 = vcmp.ne.s32.totalorder %v423_v36, 7 }
  0x27   : > { %1085 = vmatmul.msk.f32.gmra.mxu0 %vm494_vm0, %v485_v24  ;;  %v727_v24 = vld [vmem:[#allocation2 + $0x51] sm:$0xff] }
  0x2f   : > { %1086 = vmatmul.msk.f32.gmra.mxu0 %vm494_vm0, %v486_v28 }
  0x37   : > { %1087 = vmatmul.msk.f32.gmra.mxu0 %vm494_vm0, %v487_v32 }
  0x3f   : > { %1088 = vmatmul.msk.f32.gmra.mxu0 %vm494_vm0, %v488_v35 }
  0x94   : > { %v536_v38 = vpop.f32.mrf.mxu0 }
  0x95   : > { %v537_v39 = vadd.f32 %v1290_v37, %v536_v38  ;;  %v1379_v38 = vadd.s32 24, %v1312_v54 }
  0x97   : > { %v560_v40 = vmax.f32 %v537_v39, 0.0 }
  0x99   : > { %568 = vst.msk [vmem:[#allocation2 + $0x10] sm:$0xff] %vm407_vm1, %v560_v40 }
  0x9a   : > { %v554_v42 = vpop.f32.mrf.mxu3 }
  0x9b   : > { %v555_v44 = vadd.f32 %v1290_v37, %v554_v42 }
  0x9c   : > { %v539_v43 = vpop.f32.mrf.mxu0 }
  0x9d   : > { %v540_v45 = vadd.f32 %v1290_v37, %v539_v43  ;;  %v566_v46 = vmax.f32 %v555_v44, 0.0 }
  0x9f   : > { %v561_v47 = vmax.f32 %v540_v45, 0.0  ;;  %574 = vst.msk [vmem:[#allocation2 + $0x40] sm:$0xff] %vm407_vm1, %v566_v46 }
  0xa0   : > { %v577_v56 = vld [vmem:[#allocation2 + $0xf] sm:$0xff] }
  0xa1   : > { %569 = vst.msk [vmem:[#allocation2 + $0x18] sm:$0xff] %vm407_vm1, %v561_v47  ;;  %v598_v1 = vmul.f32 %v1309_v51, %v577_v56  ;;  %v635_v3 = vld [vmem:[#allocation2 + $0x10] sm:$0xff]  ;;  %v587_v46 = vmul.f32 %v1304_v50, %v577_v56 }
  0xa2   : > { %v557_v49 = vpop.f32.mrf.mxu3  ;;  %v655_v15 = vmul.f32 %v1328_v61, %v635_v3  ;;  %v690_v26 = vld [vmem:[#allocation2 + $0x9] sm:$0xff]  ;;  %v645_v47 = vmul.f32 %v1323_v60, %v635_v3 }
  0xa3   : > { %v558_v53 = vadd.f32 %v1290_v37, %v557_v49  ;;  %v606_v20 = vadd.f32 %v598_v1, %v586_v0  ;;  %v700_v40 = vmul.f32 %v1355_v21, %v690_v26  ;;  %v1751_v0 = vand.u32 7, %v1379_v38 }
  0xa4   : > { %v542_v52 = vpop.f32.mrf.mxu0  ;;  %v663_v34 = vadd.f32 %v655_v15, %v644_v14  ;;  %v1412_v1 = vadd.s32 56, %v1312_v54  ;;  %v671_v14 = vld [vmem:[#allocation2 + $0x50] sm:$0xff] }
  0xa5   : > { %v543_v57 = vadd.f32 %v1290_v37, %v542_v52  ;;  %v567_v59 = vmax.f32 %v558_v53, 0.0  ;;  %vm1488_vm8 = vcmp.ne.s32.totalorder %v1751_v0, 0 }
  0xa6   : > { %v1402_v56 = vld [vmem:[#allocation2 + $0x40] sm:$0xff]  ;;  %v1776_v23 = vand.u32 7, %v1412_v1 }
  0xa7   : > { %v562_v63 = vmax.f32 %v543_v57, 0.0  ;;  %575 = vst.msk [vmem:[#allocation2 + $0x48] sm:$0xff] %vm407_vm1, %v567_v59 }
  0xa8   : > { %v578_v8 = vld [vmem:[#allocation2 + $0x17] sm:$0xff]  ;;  %vm1519_vm9 = vcmp.ne.s32.totalorder %v1776_v23, 7 }
  0xa9   : > { %570 = vst.msk [vmem:[#allocation2 + $0x20] sm:$0xff] %vm407_vm1, %v562_v63  ;;  %v618_v11 = vmul.f32 %v1318_v58, %v578_v8  ;;  %v636_v12 = vld [vmem:[#allocation2 + $0x18] sm:$0xff]  ;;  %v599_v41 = vmul.f32 %v1309_v51, %v578_v8  ;;  %v588_v63 = vmul.f32 %v1304_v50, %v578_v8 }
  0xaa   : > { %v691_v16 = vld [vmem:[#allocation2 + $0x11] sm:$0xff]  ;;  %v674_v25 = vmul.f32 %v1338_v10, %v636_v12  ;;  %v656_v42 = vmul.f32 %v1328_v61, %v636_v12 }
  0xab   : > { %v626_v30 = vadd.f32 %v618_v11, %v606_v20  ;;  %v711_v32 = vmul.f32 %v1345_v13, %v691_v16  ;;  %v701_v62 = vmul.f32 %v1355_v21, %v691_v16  ;;  %v607_v3 = vadd.f32 %v599_v41, %v587_v46  ;;  %v1418_v20 = vld [vmem:[%s1747_s8] ss:$0 sm:$0xff] }
  0xac   : > { %v545_v22 = vpop.f32.mrf.mxu0  ;;  %v682_v43 = vadd.f32 %v674_v25, %v663_v34  ;;  %v664_v6 = vadd.f32 %v656_v42, %v645_v47  ;;  %v646_v11 = vmul.f32 %v1323_v60, %v636_v12  ;;  %v1797_v34 = vld [vmem:[#allocation8_spill] sm:$0xff] }
  0xad   : > { %v546_v28 = vadd.f32 %v1290_v37, %v545_v22  ;;  %v719_v49 = vadd.f32 %v711_v32, %v700_v40  ;;  %v746_v53 = vsel %vm1357_vm2, %v626_v30, 0.0  ;;  %v651_v22 = vmul.f32 %v1323_v60, %v1402_v56 }
  0xae   : > { %v762_v18 = vadd.f32 %v746_v53, %v682_v43  ;;  %v1422_v16 = vld [vmem:[#allocation2 + $0x47] sm:$0xff]  ;;  %v614_v30 = vld [vmem:[#allocation2 + $0x4f] sm:$0xff]  ;;  %v1440_v40 = vmul.f32 %v1338_v10, %v671_v14 }
  0xaf   : > { %v563_v39 = vmax.f32 %v546_v28, 0.0  ;;  %v1449_v43 = vmul.f32 %v1309_v51, %v1422_v16  ;;  %v1451_v46 = vld [vmem:[#allocation2 + $0x48] sm:$0xff]  ;;  %v1467_v14 = vmul.f32 %v1318_v58, %v614_v30 }
  0xb0   : > { %v1384_v44 = vld [vmem:[#allocation2 + $0x19] sm:$0xff]  ;;  %v1453_v47 = vld [vmem:[#allocation2 + $0x49] sm:$0xff]  ;;  %v662_v35 = vmul.f32 %v1328_v61, %v1451_v46 }
  0xb1   : > { %v1386_v45 = vld [vmem:[#allocation2 + $0x1f] sm:$0xff]  ;;  %571 = vst.msk [vmem:[#allocation2 + $0x28] sm:$0xff] %vm407_vm1, %v563_v39  ;;  %v730_v52 = vmul.f32 %v1371_v33, %v1384_v44  ;;  %v712_v28 = vmul.f32 %v1345_v13, %v1384_v44 }
  0xb2   : > { %v619_v55 = vmul.f32 %v1318_v58, %v1386_v45  ;;  %v1400_v57 = vld [vmem:[#allocation2 + $0x20] sm:$0xff]  ;;  %v600_v42 = vmul.f32 %v1309_v51, %v1386_v45  ;;  %v670_v59 = vadd.f32 %v662_v35, %v651_v22  ;;  %v1779_v35 = vand.u32 7, %v1379_v38 }
  0xb3   : > { %v738_v2 = vadd.f32 %v730_v52, %v719_v49  ;;  %v675_v8 = vmul.f32 %v1338_v10, %v1400_v57  ;;  %v1457_v49 = vmul.f32 %v1338_v10, %v1402_v56  ;;  %v647_v27 = vmul.f32 %v1323_v60, %v1400_v57 }
  0xb4   : > { %v548_v15 = vpop.f32.mrf.mxu0  ;;  %v627_v26 = vadd.f32 %v619_v55, %v607_v3  ;;  %v657_v3 = vmul.f32 %v1328_v61, %v1400_v57  ;;  %v608_v36 = vadd.f32 %v600_v42, %v588_v63  ;;  %vm1532_vm10 = vcmp.ne.s32.totalorder %v1779_v35, 7 }
  0xb5   : > { %v549_v12 = vadd.f32 %v1290_v37, %v548_v15  ;;  %v754_v25 = vsel %vm1363_vm3, %v738_v2, 0.0  ;;  %v683_v53 = vadd.f32 %v675_v8, %v664_v6  ;;  %v720_v15 = vadd.f32 %v712_v28, %v701_v62 }
  0xb6   : > { %v770_v32 = vadd.f32 %v762_v18, %v754_v25  ;;  %v1478_v25 = vld [vmem:[#allocation2 + $0x41] sm:$0xff]  ;;  %v718_v28 = vmul.f32 %v1345_v13, %v1453_v47 }
  0xb7   : > { %v564_v41 = vmax.f32 %v549_v12, 0.0  ;;  %v747_v12 = vsel %vm1373_vm4, %v627_v26, 0.0  ;;  %v707_v26 = vmul.f32 %v1355_v21, %v1478_v25  ;;  %v1577_v30 = vmul.f32 %v1371_v33, %v1478_v25 }
  0xb8   : > { %v781_v52 = vadd.f32 %v1418_v20, %v770_v32  ;;  %v1460_v55 = vld [vmem:[#allocation2 + $0x21] sm:$0xff]  ;;  %v763_v39 = vadd.f32 %v747_v12, %v683_v53 }
  0xb9   : > { %v1462_v2 = vld [vmem:[#allocation2 + $0x27] sm:$0xff]  ;;  %572 = vst.msk [vmem:[#allocation2 + $0x30] sm:$0xff] %vm407_vm1, %v564_v41  ;;  %v731_v18 = vmul.f32 %v1371_v33, %v1460_v55  ;;  %v702_v41 = vmul.f32 %v1355_v21, %v1384_v44  ;;  %v713_v7 = vmul.f32 %v1345_v13, %v1460_v55  ;;  %v726_v12 = vadd.f32 %v718_v28, %v707_v26 }
  0xba   : > { %v620_v6 = vmul.f32 %v1318_v58, %v1462_v2  ;;  %v1476_v8 = vld [vmem:[#allocation2 + $0x28] sm:$0xff]  ;;  %v789_v32 = vmax.f32 %v781_v52, 0.0  ;;  %v589_v52 = vmul.f32 %v1304_v50, %v1386_v45  ;;  %v601_v63 = vmul.f32 %v1309_v51, %v1462_v2 }
  0xbb   : > { %v739_v19 = vadd.f32 %v731_v18, %v720_v15  ;;  %v676_v9 = vmul.f32 %v1338_v10, %v1476_v8  ;;  %v665_v15 = vadd.f32 %v657_v3, %v646_v11  ;;  %v658_v53 = vmul.f32 %v1328_v61, %v1476_v8 }
  0xbc   : > { %v551_v0 = vpop.f32.mrf.mxu0  ;;  %1097 = vmatmul.msk.f32.vlgmr.msra.gmra.mxu1 %vm407_vm1, %v789_v32  ;;  %v628_v45 = vadd.f32 %v620_v6, %v608_v36  ;;  %v737_v32 = vmul.f32 %v1371_v33, %v727_v24  ;;  %v721_v3 = vadd.f32 %v713_v7, %v702_v41  ;;  %v609_v26 = vadd.f32 %v601_v63, %v589_v52 }
  0xbd   : > { %v552_v42 = vadd.f32 %v1290_v37, %v551_v0  ;;  %v755_v44 = vsel %vm1404_vm5, %v739_v19, 0.0  ;;  %v684_v11 = vadd.f32 %v676_v9, %v665_v15  ;;  %v666_v7 = vadd.f32 %v658_v53, %v647_v27 }
  0xbe   : > { %v771_v18 = vadd.f32 %v763_v39, %v755_v44  ;;  %v748_v57 = vsel %vm1434_vm6, %v628_v45, 0.0  ;;  %v1782_v41 = vand.u32 7, %v1391_v48  ;;  %v703_v45 = vmul.f32 %v1355_v21, %v1460_v55 }
  0xbf   : > { %v565_v31 = vmax.f32 %v552_v42, 0.0  ;;  %v764_v44 = vadd.f32 %v748_v57, %v684_v11  ;;  %v1785_v15 = vand.u32 7, %v1412_v1  ;;  %v689_v53 = vadd.f32 %v1440_v40, %v670_v59 }
  0xc0   : > { %v782_v0 = vadd.f32 %v1418_v20, %v771_v18  ;;  %v694_v39 = vld [vmem:[#allocation2 + $0x29] sm:$0xff]  ;;  %vm1541_vm11 = vcmp.ne.s32.totalorder %v1782_v41, 0  ;;  %v590_v1 = vmul.f32 %v1304_v50, %v1462_v2  ;;  %v648_v11 = vmul.f32 %v1323_v60, %v1476_v8 }
  0xc1   : > { %v581_v6 = vld [vmem:[#allocation2 + $0x2f] sm:$0xff]  ;;  %573 = vst.msk [vmem:[#allocation2 + $0x38] sm:$0xff] %vm407_vm1, %v565_v31  ;;  %v732_v24 = vmul.f32 %v1371_v33, %v694_v39  ;;  %v714_v36 = vmul.f32 %v1345_v13, %v694_v39  ;;  %v1537_v31 = vadd.f32 %v737_v32, %v726_v12  ;;  %vm1552_vm12 = vcmp.ne.s32.totalorder %v1785_v15, 0 }
  0xc2   : > { %v639_v28 = vld [vmem:[#allocation2 + $0x30] sm:$0xff]  ;;  %v621_v23 = vmul.f32 %v1318_v58, %v581_v6  ;;  %v790_v22 = vmax.f32 %v782_v0, 0.0  ;;  %v602_v42 = vmul.f32 %v1309_v51, %v581_v6  ;;  %v1788_v12 = vmov %v1782_v41 }
  0xc3   : > { %v677_v19 = vmul.f32 %v1338_v10, %v639_v28  ;;  %v740_v52 = vadd.f32 %v732_v24, %v721_v3  ;;  %v659_v38 = vmul.f32 %v1328_v61, %v639_v28  ;;  %vm1559_vm13 = vcmp.ne.s32.totalorder %v1788_v12, 7 }
  0xc4   : > { %v629_v63 = vadd.f32 %v621_v23, %v609_v26  ;;  %1098 = vmatmul.msk.f32.gmra.mxu1 %vm407_vm1, %v790_v22  ;;  %v761_v48 = vsel %vm1519_vm9, %v1537_v31, 0.0  ;;  %v426_v40 = vand.u32 7, %v1443_v29  ;;  %v722_v59 = vadd.f32 %v714_v36, %v703_v45 }
  0xc5   : > { %v685_v27 = vadd.f32 %v677_v19, %v666_v7  ;;  %v756_v0 = vsel %vm1482_vm7, %v740_v52, 0.0  ;;  %v610_v62 = vadd.f32 %v602_v42, %v590_v1  ;;  %v667_v26 = vadd.f32 %v659_v38, %v648_v11 }
  0xc6   : > { %v749_v55 = vsel %vm1488_vm8, %v629_v63, 0.0  ;;  %v772_v3 = vadd.f32 %v764_v44, %v756_v0  ;;  %v704_v24 = vmul.f32 %v1355_v21, %v694_v39  ;;  %v591_v37 = vmul.f32 %v1304_v50, %v581_v6 }
  0xc7   : > { %v765_v8 = vadd.f32 %v749_v55, %v685_v27  ;;  %v649_v22 = vmul.f32 %v1323_v60, %v639_v28  ;;  %vm1606_vm14 = vcmp.ne.s32.totalorder %v426_v40, 0  ;;  %v661_v32 = vmul.f32 %v1328_v61, %v1402_v56 }
  0xc8   : > { %v783_v2 = vadd.f32 %v1418_v20, %v772_v3  ;;  %v695_v57 = vld [vmem:[#allocation2 + $0x31] sm:$0xff]  ;;  %v583_v23 = vld [vmem:[#allocation2 + $0x3f] sm:$0xff]  ;;  %vm1623_vm15 = vcmp.ne.s32.totalorder %v426_v40, 7 }
  0xc9   : > { %v582_v19 = vld [vmem:[#allocation2 + $0x37] sm:$0xff]  ;;  %v733_v29 = vmul.f32 %v1371_v33, %v695_v57  ;;  %v593_v35 = vmul.f32 %v1304_v50, %v583_v23  ;;  %v715_v39 = vmul.f32 %v1345_v13, %v695_v57  ;;  %v623_v15 = vmul.f32 %v1318_v58, %v583_v23 }
  0xca   : > { %v622_v7 = vmul.f32 %v1318_v58, %v582_v19  ;;  %v640_v36 = vld [vmem:[#allocation2 + $0x38] sm:$0xff]  ;;  %v791_v41 = vmax.f32 %v783_v2, 0.0  ;;  %v603_v42 = vmul.f32 %v1309_v51, %v582_v19  ;;  %v705_v2 = vmul.f32 %v1355_v21, %v695_v57 }
  0xcb   : > { %v696_v31 = vld [vmem:[#allocation2 + $0x39] sm:$0xff]  ;;  %v678_v52 = vmul.f32 %v1338_v10, %v640_v36  ;;  %v741_v6 = vadd.f32 %v733_v29, %v722_v59  ;;  %v613_v28 = vadd.f32 %v1449_v43, %v593_v35  ;;  %v723_v44 = vadd.f32 %v715_v39, %v704_v24 }
  0xcc   : > { %v734_v63 = vmul.f32 %v1371_v33, %v696_v31  ;;  %v630_v38 = vadd.f32 %v622_v7, %v610_v62  ;;  %1099 = vmatmul.msk.f32.gmra.mxu1 %vm407_vm1, %v791_v41  ;;  %v611_v45 = vadd.f32 %v603_v42, %v591_v37  ;;  %v660_v12 = vmul.f32 %v1328_v61, %v640_v36 }
  0xcd   : > { %v686_v27 = vadd.f32 %v678_v52, %v667_v26  ;;  %v757_v0 = vsel %vm1532_vm10, %v741_v6, 0.0  ;;  %v633_v55 = vadd.f32 %v1467_v14, %v613_v28  ;;  %v716_v9 = vmul.f32 %v1345_v13, %v696_v31 }
  0xce   : > { %v742_v1 = vadd.f32 %v734_v63, %v723_v44  ;;  %v750_v11 = vsel %vm1541_vm11, %v630_v38, 0.0  ;;  %v773_v43 = vadd.f32 %v765_v8, %v757_v0  ;;  %v631_v59 = vadd.f32 %v623_v15, %v611_v45  ;;  %v1145_v45 = vld [vmem:[%s1749_s10] ss:$0 sm:$0xff] }
  0xcf   : > { %v766_v3 = vadd.f32 %v750_v11, %v686_v27  ;;  %v668_v62 = vadd.f32 %v660_v12, %v649_v22  ;;  %v753_v26 = vsel %vm1552_vm12, %v633_v55, 0.0  ;;  %v419_v8 = vadd.s32 48, %v1312_v54 }
  0xd0   : > { %v758_v24 = vsel %vm1559_vm13, %v742_v1, 0.0  ;;  %v784_v14 = vadd.f32 %v1418_v20, %v773_v43  ;;  %v769_v37 = vadd.f32 %v753_v26, %v689_v53  ;;  %v724_v22 = vadd.f32 %v716_v9, %v705_v2  ;;  %v1795_v26 = vld [vmem:[#allocation6_spill] sm:$0xff]  ;;  %v1796_v9 = vld [vmem:[#allocation7_spill] sm:$0xff] }
  0xd1   : > { %v592_v18 = vmul.f32 %v1304_v50, %v582_v19  ;;  %v604_v29 = vmul.f32 %v1309_v51, %v583_v23  ;;  %v774_v7 = vadd.f32 %v766_v3, %v758_v24  ;;  %v687_v39 = vadd.f32 %v1457_v49, %v668_v62 }
  0xd2   : > { %v792_v57 = vmax.f32 %v784_v14, 0.0  ;;  %v777_v35 = vadd.f32 %v769_v37, %v761_v48  ;;  %v751_v53 = vsel %vm1606_vm14, %v631_v59, 0.0  ;;  %v624_v54 = vmul.f32 %v1318_v58, %v1422_v16 }
  0xd3   : > { %v612_v41 = vadd.f32 %v604_v29, %v592_v18  ;;  %v650_v52 = vmul.f32 %v1323_v60, %v640_v36  ;;  %v427_v61 = vand.u32 7, %v419_v8  ;;  %v743_v56 = vadd.f32 %v1577_v30, %v724_v22  ;;  %v1798_v18 = vld [vmem:[#allocation4_spill] sm:$0xff] }
  0xd4   : > { %1100 = vmatmul.msk.f32.gmra.mxu1 %vm407_vm1, %v792_v57  ;;  %v788_v50 = vadd.f32 %v1418_v20, %v777_v35  ;;  %v680_v49 = vmul.f32 %v1338_v10, %v1451_v46  ;;  %v706_v48 = vmul.f32 %v1355_v21, %v696_v31  ;;  %v717_v58 = vmul.f32 %v1345_v13, %v1478_v25  ;;  %v1799_v35 = vld [vmem:[#allocation5_spill] sm:$0xff] }
  0xd5   : > { %v785_v16 = vadd.f32 %v1418_v20, %v774_v7  ;;  %v767_v23 = vadd.f32 %v751_v53, %v687_v39  ;;  %v669_v19 = vadd.f32 %v661_v32, %v650_v52  ;;  %v632_v40 = vadd.f32 %v624_v54, %v612_v41  ;;  %v950_v53 = vld [vmem:[%s1674_s30] sm:$0xff]  ;;  %v953_v41 = vld [vmem:[%s1674_s30 + $0x8] sm:$0xff] }
  0xd6   : > { %v796_v60 = vmax.f32 %v788_v50, 0.0  ;;  %vm435_vm2 = vcmp.ne.s32.totalorder %v427_v61, 0  ;;  %v759_v30 = vsel %vm1623_vm15, %v743_v56, 0.0  ;;  %v725_v36 = vadd.f32 %v717_v58, %v706_v48  ;;  %v960_v56 = vld [vmem:[%s1674_s30 + $0x18] sm:$0xff] }
  0xd7   : > { %v736_v10 = vmul.f32 %v1371_v33, %v1453_v47  ;;  %v793_v21 = vmax.f32 %v785_v16, 0.0  ;;  %v775_v46 = vadd.f32 %v767_v23, %v759_v30  ;;  %v688_v31 = vadd.f32 %v680_v49, %v669_v19  ;;  %v874_v33 = vld [vmem:[%s1741_s2 + $0x8] sm:$0xff]  ;;  %v873_v47 = vld [vmem:[%s1741_s2] sm:$0xff] }
  0xd8   : > { %1104 = vmatmul.msk.f32.vlgmr.msrb.gmra.mxu3 %vm407_vm1, %v796_v60  ;;  %v752_v13 = vsel %vm435_vm2, %v632_v40, 0.0  ;;  %vm443_vm3 = vcmp.ne.s32.totalorder %v427_v61, 7  ;;  %913 = vmatpush.msra.mxu2 %v874_v33  ;;  %v957_v61 = vld [vmem:[%s1674_s30 + $0x10] sm:$0xff]  ;;  %v964_v16 = vld [vmem:[%s1674_s30 + $0x20] sm:$0xff]  ;;  %v967_v23 = vld [vmem:[%s1674_s30 + $0x28] sm:$0xff] }
  0xd9   : > { %v744_v25 = vadd.f32 %v736_v10, %v725_v36  ;;  %v786_v63 = vadd.f32 %v1418_v20, %v775_v46  ;;  %v768_v42 = vadd.f32 %v752_v13, %v688_v31  ;;  %1121 = vmatpush.msra.mxu3 %v874_v33  ;;  %v971_v10 = vld [vmem:[%s1674_s30 + $0x30] sm:$0xff]  ;;  %v988_v33 = vld [vmem:[%s1674_s30 + $0x58] sm:$0xff] }
  0xda   : > { %914 = vmatpush.msra.mxu2 %v873_v47 }
  0xdb   : > { %v760_v6 = vsel %vm443_vm3, %v744_v25, 0.0  ;;  %v794_v28 = vmax.f32 %v786_v63, 0.0  ;;  %1122 = vmatpush.msra.mxu3 %v873_v47  ;;  %v978_v63 = vld [vmem:[%s1674_s30 + $0x40] sm:$0xff] }
  0xdc   : > { %1101 = vmatmul.msk.f32.gmra.mxu1 %vm407_vm1, %v793_v21  ;;  %v776_v38 = vadd.f32 %v768_v42, %v760_v6  ;;  %v974_v21 = vld [vmem:[%s1674_s30 + $0x38] sm:$0xff]  ;;  %v981_v42 = vld [vmem:[%s1674_s30 + $0x48] sm:$0xff] }
  0xde   : > { %v787_v44 = vadd.f32 %v1418_v20, %v776_v38 }
  0xe0   : > { %v795_v27 = vmax.f32 %v787_v44, 0.0 }
  0xe4   : > { %1102 = vmatmul.msk.f32.gmra.mxu1 %vm407_vm1, %v794_v28 }
  0xec   : > { %1103 = vmatmul.msk.f32.gmra.mxu1 %vm407_vm1, %v795_v27  ;;  %vm940_vm1 = vcmask 261120   ;;  %v985_v27 = vld [vmem:[%s1674_s30 + $0x50] sm:$0xff] }
 0x139   : > { %v841_v20 = vpop.f32.mrf.mxu1 }
 0x13a   : > { %v842_v15 = vadd.f32 %v1145_v45, %v841_v20 }
 0x13c   : > { %v865_v12 = vadd.f32 %v842_v15, %v1244_v4 }
 0x13e   : > { %1105 = vmatmul.msk.f32.vlgmr.msra.gmra.mxu2 %vm494_vm0, %v865_v12  ;;  %v992_v12 = vld [vmem:[%s1674_s30 + $0x60] sm:$0xff] }
 0x141   : > { %v844_v0 = vpop.f32.mrf.mxu1 }
 0x142   : > { %v845_v55 = vadd.f32 %v1145_v45, %v844_v0  ;;  %v995_v0 = vld [vmem:[%s1674_s30 + $0x68] sm:$0xff] }
 0x144   : > { %v866_v1 = vadd.f32 %v845_v55, %v1247_v5 }
 0x146   : > { %1106 = vmatmul.msk.f32.gmra.mxu2 %vm494_vm0, %v866_v1 }
 0x149   : > { %v847_v11 = vpop.f32.mrf.mxu1 }
 0x14a   : > { %v848_v43 = vadd.f32 %v1145_v45, %v847_v11 }
 0x14c   : > { %v867_v3 = vadd.f32 %v848_v43, %v1261_v17 }
 0x14e   : > { %1107 = vmatmul.msk.f32.gmra.mxu2 %vm494_vm0, %v867_v3  ;;  %v999_v3 = vld [vmem:[%s1674_s30 + $0x70] sm:$0xff] }
 0x151   : > { %v850_v59 = vpop.f32.mrf.mxu1 }
 0x152   : > { %v851_v62 = vadd.f32 %v1145_v45, %v850_v59  ;;  %v1002_v59 = vld [vmem:[%s1674_s30 + $0x78] sm:$0xff] }
 0x154   : > { %v868_v24 = vadd.f32 %v851_v62, %v1795_v26 }
 0x156   : > { %1108 = vmatmul.msk.f32.gmra.mxu2 %vm494_vm0, %v868_v24 }
 0x159   : > { %v853_v4 = vpop.f32.mrf.mxu1 }
 0x15a   : > { %v854_v2 = vadd.f32 %v1145_v45, %v853_v4 }
 0x15b   : > { %v862_v32 = vpop.f32.mrf.mxu3 }
 0x15c   : > { %v869_v14 = vadd.f32 %v854_v2, %v1796_v9  ;;  %v863_v57 = vadd.f32 %v1145_v45, %v862_v32 }
 0x15e   : > { %1109 = vmatmul.msk.f32.gmra.mxu2 %vm494_vm0, %v869_v14  ;;  %v872_v7 = vadd.f32 %v863_v57, %v1799_v35 }
 0x161   : > { %v856_v5 = vpop.f32.mrf.mxu1 }
 0x162   : > { %v857_v37 = vadd.f32 %v1145_v45, %v856_v5 }
 0x164   : > { %v870_v8 = vadd.f32 %v857_v37, %v1797_v34 }
 0x166   : > { %1110 = vmatmul.msk.f32.gmra.mxu2 %vm494_vm0, %v870_v8 }
 0x169   : > { %v859_v17 = vpop.f32.mrf.mxu1 }
 0x16a   : > { %v860_v22 = vadd.f32 %v1145_v45, %v859_v17 }
 0x16c   : > { %v871_v29 = vadd.f32 %v860_v22, %v1798_v18 }
 0x16e   : > { %1111 = vmatmul.msk.f32.vlgmr.msra.gmra.mxu3 %vm494_vm0, %v871_v29 }
 0x176   : > { %1112 = vmatmul.msk.f32.gmra.mxu3 %vm494_vm0, %v872_v7 }
 0x1c1   : > { %v916_v39 = vpop.f32.mrf.mxu2 }
 0x1c2   : > { %941 = vst.msk [vmem:[#allocation3] sm:$0xff] %vm940_vm1, %v916_v39 }
 0x1c9   : > { %v949_v54 = vld [vmem:[#allocation3] sm:$0xff]  ;;  %v919_v52 = vpop.f32.mrf.mxu2 }
 0x1ca   : > { %v951_v50 = vadd.f32 %v950_v53, %v949_v54  ;;  %v954_v51 = vadd.f32 %v953_v41, %v949_v54  ;;  %942 = vst.msk [vmem:[#allocation3 + $0x8] sm:$0xff] %vm940_vm1, %v919_v52 }
 0x1cc   : > { %952 = vst.msk [vmem:[%s1681_s14] sm:$0xff] %vm940_vm1, %v951_v50 }
 0x1cd   : > { %955 = vst.msk [vmem:[%s1681_s14 + $0x8] sm:$0xff] %vm940_vm1, %v954_v51 }
 0x1d1   : > { %v956_v49 = vld [vmem:[#allocation3 + $0x8] sm:$0xff]  ;;  %v922_v48 = vpop.f32.mrf.mxu2 }
 0x1d2   : > { %v958_v58 = vadd.f32 %v957_v61, %v956_v49  ;;  %v961_v60 = vadd.f32 %v960_v56, %v956_v49  ;;  %943 = vst.msk [vmem:[#allocation3 + $0x10] sm:$0xff] %vm940_vm1, %v922_v48 }
 0x1d4   : > { %959 = vst.msk [vmem:[%s1681_s14 + $0x10] sm:$0xff] %vm940_vm1, %v958_v58 }
 0x1d5   : > { %962 = vst.msk [vmem:[%s1681_s14 + $0x18] sm:$0xff] %vm940_vm1, %v961_v60 }
 0x1d9   : > { %v963_v19 = vld [vmem:[#allocation3 + $0x10] sm:$0xff]  ;;  %v925_v40 = vpop.f32.mrf.mxu2 }
 0x1da   : > { %v965_v30 = vadd.f32 %v964_v16, %v963_v19  ;;  %v968_v36 = vadd.f32 %v967_v23, %v963_v19  ;;  %944 = vst.msk [vmem:[#allocation3 + $0x18] sm:$0xff] %vm940_vm1, %v925_v40 }
 0x1dc   : > { %966 = vst.msk [vmem:[%s1681_s14 + $0x20] sm:$0xff] %vm940_vm1, %v965_v30 }
 0x1dd   : > { %969 = vst.msk [vmem:[%s1681_s14 + $0x28] sm:$0xff] %vm940_vm1, %v968_v36 }
 0x1e1   : > { %v970_v46 = vld [vmem:[#allocation3 + $0x18] sm:$0xff]  ;;  %v928_v31 = vpop.f32.mrf.mxu2 }
 0x1e2   : > { %v972_v13 = vadd.f32 %v971_v10, %v970_v46  ;;  %v975_v25 = vadd.f32 %v974_v21, %v970_v46  ;;  %945 = vst.msk [vmem:[#allocation3 + $0x20] sm:$0xff] %vm940_vm1, %v928_v31 }
 0x1e4   : > { %973 = vst.msk [vmem:[%s1681_s14 + $0x30] sm:$0xff] %vm940_vm1, %v972_v13 }
 0x1e5   : > { %976 = vst.msk [vmem:[%s1681_s14 + $0x38] sm:$0xff] %vm940_vm1, %v975_v25 }
 0x1e9   : > { %v977_v6 = vld [vmem:[#allocation3 + $0x20] sm:$0xff]  ;;  %v931_v28 = vpop.f32.mrf.mxu2 }
 0x1ea   : > { %v979_v38 = vadd.f32 %v978_v63, %v977_v6  ;;  %v982_v44 = vadd.f32 %v981_v42, %v977_v6  ;;  %946 = vst.msk [vmem:[#allocation3 + $0x28] sm:$0xff] %vm940_vm1, %v931_v28 }
 0x1ec   : > { %980 = vst.msk [vmem:[%s1681_s14 + $0x40] sm:$0xff] %vm940_vm1, %v979_v38 }
 0x1ed   : > { %983 = vst.msk [vmem:[%s1681_s14 + $0x48] sm:$0xff] %vm940_vm1, %v982_v44 }
 0x1f1   : > { %v984_v47 = vld [vmem:[#allocation3 + $0x28] sm:$0xff]  ;;  %v934_v45 = vpop.f32.mrf.mxu3 }
 0x1f2   : > { %v986_v20 = vadd.f32 %v985_v27, %v984_v47  ;;  %v989_v15 = vadd.f32 %v988_v33, %v984_v47  ;;  %947 = vst.msk [vmem:[#allocation3 + $0x30] sm:$0xff] %vm940_vm1, %v934_v45 }
 0x1f4   : > { %987 = vst.msk [vmem:[%s1681_s14 + $0x50] sm:$0xff] %vm940_vm1, %v986_v20 }
 0x1f5   : > { %990 = vst.msk [vmem:[%s1681_s14 + $0x58] sm:$0xff] %vm940_vm1, %v989_v15 }
 0x1f9   : > { %v991_v55 = vld [vmem:[#allocation3 + $0x30] sm:$0xff]  ;;  %v937_v1 = vpop.f32.mrf.mxu3 }
 0x1fa   : > { %v993_v11 = vadd.f32 %v992_v12, %v991_v55  ;;  %v996_v43 = vadd.f32 %v995_v0, %v991_v55  ;;  %948 = vst.msk [vmem:[#allocation3 + $0x38] sm:$0xff] %vm940_vm1, %v937_v1 }
 0x1fc   : > { %994 = vst.msk [vmem:[%s1681_s14 + $0x60] sm:$0xff] %vm940_vm1, %v993_v11 }
 0x1fd   : > { %997 = vst.msk [vmem:[%s1681_s14 + $0x68] sm:$0xff] %vm940_vm1, %v996_v43 }
 0x201   : > { %v998_v62 = vld [vmem:[#allocation3 + $0x38] sm:$0xff] }
 0x202   : > { %v1000_v26 = vadd.f32 %v999_v3, %v998_v62  ;;  %v1003_v24 = vadd.f32 %v1002_v59, %v998_v62 }
 0x204   : > { %1001 = vst.msk [vmem:[%s1681_s14 + $0x70] sm:$0xff] %vm940_vm1, %v1000_v26 }
 0x205   : > { %1004 = vst.msk [vmem:[%s1681_s14 + $0x78] sm:$0xff] %vm940_vm1, %v1003_v24 }
 0x206 PF: > { %s21_s17 = sadd.s32 1, %s1152_s17  }
 0x207   : > { %p18_p4 = scmp.ge.s32.totalorder %s21_s17, 4  }
 0x209   :  { %20 = sbr.rel (!%p18_p4) target bundleno = 1 (0x1), region = 99 }

// kernel: hourglass_forward.7
= control target key start
LH: loop header
LB: loop body
LE: loop exit
PB: predicated region body
PF: predicated region fallthrough
CT: control target
= control target key end

     0   :  { %s2233_s30 = smov 0   ;;  %s3860_s0 = inlined_call_operand.vmem [shape: f32[2,256,16], index: 0, kind: input, shape index: {}]   ;;  %s3861_s1 = inlined_call_operand.vmem [shape: f32[1,16], index: 1, kind: input, shape index: {}]   ;;  %s3862_s2 = inlined_call_operand.vmem [shape: f32[1,16], index: 2, kind: input, shape index: {}]   ;;  %s3863_s3 = inlined_call_operand.vmem [shape: f32[1,16,8], index: 3, kind: input, shape index: {}]   ;;  %s3864_s4 = inlined_call_operand.vmem [shape: f32[1,8], index: 4, kind: input, shape index: {}]   ;;  %s3865_s5 = inlined_call_operand.vmem [shape: f32[1,3,3,8], index: 5, kind: input, shape index: {}]   ;;  %s3866_s6 = inlined_call_operand.vmem [shape: f32[1,8], index: 6, kind: input, shape index: {}]   ;;  %s3867_s7 = inlined_call_operand.vmem [shape: f32[1,8,16], index: 7, kind: input, shape index: {}]   ;;  %s3868_s8 = inlined_call_operand.vmem [shape: f32[1,16], index: 8, kind: input, shape index: {}]   ;;  %s3869_s9 = inlined_call_operand.vmem [shape: f32[2,256,16], index: 9, kind: output, shape index: {}]  }
   0x1 LB: > { %s2022_s10 = sadd.s32 4294967295, %s2180_s30   ;;  %p2026_p0 = scmp.ge.s32.totalorder %s2180_s30, 1  ;;  %s2180_s30 = sphi %s2233_s30, %s19_s30  }
   0x2   : > { %p287_p1 = scmp.lt.s32.totalorder %s2180_s30, 3 }
   0x4   : > { %p288_p2 = pnand %p2026_p0, %p287_p1 }
   0x6   : > { %291 = sbr.rel (%p288_p2) target bundleno = 550 (0x226), region = 56 }
   0xb   : > { %v504_v0 = vld [vmem:[%s3863_s3 + $0x8] sm:$0xff]  ;;  %v503_v1 = vld [vmem:[%s3863_s3] sm:$0xff]  ;;  %p323_p3 = scmp.lt.s32.totalorder %s2022_s10, 1  ;;  %vm614_vm0 = vcmask 130048   ;;  %vm333_vm1 = vcmask 64512  }
   0xc   : > { %725 = vmatpush.msra.mxu0 %v504_v0  ;;  %v2250_v2 = vld [vmem:[%s3861_s1] ss:$0 sm:$0xff]  ;;  %2105 = vmatpush.msra.mxu2 %v504_v0 }
   0xd   : > { %s4011_s10 = smov (!%p323_p3, %s2022_s10), 1  ;;  %v2257_v3 = vld [vmem:[%s3862_s2] ss:$0 sm:$0xff] }
   0xe   : > { %726 = vmatpush.msra.mxu0 %v503_v1  ;;  %2106 = vmatpush.msra.mxu2 %v503_v1  ;;  %s2103_s19 = sshll.u32 %s4011_s10, 8 }
   0xf   : > { %s2265_s22 = scalar_lea.vmem %s3860_s0, %s2103_s19  ;;  %s3467_s21 = scalar_lea.vmem %s3869_s9, %s2103_s19 }
  0x10   : > { %v469_v4 = vld [vmem:[%s2265_s22] sm:$0xff]  ;;  %v470_v5 = vld [vmem:[%s2265_s22 + $0x8] sm:$0xff]  ;;  %v471_v11 = vld [vmem:[%s2265_s22 + $0x10] sm:$0xff] }
  0x11   : > { %v512_v6 = vmul.f32 %v2250_v2, %v469_v4  ;;  %v513_v8 = vmul.f32 %v2250_v2, %v470_v5  ;;  %v485_v12 = vld [vmem:[%s2265_s22 + $0x80] sm:$0xff]  ;;  %v514_v15 = vmul.f32 %v2250_v2, %v471_v11  ;;  %v472_v19 = vld [vmem:[%s2265_s22 + $0x18] sm:$0xff]  ;;  %v486_v20 = vld [vmem:[%s2265_s22 + $0x88] sm:$0xff] }
  0x12   : > { %v528_v13 = vmul.f32 %v2250_v2, %v485_v12  ;;  %v529_v21 = vmul.f32 %v2250_v2, %v486_v20  ;;  %v515_v23 = vmul.f32 %v2250_v2, %v472_v19  ;;  %v473_v27 = vld [vmem:[%s2265_s22 + $0x20] sm:$0xff]  ;;  %v487_v28 = vld [vmem:[%s2265_s22 + $0x90] sm:$0xff]  ;;  %v474_v35 = vld [vmem:[%s2265_s22 + $0x28] sm:$0xff] }
  0x13   : > { %v547_v7 = vadd.f32 %v2257_v3, %v512_v6  ;;  %v548_v10 = vadd.f32 %v2257_v3, %v513_v8  ;;  %v549_v18 = vadd.f32 %v2257_v3, %v514_v15  ;;  %v530_v29 = vmul.f32 %v2250_v2, %v487_v28  ;;  %v488_v36 = vld [vmem:[%s2265_s22 + $0x98] sm:$0xff]  ;;  %v475_v43 = vld [vmem:[%s2265_s22 + $0x30] sm:$0xff]  ;;  %v489_v44 = vld [vmem:[%s2265_s22 + $0xa0] sm:$0xff] }
  0x14   : > { %v563_v16 = vadd.f32 %v2257_v3, %v528_v13  ;;  %v564_v24 = vadd.f32 %v2257_v3, %v529_v21  ;;  %v550_v26 = vadd.f32 %v2257_v3, %v515_v23  ;;  %v516_v31 = vmul.f32 %v2250_v2, %v473_v27  ;;  %v476_v51 = vld [vmem:[%s2265_s22 + $0x38] sm:$0xff]  ;;  %v490_v52 = vld [vmem:[%s2265_s22 + $0xa8] sm:$0xff]  ;;  %v477_v59 = vld [vmem:[%s2265_s22 + $0x40] sm:$0xff] }
  0x15   : > { %v579_v9 = vmax.f32 %v547_v7, 0.0  ;;  %v580_v14 = vmax.f32 %v548_v10, 0.0  ;;  %v581_v22 = vmax.f32 %v549_v18, 0.0  ;;  %v565_v32 = vadd.f32 %v2257_v3, %v530_v29  ;;  %v491_v60 = vld [vmem:[%s2265_s22 + $0xb0] sm:$0xff]  ;;  %v478_v5 = vld [vmem:[%s2265_s22 + $0x48] sm:$0xff]  ;;  %v492_v6 = vld [vmem:[%s2265_s22 + $0xb8] sm:$0xff] }
  0x16   : > { %v595_v17 = vmax.f32 %v563_v16, 0.0  ;;  %v596_v25 = vmax.f32 %v564_v24, 0.0  ;;  %v582_v30 = vmax.f32 %v550_v26, 0.0  ;;  %v551_v34 = vadd.f32 %v2257_v3, %v516_v31  ;;  %v479_v13 = vld [vmem:[%s2265_s22 + $0x50] sm:$0xff]  ;;  %v480_v21 = vld [vmem:[%s2265_s22 + $0x58] sm:$0xff]  ;;  %v481_v29 = vld [vmem:[%s2265_s22 + $0x60] sm:$0xff] }
  0x17   : > { %2031 = vmatmul.msk.f32.vlgmr.msra.gmra.mxu0 %vm614_vm0, %v579_v9  ;;  %v597_v33 = vmax.f32 %v565_v32, 0.0  ;;  %v531_v37 = vmul.f32 %v2250_v2, %v488_v36  ;;  %v517_v39 = vmul.f32 %v2250_v2, %v474_v35  ;;  %v532_v45 = vmul.f32 %v2250_v2, %v489_v44 }
  0x18   : > { %2047 = vmatmul.msk.f32.vlgmr.msra.gmra.mxu2 %vm614_vm0, %v595_v17  ;;  %v583_v38 = vmax.f32 %v551_v34, 0.0  ;;  %v518_v47 = vmul.f32 %v2250_v2, %v475_v43  ;;  %v533_v53 = vmul.f32 %v2250_v2, %v490_v52  ;;  %v519_v55 = vmul.f32 %v2250_v2, %v476_v51 }
  0x19   : > { %v566_v40 = vadd.f32 %v2257_v3, %v531_v37  ;;  %v552_v42 = vadd.f32 %v2257_v3, %v517_v39  ;;  %v567_v48 = vadd.f32 %v2257_v3, %v532_v45  ;;  %v534_v61 = vmul.f32 %v2250_v2, %v491_v60  ;;  %v482_v37 = vld [vmem:[%s2265_s22 + $0x68] sm:$0xff]  ;;  %v483_v45 = vld [vmem:[%s2265_s22 + $0x70] sm:$0xff] }
  0x1a   : > { %v553_v50 = vadd.f32 %v2257_v3, %v518_v47  ;;  %v568_v56 = vadd.f32 %v2257_v3, %v533_v53  ;;  %v554_v58 = vadd.f32 %v2257_v3, %v519_v55  ;;  %v520_v63 = vmul.f32 %v2250_v2, %v477_v59  ;;  %v498_v55 = vld [vmem:[%s2265_s22 + $0xe8] sm:$0xff] }
  0x1b   : > { %v598_v41 = vmax.f32 %v566_v40, 0.0  ;;  %v584_v46 = vmax.f32 %v552_v42, 0.0  ;;  %v599_v49 = vmax.f32 %v567_v48, 0.0  ;;  %v569_v0 = vadd.f32 %v2257_v3, %v534_v61 }
  0x1c   : > { %v585_v54 = vmax.f32 %v553_v50, 0.0  ;;  %v600_v57 = vmax.f32 %v568_v56, 0.0  ;;  %v586_v62 = vmax.f32 %v554_v58, 0.0  ;;  %v555_v4 = vadd.f32 %v2257_v3, %v520_v63 }
  0x1d   : > { %v601_v1 = vmax.f32 %v569_v0, 0.0  ;;  %v535_v7 = vmul.f32 %v2250_v2, %v492_v6  ;;  %v521_v9 = vmul.f32 %v2250_v2, %v478_v5  ;;  %v522_v17 = vmul.f32 %v2250_v2, %v479_v13  ;;  %v2400_v5 = vld [vmem:[%s3864_s4] ss:$0 sm:$0xff]  ;;  %v500_v6 = vld [vmem:[%s2265_s22 + $0xf8] sm:$0xff] }
  0x1e   : > { %v587_v8 = vmax.f32 %v555_v4, 0.0  ;;  %v2182_v48 = vmov 0.0   ;;  %v526_v50 = vmul.f32 %v2250_v2, %v483_v45  ;;  %v541_v56 = vmul.f32 %v2250_v2, %v498_v55 }
  0x1f   : > { %2032 = vmatmul.msk.f32.gmra.mxu0 %vm614_vm0, %v580_v14  ;;  %v570_v10 = vadd.f32 %v2257_v3, %v535_v7  ;;  %v556_v12 = vadd.f32 %v2257_v3, %v521_v9  ;;  %v493_v14 = vld [vmem:[%s2265_s22 + $0xc0] sm:$0xff]  ;;  %v557_v20 = vadd.f32 %v2257_v3, %v522_v17  ;;  %334 = vst.msk [vmem:[#allocation2] sm:$0xff] %vm333_vm1, %v2182_v48 }
  0x20   : > { %2048 = vmatmul.msk.f32.gmra.mxu2 %vm614_vm0, %v596_v25  ;;  %v536_v15 = vmul.f32 %v2250_v2, %v493_v14  ;;  %v523_v25 = vmul.f32 %v2250_v2, %v480_v21  ;;  %335 = vst.msk [vmem:[#allocation2 + $0x8] sm:$0xff] %vm333_vm1, %v2182_v48  ;;  %v561_v53 = vadd.f32 %v2257_v3, %v526_v50  ;;  %v340_v21 = vlaneseq }
  0x21   : > { %v602_v11 = vmax.f32 %v570_v10, 0.0  ;;  %v588_v16 = vmax.f32 %v556_v12, 0.0  ;;  %v589_v24 = vmax.f32 %v557_v20, 0.0  ;;  %336 = vst.msk [vmem:[#allocation2 + $0x10] sm:$0xff] %vm333_vm1, %v2182_v48  ;;  %v576_v59 = vadd.f32 %v2257_v3, %v541_v56 }
  0x22   : > { %v571_v18 = vadd.f32 %v2257_v3, %v536_v15  ;;  %v558_v28 = vadd.f32 %v2257_v3, %v523_v25  ;;  %337 = vst.msk [vmem:[#allocation2 + $0x118] sm:$0xff] %vm333_vm1, %v2182_v48  ;;  %v543_v7 = vmul.f32 %v2250_v2, %v500_v6 }
  0x23   : > { %338 = vst.msk [vmem:[#allocation2 + $0x120] sm:$0xff] %vm333_vm1, %v2182_v48  ;;  %v608_v60 = vmax.f32 %v576_v59, 0.0 }
  0x24   : > { %v603_v19 = vmax.f32 %v571_v18, 0.0  ;;  %v590_v32 = vmax.f32 %v558_v28, 0.0  ;;  %339 = vst.msk [vmem:[#allocation2 + $0x128] sm:$0xff] %vm333_vm1, %v2182_v48  ;;  %v578_v10 = vadd.f32 %v2257_v3, %v543_v7  ;;  %v2473_v48 = vld [vmem:[%s3865_s5 + $0x6] ss:$0 sm:$0xff] }
  0x26   : > { %v610_v12 = vmax.f32 %v578_v10, 0.0 }
  0x27   : > { %2033 = vmatmul.msk.f32.gmra.mxu0 %vm614_vm0, %v581_v22  ;;  %v494_v22 = vld [vmem:[%s2265_s22 + $0xc8] sm:$0xff] }
  0x28   : > { %2049 = vmatmul.msk.f32.gmra.mxu2 %vm614_vm0, %v597_v33  ;;  %v537_v23 = vmul.f32 %v2250_v2, %v494_v22  ;;  %v524_v33 = vmul.f32 %v2250_v2, %v481_v29  ;;  %v2420_v22 = vld [vmem:[%s3865_s5] ss:$0 sm:$0xff]  ;;  %v888_v25 = vld [vmem:[#allocation2 + $0x7] sm:$0xff]  ;;  %v2430_v29 = vshrl.u32 %v340_v21, 7  ;;  %v1093_v7 = vld [vmem:[#allocation2 + $0x10] sm:$0xff] }
  0x2a   : > { %v572_v26 = vadd.f32 %v2257_v3, %v537_v23  ;;  %v559_v36 = vadd.f32 %v2257_v3, %v524_v33  ;;  %v2425_v23 = vld [vmem:[%s3865_s5 + $0x4] ss:$0 sm:$0xff]  ;;  %3897 = vst [vmem:[#allocation3_spill] sm:$0xff] %v2430_v29  ;;  %v2446_v33 = vld [vmem:[%s3865_s5 + $0x5] ss:$0 sm:$0xff] }
  0x2c   : > { %v604_v27 = vmax.f32 %v572_v26, 0.0  ;;  %v591_v40 = vmax.f32 %v559_v36, 0.0 }
  0x2f   : > { %2034 = vmatmul.msk.f32.gmra.mxu0 %vm614_vm0, %v582_v30  ;;  %v495_v30 = vld [vmem:[%s2265_s22 + $0xd0] sm:$0xff] }
  0x30   : > { %2050 = vmatmul.msk.f32.gmra.mxu2 %vm614_vm0, %v598_v41  ;;  %v538_v31 = vmul.f32 %v2250_v2, %v495_v30  ;;  %v525_v41 = vmul.f32 %v2250_v2, %v482_v37  ;;  %v2435_v30 = vld [vmem:[%s3865_s5 + $0x1] ss:$0 sm:$0xff]  ;;  %v1092_v37 = vld [vmem:[#allocation2 + $0x8] sm:$0xff] }
  0x31   : > { %v1126_v45 = vmul.f32 %v2435_v30, %v1092_v37 }
  0x32   : > { %v573_v34 = vadd.f32 %v2257_v3, %v538_v31  ;;  %v560_v44 = vadd.f32 %v2257_v3, %v525_v41  ;;  %v373_v41 = vand.u32 15, %v2430_v29 }
  0x34   : > { %v605_v35 = vmax.f32 %v573_v34, 0.0  ;;  %vm2485_vm2 = vcmp.ne.s32.totalorder %v373_v41, 0 }
  0x37   : > { %2035 = vmatmul.msk.f32.gmra.mxu0 %vm614_vm0, %v583_v38  ;;  %v496_v38 = vld [vmem:[%s2265_s22 + $0xd8] sm:$0xff] }
  0x38   : > { %2051 = vmatmul.msk.f32.gmra.mxu2 %vm614_vm0, %v599_v49  ;;  %v539_v39 = vmul.f32 %v2250_v2, %v496_v38  ;;  %v592_v49 = vmax.f32 %v560_v44, 0.0 }
  0x3a   : > { %v574_v42 = vadd.f32 %v2257_v3, %v539_v39 }
  0x3c   : > { %v606_v43 = vmax.f32 %v574_v42, 0.0 }
  0x3f   : > { %2036 = vmatmul.msk.f32.gmra.mxu0 %vm614_vm0, %v584_v46  ;;  %v497_v46 = vld [vmem:[%s2265_s22 + $0xe0] sm:$0xff] }
  0x40   : > { %2052 = vmatmul.msk.f32.gmra.mxu2 %vm614_vm0, %v600_v57  ;;  %v540_v47 = vmul.f32 %v2250_v2, %v497_v46  ;;  %v593_v57 = vmax.f32 %v561_v53, 0.0 }
  0x42   : > { %v575_v51 = vadd.f32 %v2257_v3, %v540_v47  ;;  %v1294_v47 = vld [vmem:[#allocation2 + $0x9] sm:$0xff] }
  0x44   : > { %v607_v52 = vmax.f32 %v575_v51, 0.0  ;;  %v2480_v51 = vld [vmem:[%s3865_s5 + $0x2] ss:$0 sm:$0xff] }
  0x47   : > { %2037 = vmatmul.msk.f32.gmra.mxu0 %vm614_vm0, %v585_v54  ;;  %v484_v54 = vld [vmem:[%s2265_s22 + $0x78] sm:$0xff] }
  0x48   : > { %2053 = vmatmul.msk.f32.gmra.mxu2 %vm614_vm0, %v601_v1  ;;  %v527_v58 = vmul.f32 %v2250_v2, %v484_v54 }
  0x4a   : > { %v562_v61 = vadd.f32 %v2257_v3, %v527_v58  ;;  %v1328_v58 = vmul.f32 %v2480_v51, %v1294_v47 }
  0x4c   : > { %v594_v0 = vmax.f32 %v562_v61, 0.0 }
  0x4f   : > { %2038 = vmatmul.msk.f32.gmra.mxu0 %vm614_vm0, %v586_v62  ;;  %v499_v62 = vld [vmem:[%s2265_s22 + $0xf0] sm:$0xff] }
  0x50   : > { %2054 = vmatmul.msk.f32.gmra.mxu2 %vm614_vm0, %v602_v11  ;;  %v542_v63 = vmul.f32 %v2250_v2, %v499_v62  ;;  %v507_v2 = vld [vmem:[%s3867_s7] sm:$0xff]  ;;  %v2496_v62 = vld [vmem:[%s3865_s5 + $0xa] ss:$0 sm:$0xff] }
  0x51   : > { %1805 = vmatpush.msra.mxu1 %v507_v2  ;;  %2107 = vmatpush.msra.mxu3 %v507_v2 }
  0x52   : > { %v577_v1 = vadd.f32 %v2257_v3, %v542_v63 }
  0x54   : > { %v609_v4 = vmax.f32 %v577_v1, 0.0 }
  0x57   : > { %2039 = vmatmul.msk.f32.gmra.mxu0 %vm614_vm0, %v587_v8 }
  0x58   : > { %2055 = vmatmul.msk.f32.gmra.mxu2 %vm614_vm0, %v603_v19 }
  0x5f   : > { %2040 = vmatmul.msk.f32.gmra.mxu0 %vm614_vm0, %v588_v16 }
  0x60   : > { %2056 = vmatmul.msk.f32.gmra.mxu2 %vm614_vm0, %v604_v27 }
  0x67   : > { %2041 = vmatmul.msk.f32.gmra.mxu0 %vm614_vm0, %v589_v24 }
  0x68   : > { %2057 = vmatmul.msk.f32.gmra.mxu2 %vm614_vm0, %v605_v35  ;;  %v922_v35 = vmul.f32 %v2420_v22, %v888_v25  ;;  %v343_v25 = vadd.s32 16, %v2430_v29 }
  0x6f   : > { %2042 = vmatmul.msk.f32.gmra.mxu0 %vm614_vm0, %v590_v32  ;;  %v2441_v32 = vld [vmem:[%s3865_s5 + $0x8] ss:$0 sm:$0xff] }
  0x70   : > { %2058 = vmatmul.msk.f32.gmra.mxu2 %vm614_vm0, %v606_v43 }
  0x77   : > { %2043 = vmatmul.msk.f32.gmra.mxu0 %vm614_vm0, %v591_v40  ;;  %v2456_v40 = vld [vmem:[%s3865_s5 + $0x9] ss:$0 sm:$0xff] }
  0x78   : > { %2059 = vmatmul.msk.f32.gmra.mxu2 %vm614_vm0, %v607_v52 }
  0x7f   : > { %2044 = vmatmul.msk.f32.gmra.mxu0 %vm614_vm0, %v592_v49 }
  0x80   : > { %2060 = vmatmul.msk.f32.gmra.mxu2 %vm614_vm0, %v608_v60 }
  0x87   : > { %2045 = vmatmul.msk.f32.gmra.mxu0 %vm614_vm0, %v593_v57 }
  0x88   : > { %2061 = vmatmul.msk.f32.gmra.mxu2 %vm614_vm0, %v609_v4 }
  0x8f   : > { %2046 = vmatmul.msk.f32.gmra.mxu0 %vm614_vm0, %v594_v0  ;;  %v889_v0 = vld [vmem:[#allocation2 + $0xf] sm:$0xff] }
  0x90   : > { %2062 = vmatmul.msk.f32.gmra.mxu2 %vm614_vm0, %v610_v12  ;;  %v923_v2 = vmul.f32 %v2420_v22, %v889_v0 }
  0x94   : > { %v728_v8 = vpop.f32.mrf.mxu0 }
  0x95   : > { %v729_v9 = vadd.f32 %v2400_v5, %v728_v8 }
  0x97   : > { %v824_v11 = vmax.f32 %v729_v9, 0.0 }
  0x99   : > { %856 = vst.msk [vmem:[#allocation2 + $0x18] sm:$0xff] %vm333_vm1, %v824_v11 }
  0x9b   : > { %v776_v16 = vpop.f32.mrf.mxu2 }
  0x9c   : > { %v731_v13 = vpop.f32.mrf.mxu0  ;;  %v777_v3 = vadd.f32 %v2400_v5, %v776_v16 }
  0x9d   : > { %v732_v14 = vadd.f32 %v2400_v5, %v731_v13  ;;  %v342_v13 = vadd.s32 8, %v2430_v29 }
  0x9e   : > { %v840_v19 = vmax.f32 %v777_v3, 0.0  ;;  %v1127_v3 = vmul.f32 %v2435_v30, %v1093_v7 }
  0x9f   : > { %v825_v15 = vmax.f32 %v732_v14, 0.0 }
  0xa0   : > { %872 = vst.msk [vmem:[#allocation2 + $0x98] sm:$0xff] %vm333_vm1, %v840_v19  ;;  %v2427_v26 = vld [vmem:[#allocation2 + $0x17] sm:$0xff] }
  0xa1   : > { %857 = vst.msk [vmem:[#allocation2 + $0x20] sm:$0xff] %vm333_vm1, %v825_v15  ;;  %v959_v36 = vmul.f32 %v2425_v23, %v2427_v26  ;;  %v2451_v38 = vld [vmem:[#allocation2 + $0x18] sm:$0xff] }
  0xa2   : > { %v1162_v46 = vmul.f32 %v2446_v33, %v2451_v38 }
  0xa3   : > { %v779_v24 = vpop.f32.mrf.mxu2  ;;  %v991_v49 = vadd.f32 %v959_v36, %v922_v35 }
  0xa4   : > { %v734_v17 = vpop.f32.mrf.mxu0  ;;  %v780_v27 = vadd.f32 %v2400_v5, %v779_v24  ;;  %v1194_v60 = vadd.f32 %v1162_v46, %v1126_v45  ;;  %v2526_v24 = vld [vmem:[%s3866_s6] ss:$0 sm:$0xff] }
  0xa5   : > { %v735_v18 = vadd.f32 %v2400_v5, %v734_v17 }
  0xa6   : > { %v841_v34 = vmax.f32 %v780_v27, 0.0 }
  0xa7   : > { %v826_v20 = vmax.f32 %v735_v18, 0.0 }
  0xa8   : > { %873 = vst.msk [vmem:[#allocation2 + $0xa0] sm:$0xff] %vm333_vm1, %v841_v34  ;;  %v2475_v50 = vld [vmem:[#allocation2 + $0x19] sm:$0xff]  ;;  %v1295_v34 = vld [vmem:[#allocation2 + $0x11] sm:$0xff] }
  0xa9   : > { %858 = vst.msk [vmem:[#allocation2 + $0x28] sm:$0xff] %vm333_vm1, %v826_v20  ;;  %v1364_v61 = vmul.f32 %v2473_v48, %v2475_v50  ;;  %v2498_v6 = vld [vmem:[#allocation2 + $0x1f] sm:$0xff] }
  0xaa   : > { %v2500_v8 = vld [vmem:[#allocation2 + $0x20] sm:$0xff]  ;;  %v960_v16 = vmul.f32 %v2425_v23, %v2498_v6 }
  0xab   : > { %v782_v52 = vpop.f32.mrf.mxu2  ;;  %v1396_v11 = vadd.f32 %v1364_v61, %v1328_v58  ;;  %v1163_v17 = vmul.f32 %v2446_v33, %v2500_v8 }
  0xac   : > { %v737_v28 = vpop.f32.mrf.mxu0  ;;  %v783_v54 = vadd.f32 %v2400_v5, %v782_v52 }
  0xad   : > { %v738_v31 = vadd.f32 %v2400_v5, %v737_v28  ;;  %v1195_v45 = vadd.f32 %v1163_v17, %v1127_v3 }
  0xae   : > { %v842_v63 = vmax.f32 %v783_v54, 0.0  ;;  %v375_v54 = vand.u32 15, %v343_v25 }
  0xaf   : > { %v827_v39 = vmax.f32 %v738_v31, 0.0 }
  0xb0   : > { %v2460_v42 = vld [vmem:[#allocation2 + $0x27] sm:$0xff]  ;;  %874 = vst.msk [vmem:[#allocation2 + $0xa8] sm:$0xff] %vm333_vm1, %v842_v63  ;;  %vm2564_vm4 = vcmp.ne.s32.totalorder %v375_v54, 0 }
  0xb1   : > { %v2462_v43 = vld [vmem:[#allocation2 + $0x28] sm:$0xff]  ;;  %859 = vst.msk [vmem:[#allocation2 + $0x30] sm:$0xff] %vm333_vm1, %v827_v39  ;;  %v1028_v44 = vmul.f32 %v2441_v32, %v2460_v42  ;;  %v374_v39 = vand.u32 15, %v342_v13  ;;  %v961_v46 = vmul.f32 %v2425_v23, %v2460_v42 }
  0xb2   : > { %v1230_v53 = vmul.f32 %v2456_v40, %v2462_v43  ;;  %v2521_v18 = vld [vmem:[#allocation2 + $0x21] sm:$0xff]  ;;  %v1164_v61 = vmul.f32 %v2446_v33, %v2462_v43 }
  0xb3   : > { %v1060_v57 = vadd.f32 %v1028_v44, %v991_v49  ;;  %v785_v19 = vpop.f32.mrf.mxu2  ;;  %v1365_v41 = vmul.f32 %v2473_v48, %v2521_v18  ;;  %v992_v44 = vadd.f32 %v960_v16, %v923_v2  ;;  %vm2557_vm3 = vcmp.ne.s32.totalorder %v374_v39, 15 }
  0xb4   : > { %v740_v55 = vpop.f32.mrf.mxu0  ;;  %v1262_v4 = vadd.f32 %v1230_v53, %v1194_v60  ;;  %v786_v35 = vadd.f32 %v2400_v5, %v785_v19  ;;  %v1329_v53 = vmul.f32 %v2480_v51, %v1295_v34 }
  0xb5   : > { %v741_v59 = vadd.f32 %v2400_v5, %v740_v55  ;;  %v1496_v10 = vsel %vm2485_vm2, %v1060_v57, 0.0 }
  0xb6   : > { %v1560_v21 = vadd.f32 %v1496_v10, %v1262_v4  ;;  %v843_v47 = vmax.f32 %v786_v35, 0.0  ;;  %v1397_v0 = vadd.f32 %v1365_v41, %v1329_v53  ;;  %v1128_v10 = vmul.f32 %v2435_v30, %v2451_v38 }
  0xb7   : > { %v828_v1 = vmax.f32 %v741_v59, 0.0  ;;  %v924_v59 = vmul.f32 %v2420_v22, %v2427_v26 }
  0xb8   : > { %v2503_v9 = vld [vmem:[#allocation2 + $0x29] sm:$0xff]  ;;  %875 = vst.msk [vmem:[#allocation2 + $0xb0] sm:$0xff] %vm333_vm1, %v843_v47 }
  0xb9   : > { %860 = vst.msk [vmem:[#allocation2 + $0x38] sm:$0xff] %vm333_vm1, %v828_v1  ;;  %v1432_v12 = vmul.f32 %v2496_v62, %v2503_v9  ;;  %v2511_v14 = vld [vmem:[#allocation2 + $0x2f] sm:$0xff]  ;;  %v993_v26 = vadd.f32 %v961_v46, %v924_v59  ;;  %v1331_v59 = vmul.f32 %v2480_v51, %v2521_v18 }
  0xba   : > { %v2513_v15 = vld [vmem:[#allocation2 + $0x30] sm:$0xff]  ;;  %v1029_v28 = vmul.f32 %v2441_v32, %v2511_v14 }
  0xbb   : > { %v1464_v20 = vadd.f32 %v1432_v12, %v1396_v11  ;;  %v1231_v31 = vmul.f32 %v2456_v40, %v2513_v15  ;;  %v788_v11 = vpop.f32.mrf.mxu2 }
  0xbc   : > { %v743_v27 = vpop.f32.mrf.mxu0  ;;  %v1061_v55 = vadd.f32 %v1029_v28, %v992_v44  ;;  %v789_v16 = vadd.f32 %v2400_v5, %v788_v11 }
  0xbd   : > { %v744_v36 = vadd.f32 %v2400_v5, %v743_v27  ;;  %v1592_v37 = vadd.f32 %v1560_v21, %v1464_v20  ;;  %v1263_v56 = vadd.f32 %v1231_v31, %v1195_v45  ;;  %v1196_v20 = vadd.f32 %v1164_v61, %v1128_v10 }
  0xbe   : > { %v344_v21 = vadd.s32 24, %v2430_v29  ;;  %v1366_v27 = vmul.f32 %v2473_v48, %v2503_v9  ;;  %v844_v28 = vmax.f32 %v789_v16, 0.0 }
  0xbf   : > { %v829_v49 = vmax.f32 %v744_v36, 0.0  ;;  %v1627_v52 = vadd.f32 %v2526_v24, %v1592_v37  ;;  %v1561_v17 = vadd.f32 %v1263_v56, %v1061_v55  ;;  %v1330_v36 = vmul.f32 %v2480_v51, %v2475_v50 }
  0xc0   : > { %v2541_v57 = vld [vmem:[#allocation2 + $0x31] sm:$0xff]  ;;  %876 = vst.msk [vmem:[#allocation2 + $0xb8] sm:$0xff] %vm333_vm1, %v844_v28  ;;  %v345_v37 = vadd.s32 32, %v2430_v29  ;;  %v376_v45 = vand.u32 15, %v344_v21  ;;  %v925_v50 = vmul.f32 %v2420_v22, %v2498_v6  ;;  %v1129_v55 = vmul.f32 %v2435_v30, %v2500_v8 }
  0xc1   : > { %v2543_v58 = vld [vmem:[#allocation2 + $0x37] sm:$0xff]  ;;  %861 = vst.msk [vmem:[#allocation2 + $0x40] sm:$0xff] %vm333_vm1, %v829_v49  ;;  %v1659_v63 = vmax.f32 %v1627_v52, 0.0  ;;  %v1433_v1 = vmul.f32 %v2496_v62, %v2541_v57  ;;  %v1398_v46 = vadd.f32 %v1366_v27, %v1330_v36  ;;  %v962_v52 = vmul.f32 %v2425_v23, %v2511_v14 }
  0xc2   : > { %v2547_v60 = vld [vmem:[#allocation2 + $0x38] sm:$0xff]  ;;  %v1030_v4 = vmul.f32 %v2441_v32, %v2543_v58  ;;  %v1165_v56 = vmul.f32 %v2446_v33, %v2513_v15  ;;  %v926_v6 = vmul.f32 %v2420_v22, %v2460_v42  ;;  %vm2606_vm5 = vcmp.ne.s32.totalorder %v376_v45, 15 }
  0xc3   : > { %2069 = vmatmul.msk.f32.vlgmr.msra.gmra.mxu1 %vm333_vm1, %v1659_v63  ;;  %v1465_v12 = vadd.f32 %v1433_v1, %v1397_v0  ;;  %v1232_v2 = vmul.f32 %v2456_v40, %v2547_v60  ;;  %v791_v61 = vpop.f32.mrf.mxu2  ;;  %v377_v1 = vand.u32 15, %v345_v37  ;;  %v1367_v42 = vmul.f32 %v2473_v48, %v2541_v57 }
  0xc4   : > { %v746_v3 = vpop.f32.mrf.mxu0  ;;  %v1062_v19 = vadd.f32 %v1030_v4, %v993_v26  ;;  %v792_v26 = vadd.f32 %v2400_v5, %v791_v61  ;;  %v1197_v13 = vadd.f32 %v1165_v56, %v1129_v55  ;;  %v1166_v16 = vmul.f32 %v2446_v33, %v2547_v60 }
  0xc5   : > { %v747_v38 = vadd.f32 %v2400_v5, %v746_v3  ;;  %v1529_v25 = vsel %vm2557_vm3, %v1465_v12, 0.0  ;;  %v1264_v35 = vadd.f32 %v1232_v2, %v1196_v20  ;;  %v994_v12 = vadd.f32 %v962_v52, %v925_v50 }
  0xc6   : > { %v1593_v31 = vadd.f32 %v1561_v17, %v1529_v25  ;;  %v1498_v44 = vsel %vm2564_vm4, %v1062_v19, 0.0  ;;  %v963_v2 = vmul.f32 %v2425_v23, %v2543_v58  ;;  %v845_v3 = vmax.f32 %v792_v26, 0.0 }
  0xc7   : > { %v830_v34 = vmax.f32 %v747_v38, 0.0  ;;  %v1562_v0 = vadd.f32 %v1498_v44, %v1264_v35  ;;  %vm2623_vm6 = vcmp.ne.s32.totalorder %v377_v1, 0  ;;  %v1130_v21 = vmul.f32 %v2435_v30, %v2462_v43 }
  0xc8   : > { %v1628_v39 = vadd.f32 %v2526_v24, %v1593_v31  ;;  %v2582_v41 = vld [vmem:[#allocation2 + $0x39] sm:$0xff]  ;;  %877 = vst.msk [vmem:[#allocation2 + $0xc0] sm:$0xff] %vm333_vm1, %v845_v3  ;;  %v927_v35 = vmul.f32 %v2420_v22, %v2511_v14  ;;  %v1399_v37 = vadd.f32 %v1367_v42, %v1331_v59  ;;  %v995_v44 = vadd.f32 %v963_v2, %v926_v6 }
  0xc9   : > { %862 = vst.msk [vmem:[#allocation2 + $0x48] sm:$0xff] %vm333_vm1, %v830_v34  ;;  %v1434_v47 = vmul.f32 %v2496_v62, %v2582_v41  ;;  %v2589_v49 = vld [vmem:[#allocation2 + $0x3f] sm:$0xff]  ;;  %v1332_v34 = vmul.f32 %v2480_v51, %v2503_v9  ;;  %v1198_v45 = vadd.f32 %v1166_v16, %v1130_v21  ;;  %v1131_v9 = vmul.f32 %v2435_v30, %v2513_v15 }
  0xca   : > { %v2595_v53 = vld [vmem:[#allocation2 + $0x40] sm:$0xff]  ;;  %v1660_v54 = vmax.f32 %v1628_v39, 0.0  ;;  %v1031_v8 = vmul.f32 %v2441_v32, %v2589_v49  ;;  %v1368_v61 = vmul.f32 %v2473_v48, %v2582_v41  ;;  %v964_v15 = vmul.f32 %v2425_v23, %v2589_v49 }
  0xcb   : > { %v1466_v63 = vadd.f32 %v1434_v47, %v1398_v46  ;;  %v1233_v18 = vmul.f32 %v2456_v40, %v2595_v53  ;;  %v346_v46 = vadd.s32 40, %v2430_v29  ;;  %v794_v47 = vpop.f32.mrf.mxu2  ;;  %v1167_v1 = vmul.f32 %v2446_v33, %v2595_v53 }
  0xcc   : > { %v749_v4 = vpop.f32.mrf.mxu0  ;;  %2070 = vmatmul.msk.f32.gmra.mxu1 %vm333_vm1, %v1660_v54  ;;  %v1063_v38 = vadd.f32 %v1031_v8, %v994_v12  ;;  %v795_v52 = vadd.f32 %v2400_v5, %v794_v47  ;;  %v347_v54 = vadd.s32 48, %v2430_v29  ;;  %v928_v26 = vmul.f32 %v2420_v22, %v2543_v58 }
  0xcd   : > { %v750_v10 = vadd.f32 %v2400_v5, %v749_v4  ;;  %v1594_v11 = vadd.f32 %v1562_v0, %v1466_v63  ;;  %v1265_v25 = vadd.f32 %v1233_v18, %v1197_v13  ;;  %v378_v8 = vand.u32 15, %v346_v46 }
  0xce   : > { %v846_v6 = vmax.f32 %v795_v52, 0.0  ;;  %v1333_v18 = vmul.f32 %v2480_v51, %v2541_v57  ;;  %v379_v12 = vand.u32 15, %v347_v54  ;;  %v1132_v7 = vmul.f32 %v2435_v30, %v2547_v60 }
  0xcf   : > { %v831_v17 = vmax.f32 %v750_v10, 0.0  ;;  %v1629_v19 = vadd.f32 %v2526_v24, %v1594_v11  ;;  %v1563_v56 = vadd.f32 %v1265_v25, %v1063_v38  ;;  %v1400_v2 = vadd.f32 %v1368_v61, %v1332_v34 }
  0xd0   : > { %v1301_v27 = vld [vmem:[#allocation2 + $0x41] sm:$0xff]  ;;  %878 = vst.msk [vmem:[#allocation2 + $0xc8] sm:$0xff] %vm333_vm1, %v846_v6  ;;  %v1199_v60 = vadd.f32 %v1167_v1, %v1131_v9  ;;  %vm2681_vm7 = vcmp.ne.s32.totalorder %v378_v8, 15  ;;  %v1334_v25 = vmul.f32 %v2480_v51, %v2582_v41  ;;  %vm2699_vm8 = vcmp.ne.s32.totalorder %v379_v12, 0 }
  0xd1   : > { %v2629_v28 = vld [vmem:[#allocation2 + $0x47] sm:$0xff]  ;;  %863 = vst.msk [vmem:[#allocation2 + $0x50] sm:$0xff] %vm333_vm1, %v831_v17  ;;  %v1661_v36 = vmax.f32 %v1629_v19, 0.0  ;;  %v1435_v43 = vmul.f32 %v2496_v62, %v1301_v27  ;;  %v1369_v57 = vmul.f32 %v2473_v48, %v1301_v27  ;;  %v996_v17 = vadd.f32 %v964_v15, %v927_v35 }
  0xd2   : > { %v2631_v31 = vld [vmem:[#allocation2 + $0x48] sm:$0xff]  ;;  %v1032_v39 = vmul.f32 %v2441_v32, %v2629_v28  ;;  %v965_v21 = vmul.f32 %v2425_v23, %v2629_v28  ;;  %v1133_v35 = vmul.f32 %v2435_v30, %v2595_v53 }
  0xd3   : > { %v1467_v50 = vadd.f32 %v1435_v43, %v1399_v37  ;;  %v1234_v14 = vmul.f32 %v2456_v40, %v2631_v31  ;;  %v797_v34 = vpop.f32.mrf.mxu2 }
  0xd4   : > { %v752_v55 = vpop.f32.mrf.mxu0  ;;  %2071 = vmatmul.msk.f32.gmra.mxu1 %vm333_vm1, %v1661_v36  ;;  %v1064_v59 = vadd.f32 %v1032_v39, %v995_v44  ;;  %v929_v36 = vmul.f32 %v2420_v22, %v2589_v49  ;;  %v1168_v39 = vmul.f32 %v2446_v33, %v2631_v31  ;;  %v1335_v44 = vmul.f32 %v2480_v51, %v1301_v27 }
  0xd5   : > { %v753_v63 = vadd.f32 %v2400_v5, %v752_v55  ;;  %v1531_v0 = vsel %vm2606_vm5, %v1467_v50, 0.0  ;;  %v1266_v11 = vadd.f32 %v1234_v14, %v1198_v45  ;;  %v1401_v49 = vadd.f32 %v1369_v57, %v1333_v18 }
  0xd6   : > { %v1595_v4 = vadd.f32 %v1563_v56, %v1531_v0  ;;  %v1500_v16 = vsel %vm2623_vm6, %v1064_v59, 0.0  ;;  %v798_v53 = vadd.f32 %v2400_v5, %v797_v34  ;;  %v997_v27 = vadd.f32 %v965_v21, %v928_v26 }
  0xd7   : > { %v832_v10 = vmax.f32 %v753_v63, 0.0  ;;  %v1564_v43 = vadd.f32 %v1500_v16, %v1266_v11  ;;  %v2706_v14 = vadd.s32 56, %v2430_v29  ;;  %v349_v56 = vadd.s32 64, %v2430_v29 }
  0xd8   : > { %v1630_v42 = vadd.f32 %v2526_v24, %v1595_v4  ;;  %v2667_v13 = vld [vmem:[#allocation2 + $0x49] sm:$0xff]  ;;  %v847_v54 = vmax.f32 %v798_v53, 0.0  ;;  %v1200_v15 = vadd.f32 %v1168_v39, %v1132_v7  ;;  %v930_v63 = vmul.f32 %v2420_v22, %v2629_v28 }
  0xd9   : > { %864 = vst.msk [vmem:[#allocation2 + $0x58] sm:$0xff] %vm333_vm1, %v832_v10  ;;  %v1436_v58 = vmul.f32 %v2496_v62, %v2667_v13  ;;  %v2675_v3 = vld [vmem:[#allocation2 + $0x4f] sm:$0xff]  ;;  %v1370_v52 = vmul.f32 %v2473_v48, %v2667_v13  ;;  %v1134_v26 = vmul.f32 %v2435_v30, %v2631_v31  ;;  %v380_v12 = vand.u32 15, %v2706_v14 }
  0xda   : > { %v2677_v19 = vld [vmem:[#allocation2 + $0x50] sm:$0xff]  ;;  %v1662_v38 = vmax.f32 %v1630_v42, 0.0  ;;  %v1033_v41 = vmul.f32 %v2441_v32, %v2675_v3  ;;  %v966_v55 = vmul.f32 %v2425_v23, %v2675_v3  ;;  %879 = vst.msk [vmem:[#allocation2 + $0xd0] sm:$0xff] %vm333_vm1, %v847_v54  ;;  %v381_v57 = vand.u32 15, %v349_v56 }
  0xdb   : > { %v1468_v37 = vadd.f32 %v1436_v58, %v1400_v2  ;;  %v1235_v46 = vmul.f32 %v2456_v40, %v2677_v19  ;;  %v1169_v18 = vmul.f32 %v2446_v33, %v2677_v19  ;;  %v1402_v42 = vadd.f32 %v1370_v52, %v1334_v25  ;;  %v800_v16 = vpop.f32.mrf.mxu2 }
  0xdc   : > { %v755_v45 = vpop.f32.mrf.mxu0  ;;  %2072 = vmatmul.msk.f32.gmra.mxu1 %vm333_vm1, %v1662_v38  ;;  %v1065_v0 = vadd.f32 %v1033_v41, %v996_v17  ;;  %v998_v2 = vadd.f32 %v966_v55, %v929_v36  ;;  %v801_v31 = vadd.f32 %v2400_v5, %v800_v16  ;;  %v2761_v56 = vadd.s32 72, %v2430_v29 }
  0xdd   : > { %v756_v47 = vadd.f32 %v2400_v5, %v755_v45  ;;  %v1596_v50 = vadd.f32 %v1564_v43, %v1468_v37  ;;  %v1267_v1 = vadd.f32 %v1235_v46, %v1199_v60  ;;  %v1201_v34 = vadd.f32 %v1169_v18, %v1133_v35  ;;  %v2777_v18 = vld [vmem:[#allocation2 + $0x98] sm:$0xff] }
  0xde   : > { %v848_v39 = vmax.f32 %v801_v31, 0.0  ;;  %v1336_v45 = vmul.f32 %v2480_v51, %v2667_v13  ;;  %v1135_v35 = vmul.f32 %v2435_v30, %v2677_v19  ;;  %vm2765_vm9 = vcmp.ne.s32.totalorder %v380_v12, 15  ;;  %3916 = vst [vmem:[#allocation4_spill] sm:$0xff] %v2777_v18  ;;  %v2784_v12 = vld [vmem:[#allocation2 + $0xa8] sm:$0xff] }
  0xdf   : > { %v833_v59 = vmax.f32 %v756_v47, 0.0  ;;  %v1631_v61 = vadd.f32 %v2526_v24, %v1596_v50  ;;  %v1565_v38 = vadd.f32 %v1267_v1, %v1065_v0  ;;  %vm2769_vm10 = vcmp.ne.s32.totalorder %v381_v57, 0  ;;  %3917 = vst [vmem:[#allocation5_spill] sm:$0xff] %v2784_v12 }
  0xe0   : > { %v1303_v6 = vld [vmem:[#allocation2 + $0x51] sm:$0xff]  ;;  %880 = vst.msk [vmem:[#allocation2 + $0xd8] sm:$0xff] %vm333_vm1, %v848_v39  ;;  %v382_v31 = vand.u32 15, %v2761_v56  ;;  %v2806_v39 = vld [vmem:[#allocation2 + $0xa7] sm:$0xff] }
  0xe1   : > { %v898_v4 = vld [vmem:[#allocation2 + $0x57] sm:$0xff]  ;;  %865 = vst.msk [vmem:[#allocation2 + $0x60] sm:$0xff] %vm333_vm1, %v833_v59  ;;  %v1663_v10 = vmax.f32 %v1631_v61, 0.0  ;;  %v1437_v11 = vmul.f32 %v2496_v62, %v1303_v6  ;;  %v1371_v60 = vmul.f32 %v2473_v48, %v1303_v6  ;;  %v2746_v20 = vmul.f32 %v2480_v51, %v1303_v6  ;;  %v2763_v59 = vld [vmem:[#allocation2 + $0x9f] sm:$0xff] }
  0xe2   : > { %v1102_v8 = vld [vmem:[#allocation2 + $0x58] sm:$0xff]  ;;  %v1034_v28 = vmul.f32 %v2441_v32, %v898_v4  ;;  %v967_v37 = vmul.f32 %v2425_v23, %v898_v4  ;;  %v2754_v19 = vmul.f32 %v2420_v22, %v898_v4  ;;  %v2775_v4 = vadd.s32 80, %v2430_v29  ;;  %3918 = vst [vmem:[#allocation6_spill] sm:$0xff] %v2806_v39 }
  0xe3   : > { %v1236_v7 = vmul.f32 %v2456_v40, %v1102_v8  ;;  %v1469_v58 = vadd.f32 %v1437_v11, %v1401_v49  ;;  %v1170_v43 = vmul.f32 %v2446_v33, %v1102_v8  ;;  %v931_v49 = vmul.f32 %v2420_v22, %v2675_v3  ;;  %v803_v6 = vpop.f32.mrf.mxu2 }
  0xe4   : > { %v1066_v17 = vadd.f32 %v1034_v28, %v997_v27  ;;  %v758_v21 = vpop.f32.mrf.mxu0  ;;  %2073 = vmatmul.msk.f32.gmra.mxu1 %vm333_vm1, %v1663_v10  ;;  %v2742_v50 = vadd.f32 %v1371_v60, %v1335_v44  ;;  %v2749_v3 = vadd.f32 %v967_v37, %v930_v63  ;;  %v2782_v28 = vmul.f32 %v2435_v30, %v1102_v8 }
  0xe5   : > { %v759_v25 = vadd.f32 %v2400_v5, %v758_v21  ;;  %v1533_v36 = vsel %vm2681_vm7, %v1469_v58, 0.0  ;;  %v1268_v46 = vadd.f32 %v1236_v7, %v1200_v15  ;;  %v2751_v54 = vadd.f32 %v1170_v43, %v1134_v26 }
  0xe6   : > { %v1597_v41 = vadd.f32 %v1565_v38, %v1533_v36  ;;  %v1502_v47 = vsel %vm2699_vm8, %v1066_v17, 0.0  ;;  %v804_v58 = vadd.f32 %v2400_v5, %v803_v6  ;;  %v2790_v17 = vmul.f32 %v2425_v23, %v2763_v59 }
  0xe7   : > { %v834_v53 = vmax.f32 %v759_v25, 0.0  ;;  %v1566_v15 = vadd.f32 %v1502_v47, %v1268_v46  ;;  %v1144_v8 = vmul.f32 %v2435_v30, %v2777_v18  ;;  %vm2900_vm11 = vcmp.ne.s32.totalorder %v382_v31, 15 }
  0xe8   : > { %v1632_v13 = vadd.f32 %v2526_v24, %v1597_v41  ;;  %v1304_v27 = vld [vmem:[#allocation2 + $0x59] sm:$0xff]  ;;  %v849_v38 = vmax.f32 %v804_v58, 0.0  ;;  %v2854_v58 = vld [vmem:[#allocation2 + $0xa9] sm:$0xff] }
  0xe9   : > { %v899_v14 = vld [vmem:[#allocation2 + $0x5f] sm:$0xff]  ;;  %866 = vst.msk [vmem:[#allocation2 + $0x68] sm:$0xff] %vm333_vm1, %v834_v53  ;;  %v1438_v44 = vmul.f32 %v2496_v62, %v1304_v27  ;;  %v1372_v1 = vmul.f32 %v2473_v48, %v1304_v27  ;;  %v2814_v47 = vmul.f32 %v2480_v51, %v1304_v27 }
  0xea   : > { %v1103_v52 = vld [vmem:[#allocation2 + $0x60] sm:$0xff]  ;;  %v1035_v9 = vmul.f32 %v2441_v32, %v899_v14  ;;  %v1664_v61 = vmax.f32 %v1632_v13, 0.0  ;;  %v968_v10 = vmul.f32 %v2425_v23, %v899_v14  ;;  %881 = vst.msk [vmem:[#allocation2 + $0xe0] sm:$0xff] %vm333_vm1, %v849_v38  ;;  %v2817_v13 = vmul.f32 %v2420_v22, %v899_v14  ;;  %v2832_v14 = vld [vmem:[#allocation2 + $0xb8] sm:$0xff] }
  0xeb   : > { %v1237_v55 = vmul.f32 %v2456_v40, %v1103_v52  ;;  %v1470_v26 = vadd.f32 %v1438_v44, %v1402_v42  ;;  %v1171_v11 = vmul.f32 %v2446_v33, %v1103_v52  ;;  %v2796_v21 = vadd.f32 %v1372_v1, %v1336_v45  ;;  %v2830_v27 = vld [vmem:[#allocation2 + $0xa1] sm:$0xff]  ;;  %3919 = vst [vmem:[#allocation7_spill] sm:$0xff] %v2832_v14 }
  0xec   : > { %v761_v7 = vpop.f32.mrf.mxu0  ;;  %2074 = vmatmul.msk.f32.gmra.mxu1 %vm333_vm1, %v1664_v61  ;;  %v1067_v16 = vadd.f32 %v1035_v9, %v998_v2  ;;  %v383_v2 = vand.u32 15, %v2775_v4  ;;  %v2802_v25 = vadd.f32 %v968_v10, %v931_v49  ;;  %v2820_v49 = vmul.f32 %v2435_v30, %v1103_v52  ;;  %v2828_v61 = vld [vmem:[#allocation2 + $0xa0] sm:$0xff]  ;;  %3923 = vst [vmem:[#allocation11_spill] sm:$0xff] %v2854_v58 }
  0xed   : > { %v1269_v57 = vadd.f32 %v1237_v55, %v1201_v34  ;;  %v762_v42 = vadd.f32 %v2400_v5, %v761_v7  ;;  %v1598_v60 = vadd.f32 %v1566_v15, %v1470_v26  ;;  %v1180_v34 = vmul.f32 %v2446_v33, %v2784_v12  ;;  %v806_v15 = vpop.f32.mrf.mxu2 }
  0xee   : > { %v2804_v36 = vadd.f32 %v1171_v11, %v1135_v35  ;;  %v2837_v1 = vmul.f32 %v2446_v33, %v2828_v61  ;;  %v2841_v6 = vmul.f32 %v2473_v48, %v2830_v27  ;;  %v2845_v26 = vmul.f32 %v2425_v23, %v2806_v39 }
  0xef   : > { %v835_v37 = vmax.f32 %v762_v42, 0.0  ;;  %v1633_v43 = vadd.f32 %v2526_v24, %v1598_v60  ;;  %v1567_v46 = vadd.f32 %v1269_v57, %v1067_v16  ;;  %v807_v7 = vadd.f32 %v2400_v5, %v806_v15  ;;  %v2852_v57 = vld [vmem:[#allocation2 + $0x99] sm:$0xff] }
  0xf0   : > { %v1305_v41 = vld [vmem:[#allocation2 + $0x61] sm:$0xff]  ;;  %3920 = vst [vmem:[#allocation8_spill] sm:$0xff] %v2841_v6  ;;  %vm2906_vm12 = vcmp.ne.s32.totalorder %v383_v2, 0  ;;  %v2918_v2 = vld [vmem:[#allocation2 + $0xaf] sm:$0xff] }
  0xf1   : > { %v2808_v53 = vld [vmem:[#allocation2 + $0x67] sm:$0xff]  ;;  %867 = vst.msk [vmem:[#allocation2 + $0x70] sm:$0xff] %vm333_vm1, %v835_v37  ;;  %v1665_v35 = vmax.f32 %v1633_v43, 0.0  ;;  %v1439_v44 = vmul.f32 %v2496_v62, %v1305_v41  ;;  %v1373_v52 = vmul.f32 %v2473_v48, %v1305_v41 }
  0xf2   : > { %v2810_v45 = vld [vmem:[#allocation2 + $0x68] sm:$0xff]  ;;  %v1036_v9 = vmul.f32 %v2441_v32, %v2808_v53  ;;  %3921 = vst [vmem:[#allocation9_spill] sm:$0xff] %v2845_v26  ;;  %v969_v16 = vmul.f32 %v2425_v23, %v2808_v53  ;;  %v934_v4 = vmul.f32 %v2420_v22, %v2808_v53  ;;  %v2986_v26 = vld [vmem:[#allocation2 + $0xb7] sm:$0xff] }
  0xf3   : > { %v1238_v55 = vmul.f32 %v2456_v40, %v2810_v45  ;;  %v1471_v10 = vadd.f32 %v1439_v44, %v2742_v50  ;;  %3922 = vst [vmem:[#allocation10_spill] sm:$0xff] %v2852_v57  ;;  %v1172_v38 = vmul.f32 %v2446_v33, %v2810_v45  ;;  %v1212_v50 = vadd.f32 %v1180_v34, %v1144_v8 }
  0xf4   : > { %v1068_v11 = vadd.f32 %v1036_v9, %v2749_v3  ;;  %v764_v42 = vpop.f32.mrf.mxu0  ;;  %2075 = vmatmul.msk.f32.gmra.mxu1 %vm333_vm1, %v1665_v35  ;;  %v1248_v3 = vmul.f32 %v2456_v40, %v2832_v14  ;;  %v850_v9 = vmax.f32 %v807_v7, 0.0  ;;  %v2868_v35 = vadd.s32 88, %v2430_v29  ;;  %3928 = vst [vmem:[#allocation12_spill] sm:$0xff] %v2918_v2 }
  0xf5   : > { %v1270_v60 = vadd.f32 %v1238_v55, %v2751_v54  ;;  %v765_v37 = vadd.f32 %v2400_v5, %v764_v42  ;;  %v1535_v43 = vsel %vm2765_vm9, %v1471_v10, 0.0  ;;  %v2872_v54 = vmul.f32 %v2480_v51, %v2852_v57  ;;  %3936 = vst [vmem:[#allocation20_spill] sm:$0xff] %v2986_v26 }
  0xf6   : > { %v1504_v44 = vsel %vm2769_vm10, %v1068_v11, 0.0  ;;  %v1599_v15 = vadd.f32 %v1567_v46, %v1535_v43  ;;  %v2876_v8 = vmul.f32 %v2473_v48, %v2854_v58  ;;  %v2879_v63 = vadd.f32 %v1373_v52, %v2746_v20  ;;  %882 = vst.msk [vmem:[#allocation2 + $0xe8] sm:$0xff] %vm333_vm1, %v850_v9 }
  0xf7   : > { %v836_v34 = vmax.f32 %v765_v37, 0.0  ;;  %v2883_v0 = vadd.f32 %v969_v16, %v2754_v19  ;;  %v2886_v46 = vmul.f32 %v2480_v51, %v1305_v41  ;;  %v1568_v11 = vadd.f32 %v1504_v44, %v1270_v60 }
  0xf8   : > { %v1634_v55 = vadd.f32 %v2526_v24, %v1599_v15  ;;  %v1306_v10 = vld [vmem:[#allocation2 + $0x69] sm:$0xff]  ;;  %v1204_v43 = vadd.f32 %v1172_v38, %v2782_v28  ;;  %v2891_v37 = vadd.s32 96, %v2430_v29  ;;  %v809_v38 = vpop.f32.mrf.mxu2  ;;  %v1138_v14 = vmul.f32 %v2435_v30, %v2810_v45 }
  0xf9   : > { %v901_v7 = vld [vmem:[#allocation2 + $0x6f] sm:$0xff]  ;;  %868 = vst.msk [vmem:[#allocation2 + $0x78] sm:$0xff] %vm333_vm1, %v836_v34  ;;  %v1440_v20 = vmul.f32 %v2496_v62, %v1306_v10  ;;  %v1374_v52 = vmul.f32 %v2473_v48, %v1306_v10  ;;  %v810_v44 = vadd.f32 %v2400_v5, %v809_v38  ;;  %v2942_v45 = vmul.f32 %v2480_v51, %v1306_v10 }
  0xfa   : > { %v1105_v42 = vld [vmem:[#allocation2 + $0x70] sm:$0xff]  ;;  %v1037_v19 = vmul.f32 %v2441_v32, %v901_v7  ;;  %v1666_v16 = vmax.f32 %v1634_v55, 0.0  ;;  %v970_v9 = vmul.f32 %v2425_v23, %v901_v7  ;;  %v2961_v10 = vadd.s32 104, %v2430_v29 }
  0xfb   : > { %v1239_v41 = vmul.f32 %v2456_v40, %v1105_v42  ;;  %v1173_v15 = vmul.f32 %v2446_v33, %v1105_v42  ;;  %v1472_v34 = vadd.f32 %v1440_v20, %v2796_v21  ;;  %v2927_v21 = vmul.f32 %v2441_v32, %v2918_v2  ;;  %v2944_v38 = vld [vmem:[#allocation2 + $0xb0] sm:$0xff] }
  0xfc   : > { %v1069_v56 = vadd.f32 %v1037_v19, %v2802_v25  ;;  %v767_v55 = vpop.f32.mrf.mxu0  ;;  %2076 = vmatmul.msk.f32.gmra.mxu1 %vm333_vm1, %v1666_v16  ;;  %v2931_v53 = vadd.f32 %v1374_v52, %v2814_v47  ;;  %v2933_v20 = vadd.f32 %v1248_v3, %v1212_v50  ;;  %v851_v19 = vmax.f32 %v810_v44, 0.0  ;;  %3931 = vst [vmem:[#allocation15_spill] sm:$0xff] %v2944_v38  ;;  %v2951_v50 = vld [vmem:[#allocation2 + $0xb1] sm:$0xff] }
  0xfd   : > { %v1271_v31 = vadd.f32 %v1239_v41, %v2804_v36  ;;  %3929 = vst [vmem:[#allocation13_spill] sm:$0xff] %v2927_v21  ;;  %v768_v25 = vadd.f32 %v2400_v5, %v767_v55  ;;  %v1600_v36 = vadd.f32 %v1568_v11, %v1472_v34  ;;  %v2936_v41 = vadd.f32 %v970_v9, %v2817_v13 }
  0xfe   : > { %3930 = vst [vmem:[#allocation14_spill] sm:$0xff] %v2933_v20  ;;  %v2939_v16 = vadd.f32 %v1173_v15, %v2820_v49  ;;  %v2949_v47 = vmul.f32 %v2456_v40, %v2944_v38  ;;  %v2958_v49 = vmul.f32 %v2496_v62, %v2951_v50  ;;  %v2964_v44 = vmul.f32 %v2420_v22, %v901_v7 }
  0xff   : > { %v837_v58 = vmax.f32 %v768_v25, 0.0  ;;  %v1635_v11 = vadd.f32 %v2526_v24, %v1600_v36  ;;  %v1569_v34 = vadd.f32 %v1271_v31, %v1069_v56  ;;  %3933 = vst [vmem:[#allocation17_spill] sm:$0xff] %v2951_v50  ;;  %v2967_v9 = vmul.f32 %v2435_v30, %v1105_v42  ;;  %v2974_v25 = vld [vmem:[#allocation2 + $0xb9] sm:$0xff] }
 0x100   : > { %3932 = vst [vmem:[#allocation16_spill] sm:$0xff] %v2949_v47  ;;  %v1307_v13 = vld [vmem:[#allocation2 + $0x71] sm:$0xff]  ;;  %v2992_v21 = vmul.f32 %v2441_v32, %v2986_v26  ;;  %v1414_v6 = vadd.f32 %v2876_v8, %v2872_v54 }
 0x101   : > { %v902_v3 = vld [vmem:[#allocation2 + $0x77] sm:$0xff]  ;;  %883 = vst.msk [vmem:[#allocation2 + $0xf0] sm:$0xff] %vm333_vm1, %v851_v19  ;;  %v1667_v15 = vmax.f32 %v1635_v11, 0.0  ;;  %v1441_v56 = vmul.f32 %v2496_v62, %v1307_v13  ;;  %v1375_v36 = vmul.f32 %v2473_v48, %v1307_v13  ;;  %v812_v19 = vpop.f32.mrf.mxu2  ;;  %v3013_v60 = vmul.f32 %v2480_v51, %v1307_v13 }
 0x102   : > { %v2953_v52 = vld [vmem:[#allocation2 + $0x78] sm:$0xff]  ;;  %3934 = vst [vmem:[#allocation18_spill] sm:$0xff] %v2958_v49  ;;  %v1038_v31 = vmul.f32 %v2441_v32, %v902_v3  ;;  %v971_v7 = vmul.f32 %v2425_v23, %v902_v3  ;;  %v813_v20 = vadd.f32 %v2400_v5, %v812_v19 }
 0x103   : > { %869 = vst.msk [vmem:[#allocation2 + $0x80] sm:$0xff] %vm333_vm1, %v837_v58  ;;  %v1240_v55 = vmul.f32 %v2456_v40, %v2953_v52  ;;  %v1174_v42 = vmul.f32 %v2446_v33, %v2953_v52  ;;  %v2981_v58 = vadd.s32 136, %v2430_v29  ;;  %v1473_v11 = vadd.f32 %v1441_v56, %v2879_v63 }
 0x104   : > { %3935 = vst [vmem:[#allocation19_spill] sm:$0xff] %v2974_v25  ;;  %v1070_v12 = vadd.f32 %v1038_v31, %v2883_v0  ;;  %v770_v49 = vpop.f32.mrf.mxu0  ;;  %2077 = vmatmul.msk.f32.gmra.mxu1 %vm333_vm1, %v1667_v15  ;;  %v1450_v63 = vmul.f32 %v2496_v62, %v2974_v25  ;;  %v852_v56 = vmax.f32 %v813_v20, 0.0  ;;  %v3006_v19 = vadd.f32 %v971_v7, %v934_v4 }
 0x105   : > { %v1272_v39 = vadd.f32 %v1240_v55, %v1204_v43  ;;  %v771_v0 = vadd.f32 %v2400_v5, %v770_v49  ;;  %v1537_v43 = vsel %vm2900_vm11, %v1473_v11, 0.0  ;;  %v3004_v55 = vadd.f32 %v1375_v36, %v2886_v46 }
 0x106   : > { %v1506_v15 = vsel %vm2906_vm12, %v1070_v12, 0.0  ;;  %v1601_v31 = vadd.f32 %v1569_v34, %v1537_v43  ;;  %884 = vst.msk [vmem:[#allocation2 + $0xf8] sm:$0xff] %vm333_vm1, %v852_v56  ;;  %v3010_v5 = vadd.f32 %v1174_v42, %v1138_v14  ;;  %v3021_v4 = vadd.s32 144, %v2430_v29 }
 0x107   : > { %v838_v8 = vmax.f32 %v771_v0, 0.0  ;;  %v1570_v47 = vadd.f32 %v1506_v15, %v1272_v39  ;;  %v3023_v34 = vadd.f32 %v1450_v63, %v1414_v6  ;;  %v3026_v39 = vadd.s32 112, %v2430_v29  ;;  %v3163_v6 = vld [vmem:[#allocation2 + $0xc1] sm:$0xff] }
 0x108   : > { %v1636_v12 = vadd.f32 %v2526_v24, %v1601_v31  ;;  %v3937_v42 = vand.u32 15, %v2868_v35  ;;  %v3940_v11 = vand.u32 15, %v2891_v37  ;;  %v936_v56 = vmul.f32 %v2420_v22, %v902_v3  ;;  %3953 = vst [vmem:[#allocation25_spill] sm:$0xff] %v3163_v6 }
 0x109   : > { %870 = vst.msk [vmem:[#allocation2 + $0x88] sm:$0xff] %vm333_vm1, %v838_v8  ;;  %v815_v0 = vpop.f32.mrf.mxu2  ;;  %v1140_v37 = vmul.f32 %v2435_v30, %v2953_v52 }
 0x10a   : > { %v1308_v28 = vld [vmem:[#allocation2 + $0x79] sm:$0xff]  ;;  %v1668_v7 = vmax.f32 %v1636_v12, 0.0  ;;  %vm3037_vm13 = vcmp.ne.s32.totalorder %v3937_v42, 15  ;;  %vm3043_vm14 = vcmp.ne.s32.totalorder %v3940_v11, 0 }
 0x10b   : > { %v3016_v20 = vld [vmem:[#allocation2 + $0x7f] sm:$0xff]  ;;  %v1442_v14 = vmul.f32 %v2496_v62, %v1308_v28  ;;  %v1376_v36 = vmul.f32 %v2473_v48, %v1308_v28 }
 0x10c   : > { %v3018_v46 = vld [vmem:[#allocation2 + $0x80] sm:$0xff]  ;;  %v1039_v13 = vmul.f32 %v2441_v32, %v3016_v20  ;;  %v972_v43 = vmul.f32 %v2425_v23, %v3016_v20  ;;  %v773_v12 = vpop.f32.mrf.mxu0  ;;  %2078 = vmatmul.msk.f32.gmra.mxu1 %vm333_vm1, %v1668_v7 }
 0x10d   : > { %v1241_v49 = vmul.f32 %v2456_v40, %v3018_v46  ;;  %v1175_v15 = vmul.f32 %v2446_v33, %v3018_v46  ;;  %v1474_v35 = vadd.f32 %v1442_v14, %v2931_v53  ;;  %v3059_v42 = vadd.f32 %v1376_v36, %v2942_v45  ;;  %v3064_v11 = vld [vmem:[%s3864_s4] ss:$0 sm:$0xff] }
 0x10e   : > { %v1071_v31 = vadd.f32 %v1039_v13, %v2936_v41  ;;  %v816_v53 = vadd.f32 %v3064_v11, %v815_v0  ;;  %v391_v41 = vand.u32 15, %v3021_v4  ;;  %v774_v30 = vadd.f32 %v3064_v11, %v773_v12  ;;  %v3077_v14 = vld [vmem:[#allocation2 + $0xbf] sm:$0xff] }
 0x10f   : > { %v1273_v8 = vadd.f32 %v1241_v49, %v2939_v16  ;;  %v1244_v16 = vmul.f32 %v2456_v40, %v2777_v18  ;;  %v1602_v3 = vadd.f32 %v1570_v47, %v1474_v35  ;;  %v3072_v52 = vadd.f32 %v972_v43, %v2964_v44  ;;  %3943 = vst [vmem:[#allocation21_spill] sm:$0xff] %v3077_v14 }
 0x110   : > { %v3075_v45 = vadd.f32 %v1175_v15, %v2967_v9  ;;  %v853_v49 = vmax.f32 %v816_v53, 0.0  ;;  %v387_v36 = vand.u32 15, %v3026_v39  ;;  %v3081_v4 = vadd.s32 152, %v2430_v29  ;;  %v3091_v9 = vld [vmem:[#allocation2 + $0x81] sm:$0xff] }
 0x111   : > { %v1571_v13 = vadd.f32 %v1273_v8, %v1071_v31  ;;  %v839_v7 = vmax.f32 %v774_v30, 0.0  ;;  %v1637_v0 = vadd.f32 %v2526_v24, %v1602_v3  ;;  %v3085_v47 = vmul.f32 %v2480_v51, %v1308_v28  ;;  %v3093_v43 = vld [vmem:[#allocation2 + $0x87] sm:$0xff]  ;;  %v818_v30 = vpop.f32.mrf.mxu2 }
 0x112   : > { %v3089_v44 = vmul.f32 %v2496_v62, %v2852_v57  ;;  %3944 = vst [vmem:[#allocation22_spill] sm:$0xff] %v3093_v43  ;;  %v3095_v15 = vld [vmem:[#allocation2 + $0x88] sm:$0xff]  ;;  %v941_v35 = vmul.f32 %v2420_v22, %v2763_v59  ;;  %v978_v51 = vmul.f32 %v2425_v23, %v2918_v2  ;;  %v1047_v28 = vmul.f32 %v2441_v32, %v3077_v14  ;;  %v3117_v23 = vld [vmem:[%s3865_s5 + $0x4] ss:$0 sm:$0xff] }
 0x113   : > { %3945 = vst [vmem:[#allocation23_spill] sm:$0xff] %v3095_v15  ;;  %v1669_v31 = vmax.f32 %v1637_v0, 0.0  ;;  %v1443_v8 = vmul.f32 %v2496_v62, %v3091_v9  ;;  %v1040_v12 = vmul.f32 %v2441_v32, %v3093_v43  ;;  %v1242_v53 = vmul.f32 %v2456_v40, %v3095_v15  ;;  %v3126_v32 = vld [vmem:[%s3865_s5 + $0x1] ss:$0 sm:$0xff] }
 0x114   : > { %885 = vst.msk [vmem:[#allocation2 + $0x100] sm:$0xff] %vm333_vm1, %v853_v49  ;;  %v1377_v22 = vmul.f32 %v2473_v48, %v3091_v9  ;;  %v973_v3 = vmul.f32 %v3117_v23, %v3093_v43  ;;  %v1176_v62 = vmul.f32 %v2446_v33, %v3095_v15  ;;  %v1145_v40 = vmul.f32 %v3126_v32, %v2828_v61  ;;  %v3961_v43 = vld [vmem:[#allocation8_spill] sm:$0xff] }
 0x115   : > { %871 = vst.msk [vmem:[#allocation2 + $0x90] sm:$0xff] %vm333_vm1, %v839_v7  ;;  %v1475_v48 = vadd.f32 %v1443_v8, %v3004_v55  ;;  %v1072_v49 = vadd.f32 %v1040_v12, %v3006_v19  ;;  %v1274_v7 = vadd.f32 %v1242_v53, %v3010_v5  ;;  %v3946_v0 = vand.u32 15, %v2961_v10  ;;  %2079 = vmatmul.msk.f32.gmra.mxu1 %vm333_vm1, %v1669_v31  ;;  %v3144_v8 = vld [vmem:[#allocation2 + $0xc0] sm:$0xff] }
 0x116   : > { %v819_v33 = vadd.f32 %v3064_v11, %v818_v30  ;;  %v1409_v54 = vadd.f32 %v1377_v22, %v3013_v60  ;;  %v3142_v14 = vadd.f32 %v973_v3, %v936_v56  ;;  %v1208_v2 = vadd.f32 %v1176_v62, %v1140_v37  ;;  %3949 = vst [vmem:[#allocation24_spill] sm:$0xff] %v3144_v8  ;;  %v3159_v60 = vld [vmem:[%s3865_s5 + $0x5] ss:$0 sm:$0xff] }
 0x117   : > { %vm3135_vm15 = vcmp.ne.s32.totalorder %v3946_v0, 15  ;;  %v1010_v55 = vadd.f32 %v978_v51, %v941_v35  ;;  %v1539_v19 = vsel %vm3037_vm13, %v1475_v48, 0.0  ;;  %v1508_v10 = vsel %vm3043_vm14, %v1072_v49, 0.0  ;;  %v3209_v48 = vld [vmem:[%s3865_s5 + $0xa] ss:$0 sm:$0xff] }
 0x118   : > { %v3950_v5 = vand.u32 15, %v2981_v58  ;;  %v854_v31 = vmax.f32 %v819_v33, 0.0  ;;  %v1181_v56 = vmul.f32 %v3159_v60, %v2944_v38  ;;  %v1603_v37 = vadd.f32 %v1571_v13, %v1539_v19  ;;  %v3181_v13 = vld [vmem:[%s3865_s5 + $0x9] ss:$0 sm:$0xff] }
 0x119   : > { %v1572_v63 = vadd.f32 %v1508_v10, %v1274_v7  ;;  %vm3165_vm3 = vcmp.ne.s32.totalorder %v387_v36, 0  ;;  %v3169_v58 = vadd.f32 %v1244_v16, %v1208_v2  ;;  %v3171_v51 = vadd.f32 %v1047_v28, %v1010_v55  ;;  %v3188_v2 = vld [vmem:[%s3865_s5 + $0x2] ss:$0 sm:$0xff]  ;;  %v3195_v16 = vld [vmem:[%s3865_s5 + $0x6] ss:$0 sm:$0xff] }
 0x11a   : > { %vm3152_vm2 = vcmp.ne.s32.totalorder %v3950_v5, 15  ;;  %vm3173_vm4 = vcmp.ne.s32.totalorder %v391_v41, 0  ;;  %886 = vst.msk [vmem:[#allocation2 + $0x108] sm:$0xff] %vm333_vm1, %v854_v31  ;;  %v1213_v22 = vadd.f32 %v1181_v56, %v1145_v40  ;;  %v1249_v36 = vmul.f32 %v3181_v13, %v3144_v8  ;;  %v3236_v5 = vld [vmem:[%s3865_s5 + $0x8] ss:$0 sm:$0xff] }
 0x11b   : > { %v1347_v41 = vmul.f32 %v3188_v2, %v2830_v27  ;;  %v1383_v28 = vmul.f32 %v3195_v16, %v2951_v50  ;;  %v1638_v30 = vadd.f32 %v2526_v24, %v1603_v37  ;;  %v1451_v49 = vmul.f32 %v3209_v48, %v3163_v6  ;;  %v3219_v24 = vld [vmem:[%s3865_s5] ss:$0 sm:$0xff] }
 0x11c   : > { %v3200_v3 = vld [vmem:[#allocation2 + $0x89] sm:$0xff]  ;;  %v3214_v7 = vadd.s32 120, %v2430_v29  ;;  %v3223_v0 = vmul.f32 %v3219_v24, %v3016_v20  ;;  %v3231_v10 = vld [vmem:[#allocation2 + $0x91] sm:$0xff]  ;;  %v3958_v15 = vand.u32 15, %v3081_v4 }
 0x11d   : > { %v3202_v62 = vld [vmem:[#allocation2 + $0x8f] sm:$0xff]  ;;  %v1444_v33 = vmul.f32 %v3209_v48, %v3200_v3  ;;  %v3240_v31 = vld [vmem:[#allocation2 + $0x97] sm:$0xff]  ;;  %v1670_v56 = vmax.f32 %v1638_v30, 0.0  ;;  %v1345_v37 = vmul.f32 %v3188_v2, %v3231_v10  ;;  %v1445_v50 = vmul.f32 %v3209_v48, %v3231_v10 }
 0x11e   : > { %v3204_v40 = vld [vmem:[#allocation2 + $0x90] sm:$0xff]  ;;  %v939_v55 = vmul.f32 %v3219_v24, %v3202_v62  ;;  %v1041_v20 = vmul.f32 %v3236_v5, %v3202_v62  ;;  %vm3254_vm5 = vcmp.ne.s32.totalorder %v3958_v15, 15  ;;  %v1042_v4 = vmul.f32 %v3236_v5, %v3240_v31  ;;  %v3964_v15 = vld [vmem:[#allocation18_spill] sm:$0xff] }
 0x11f   : > { %v1143_v19 = vmul.f32 %v3126_v32, %v3204_v40  ;;  %v1243_v6 = vmul.f32 %v3181_v13, %v3204_v40  ;;  %v1476_v8 = vadd.f32 %v1444_v33, %v3059_v42  ;;  %2080 = vmatmul.msk.f32.gmra.mxu1 %vm333_vm1, %v1670_v56  ;;  %v1413_v25 = vadd.f32 %v3961_v43, %v1345_v37  ;;  %v3965_v56 = vld [vmem:[#allocation9_spill] sm:$0xff] }
 0x120   : > { %v1008_v38 = vadd.f32 %v2790_v17, %v939_v55  ;;  %v1073_v18 = vadd.f32 %v1041_v20, %v3072_v52  ;;  %v1477_v29 = vadd.f32 %v1445_v50, %v1409_v54  ;;  %v940_v17 = vmul.f32 %v3219_v24, %v3240_v31  ;;  %v3963_v52 = vld [vmem:[#allocation16_spill] sm:$0xff]  ;;  %v3274_v50 = vld [vmem:[%s3866_s6] ss:$0 sm:$0xff] }
 0x121   : > { %v1211_v57 = vadd.f32 %v2837_v1, %v1143_v19  ;;  %v1275_v26 = vadd.f32 %v1243_v6, %v3075_v45  ;;  %v1604_v42 = vadd.f32 %v1572_v63, %v1476_v8  ;;  %v3962_v1 = vld [vmem:[#allocation13_spill] sm:$0xff]  ;;  %v1481_v19 = vadd.f32 %v3964_v15, %v1413_v25 }
 0x122   : > { %v1077_v33 = vadd.f32 %v3962_v1, %v1008_v38  ;;  %v1541_v20 = vsel %vm3135_vm15, %v1477_v29, 0.0  ;;  %v1009_v45 = vadd.f32 %v3965_v56, %v940_v17  ;;  %v1378_v8 = vmul.f32 %v3195_v16, %v3200_v3  ;;  %v821_v17 = vpop.f32.mrf.mxu2 }
 0x123   : > { %v1279_v55 = vadd.f32 %v3963_v52, %v1211_v57  ;;  %v1573_v43 = vadd.f32 %v1275_v26, %v1073_v18  ;;  %v1639_v38 = vadd.f32 %v3274_v50, %v1604_v42  ;;  %v1074_v57 = vadd.f32 %v1042_v4, %v3142_v14 }
 0x124   : > { %v1545_v25 = vsel %vm3152_vm2, %v1481_v19, 0.0  ;;  %v1078_v18 = vadd.f32 %v2992_v21, %v1009_v45  ;;  %v1281_v26 = vadd.f32 %v1249_v36, %v1213_v22  ;;  %v1410_v63 = vadd.f32 %v1378_v8, %v3085_v47  ;;  %v3966_v21 = vld [vmem:[#allocation14_spill] sm:$0xff] }
 0x125   : > { %v1577_v54 = vadd.f32 %v1279_v55, %v1077_v33  ;;  %v1605_v29 = vadd.f32 %v1573_v43, %v1541_v20  ;;  %v1671_v39 = vmax.f32 %v1639_v38, 0.0  ;;  %v1510_v37 = vsel %vm3165_vm3, %v1074_v57, 0.0  ;;  %v3321_v43 = vld [vmem:[#allocation2 + $0xc7] sm:$0xff]  ;;  %v3969_v57 = vld [vmem:[#allocation3_spill] sm:$0xff] }
 0x126   : > { %v1514_v42 = vsel %vm3173_vm4, %v1078_v18, 0.0  ;;  %v1574_v12 = vadd.f32 %v1510_v37, %v3169_v58  ;;  %v1415_v1 = vadd.f32 %v1383_v28, %v1347_v41  ;;  %v1478_v36 = vadd.f32 %v3089_v44, %v1410_v63  ;;  %v3971_v18 = vld [vmem:[#allocation20_spill] sm:$0xff] }
 0x127   : > { %v1609_v6 = vadd.f32 %v1577_v54, %v1545_v25  ;;  %v1640_v14 = vadd.f32 %v3274_v50, %v1605_v29  ;;  %v1578_v22 = vadd.f32 %v1514_v42, %v3966_v21  ;;  %v1579_v47 = vadd.f32 %v1281_v26, %v3171_v51  ;;  %2081 = vmatmul.msk.f32.gmra.mxu1 %vm333_vm1, %v1671_v39  ;;  %v3973_v42 = vld [vmem:[#allocation7_spill] sm:$0xff] }
 0x128   : > { %v1483_v52 = vadd.f32 %v1451_v49, %v1415_v1  ;;  %v822_v55 = vadd.f32 %v3064_v11, %v821_v17  ;;  %v388_v53 = vand.u32 15, %v3214_v7  ;;  %v1606_v41 = vadd.f32 %v1574_v12, %v1478_v36  ;;  %v3340_v17 = vld [vmem:[#allocation2 + $0xc9] sm:$0xff] }
 0x129   : > { %v1644_v33 = vadd.f32 %v3274_v50, %v1609_v6  ;;  %v1672_v35 = vmax.f32 %v1640_v14, 0.0  ;;  %v1610_v58 = vadd.f32 %v1578_v22, %v3023_v34  ;;  %v974_v28 = vmul.f32 %v3117_v23, %v3202_v62  ;;  %v3979_v51 = vld [vmem:[#allocation23_spill] sm:$0xff] }
 0x12a   : > { %v1547_v44 = vsel %vm3254_vm5, %v1483_v52, 0.0  ;;  %v855_v15 = vmax.f32 %v822_v55, 0.0  ;;  %vm3302_vm6 = vcmp.ne.s32.totalorder %v388_v53, 15  ;;  %v1043_v11 = vmul.f32 %v3236_v5, %v2763_v59 }
 0x12b   : > { %v1676_v4 = vmax.f32 %v1644_v33, 0.0  ;;  %v1645_v49 = vadd.f32 %v3274_v50, %v1610_v58  ;;  %v1641_v34 = vadd.f32 %v3274_v50, %v1606_v41  ;;  %v1611_v7 = vadd.f32 %v1579_v47, %v1547_v44  ;;  %v3974_v33 = vld [vmem:[#allocation11_spill] sm:$0xff]  ;;  %v3978_v44 = vld [vmem:[#allocation22_spill] sm:$0xff] }
 0x12c   : > { %v1006_v62 = vadd.f32 %v974_v28, %v3223_v0  ;;  %887 = vst.msk [vmem:[#allocation2 + $0x110] sm:$0xff] %vm333_vm1, %v855_v15  ;;  %v1141_v30 = vmul.f32 %v3126_v32, %v3018_v46  ;;  %v1177_v19 = vmul.f32 %v3159_v60, %v3204_v40  ;;  %v1245_v59 = vmul.f32 %v3181_v13, %v2828_v61  ;;  %v3329_v61 = vld [vmem:[#allocation2 + $0xc8] sm:$0xff] }
 0x12d   : > { %2086 = vmatmul.msk.f32.vlgmr.msra.gmra.mxu3 %vm333_vm1, %v1676_v4  ;;  %v1343_v20 = vmul.f32 %v3188_v2, %v3091_v9  ;;  %v1677_v56 = vmax.f32 %v1645_v49, 0.0  ;;  %v1673_v45 = vmax.f32 %v1641_v34, 0.0  ;;  %v1646_v0 = vadd.f32 %v3274_v50, %v1611_v7  ;;  %v3970_v9 = vld [vmem:[#allocation6_spill] sm:$0xff] }
 0x12e   : > { %v1075_v38 = vadd.f32 %v1043_v11, %v1006_v62  ;;  %v1209_v54 = vadd.f32 %v1177_v19, %v1141_v30  ;;  %v1379_v46 = vmul.f32 %v3195_v16, %v3231_v10  ;;  %v1447_v40 = vmul.f32 %v3209_v48, %v2830_v27  ;;  %v3972_v27 = vld [vmem:[#allocation5_spill] sm:$0xff] }
 0x12f   : > { %v361_v8 = vadd.s32 160, %v3969_v57  ;;  %v1678_v25 = vmax.f32 %v1646_v0, 0.0  ;;  %v942_v29 = vmul.f32 %v3219_v24, %v3970_v9  ;;  %v979_v26 = vmul.f32 %v3117_v23, %v3971_v18  ;;  %2082 = vmatmul.msk.f32.gmra.mxu1 %vm333_vm1, %v1672_v35  ;;  %v3977_v35 = vld [vmem:[#allocation19_spill] sm:$0xff] }
 0x130   : > { %v1048_v39 = vmul.f32 %v3236_v5, %v3321_v43  ;;  %v1277_v10 = vadd.f32 %v1245_v59, %v1209_v54  ;;  %v1411_v6 = vadd.f32 %v1379_v46, %v1343_v20  ;;  %v1146_v37 = vmul.f32 %v3126_v32, %v3972_v27 }
 0x131   : > { %v393_v63 = vand.u32 15, %v361_v8  ;;  %v1011_v14 = vadd.f32 %v979_v26, %v942_v29  ;;  %v1182_v12 = vmul.f32 %v3159_v60, %v3973_v42  ;;  %v1250_v1 = vmul.f32 %v3181_v13, %v3329_v61  ;;  %v3384_v26 = vld [vmem:[#allocation2 + $0xcf] sm:$0xff] }
 0x132   : > { %v1348_v21 = vmul.f32 %v3188_v2, %v3974_v33  ;;  %v1479_v22 = vadd.f32 %v1447_v40, %v1411_v6  ;;  %v1575_v36 = vadd.f32 %v1277_v10, %v1075_v38  ;;  %v1384_v52 = vmul.f32 %v3195_v16, %v3977_v35 }
 0x133   : > { %vm3348_vm7 = vcmp.ne.s32.totalorder %v393_v63, 0  ;;  %v1080_v55 = vadd.f32 %v1048_v39, %v1011_v14  ;;  %v1214_v53 = vadd.f32 %v1182_v12, %v1146_v37  ;;  %v1452_v4 = vmul.f32 %v3209_v48, %v3340_v17  ;;  %v3984_v14 = vld [vmem:[#allocation12_spill] sm:$0xff]  ;;  %v3393_v12 = vld [vmem:[#allocation2 + $0xd0] sm:$0xff] }
 0x134   : > { %v357_v58 = vadd.s32 128, %v3969_v57  ;;  %v1543_v41 = vsel %vm3302_vm6, %v1479_v22, 0.0  ;;  %v1416_v28 = vadd.f32 %v1384_v52, %v1348_v21  ;;  %v938_v15 = vmul.f32 %v3219_v24, %v3978_v44  ;;  %v3985_v22 = vld [vmem:[#allocation21_spill] sm:$0xff] }
 0x135   : > { %2087 = vmatmul.msk.f32.gmra.mxu3 %vm333_vm1, %v1677_v56  ;;  %v975_v11 = vmul.f32 %v3117_v23, %v3240_v31  ;;  %v1607_v49 = vadd.f32 %v1575_v36, %v1543_v41  ;;  %v1282_v34 = vadd.f32 %v1250_v1, %v1214_v53  ;;  %v1516_v7 = vsel %vm3348_vm7, %v1080_v55, 0.0  ;;  %v3982_v31 = vld [vmem:[#allocation4_spill] sm:$0xff]  ;;  %v3986_v55 = vld [vmem:[#allocation15_spill] sm:$0xff] }
 0x136   : > { %v389_v62 = vand.u32 15, %v357_v58  ;;  %v1484_v30 = vadd.f32 %v1452_v4, %v1416_v28  ;;  %v1044_v59 = vmul.f32 %v3236_v5, %v3970_v9  ;;  %v1142_v20 = vmul.f32 %v3126_v32, %v3979_v51  ;;  %v3983_v9 = vld [vmem:[#allocation10_spill] sm:$0xff]  ;;  %v3987_v4 = vld [vmem:[#allocation24_spill] sm:$0xff] }
 0x137   : > { %v1007_v19 = vadd.f32 %v975_v11, %v938_v15  ;;  %v1642_v56 = vadd.f32 %v3274_v50, %v1607_v49  ;;  %v1580_v0 = vadd.f32 %v1516_v7, %v1282_v34  ;;  %v1178_v54 = vmul.f32 %v3159_v60, %v3982_v31  ;;  %2083 = vmatmul.msk.f32.gmra.mxu1 %vm333_vm1, %v1673_v45  ;;  %v3405_v41 = vld [vmem:[#allocation2 + $0xd1] sm:$0xff]  ;;  %v3990_v34 = vld [vmem:[#allocation17_spill] sm:$0xff] }
 0x138   : > { %vm3371_vm8 = vcmp.ne.s32.totalorder %v389_v62, 0  ;;  %v1246_v40 = vmul.f32 %v3181_v13, %v3972_v27  ;;  %v1344_v8 = vmul.f32 %v3188_v2, %v3200_v3  ;;  %v1380_v29 = vmul.f32 %v3195_v16, %v3983_v9  ;;  %v3991_v62 = vld [vmem:[#allocation25_spill] sm:$0xff] }
 0x139   : > { %v1076_v46 = vadd.f32 %v1044_v59, %v1007_v19  ;;  %v1674_v39 = vmax.f32 %v1642_v56, 0.0  ;;  %v1612_v10 = vadd.f32 %v1580_v0, %v1484_v30  ;;  %v1210_v6 = vadd.f32 %v1178_v54, %v1142_v20  ;;  %v3417_v19 = vld [vmem:[#allocation2 + $0xd7] sm:$0xff] }
 0x13a   : > { %v1448_v63 = vmul.f32 %v3209_v48, %v3974_v33  ;;  %v1412_v37 = vadd.f32 %v1380_v29, %v1344_v8  ;;  %v362_v27 = vadd.s32 168, %v3969_v57  ;;  %v943_v3 = vmul.f32 %v3219_v24, %v3984_v14 }
 0x13b   : > { %v1512_v45 = vsel %vm3371_vm8, %v1076_v46, 0.0  ;;  %v1647_v1 = vadd.f32 %v3274_v50, %v1612_v10  ;;  %v1278_v21 = vadd.f32 %v1246_v40, %v1210_v6  ;;  %v980_v36 = vmul.f32 %v3117_v23, %v3985_v22  ;;  %v3427_v46 = vld [vmem:[#allocation2 + $0xd8] sm:$0xff]  ;;  %v3432_v40 = vld [vmem:[%s3868_s8] ss:$0 sm:$0xff] }
 0x13c   : > { %v1049_v33 = vmul.f32 %v3236_v5, %v3384_v26  ;;  %v1480_v47 = vadd.f32 %v1448_v63, %v1412_v37  ;;  %v394_v52 = vand.u32 15, %v362_v27  ;;  %v1147_v53 = vmul.f32 %v3126_v32, %v3986_v55  ;;  %v3441_v37 = vld [vmem:[#allocation2 + $0xd9] sm:$0xff] }
 0x13d   : > { %2088 = vmatmul.msk.f32.gmra.mxu3 %vm333_vm1, %v1678_v25  ;;  %v1183_v58 = vmul.f32 %v3159_v60, %v3987_v4  ;;  %v1679_v25 = vmax.f32 %v1647_v1, 0.0  ;;  %v1576_v28 = vadd.f32 %v1512_v45, %v1278_v21  ;;  %v1012_v44 = vadd.f32 %v980_v36, %v943_v3 }
 0x13e   : > { %v1251_v15 = vmul.f32 %v3181_v13, %v3393_v12  ;;  %vm3409_vm9 = vcmp.ne.s32.totalorder %v394_v52, 15  ;;  %v1349_v7 = vmul.f32 %v3188_v2, %v3990_v34  ;;  %v1385_v30 = vmul.f32 %v3195_v16, %v3991_v62 }
 0x13f   : > { %v1215_v49 = vadd.f32 %v1183_v58, %v1147_v53  ;;  %v1608_v59 = vadd.f32 %v1576_v28, %v1480_v47  ;;  %v1081_v51 = vadd.f32 %v1049_v33, %v1012_v44  ;;  %v1453_v20 = vmul.f32 %v3209_v48, %v3405_v41  ;;  %2084 = vmatmul.msk.f32.gmra.mxu1 %vm333_vm1, %v1674_v39  ;;  %v3460_v58 = vld [vmem:[#allocation2 + $0xdf] sm:$0xff] }
 0x140   : > { %v363_v56 = vadd.s32 176, %v3969_v57  ;;  %v1417_v38 = vadd.f32 %v1385_v30, %v1349_v7  ;;  %v944_v31 = vmul.f32 %v3219_v24, %v3971_v18  ;;  %v981_v54 = vmul.f32 %v3117_v23, %v3321_v43  ;;  %v1807_v3 = vpop.f32.mrf.mxu1  ;;  %v3477_v30 = vld [vmem:[#allocation2 + $0xe0] sm:$0xff] }
 0x141   : > { %v1283_v0 = vadd.f32 %v1251_v15, %v1215_v49  ;;  %v1643_v8 = vadd.f32 %v3274_v50, %v1608_v59  ;;  %v1050_v29 = vmul.f32 %v3236_v5, %v3417_v19  ;;  %v1148_v39 = vmul.f32 %v3126_v32, %v3973_v42  ;;  %v2142_v15 = vld [vmem:[%s2265_s22] sm:$0xff] }
 0x142   : > { %v395_v9 = vand.u32 15, %v363_v56  ;;  %v1485_v18 = vadd.f32 %v1453_v20, %v1417_v38  ;;  %v1013_v6 = vadd.f32 %v981_v54, %v944_v31  ;;  %v1184_v63 = vmul.f32 %v3159_v60, %v3329_v61  ;;  %v3484_v56 = vld [vmem:[#allocation2 + $0xe1] sm:$0xff] }
 0x143   : > { %v1581_v10 = vadd.f32 %v1283_v0, %v1081_v51  ;;  %v1675_v45 = vmax.f32 %v1643_v8, 0.0  ;;  %v1252_v14 = vmul.f32 %v3181_v13, %v3427_v46  ;;  %v1350_v42 = vmul.f32 %v3188_v2, %v3977_v35 }
 0x144   : > { %vm3444_vm10 = vcmp.ne.s32.totalorder %v395_v9, 0  ;;  %v1549_v1 = vsel %vm3409_vm9, %v1485_v18, 0.0  ;;  %v1082_v21 = vadd.f32 %v1050_v29, %v1013_v6  ;;  %v1216_v36 = vadd.f32 %v1184_v63, %v1148_v39  ;;  %v3500_v39 = vld [vmem:[#allocation2 + $0xe7] sm:$0xff] }
 0x145   : > { %2089 = vmatmul.msk.f32.gmra.mxu3 %vm333_vm1, %v1679_v25  ;;  %v1386_v33 = vmul.f32 %v3195_v16, %v3340_v17  ;;  %v1808_v47 = vadd.f32 %v3432_v40, %v1807_v3  ;;  %v1613_v52 = vadd.f32 %v1581_v10, %v1549_v1  ;;  %v1454_v55 = vmul.f32 %v3209_v48, %v3441_v37 }
 0x146   : > { %v364_v53 = vadd.s32 184, %v3969_v57  ;;  %v1284_v35 = vadd.f32 %v1252_v14, %v1216_v36  ;;  %v1518_v28 = vsel %vm3444_vm10, %v1082_v21, 0.0  ;;  %v945_v44 = vmul.f32 %v3219_v24, %v3985_v22 }
 0x147   : > { %v1418_v25 = vadd.f32 %v1386_v33, %v1350_v42  ;;  %v1903_v11 = vadd.f32 %v2142_v15, %v1808_v47  ;;  %v1648_v49 = vadd.f32 %v3274_v50, %v1613_v52  ;;  %v982_v7 = vmul.f32 %v3117_v23, %v3384_v26  ;;  %2085 = vmatmul.msk.f32.gmra.mxu1 %vm333_vm1, %v1675_v45  ;;  %v3511_v42 = vld [vmem:[#allocation2 + $0xe8] sm:$0xff] }
 0x148   : > { %v396_v34 = vand.u32 15, %v364_v53  ;;  %v1582_v51 = vadd.f32 %v1518_v28, %v1284_v35  ;;  %v1051_v20 = vmul.f32 %v3236_v5, %v3460_v58  ;;  %v1149_v22 = vmul.f32 %v3126_v32, %v3987_v4  ;;  %v3518_v53 = vld [vmem:[#allocation2 + $0xe9] sm:$0xff] }
 0x149   : > { %v1486_v59 = vadd.f32 %v1454_v55, %v1418_v25  ;;  %1935 = vst.msk [vmem:[%s3467_s21] sm:$0xff] %vm614_vm0, %v1903_v11  ;;  %v1680_v0 = vmax.f32 %v1648_v49, 0.0  ;;  %v1014_v31 = vadd.f32 %v982_v7, %v945_v44  ;;  %v1185_v54 = vmul.f32 %v3159_v60, %v3393_v12  ;;  %v1810_v3 = vpop.f32.mrf.mxu1  ;;  %v3533_v7 = vld [vmem:[#allocation2 + $0xef] sm:$0xff] }
 0x14a   : > { %vm3488_vm11 = vcmp.ne.s32.totalorder %v396_v34, 15  ;;  %v1253_v9 = vmul.f32 %v3181_v13, %v3477_v30  ;;  %v1351_v4 = vmul.f32 %v3188_v2, %v3991_v62  ;;  %v1387_v29 = vmul.f32 %v3195_v16, %v3405_v41 }
 0x14b   : > { %v1614_v8 = vadd.f32 %v1582_v51, %v1486_v59  ;;  %v1083_v18 = vadd.f32 %v1051_v20, %v1014_v31  ;;  %v1217_v10 = vadd.f32 %v1185_v54, %v1149_v22  ;;  %v1455_v6 = vmul.f32 %v3209_v48, %v3484_v56  ;;  %v3548_v54 = vld [vmem:[#allocation2 + $0xf0] sm:$0xff] }
 0x14c   : > { %v365_v63 = vadd.s32 192, %v3969_v57  ;;  %v1419_v27 = vadd.f32 %v1387_v29, %v1351_v4  ;;  %v946_v62 = vmul.f32 %v3219_v24, %v3321_v43  ;;  %v983_v14 = vmul.f32 %v3117_v23, %v3417_v19 }
 0x14d   : > { %2090 = vmatmul.msk.f32.gmra.mxu3 %vm333_vm1, %v1680_v0  ;;  %v1649_v45 = vadd.f32 %v3274_v50, %v1614_v8  ;;  %v1285_v1 = vadd.f32 %v1253_v9, %v1217_v10  ;;  %v1052_v36 = vmul.f32 %v3236_v5, %v3500_v39  ;;  %v1150_v33 = vmul.f32 %v3126_v32, %v3329_v61  ;;  %v2143_v61 = vld [vmem:[%s2265_s22 + $0x8] sm:$0xff] }
 0x14e   : > { %v397_v21 = vand.u32 15, %v365_v63  ;;  %v1811_v47 = vadd.f32 %v3432_v40, %v1810_v3  ;;  %v1487_v55 = vadd.f32 %v1455_v6, %v1419_v27  ;;  %v1015_v43 = vadd.f32 %v983_v14, %v946_v62  ;;  %v3558_v6 = vld [vmem:[#allocation2 + $0xf1] sm:$0xff] }
 0x14f   : > { %v1681_v52 = vmax.f32 %v1649_v45, 0.0  ;;  %v1583_v35 = vadd.f32 %v1285_v1, %v1083_v18  ;;  %v1186_v28 = vmul.f32 %v3159_v60, %v3427_v46  ;;  %v1254_v44 = vmul.f32 %v3181_v13, %v3511_v42 }
 0x150   : > { %vm3520_vm12 = vcmp.ne.s32.totalorder %v397_v21, 0  ;;  %v1904_v15 = vadd.f32 %v2143_v61, %v1811_v47  ;;  %v1551_v11 = vsel %vm3488_vm11, %v1487_v55, 0.0  ;;  %v1084_v49 = vadd.f32 %v1052_v36, %v1015_v43  ;;  %v3563_v36 = vld [vmem:[#allocation2 + $0xf7] sm:$0xff] }
 0x151   : > { %v1352_v34 = vmul.f32 %v3188_v2, %v3340_v17  ;;  %v1615_v59 = vadd.f32 %v1583_v35, %v1551_v11  ;;  %v1218_v51 = vadd.f32 %v1186_v28, %v1150_v33  ;;  %v1388_v20 = vmul.f32 %v3195_v16, %v3441_v37  ;;  %v1813_v63 = vpop.f32.mrf.mxu1  ;;  %v2144_v55 = vld [vmem:[%s2265_s22 + $0x10] sm:$0xff]  ;;  %v3579_v11 = vld [vmem:[#allocation2 + $0xf8] sm:$0xff] }
 0x152   : > { %v1456_v22 = vmul.f32 %v3209_v48, %v3518_v53  ;;  %1936 = vst.msk [vmem:[%s3467_s21 + $0x8] sm:$0xff] %vm614_vm0, %v1904_v15  ;;  %v1520_v0 = vsel %vm3520_vm12, %v1084_v49, 0.0  ;;  %v366_v38 = vadd.s32 200, %v3969_v57  ;;  %v947_v17 = vmul.f32 %v3219_v24, %v3384_v26 }
 0x153   : > { %v984_v31 = vmul.f32 %v3117_v23, %v3460_v58  ;;  %v1650_v8 = vadd.f32 %v3274_v50, %v1615_v59  ;;  %v1286_v9 = vadd.f32 %v1254_v44, %v1218_v51  ;;  %v1420_v4 = vadd.f32 %v1388_v20, %v1352_v34 }
 0x154   : > { %v1053_v29 = vmul.f32 %v3236_v5, %v3533_v7  ;;  %v1151_v10 = vmul.f32 %v3126_v32, %v3393_v12  ;;  %v1187_v26 = vmul.f32 %v3159_v60, %v3477_v30  ;;  %v1255_v62 = vmul.f32 %v3181_v13, %v3548_v54 }
 0x155   : > { %2091 = vmatmul.msk.f32.gmra.mxu3 %vm333_vm1, %v1681_v52  ;;  %v1016_v18 = vadd.f32 %v984_v31, %v947_v17  ;;  %v1488_v45 = vadd.f32 %v1456_v22, %v1420_v4  ;;  %v1584_v27 = vadd.f32 %v1520_v0, %v1286_v9  ;;  %v1814_v14 = vadd.f32 %v3432_v40, %v1813_v63  ;;  %v3594_v17 = vld [vmem:[#allocation2 + $0xf9] sm:$0xff] }
 0x156   : > { %v1682_v3 = vmax.f32 %v1650_v8, 0.0  ;;  %v398_v1 = vand.u32 15, %v366_v38  ;;  %v1219_v21 = vadd.f32 %v1187_v26, %v1151_v10  ;;  %v1353_v33 = vmul.f32 %v3188_v2, %v3405_v41 }
 0x157   : > { %v1085_v12 = vadd.f32 %v1053_v29, %v1016_v18  ;;  %v1389_v47 = vmul.f32 %v3195_v16, %v3484_v56  ;;  %v1457_v52 = vmul.f32 %v3209_v48, %v3558_v6  ;;  %v1905_v43 = vadd.f32 %v2144_v55, %v1814_v14 }
 0x158   : > { %v1287_v35 = vadd.f32 %v1255_v62, %v1219_v21  ;;  %v367_v25 = vadd.s32 208, %v3969_v57  ;;  %v948_v28 = vmul.f32 %v3219_v24, %v3417_v19  ;;  %v1616_v44 = vadd.f32 %v1584_v27, %v1488_v45  ;;  %v2145_v45 = vld [vmem:[%s2265_s22 + $0x18] sm:$0xff] }
 0x159   : > { %v1421_v61 = vadd.f32 %v1389_v47, %v1353_v33  ;;  %v985_v15 = vmul.f32 %v3117_v23, %v3500_v39  ;;  %v1054_v41 = vmul.f32 %v3236_v5, %v3563_v36  ;;  %1937 = vst.msk [vmem:[%s3467_s21 + $0x10] sm:$0xff] %vm614_vm0, %v1905_v43  ;;  %vm3583_vm13 = vcmp.ne.s32.totalorder %v398_v1, 15  ;;  %v1816_v8 = vpop.f32.mrf.mxu1 }
 0x15a   : > { %v399_v34 = vand.u32 15, %v367_v25  ;;  %v1152_v19 = vmul.f32 %v3126_v32, %v3427_v46  ;;  %v1188_v59 = vmul.f32 %v3159_v60, %v3511_v42  ;;  %v1585_v20 = vadd.f32 %v1287_v35, %v1085_v12  ;;  %v3617_v12 = vld [vmem:[#allocation2 + $0xff] sm:$0xff] }
 0x15b   : > { %v1489_v51 = vadd.f32 %v1457_v52, %v1421_v61  ;;  %v1017_v22 = vadd.f32 %v985_v15, %v948_v28  ;;  %v1256_v38 = vmul.f32 %v3181_v13, %v3579_v11  ;;  %v1354_v31 = vmul.f32 %v3188_v2, %v3441_v37  ;;  %v3624_v52 = vld [vmem:[#allocation2 + $0x100] sm:$0xff] }
 0x15c   : > { %v1220_v0 = vadd.f32 %v1188_v59, %v1152_v19  ;;  %v1390_v46 = vmul.f32 %v3195_v16, %v3518_v53  ;;  %v1651_v9 = vadd.f32 %v3274_v50, %v1616_v44  ;;  %v1817_v18 = vadd.f32 %v3432_v40, %v1816_v8  ;;  %v3630_v35 = vld [vmem:[#allocation2 + $0x101] sm:$0xff] }
 0x15d   : > { %2092 = vmatmul.msk.f32.gmra.mxu3 %vm333_vm1, %v1682_v3  ;;  %v1553_v4 = vsel %vm3583_vm13, %v1489_v51, 0.0  ;;  %v1086_v29 = vadd.f32 %v1054_v41, %v1017_v22  ;;  %vm3604_vm14 = vcmp.ne.s32.totalorder %v399_v34, 0  ;;  %v1458_v37 = vmul.f32 %v3209_v48, %v3594_v17 }
 0x15e   : > { %v1617_v26 = vadd.f32 %v1585_v20, %v1553_v4  ;;  %v1422_v63 = vadd.f32 %v1390_v46, %v1354_v31  ;;  %v1906_v27 = vadd.f32 %v2145_v45, %v1817_v18  ;;  %v1288_v62 = vadd.f32 %v1256_v38, %v1220_v0  ;;  %v2146_v31 = vld [vmem:[%s2265_s22 + $0x20] sm:$0xff] }
 0x15f   : > { %v949_v14 = vmul.f32 %v3219_v24, %v3460_v58  ;;  %v986_v3 = vmul.f32 %v3117_v23, %v3533_v7  ;;  %v1683_v1 = vmax.f32 %v1651_v9, 0.0  ;;  %v1522_v21 = vsel %vm3604_vm14, %v1086_v29, 0.0  ;;  %v1158_v29 = vld [vmem:[#allocation2 + $0x108] sm:$0xff] }
 0x160   : > { %v1153_v33 = vmul.f32 %v3126_v32, %v3477_v30  ;;  %1938 = vst.msk [vmem:[%s3467_s21 + $0x18] sm:$0xff] %vm614_vm0, %v1906_v27  ;;  %v368_v47 = vadd.s32 216, %v3969_v57  ;;  %v1189_v58 = vmul.f32 %v3159_v60, %v3548_v54  ;;  %v1652_v55 = vadd.f32 %v3274_v50, %v1617_v26 }
 0x161   : > { %v1490_v43 = vadd.f32 %v1458_v37, %v1422_v63  ;;  %v1355_v25 = vmul.f32 %v3188_v2, %v3484_v56  ;;  %v1391_v30 = vmul.f32 %v3195_v16, %v3558_v6  ;;  %v1586_v28 = vadd.f32 %v1522_v21, %v1288_v62  ;;  %v1819_v41 = vpop.f32.mrf.mxu1  ;;  %v954_v56 = vld [vmem:[#allocation2 + $0x107] sm:$0xff] }
 0x162   : > { %v1018_v44 = vadd.f32 %v986_v3, %v949_v14  ;;  %v1055_v61 = vmul.f32 %v3236_v5, %v3617_v12  ;;  %v950_v15 = vmul.f32 %v3219_v24, %v3500_v39  ;;  %v1221_v49 = vadd.f32 %v1189_v58, %v1153_v33  ;;  %v3664_v14 = vld [vmem:[#allocation2 + $0x109] sm:$0xff] }
 0x163   : > { %v1257_v34 = vmul.f32 %v3181_v13, %v3624_v52  ;;  %v369_v19 = vadd.s32 224, %v3969_v57  ;;  %v987_v59 = vmul.f32 %v3117_v23, %v3563_v36  ;;  %v1820_v51 = vadd.f32 %v3432_v40, %v1819_v41 }
 0x164   : > { %v400_v20 = vand.u32 15, %v368_v47  ;;  %v1423_v22 = vadd.f32 %v1391_v30, %v1355_v25  ;;  %v1459_v0 = vmul.f32 %v3209_v48, %v3630_v35  ;;  %v1154_v39 = vmul.f32 %v3126_v32, %v3511_v42 }
 0x165   : > { %2093 = vmatmul.msk.f32.gmra.mxu3 %vm333_vm1, %v1683_v1  ;;  %v1190_v38 = vmul.f32 %v3159_v60, %v3579_v11  ;;  %v1907_v46 = vadd.f32 %v2146_v31, %v1820_v51  ;;  %v1684_v8 = vmax.f32 %v1652_v55, 0.0  ;;  %v1019_v9 = vadd.f32 %v987_v59, %v950_v15 }
 0x166   : > { %v1056_v4 = vmul.f32 %v3236_v5, %v954_v56  ;;  %v1618_v18 = vadd.f32 %v1586_v28, %v1490_v43  ;;  %v1087_v10 = vadd.f32 %v1055_v61, %v1018_v44  ;;  %v1289_v26 = vadd.f32 %v1257_v34, %v1221_v49  ;;  %v2147_v61 = vld [vmem:[%s2265_s22 + $0x28] sm:$0xff] }
 0x167   : > { %v401_v63 = vand.u32 15, %v369_v19  ;;  %1939 = vst.msk [vmem:[%s3467_s21 + $0x20] sm:$0xff] %vm614_vm0, %v1907_v46  ;;  %vm3656_vm15 = vcmp.ne.s32.totalorder %v400_v20, 15  ;;  %v1491_v42 = vadd.f32 %v1459_v0, %v1423_v22  ;;  %v1222_v45 = vadd.f32 %v1190_v38, %v1154_v39  ;;  %v3685_v49 = vld [vmem:[#allocation2 + $0x10f] sm:$0xff] }
 0x168   : > { %v1258_v27 = vmul.f32 %v3181_v13, %v1158_v29  ;;  %v1356_v62 = vmul.f32 %v3188_v2, %v3518_v53  ;;  %v1392_v3 = vmul.f32 %v3195_v16, %v3594_v17  ;;  %v1088_v1 = vadd.f32 %v1056_v4, %v1019_v9  ;;  %v1159_v20 = vld [vmem:[#allocation2 + $0x110] sm:$0xff] }
 0x169   : > { %v1822_v21 = vpop.f32.mrf.mxu1  ;;  %v1653_v33 = vadd.f32 %v3274_v50, %v1618_v18  ;;  %v1587_v47 = vadd.f32 %v1289_v26, %v1087_v10  ;;  %vm3669_vm2 = vcmp.ne.s32.totalorder %v401_v63, 0  ;;  %v1555_v43 = vsel %vm3656_vm15, %v1491_v42, 0.0  ;;  %v1361_v39 = vld [vmem:[#allocation2 + $0x111] sm:$0xff] }
 0x16a   : > { %v1823_v55 = vadd.f32 %v3432_v40, %v1822_v21  ;;  %v1460_v53 = vmul.f32 %v3209_v48, %v3664_v14  ;;  %v1290_v25 = vadd.f32 %v1258_v27, %v1222_v45  ;;  %v1424_v30 = vadd.f32 %v1392_v3, %v1356_v62  ;;  %v1023_v42 = vld [vmem:[#allocation2 + $0x117] sm:$0xff] }
 0x16b   : > { %v951_v28 = vmul.f32 %v3219_v24, %v3533_v7  ;;  %v988_v44 = vmul.f32 %v3117_v23, %v3617_v12  ;;  %v1524_v41 = vsel %vm3669_vm2, %v1088_v1, 0.0  ;;  %v1155_v34 = vmul.f32 %v3126_v32, %v3548_v54  ;;  %v2148_v1 = vld [vmem:[%s2265_s22 + $0x30] sm:$0xff] }
 0x16c   : > { %v1908_v15 = vadd.f32 %v2147_v61, %v1823_v55  ;;  %v1191_v19 = vmul.f32 %v3159_v60, %v3624_v52  ;;  %v1685_v59 = vmax.f32 %v1653_v33, 0.0  ;;  %v1619_v51 = vadd.f32 %v1587_v47, %v1555_v43  ;;  %v1226_v55 = vld [vmem:[#allocation2 + $0x118] sm:$0xff] }
 0x16d   : > { %2094 = vmatmul.msk.f32.gmra.mxu3 %vm333_vm1, %v1684_v8  ;;  %v1357_v7 = vmul.f32 %v3188_v2, %v3558_v6  ;;  %v1393_v22 = vmul.f32 %v3195_v16, %v3630_v35  ;;  %v370_v0 = vadd.s32 232, %v3969_v57  ;;  %v1492_v54 = vadd.f32 %v1460_v53, %v1424_v30  ;;  %v2152_v30 = vld [vmem:[%s2265_s22 + $0x50] sm:$0xff] }
 0x16e   : > { %1940 = vst.msk [vmem:[%s3467_s21 + $0x28] sm:$0xff] %vm614_vm0, %v1908_v15  ;;  %v1588_v38 = vadd.f32 %v1524_v41, %v1290_v25  ;;  %v1020_v31 = vadd.f32 %v988_v44, %v951_v28  ;;  %v1057_v46 = vmul.f32 %v3236_v5, %v3685_v49  ;;  %v1223_v8 = vadd.f32 %v1191_v19, %v1155_v34  ;;  %v1428_v34 = vld [vmem:[#allocation2 + $0x119] sm:$0xff] }
 0x16f   : > { %v1259_v6 = vmul.f32 %v3181_v13, %v1159_v20  ;;  %v952_v9 = vmul.f32 %v3219_v24, %v3563_v36  ;;  %v989_v4 = vmul.f32 %v3117_v23, %v954_v56  ;;  %v1654_v10 = vadd.f32 %v3274_v50, %v1619_v51 }
 0x170   : > { %v1425_v26 = vadd.f32 %v1393_v22, %v1357_v7  ;;  %v1461_v63 = vmul.f32 %v3209_v48, %v1361_v39  ;;  %v371_v37 = vadd.s32 240, %v3969_v57  ;;  %v402_v27 = vand.u32 15, %v370_v0 }
 0x171   : > { %v1825_v18 = vpop.f32.mrf.mxu1  ;;  %v1620_v62 = vadd.f32 %v1588_v38, %v1492_v54  ;;  %v1089_v3 = vadd.f32 %v1057_v46, %v1020_v31  ;;  %v1156_v36 = vmul.f32 %v3126_v32, %v3579_v11  ;;  %v1192_v56 = vmul.f32 %v3159_v60, %v1158_v29 }
 0x172   : > { %v1826_v45 = vadd.f32 %v3432_v40, %v1825_v18  ;;  %v1291_v33 = vadd.f32 %v1259_v6, %v1223_v8  ;;  %v1021_v47 = vadd.f32 %v989_v4, %v952_v9  ;;  %v1058_v58 = vmul.f32 %v3236_v5, %v1023_v42  ;;  %v1024_v18 = vld [vmem:[#allocation2 + $0x11f] sm:$0xff] }
 0x173   : > { %v1686_v43 = vmax.f32 %v1654_v10, 0.0  ;;  %v1493_v53 = vadd.f32 %v1461_v63, %v1425_v26  ;;  %v403_v25 = vand.u32 15, %v371_v37  ;;  %vm3716_vm3 = vcmp.ne.s32.totalorder %v402_v27, 15  ;;  %v1227_v10 = vld [vmem:[#allocation2 + $0x120] sm:$0xff] }
 0x174   : > { %v1909_v21 = vadd.f32 %v2148_v1, %v1826_v45  ;;  %v1655_v11 = vadd.f32 %v3274_v50, %v1620_v62  ;;  %v1224_v29 = vadd.f32 %v1192_v56, %v1156_v36  ;;  %v1260_v28 = vmul.f32 %v3181_v13, %v1226_v55 }
 0x175   : > { %2095 = vmatmul.msk.f32.gmra.mxu3 %vm333_vm1, %v1685_v59  ;;  %v1589_v44 = vadd.f32 %v1291_v33, %v1089_v3  ;;  %v1090_v61 = vadd.f32 %v1058_v58, %v1021_v47  ;;  %v1358_v15 = vmul.f32 %v3188_v2, %v3594_v17  ;;  %v1394_v41 = vmul.f32 %v3195_v16, %v3664_v14  ;;  %v2149_v17 = vld [vmem:[%s2265_s22 + $0x38] sm:$0xff]  ;;  %v2151_v33 = vld [vmem:[%s2265_s22 + $0x48] sm:$0xff] }
 0x176   : > { %1941 = vst.msk [vmem:[%s3467_s21 + $0x30] sm:$0xff] %vm614_vm0, %v1909_v21  ;;  %v1557_v59 = vsel %vm3716_vm3, %v1493_v53, 0.0  ;;  %vm3729_vm4 = vcmp.ne.s32.totalorder %v403_v25, 0  ;;  %v1687_v22 = vmax.f32 %v1655_v11, 0.0  ;;  %v1292_v0 = vadd.f32 %v1260_v28, %v1224_v29 }
 0x177   : > { %v1462_v54 = vmul.f32 %v3209_v48, %v1428_v34  ;;  %v1621_v31 = vadd.f32 %v1589_v44, %v1557_v59  ;;  %v1426_v14 = vadd.f32 %v1394_v41, %v1358_v15  ;;  %v1526_v46 = vsel %vm3729_vm4, %v1090_v61, 0.0  ;;  %v2153_v61 = vld [vmem:[%s2265_s22 + $0x58] sm:$0xff]  ;;  %v2154_v34 = vld [vmem:[%s2265_s22 + $0x60] sm:$0xff] }
 0x178   : > { %v953_v8 = vmul.f32 %v3219_v24, %v3617_v12  ;;  %v990_v6 = vmul.f32 %v3117_v23, %v3685_v49  ;;  %v1157_v9 = vmul.f32 %v3126_v32, %v3624_v52  ;;  %v1193_v4 = vmul.f32 %v3159_v60, %v1159_v20  ;;  %v1429_v23 = vld [vmem:[#allocation2 + $0x121] sm:$0xff] }
 0x179   : > { %v1828_v19 = vpop.f32.mrf.mxu1  ;;  %v1359_v26 = vmul.f32 %v3188_v2, %v3630_v35  ;;  %v1395_v63 = vmul.f32 %v3195_v16, %v1361_v39  ;;  %v372_v24 = vadd.s32 248, %v3969_v57  ;;  %v1656_v12 = vadd.f32 %v3274_v50, %v1621_v31  ;;  %v2150_v57 = vld [vmem:[%s2265_s22 + $0x40] sm:$0xff] }
 0x17a   : > { %v1829_v7 = vadd.f32 %v3432_v40, %v1828_v19  ;;  %v1494_v32 = vadd.f32 %v1462_v54, %v1426_v14  ;;  %v1590_v52 = vadd.f32 %v1526_v46, %v1292_v0  ;;  %v1022_v49 = vadd.f32 %v990_v6, %v953_v8  ;;  %v2155_v0 = vld [vmem:[%s2265_s22 + $0x68] sm:$0xff]  ;;  %v2157_v6 = vld [vmem:[%s2265_s22 + $0x70] sm:$0xff] }
 0x17b   : > { %v1059_v20 = vmul.f32 %v3236_v5, %v1024_v18  ;;  %v1225_v37 = vadd.f32 %v1193_v4, %v1157_v9  ;;  %v1261_v2 = vmul.f32 %v3181_v13, %v1227_v10  ;;  %v1427_v35 = vadd.f32 %v1395_v63, %v1359_v26  ;;  %v2158_v4 = vld [vmem:[%s2265_s22 + $0x90] sm:$0xff] }
 0x17c   : > { %v1910_v38 = vadd.f32 %v2149_v17, %v1829_v7  ;;  %v1463_v39 = vmul.f32 %v3209_v48, %v1429_v23  ;;  %v404_v42 = vand.u32 15, %v372_v24  ;;  %v1688_v27 = vmax.f32 %v1656_v12, 0.0  ;;  %v2156_v17 = vld [vmem:[%s2265_s22 + $0x88] sm:$0xff]  ;;  %v2159_v23 = vld [vmem:[%s2265_s22 + $0x78] sm:$0xff] }
 0x17d   : > { %2096 = vmatmul.msk.f32.gmra.mxu3 %vm333_vm1, %v1686_v43  ;;  %v1622_v62 = vadd.f32 %v1590_v52, %v1494_v32  ;;  %v1091_v3 = vadd.f32 %v1059_v20, %v1022_v49  ;;  %v1293_v36 = vadd.f32 %v1261_v2, %v1225_v37  ;;  %v2160_v32 = vld [vmem:[%s2265_s22 + $0x98] sm:$0xff]  ;;  %v2161_v2 = vld [vmem:[%s2265_s22 + $0x80] sm:$0xff] }
 0x17e   : > { %1942 = vst.msk [vmem:[%s3467_s21 + $0x38] sm:$0xff] %vm614_vm0, %v1910_v38  ;;  %v1495_v5 = vadd.f32 %v1463_v39, %v1427_v35  ;;  %vm468_vm5 = vcmp.ne.s32.totalorder %v404_v42, 15  ;;  %v2162_v35 = vld [vmem:[%s2265_s22 + $0xa0] sm:$0xff] }
 0x17f   : > { %v1657_v56 = vadd.f32 %v3274_v50, %v1622_v62  ;;  %v1591_v48 = vadd.f32 %v1293_v36, %v1091_v3  ;;  %v2164_v36 = vld [vmem:[%s2265_s22 + $0xb0] sm:$0xff] }
 0x180   : > { %v1559_v21 = vsel %vm468_vm5, %v1495_v5, 0.0 }
 0x181   : > { %v1831_v60 = vpop.f32.mrf.mxu1  ;;  %v1689_v58 = vmax.f32 %v1657_v56, 0.0  ;;  %v1623_v55 = vadd.f32 %v1591_v48, %v1559_v21  ;;  %v2165_v48 = vld [vmem:[%s2265_s22 + $0xb8] sm:$0xff] }
 0x182   : > { %v1832_v16 = vadd.f32 %v3432_v40, %v1831_v60 }
 0x183   : > { %v1658_v53 = vadd.f32 %v3274_v50, %v1623_v55 }
 0x184   : > { %v1911_v45 = vadd.f32 %v2150_v57, %v1832_v16 }
 0x185   : > { %2097 = vmatmul.msk.f32.gmra.mxu3 %vm333_vm1, %v1687_v22  ;;  %v1690_v29 = vmax.f32 %v1658_v53, 0.0  ;;  %v2167_v53 = vld [vmem:[%s2265_s22 + $0xc8] sm:$0xff] }
 0x186   : > { %1943 = vst.msk [vmem:[%s3467_s21 + $0x40] sm:$0xff] %vm614_vm0, %v1911_v45  ;;  %v2163_v45 = vld [vmem:[%s2265_s22 + $0xa8] sm:$0xff] }
 0x189   : > { %v1834_v13 = vpop.f32.mrf.mxu1 }
 0x18a   : > { %v1835_v1 = vadd.f32 %v3432_v40, %v1834_v13 }
 0x18c   : > { %v1912_v47 = vadd.f32 %v2151_v33, %v1835_v1 }
 0x18d   : > { %2098 = vmatmul.msk.f32.gmra.mxu3 %vm333_vm1, %v1688_v27 }
 0x18e   : > { %1944 = vst.msk [vmem:[%s3467_s21 + $0x48] sm:$0xff] %vm614_vm0, %v1912_v47  ;;  %v2166_v47 = vld [vmem:[%s2265_s22 + $0xc0] sm:$0xff] }
 0x192   : > { %v1837_v43 = vpop.f32.mrf.mxu1 }
 0x193   : > { %v1838_v25 = vadd.f32 %v3432_v40, %v1837_v43 }
 0x195   : > { %2099 = vmatmul.msk.f32.gmra.mxu3 %vm333_vm1, %v1689_v58  ;;  %v1913_v11 = vadd.f32 %v2152_v30, %v1838_v25 }
 0x197   : > { %1945 = vst.msk [vmem:[%s3467_s21 + $0x50] sm:$0xff] %vm614_vm0, %v1913_v11 }
 0x19c   : > { %v1840_v28 = vpop.f32.mrf.mxu1 }
 0x19d   : > { %2100 = vmatmul.msk.f32.gmra.mxu3 %vm333_vm1, %v1690_v29  ;;  %v1841_v44 = vadd.f32 %v3432_v40, %v1840_v28  ;;  %v2168_v29 = vld [vmem:[%s2265_s22 + $0xd0] sm:$0xff] }
 0x19f   : > { %v1914_v15 = vadd.f32 %v2153_v61, %v1841_v44 }
 0x1a1   : > { %1946 = vst.msk [vmem:[%s3467_s21 + $0x58] sm:$0xff] %vm614_vm0, %v1914_v15  ;;  %v2169_v15 = vld [vmem:[%s2265_s22 + $0xd8] sm:$0xff] }
 0x1a4   : > { %v1843_v50 = vpop.f32.mrf.mxu1 }
 0x1a5   : > { %v1844_v41 = vadd.f32 %v3432_v40, %v1843_v50 }
 0x1a7   : > { %v1915_v19 = vadd.f32 %v2154_v34, %v1844_v41 }
 0x1a9   : > { %1947 = vst.msk [vmem:[%s3467_s21 + $0x60] sm:$0xff] %vm614_vm0, %v1915_v19  ;;  %v2170_v19 = vld [vmem:[%s2265_s22 + $0xe0] sm:$0xff] }
 0x1ac   : > { %v1846_v59 = vpop.f32.mrf.mxu1 }
 0x1ad   : > { %v1847_v51 = vadd.f32 %v3432_v40, %v1846_v59 }
 0x1af   : > { %v1916_v54 = vadd.f32 %v2155_v0, %v1847_v51 }
 0x1b0   : > { %v1858_v7 = vpop.f32.mrf.mxu3 }
 0x1b1   : > { %v1859_v22 = vadd.f32 %v3432_v40, %v1858_v7  ;;  %1948 = vst.msk [vmem:[%s3467_s21 + $0x68] sm:$0xff] %vm614_vm0, %v1916_v54 }
 0x1b3   : > { %v1920_v38 = vadd.f32 %v2156_v17, %v1859_v22  ;;  %v2171_v22 = vld [vmem:[%s2265_s22 + $0xe8] sm:$0xff] }
 0x1b4   : > { %v1849_v31 = vpop.f32.mrf.mxu1 }
 0x1b5   : > { %1952 = vst.msk [vmem:[%s3467_s21 + $0x88] sm:$0xff] %vm614_vm0, %v1920_v38  ;;  %v1850_v14 = vadd.f32 %v3432_v40, %v1849_v31  ;;  %v2172_v38 = vld [vmem:[%s2265_s22 + $0xf0] sm:$0xff] }
 0x1b7   : > { %v1917_v9 = vadd.f32 %v2157_v6, %v1850_v14 }
 0x1b8   : > { %v1861_v46 = vpop.f32.mrf.mxu3 }
 0x1b9   : > { %v1862_v8 = vadd.f32 %v3432_v40, %v1861_v46  ;;  %1949 = vst.msk [vmem:[%s3467_s21 + $0x70] sm:$0xff] %vm614_vm0, %v1917_v9 }
 0x1bb   : > { %v1921_v18 = vadd.f32 %v2158_v4, %v1862_v8  ;;  %v2173_v8 = vld [vmem:[%s2265_s22 + $0xf8] sm:$0xff] }
 0x1bc   : > { %v1852_v10 = vpop.f32.mrf.mxu1 }
 0x1bd   : > { %1953 = vst.msk [vmem:[%s3467_s21 + $0x90] sm:$0xff] %vm614_vm0, %v1921_v18  ;;  %v1853_v26 = vadd.f32 %v3432_v40, %v1852_v10 }
 0x1bf   : > { %v1918_v12 = vadd.f32 %v2159_v23, %v1853_v26 }
 0x1c0   : > { %v1864_v63 = vpop.f32.mrf.mxu3 }
 0x1c1   : > { %v1865_v24 = vadd.f32 %v3432_v40, %v1864_v63  ;;  %1950 = vst.msk [vmem:[%s3467_s21 + $0x78] sm:$0xff] %vm614_vm0, %v1918_v12 }
 0x1c3   : > { %v1922_v52 = vadd.f32 %v2160_v32, %v1865_v24 }
 0x1c4   : > { %v1855_v60 = vpop.f32.mrf.mxu1 }
 0x1c5   : > { %1954 = vst.msk [vmem:[%s3467_s21 + $0x98] sm:$0xff] %vm614_vm0, %v1922_v52  ;;  %v1856_v49 = vadd.f32 %v3432_v40, %v1855_v60 }
 0x1c7   : > { %v1919_v16 = vadd.f32 %v2161_v2, %v1856_v49 }
 0x1c8   : > { %v1867_v20 = vpop.f32.mrf.mxu3 }
 0x1c9   : > { %v1868_v37 = vadd.f32 %v3432_v40, %v1867_v20  ;;  %1951 = vst.msk [vmem:[%s3467_s21 + $0x80] sm:$0xff] %vm614_vm0, %v1919_v16 }
 0x1cb   : > { %v1923_v39 = vadd.f32 %v2162_v35, %v1868_v37 }
 0x1cd   : > { %1955 = vst.msk [vmem:[%s3467_s21 + $0xa0] sm:$0xff] %vm614_vm0, %v1923_v39 }
 0x1d0   : > { %v1870_v42 = vpop.f32.mrf.mxu3 }
 0x1d1   : > { %v1871_v57 = vadd.f32 %v3432_v40, %v1870_v42 }
 0x1d3   : > { %v1924_v27 = vadd.f32 %v2163_v45, %v1871_v57 }
 0x1d5   : > { %1956 = vst.msk [vmem:[%s3467_s21 + $0xa8] sm:$0xff] %vm614_vm0, %v1924_v27 }
 0x1d8   : > { %v1873_v62 = vpop.f32.mrf.mxu3 }
 0x1d9   : > { %v1874_v3 = vadd.f32 %v3432_v40, %v1873_v62 }
 0x1db   : > { %v1925_v5 = vadd.f32 %v2164_v36, %v1874_v3 }
 0x1dd   : > { %1957 = vst.msk [vmem:[%s3467_s21 + $0xb0] sm:$0xff] %vm614_vm0, %v1925_v5 }
 0x1e0   : > { %v1876_v13 = vpop.f32.mrf.mxu3 }
 0x1e1   : > { %v1877_v56 = vadd.f32 %v3432_v40, %v1876_v13 }
 0x1e3   : > { %v1926_v1 = vadd.f32 %v2165_v48, %v1877_v56 }
 0x1e5   : > { %1958 = vst.msk [vmem:[%s3467_s21 + $0xb8] sm:$0xff] %vm614_vm0, %v1926_v1 }
 0x1e8   : > { %v1879_v21 = vpop.f32.mrf.mxu3 }
 0x1e9   : > { %v1880_v33 = vadd.f32 %v3432_v40, %v1879_v21 }
 0x1eb   : > { %v1927_v58 = vadd.f32 %v2166_v47, %v1880_v33 }
 0x1ed   : > { %1959 = vst.msk [vmem:[%s3467_s21 + $0xc0] sm:$0xff] %vm614_vm0, %v1927_v58 }
 0x1f0   : > { %v1882_v55 = vpop.f32.mrf.mxu3 }
 0x1f1   : > { %v1883_v43 = vadd.f32 %v3432_v40, %v1882_v55 }
 0x1f3   : > { %v1928_v25 = vadd.f32 %v2167_v53, %v1883_v43 }
 0x1f5   : > { %1960 = vst.msk [vmem:[%s3467_s21 + $0xc8] sm:$0xff] %vm614_vm0, %v1928_v25 }
 0x1f8   : > { %v1885_v30 = vpop.f32.mrf.mxu3 }
 0x1f9   : > { %v1886_v11 = vadd.f32 %v3432_v40, %v1885_v30 }
 0x1fb   : > { %v1929_v28 = vadd.f32 %v2168_v29, %v1886_v11 }
 0x1fd   : > { %1961 = vst.msk [vmem:[%s3467_s21 + $0xd0] sm:$0xff] %vm614_vm0, %v1929_v28 }
 0x200   : > { %v1888_v44 = vpop.f32.mrf.mxu3 }
 0x201   : > { %v1889_v61 = vadd.f32 %v3432_v40, %v1888_v44 }
 0x203   : > { %v1930_v50 = vadd.f32 %v2169_v15, %v1889_v61 }
 0x205   : > { %1962 = vst.msk [vmem:[%s3467_s21 + $0xd8] sm:$0xff] %vm614_vm0, %v1930_v50 }
 0x208   : > { %v1891_v41 = vpop.f32.mrf.mxu3 }
 0x209   : > { %v1892_v34 = vadd.f32 %v3432_v40, %v1891_v41 }
 0x20b   : > { %v1931_v59 = vadd.f32 %v2170_v19, %v1892_v34 }
 0x20d   : > { %1963 = vst.msk [vmem:[%s3467_s21 + $0xe0] sm:$0xff] %vm614_vm0, %v1931_v59 }
 0x210   : > { %v1894_v51 = vpop.f32.mrf.mxu3 }
 0x211   : > { %v1895_v7 = vadd.f32 %v3432_v40, %v1894_v51 }
 0x213   : > { %v1932_v0 = vadd.f32 %v2171_v22, %v1895_v7 }
 0x215   : > { %1964 = vst.msk [vmem:[%s3467_s21 + $0xe8] sm:$0xff] %vm614_vm0, %v1932_v0 }
 0x218   : > { %v1897_v54 = vpop.f32.mrf.mxu3 }
 0x219   : > { %v1898_v17 = vadd.f32 %v3432_v40, %v1897_v54 }
 0x21b   : > { %v1933_v31 = vadd.f32 %v2172_v38, %v1898_v17 }
 0x21d   : > { %1965 = vst.msk [vmem:[%s3467_s21 + $0xf0] sm:$0xff] %vm614_vm0, %v1933_v31 }
 0x220   : > { %v1900_v14 = vpop.f32.mrf.mxu3 }
 0x221   : > { %v1901_v46 = vadd.f32 %v3432_v40, %v1900_v14 }
 0x223   : > { %v1934_v6 = vadd.f32 %v2173_v8, %v1901_v46 }
 0x225   : > { %1966 = vst.msk [vmem:[%s3467_s21 + $0xf8] sm:$0xff] %vm614_vm0, %v1934_v6 }
 0x226 PF: > { %s19_s30 = sadd.s32 1, %s2180_s30  }
 0x227   : > { %p16_p4 = scmp.ge.s32.totalorder %s19_s30, 4  }
 0x229   :  { %18 = sbr.rel (!%p16_p4) target bundleno = 1 (0x1), region = 88 }

</bundles_post_ra>
